<compile_context>
chip_gen: v7x
topology: tpu7x:2x2x1
jax: 0.10.0
libtpu: 0.0.40
codegen_flags: <defaults>
</compile_context>

<pallas_src>
import jax
import jax.numpy as jnp
from jax.experimental import pallas as pl
from jax.experimental.pallas import tpu as pltpu

BF16 = jnp.bfloat16
F32 = jnp.float32


def _compiler_params():
    return pltpu.CompilerParams(
        dimension_semantics=("parallel",),      # batch grid -> megacore on v7x
        vmem_limit_bytes=32 * 1024 * 1024,
    )


# --------------------------------------------------------------------------- kernels
def _conv_pair_kernel(p_ref, w1_ref, b1_ref, wb_ref, bb_ref, h1_ref, hb_ref):
    """Per-sample: h1 = relu(p @ w1 + b1), hb = p @ wb + bb (shared patch slab).

    p_ref: (HW, 9*Cin) bf16   w*: (9*Cin, D) bf16   b*: (1, D) f32   outs: (HW, D) bf16
    """
    p = p_ref[...]
    h1 = jnp.dot(p, w1_ref[...], preferred_element_type=F32) + b1_ref[...]
    h1 = jnp.maximum(h1, 0.0)                                   # conv1 + BN + ReLU
    hb = jnp.dot(p, wb_ref[...], preferred_element_type=F32) + bb_ref[...]  # branch conv
    h1_ref[...] = h1.astype(h1_ref.dtype)
    hb_ref[...] = hb.astype(hb_ref.dtype)


def _conv_add_pool_kernel(p2_ref, hb_ref, w2_ref, b2_ref, o_ref):
    """Per-sample: relu(conv2) + branch, then 2x2 maxpool over the 4 pooling phases.

    p2_ref: (4, Q, 9*D) bf16   hb_ref: (4, Q, D) bf16   w2: (9*D, D) bf16
    b2: (1, D) f32             o_ref: (Q, D) bf16        (Q = (H//2)*(W//2))
    """
    acc = None
    for k in range(4):                                          # static unroll over phases
        z = jnp.dot(p2_ref[k], w2_ref[...], preferred_element_type=F32) + b2_ref[...]
        z = jnp.maximum(z, 0.0)                                 # conv2 + BN + ReLU
        s = z + hb_ref[k].astype(F32)                           # residual add
        acc = s if acc is None else jnp.maximum(acc, s)         # MaxPool2d(2)
    o_ref[...] = acc.astype(o_ref.dtype)


def _head_kernel(p_ref, w3_ref, b3_ref, wl_ref, bl_ref, o_ref):
    """Per-sample: conv3(stride2,valid)+BN+ReLU at the 9 output positions,
    MaxPool2d(3), Linear(64,10), Softmax.

    p_ref: (9, 288) bf16  w3: (288, 64) bf16  b3: (1, 64) f32
    wl: (64, 10) f32      bl: (1, 10) f32     o_ref: (1, 10) f32
    """
    z = jnp.dot(p_ref[...], w3_ref[...], preferred_element_type=F32) + b3_ref[...]  # (9, 64)
    z = jnp.maximum(z, 0.0)
    pooled = jnp.max(z, axis=0, keepdims=True)                                       # (1, 64)
    logits = jnp.dot(pooled, wl_ref[...], preferred_element_type=F32) + bl_ref[...]  # (1, 10)
    m = jnp.max(logits, axis=1, keepdims=True)
    e = jnp.exp(logits - m)
    o_ref[...] = e * pl.reciprocal(jnp.sum(e, axis=1, keepdims=True), approx=True)


# --------------------------------------------------------------------------- pallas wrappers
def conv_pair(p1, w1, b1, wb, bb):
    n, hw, kc = p1.shape
    d = w1.shape[-1]
    const2 = lambda i: (0, 0)
    return pl.pallas_call(
        _conv_pair_kernel,
        grid=(n,),
        in_specs=[
            pl.BlockSpec((None, hw, kc), lambda i: (i, 0, 0)),
            pl.BlockSpec((kc, d), const2),
            pl.BlockSpec((1, d), const2),
            pl.BlockSpec((kc, d), const2),
            pl.BlockSpec((1, d), const2),
        ],
        out_specs=[
            pl.BlockSpec((None, hw, d), lambda i: (i, 0, 0)),
            pl.BlockSpec((None, hw, d), lambda i: (i, 0, 0)),
        ],
        out_shape=[
            jax.ShapeDtypeStruct((n, hw, d), BF16),
            jax.ShapeDtypeStruct((n, hw, d), BF16),
        ],
        compiler_params=_compiler_params(),
    )(p1, w1, b1, wb, bb)


def conv_add_pool(p2, hb, w2, b2):
    n, _, q, kd = p2.shape
    d = w2.shape[-1]
    const2 = lambda i: (0, 0)
    return pl.pallas_call(
        _conv_add_pool_kernel,
        grid=(n,),
        in_specs=[
            pl.BlockSpec((None, 4, q, kd), lambda i: (i, 0, 0, 0)),
            pl.BlockSpec((None, 4, q, d), lambda i: (i, 0, 0, 0)),
            pl.BlockSpec((kd, d), const2),
            pl.BlockSpec((1, d), const2),
        ],
        out_specs=pl.BlockSpec((None, q, d), lambda i: (i, 0, 0)),
        out_shape=jax.ShapeDtypeStruct((n, q, d), BF16),
        compiler_params=_compiler_params(),
    )(p2, hb, w2, b2)


def head_call(p3, w3, b3, wl, bl):
    n, pos, kc = p3.shape
    const2 = lambda i: (0, 0)
    out = pl.pallas_call(
        _head_kernel,
        grid=(n,),
        in_specs=[
            pl.BlockSpec((None, pos, kc), lambda i: (i, 0, 0)),
            pl.BlockSpec((kc, 64), const2),
            pl.BlockSpec((1, 64), const2),
            pl.BlockSpec((64, 10), const2),
            pl.BlockSpec((1, 10), const2),
        ],
        out_specs=pl.BlockSpec((None, 1, 10), lambda i: (i, 0, 0)),
        out_shape=jax.ShapeDtypeStruct((n, 1, 10), F32),
        compiler_params=_compiler_params(),
    )(p3, w3, b3, wl, bl)
    return out.reshape(n, 10)


# --------------------------------------------------------------------------- XLA glue (im2col / phases / BN fold)
def _im2col_same(x):
    """x: (N,H,W,C) -> (N, H*W, 9*C); feature order (kh, kw, c) matches flattened HWIO weights."""
    n, h, w, c = x.shape
    xp = jnp.pad(x, ((0, 0), (1, 1), (1, 1), (0, 0)))
    taps = [xp[:, kh:kh + h, kw:kw + w, :] for kh in range(3) for kw in range(3)]
    return jnp.concatenate(taps, axis=-1).reshape(n, h * w, 9 * c)


def _im2col_stride2_valid(x):
    """x: (N,H,W,C) -> (N, Ho*Wo, 9*C) patches of a 3x3 / stride-2 / no-pad conv."""
    n, h, w, c = x.shape
    ho = (h - 3) // 2 + 1
    wo = (w - 3) // 2 + 1
    taps = [x[:, kh:kh + 2 * (ho - 1) + 1:2, kw:kw + 2 * (wo - 1) + 1:2, :]
            for kh in range(3) for kw in range(3)]
    return jnp.concatenate(taps, axis=-1).reshape(n, ho * wo, 9 * c), ho, wo


def _phase_split(x):
    """x: (N,H,W,C) -> (N, 4, (H//2)*(W//2), C): rows grouped by 2x2 pooling phase (dh,dw)."""
    n, h, w, c = x.shape
    ho, wo = h // 2, w // 2
    x = x.reshape(n, ho, 2, wo, 2, c).transpose(0, 2, 4, 1, 3, 5)
    return x.reshape(n, 4, ho * wo, c)


def _fold_bn(w, b, bn, eps=1e-5):
    """Fold inference-mode BatchNorm2d into flattened conv weights (9*Cin, D) / bias (1, D)."""
    gamma, beta, mean, var = bn
    scale = gamma / jnp.sqrt(var + eps)
    return w * scale, b * scale + (beta - mean * scale)


# --------------------------------------------------------------------------- network
def res_block(x, p):
    """res_net: (conv-BN-ReLU-conv-BN-ReLU)(x) + conv(x), then MaxPool2d(2).  x: (N,H,W,Cin)."""
    n, h, w, _ = x.shape
    w1, b1 = _fold_bn(p["w1"], p["b1"], p["bn1"])
    w2, b2 = _fold_bn(p["w2"], p["b2"], p["bn2"])
    d = w1.shape[-1]

    p1 = _im2col_same(x).astype(BF16)                                   # (N, HW, 9*Cin)
    h1, hb = conv_pair(p1, w1.astype(BF16), b1, p["wb"].astype(BF16), p["bb"])
    p2 = _phase_split(_im2col_same(h1.reshape(n, h, w, d)).reshape(n, h, w, 9 * d))
    hb_ph = _phase_split(hb.reshape(n, h, w, d))
    out = conv_add_pool(p2, hb_ph, w2.astype(BF16), b2)                 # (N, Ho*Wo, D)
    return out.reshape(n, h // 2, w // 2, d)


def head(x, p):
    """Conv2d(32,64,3,stride=2) + BN + ReLU + MaxPool2d(3) + Linear(64,10) + Softmax."""
    w3, b3 = _fold_bn(p["w3"], p["b3"], p["bn3"])
    p3, ho, wo = _im2col_stride2_valid(x)
    assert ho == 3 and wo == 3, "MaxPool2d(3) + view(-1, 64) expects a 3x3 map (28x28 input)"
    return head_call(p3.astype(BF16), w3.astype(BF16), b3, p["wl"], p["bl"])


def my_net_forward(x_nchw, params):
    x = jnp.transpose(x_nchw, (0, 2, 3, 1)).astype(F32)   # NCHW -> NHWC (channels on lanes)
    x = res_block(x, params["res1"])                      # (N, 14, 14, 16)
    x = res_block(x, params["res2"])                      # (N, 7, 7, 32)
    return head(x, params["head"])                        # (N, 10)


# --------------------------------------------------------------------------- deterministic parameter init
def init_params(key):
    keys = iter(jax.random.split(key, 32))

    def conv_wb(cin, cout):
        s = 1.0 / (cin * 9) ** 0.5                        # PyTorch Conv2d default bound
        w = jax.random.uniform(next(keys), (3, 3, cin, cout), F32, -s, s)
        b = jax.random.uniform(next(keys), (1, cout), F32, -s, s)
        return w.reshape(9 * cin, cout), b                # HWIO flattened -> (9*Cin, Cout)

    def bn(c):
        gamma = 1.0 + 0.1 * jax.random.normal(next(keys), (c,), F32)
        beta = 0.1 * jax.random.normal(next(keys), (c,), F32)
        return (gamma, beta, jnp.zeros((c,), F32), jnp.ones((c,), F32))

    def res_params(cin, d):
        w1, b1 = conv_wb(cin, d)
        w2, b2 = conv_wb(d, d)
        wb, bb = conv_wb(cin, d)
        return {"w1": w1, "b1": b1, "bn1": bn(d),
                "w2": w2, "b2": b2, "bn2": bn(d),
                "wb": wb, "bb": bb}

    params = {"res1": res_params(1, 16), "res2": res_params(16, 32)}
    w3, b3 = conv_wb(32, 64)
    s = 1.0 / 64 ** 0.5                                   # PyTorch Linear default bound
    wl = jax.random.uniform(next(keys), (64, 10), F32, -s, s)
    bl = jax.random.uniform(next(keys), (1, 10), F32, -s, s)
    params["head"] = {"w3": w3, "b3": b3, "bn3": bn(64), "wl": wl, "bl": bl}
    return params


if __name__ == "__main__":
    key = jax.random.PRNGKey(0)
    k_x, k_p = jax.random.split(key)
    # MNIST-like shapes (required so the head's view(-1, 64) sees a 1x1 spatial map).
    x = jax.random.normal(k_x, (2, 1, 28, 28), F32)       # NCHW, matching the PyTorch spec
    params = init_params(k_p)

    out = jax.jit(my_net_forward)(x, params)
    out = jax.block_until_ready(out)

    assert out.shape == (2, 10), out.shape
    row_sums = jnp.sum(out, axis=1)
    # tolerance covers bf16 matmul operands + approx-EUP reciprocal in the softmax
    assert bool(jnp.all(jnp.abs(row_sums - 1.0) < 5e-3)), row_sums
    print("KERNEL_OK")
</pallas_src>

<mosaic_0001>
module attributes {stable_mosaic.version = 11 : i64} {
  func.func @_conv_pair_kernel(%arg0: i32, %arg1: memref<1x784x9xbf16, #tpu.memory_space<vmem>>, %arg2: memref<9x16xbf16, #tpu.memory_space<vmem>>, %arg3: memref<1x16xf32, #tpu.memory_space<vmem>>, %arg4: memref<9x16xbf16, #tpu.memory_space<vmem>>, %arg5: memref<1x16xf32, #tpu.memory_space<vmem>>, %arg6: memref<1x784x16xbf16, #tpu.memory_space<vmem>>, %arg7: memref<1x784x16xbf16, #tpu.memory_space<vmem>>) attributes {dimension_semantics = [#tpu.dimension_semantics<parallel>], iteration_bounds = array<i64: 2>, scalar_prefetch = 0 : i64, scratch_operands = 0 : i64, tpu.core_type = #tpu.core_type<tc>, window_params = [{transform_indices = @transform_0, window_bounds = array<i64: 1, 784, 9>}, {pipeline_mode = #tpu.pipeline_mode<synchronous>, transform_indices = @transform_1, window_bounds = array<i64: 9, 16>}, {pipeline_mode = #tpu.pipeline_mode<synchronous>, transform_indices = @transform_2, window_bounds = array<i64: 1, 16>}, {pipeline_mode = #tpu.pipeline_mode<synchronous>, transform_indices = @transform_3, window_bounds = array<i64: 9, 16>}, {pipeline_mode = #tpu.pipeline_mode<synchronous>, transform_indices = @transform_4, window_bounds = array<i64: 1, 16>}, {transform_indices = @transform_5, window_bounds = array<i64: 1, 784, 16>}, {transform_indices = @transform_6, window_bounds = array<i64: 1, 784, 16>}]} {
    %c0 = arith.constant 0 : index
    %c0_0 = arith.constant 0 : index
    %c0_1 = arith.constant 0 : index
    %0 = vector.load %arg1[%c0, %c0_0, %c0_1] : memref<1x784x9xbf16, #tpu.memory_space<vmem>>, vector<1x784x9xbf16>
    %1 = vector.shape_cast %0 : vector<1x784x9xbf16> to vector<784x9xbf16>
    %c0_2 = arith.constant 0 : index
    %c0_3 = arith.constant 0 : index
    %2 = vector.load %arg2[%c0_2, %c0_3] : memref<9x16xbf16, #tpu.memory_space<vmem>>, vector<9x16xbf16>
    %cst = arith.constant dense<0.000000e+00> : vector<784x16xf32>
    %3 = tpu.matmul %1, %2, %cst {dimension_numbers = #tpu.dot_dimension_numbers<[1], [0], [0], [1], [0, 0, 1, 1], [], []>} : vector<784x9xbf16>, vector<9x16xbf16>, vector<784x16xf32> -> vector<784x16xf32>
    %c0_4 = arith.constant 0 : index
    %c0_5 = arith.constant 0 : index
    %4 = vector.load %arg3[%c0_4, %c0_5] : memref<1x16xf32, #tpu.memory_space<vmem>>, vector<1x16xf32>
    %5 = vector.broadcast %4 : vector<1x16xf32> to vector<784x16xf32>
    %6 = arith.addf %3, %5 : vector<784x16xf32>
    %cst_6 = arith.constant 0.000000e+00 : f32
    %7 = vector.broadcast %cst_6 : f32 to vector<784x16xf32>
    %8 = arith.maximumf %6, %7 : vector<784x16xf32>
    %c0_7 = arith.constant 0 : index
    %c0_8 = arith.constant 0 : index
    %9 = vector.load %arg4[%c0_7, %c0_8] : memref<9x16xbf16, #tpu.memory_space<vmem>>, vector<9x16xbf16>
    %cst_9 = arith.constant dense<0.000000e+00> : vector<784x16xf32>
    %10 = tpu.matmul %1, %9, %cst_9 {dimension_numbers = #tpu.dot_dimension_numbers<[1], [0], [0], [1], [0, 0, 1, 1], [], []>} : vector<784x9xbf16>, vector<9x16xbf16>, vector<784x16xf32> -> vector<784x16xf32>
    %c0_10 = arith.constant 0 : index
    %c0_11 = arith.constant 0 : index
    %11 = vector.load %arg5[%c0_10, %c0_11] : memref<1x16xf32, #tpu.memory_space<vmem>>, vector<1x16xf32>
    %12 = vector.broadcast %11 : vector<1x16xf32> to vector<784x16xf32>
    %13 = arith.addf %10, %12 : vector<784x16xf32>
    %14 = arith.truncf %8 : vector<784x16xf32> to vector<784x16xbf16>
    %c0_12 = arith.constant 0 : index
    %c0_13 = arith.constant 0 : index
    %c0_14 = arith.constant 0 : index
    %15 = vector.load %arg6[%c0_12, %c0_13, %c0_14] : memref<1x784x16xbf16, #tpu.memory_space<vmem>>, vector<1x784x16xbf16>
    %16 = vector.shape_cast %15 : vector<1x784x16xbf16> to vector<784x16xbf16>
    %17 = vector.shape_cast %14 : vector<784x16xbf16> to vector<1x784x16xbf16>
    tpu.vector_store %arg6[%c0_12, %c0_13, %c0_14], %17 {strides = array<i32>} : memref<1x784x16xbf16, #tpu.memory_space<vmem>>, vector<1x784x16xbf16>,
    %18 = arith.truncf %13 : vector<784x16xf32> to vector<784x16xbf16>
    %c0_15 = arith.constant 0 : index
    %c0_16 = arith.constant 0 : index
    %c0_17 = arith.constant 0 : index
    %19 = vector.load %arg7[%c0_15, %c0_16, %c0_17] : memref<1x784x16xbf16, #tpu.memory_space<vmem>>, vector<1x784x16xbf16>
    %20 = vector.shape_cast %19 : vector<1x784x16xbf16> to vector<784x16xbf16>
    %21 = vector.shape_cast %18 : vector<784x16xbf16> to vector<1x784x16xbf16>
    tpu.vector_store %arg7[%c0_15, %c0_16, %c0_17], %21 {strides = array<i32>} : memref<1x784x16xbf16, #tpu.memory_space<vmem>>, vector<1x784x16xbf16>,
    return
  }
  func.func @transform_0(%arg0: i32) -> (i32, i32, i32) {
    %c0_i32 = arith.constant 0 : i32
    %c0_i32_0 = arith.constant 0 : i32
    %c0_i32_1 = arith.constant 0 : i32
    return %arg0, %c0_i32, %c0_i32_0 : i32, i32, i32
  }
  func.func @transform_1(%arg0: i32) -> (i32, i32) {
    %c0_i32 = arith.constant 0 : i32
    %c0_i32_0 = arith.constant 0 : i32
    %c0_i32_1 = arith.constant 0 : i32
    return %c0_i32, %c0_i32_0 : i32, i32
  }
  func.func @transform_2(%arg0: i32) -> (i32, i32) {
    %c0_i32 = arith.constant 0 : i32
    %c0_i32_0 = arith.constant 0 : i32
    %c0_i32_1 = arith.constant 0 : i32
    return %c0_i32, %c0_i32_0 : i32, i32
  }
  func.func @transform_3(%arg0: i32) -> (i32, i32) {
    %c0_i32 = arith.constant 0 : i32
    %c0_i32_0 = arith.constant 0 : i32
    %c0_i32_1 = arith.constant 0 : i32
    return %c0_i32, %c0_i32_0 : i32, i32
  }
  func.func @transform_4(%arg0: i32) -> (i32, i32) {
    %c0_i32 = arith.constant 0 : i32
    %c0_i32_0 = arith.constant 0 : i32
    %c0_i32_1 = arith.constant 0 : i32
    return %c0_i32, %c0_i32_0 : i32, i32
  }
  func.func @transform_5(%arg0: i32) -> (i32, i32, i32) {
    %c0_i32 = arith.constant 0 : i32
    %c0_i32_0 = arith.constant 0 : i32
    %c0_i32_1 = arith.constant 0 : i32
    return %arg0, %c0_i32, %c0_i32_0 : i32, i32, i32
  }
  func.func @transform_6(%arg0: i32) -> (i32, i32, i32) {
    %c0_i32 = arith.constant 0 : i32
    %c0_i32_0 = arith.constant 0 : i32
    %c0_i32_1 = arith.constant 0 : i32
    return %arg0, %c0_i32, %c0_i32_0 : i32, i32, i32
  }
}

module attributes {stable_mosaic.version = 11 : i64} {
  func.func @_conv_add_pool_kernel(%arg0: i32, %arg1: memref<1x4x196x144xbf16, #tpu.memory_space<vmem>>, %arg2: memref<1x4x196x16xbf16, #tpu.memory_space<vmem>>, %arg3: memref<144x16xbf16, #tpu.memory_space<vmem>>, %arg4: memref<1x16xf32, #tpu.memory_space<vmem>>, %arg5: memref<1x196x16xbf16, #tpu.memory_space<vmem>>) attributes {dimension_semantics = [#tpu.dimension_semantics<parallel>], iteration_bounds = array<i64: 2>, scalar_prefetch = 0 : i64, scratch_operands = 0 : i64, tpu.core_type = #tpu.core_type<tc>, window_params = [{transform_indices = @transform_0, window_bounds = array<i64: 1, 4, 196, 144>}, {transform_indices = @transform_1, window_bounds = array<i64: 1, 4, 196, 16>}, {pipeline_mode = #tpu.pipeline_mode<synchronous>, transform_indices = @transform_2, window_bounds = array<i64: 144, 16>}, {pipeline_mode = #tpu.pipeline_mode<synchronous>, transform_indices = @transform_3, window_bounds = array<i64: 1, 16>}, {transform_indices = @transform_4, window_bounds = array<i64: 1, 196, 16>}]} {
    %c0 = arith.constant 0 : index
    %c0_0 = arith.constant 0 : index
    %c0_1 = arith.constant 0 : index
    %c0_2 = arith.constant 0 : index
    %0 = vector.load %arg1[%c0, %c0_0, %c0_1, %c0_2] : memref<1x4x196x144xbf16, #tpu.memory_space<vmem>>, vector<1x1x196x144xbf16>
    %1 = vector.shape_cast %0 : vector<1x1x196x144xbf16> to vector<196x144xbf16>
    %c0_3 = arith.constant 0 : index
    %c0_4 = arith.constant 0 : index
    %2 = vector.load %arg3[%c0_3, %c0_4] : memref<144x16xbf16, #tpu.memory_space<vmem>>, vector<144x16xbf16>
    %cst = arith.constant dense<0.000000e+00> : vector<196x16xf32>
    %3 = tpu.matmul %1, %2, %cst {dimension_numbers = #tpu.dot_dimension_numbers<[1], [0], [0], [1], [0, 0, 1, 1], [], []>} : vector<196x144xbf16>, vector<144x16xbf16>, vector<196x16xf32> -> vector<196x16xf32>
    %c0_5 = arith.constant 0 : index
    %c0_6 = arith.constant 0 : index
    %4 = vector.load %arg4[%c0_5, %c0_6] : memref<1x16xf32, #tpu.memory_space<vmem>>, vector<1x16xf32>
    %5 = vector.broadcast %4 : vector<1x16xf32> to vector<196x16xf32>
    %6 = arith.addf %3, %5 : vector<196x16xf32>
    %cst_7 = arith.constant 0.000000e+00 : f32
    %7 = vector.broadcast %cst_7 : f32 to vector<196x16xf32>
    %8 = arith.maximumf %6, %7 : vector<196x16xf32>
    %c0_8 = arith.constant 0 : index
    %c0_9 = arith.constant 0 : index
    %c0_10 = arith.constant 0 : index
    %c0_11 = arith.constant 0 : index
    %9 = vector.load %arg2[%c0_8, %c0_9, %c0_10, %c0_11] : memref<1x4x196x16xbf16, #tpu.memory_space<vmem>>, vector<1x1x196x16xbf16>
    %10 = vector.shape_cast %9 : vector<1x1x196x16xbf16> to vector<196x16xbf16>
    %11 = arith.extf %10 : vector<196x16xbf16> to vector<196x16xf32>
    %12 = arith.addf %8, %11 : vector<196x16xf32>
    %c0_12 = arith.constant 0 : index
    %c1 = arith.constant 1 : index
    %c0_13 = arith.constant 0 : index
    %c0_14 = arith.constant 0 : index
    %13 = vector.load %arg1[%c0_12, %c1, %c0_13, %c0_14] : memref<1x4x196x144xbf16, #tpu.memory_space<vmem>>, vector<1x1x196x144xbf16>
    %14 = vector.shape_cast %13 : vector<1x1x196x144xbf16> to vector<196x144xbf16>
    %c0_15 = arith.constant 0 : index
    %c0_16 = arith.constant 0 : index
    %15 = vector.load %arg3[%c0_15, %c0_16] : memref<144x16xbf16, #tpu.memory_space<vmem>>, vector<144x16xbf16>
    %cst_17 = arith.constant dense<0.000000e+00> : vector<196x16xf32>
    %16 = tpu.matmul %14, %15, %cst_17 {dimension_numbers = #tpu.dot_dimension_numbers<[1], [0], [0], [1], [0, 0, 1, 1], [], []>} : vector<196x144xbf16>, vector<144x16xbf16>, vector<196x16xf32> -> vector<196x16xf32>
    %c0_18 = arith.constant 0 : index
    %c0_19 = arith.constant 0 : index
    %17 = vector.load %arg4[%c0_18, %c0_19] : memref<1x16xf32, #tpu.memory_space<vmem>>, vector<1x16xf32>
    %18 = vector.broadcast %17 : vector<1x16xf32> to vector<196x16xf32>
    %19 = arith.addf %16, %18 : vector<196x16xf32>
    %cst_20 = arith.constant 0.000000e+00 : f32
    %20 = vector.broadcast %cst_20 : f32 to vector<196x16xf32>
    %21 = arith.maximumf %19, %20 : vector<196x16xf32>
    %c0_21 = arith.constant 0 : index
    %c1_22 = arith.constant 1 : index
    %c0_23 = arith.constant 0 : index
    %c0_24 = arith.constant 0 : index
    %22 = vector.load %arg2[%c0_21, %c1_22, %c0_23, %c0_24] : memref<1x4x196x16xbf16, #tpu.memory_space<vmem>>, vector<1x1x196x16xbf16>
    %23 = vector.shape_cast %22 : vector<1x1x196x16xbf16> to vector<196x16xbf16>
    %24 = arith.extf %23 : vector<196x16xbf16> to vector<196x16xf32>
    %25 = arith.addf %21, %24 : vector<196x16xf32>
    %26 = arith.maximumf %12, %25 : vector<196x16xf32>
    %c0_25 = arith.constant 0 : index
    %c2 = arith.constant 2 : index
    %c0_26 = arith.constant 0 : index
    %c0_27 = arith.constant 0 : index
    %27 = vector.load %arg1[%c0_25, %c2, %c0_26, %c0_27] : memref<1x4x196x144xbf16, #tpu.memory_space<vmem>>, vector<1x1x196x144xbf16>
    %28 = vector.shape_cast %27 : vector<1x1x196x144xbf16> to vector<196x144xbf16>
    %c0_28 = arith.constant 0 : index
    %c0_29 = arith.constant 0 : index
    %29 = vector.load %arg3[%c0_28, %c0_29] : memref<144x16xbf16, #tpu.memory_space<vmem>>, vector<144x16xbf16>
    %cst_30 = arith.constant dense<0.000000e+00> : vector<196x16xf32>
    %30 = tpu.matmul %28, %29, %cst_30 {dimension_numbers = #tpu.dot_dimension_numbers<[1], [0], [0], [1], [0, 0, 1, 1], [], []>} : vector<196x144xbf16>, vector<144x16xbf16>, vector<196x16xf32> -> vector<196x16xf32>
    %c0_31 = arith.constant 0 : index
    %c0_32 = arith.constant 0 : index
    %31 = vector.load %arg4[%c0_31, %c0_32] : memref<1x16xf32, #tpu.memory_space<vmem>>, vector<1x16xf32>
    %32 = vector.broadcast %31 : vector<1x16xf32> to vector<196x16xf32>
    %33 = arith.addf %30, %32 : vector<196x16xf32>
    %cst_33 = arith.constant 0.000000e+00 : f32
    %34 = vector.broadcast %cst_33 : f32 to vector<196x16xf32>
    %35 = arith.maximumf %33, %34 : vector<196x16xf32>
    %c0_34 = arith.constant 0 : index
    %c2_35 = arith.constant 2 : index
    %c0_36 = arith.constant 0 : index
    %c0_37 = arith.constant 0 : index
    %36 = vector.load %arg2[%c0_34, %c2_35, %c0_36, %c0_37] : memref<1x4x196x16xbf16, #tpu.memory_space<vmem>>, vector<1x1x196x16xbf16>
    %37 = vector.shape_cast %36 : vector<1x1x196x16xbf16> to vector<196x16xbf16>
    %38 = arith.extf %37 : vector<196x16xbf16> to vector<196x16xf32>
    %39 = arith.addf %35, %38 : vector<196x16xf32>
    %40 = arith.maximumf %26, %39 : vector<196x16xf32>
    %c0_38 = arith.constant 0 : index
    %c3 = arith.constant 3 : index
    %c0_39 = arith.constant 0 : index
    %c0_40 = arith.constant 0 : index
    %41 = vector.load %arg1[%c0_38, %c3, %c0_39, %c0_40] : memref<1x4x196x144xbf16, #tpu.memory_space<vmem>>, vector<1x1x196x144xbf16>
    %42 = vector.shape_cast %41 : vector<1x1x196x144xbf16> to vector<196x144xbf16>
    %c0_41 = arith.constant 0 : index
    %c0_42 = arith.constant 0 : index
    %43 = vector.load %arg3[%c0_41, %c0_42] : memref<144x16xbf16, #tpu.memory_space<vmem>>, vector<144x16xbf16>
    %cst_43 = arith.constant dense<0.000000e+00> : vector<196x16xf32>
    %44 = tpu.matmul %42, %43, %cst_43 {dimension_numbers = #tpu.dot_dimension_numbers<[1], [0], [0], [1], [0, 0, 1, 1], [], []>} : vector<196x144xbf16>, vector<144x16xbf16>, vector<196x16xf32> -> vector<196x16xf32>
    %c0_44 = arith.constant 0 : index
    %c0_45 = arith.constant 0 : index
    %45 = vector.load %arg4[%c0_44, %c0_45] : memref<1x16xf32, #tpu.memory_space<vmem>>, vector<1x16xf32>
    %46 = vector.broadcast %45 : vector<1x16xf32> to vector<196x16xf32>
    %47 = arith.addf %44, %46 : vector<196x16xf32>
    %cst_46 = arith.constant 0.000000e+00 : f32
    %48 = vector.broadcast %cst_46 : f32 to vector<196x16xf32>
    %49 = arith.maximumf %47, %48 : vector<196x16xf32>
    %c0_47 = arith.constant 0 : index
    %c3_48 = arith.constant 3 : index
    %c0_49 = arith.constant 0 : index
    %c0_50 = arith.constant 0 : index
    %50 = vector.load %arg2[%c0_47, %c3_48, %c0_49, %c0_50] : memref<1x4x196x16xbf16, #tpu.memory_space<vmem>>, vector<1x1x196x16xbf16>
    %51 = vector.shape_cast %50 : vector<1x1x196x16xbf16> to vector<196x16xbf16>
    %52 = arith.extf %51 : vector<196x16xbf16> to vector<196x16xf32>
    %53 = arith.addf %49, %52 : vector<196x16xf32>
    %54 = arith.maximumf %40, %53 : vector<196x16xf32>
    %55 = arith.truncf %54 : vector<196x16xf32> to vector<196x16xbf16>
    %c0_51 = arith.constant 0 : index
    %c0_52 = arith.constant 0 : index
    %c0_53 = arith.constant 0 : index
    %56 = vector.load %arg5[%c0_51, %c0_52, %c0_53] : memref<1x196x16xbf16, #tpu.memory_space<vmem>>, vector<1x196x16xbf16>
    %57 = vector.shape_cast %56 : vector<1x196x16xbf16> to vector<196x16xbf16>
    %58 = vector.shape_cast %55 : vector<196x16xbf16> to vector<1x196x16xbf16>
    tpu.vector_store %arg5[%c0_51, %c0_52, %c0_53], %58 {strides = array<i32>} : memref<1x196x16xbf16, #tpu.memory_space<vmem>>, vector<1x196x16xbf16>,
    return
  }
  func.func @transform_0(%arg0: i32) -> (i32, i32, i32, i32) {
    %c0_i32 = arith.constant 0 : i32
    %c0_i32_0 = arith.constant 0 : i32
    %c0_i32_1 = arith.constant 0 : i32
    %c0_i32_2 = arith.constant 0 : i32
    return %arg0, %c0_i32, %c0_i32_0, %c0_i32_1 : i32, i32, i32, i32
  }
  func.func @transform_1(%arg0: i32) -> (i32, i32, i32, i32) {
    %c0_i32 = arith.constant 0 : i32
    %c0_i32_0 = arith.constant 0 : i32
    %c0_i32_1 = arith.constant 0 : i32
    %c0_i32_2 = arith.constant 0 : i32
    return %arg0, %c0_i32, %c0_i32_0, %c0_i32_1 : i32, i32, i32, i32
  }
  func.func @transform_2(%arg0: i32) -> (i32, i32) {
    %c0_i32 = arith.constant 0 : i32
    %c0_i32_0 = arith.constant 0 : i32
    %c0_i32_1 = arith.constant 0 : i32
    return %c0_i32, %c0_i32_0 : i32, i32
  }
  func.func @transform_3(%arg0: i32) -> (i32, i32) {
    %c0_i32 = arith.constant 0 : i32
    %c0_i32_0 = arith.constant 0 : i32
    %c0_i32_1 = arith.constant 0 : i32
    return %c0_i32, %c0_i32_0 : i32, i32
  }
  func.func @transform_4(%arg0: i32) -> (i32, i32, i32) {
    %c0_i32 = arith.constant 0 : i32
    %c0_i32_0 = arith.constant 0 : i32
    %c0_i32_1 = arith.constant 0 : i32
    return %arg0, %c0_i32, %c0_i32_0 : i32, i32, i32
  }
}

module attributes {stable_mosaic.version = 11 : i64} {
  func.func @_conv_pair_kernel(%arg0: i32, %arg1: memref<1x196x144xbf16, #tpu.memory_space<vmem>>, %arg2: memref<144x32xbf16, #tpu.memory_space<vmem>>, %arg3: memref<1x32xf32, #tpu.memory_space<vmem>>, %arg4: memref<144x32xbf16, #tpu.memory_space<vmem>>, %arg5: memref<1x32xf32, #tpu.memory_space<vmem>>, %arg6: memref<1x196x32xbf16, #tpu.memory_space<vmem>>, %arg7: memref<1x196x32xbf16, #tpu.memory_space<vmem>>) attributes {dimension_semantics = [#tpu.dimension_semantics<parallel>], iteration_bounds = array<i64: 2>, scalar_prefetch = 0 : i64, scratch_operands = 0 : i64, tpu.core_type = #tpu.core_type<tc>, window_params = [{transform_indices = @transform_0, window_bounds = array<i64: 1, 196, 144>}, {pipeline_mode = #tpu.pipeline_mode<synchronous>, transform_indices = @transform_1, window_bounds = array<i64: 144, 32>}, {pipeline_mode = #tpu.pipeline_mode<synchronous>, transform_indices = @transform_2, window_bounds = array<i64: 1, 32>}, {pipeline_mode = #tpu.pipeline_mode<synchronous>, transform_indices = @transform_3, window_bounds = array<i64: 144, 32>}, {pipeline_mode = #tpu.pipeline_mode<synchronous>, transform_indices = @transform_4, window_bounds = array<i64: 1, 32>}, {transform_indices = @transform_5, window_bounds = array<i64: 1, 196, 32>}, {transform_indices = @transform_6, window_bounds = array<i64: 1, 196, 32>}]} {
    %c0 = arith.constant 0 : index
    %c0_0 = arith.constant 0 : index
    %c0_1 = arith.constant 0 : index
    %0 = vector.load %arg1[%c0, %c0_0, %c0_1] : memref<1x196x144xbf16, #tpu.memory_space<vmem>>, vector<1x196x144xbf16>
    %1 = vector.shape_cast %0 : vector<1x196x144xbf16> to vector<196x144xbf16>
    %c0_2 = arith.constant 0 : index
    %c0_3 = arith.constant 0 : index
    %2 = vector.load %arg2[%c0_2, %c0_3] : memref<144x32xbf16, #tpu.memory_space<vmem>>, vector<144x32xbf16>
    %cst = arith.constant dense<0.000000e+00> : vector<196x32xf32>
    %3 = tpu.matmul %1, %2, %cst {dimension_numbers = #tpu.dot_dimension_numbers<[1], [0], [0], [1], [0, 0, 1, 1], [], []>} : vector<196x144xbf16>, vector<144x32xbf16>, vector<196x32xf32> -> vector<196x32xf32>
    %c0_4 = arith.constant 0 : index
    %c0_5 = arith.constant 0 : index
    %4 = vector.load %arg3[%c0_4, %c0_5] : memref<1x32xf32, #tpu.memory_space<vmem>>, vector<1x32xf32>
    %5 = vector.broadcast %4 : vector<1x32xf32> to vector<196x32xf32>
    %6 = arith.addf %3, %5 : vector<196x32xf32>
    %cst_6 = arith.constant 0.000000e+00 : f32
    %7 = vector.broadcast %cst_6 : f32 to vector<196x32xf32>
    %8 = arith.maximumf %6, %7 : vector<196x32xf32>
    %c0_7 = arith.constant 0 : index
    %c0_8 = arith.constant 0 : index
    %9 = vector.load %arg4[%c0_7, %c0_8] : memref<144x32xbf16, #tpu.memory_space<vmem>>, vector<144x32xbf16>
    %cst_9 = arith.constant dense<0.000000e+00> : vector<196x32xf32>
    %10 = tpu.matmul %1, %9, %cst_9 {dimension_numbers = #tpu.dot_dimension_numbers<[1], [0], [0], [1], [0, 0, 1, 1], [], []>} : vector<196x144xbf16>, vector<144x32xbf16>, vector<196x32xf32> -> vector<196x32xf32>
    %c0_10 = arith.constant 0 : index
    %c0_11 = arith.constant 0 : index
    %11 = vector.load %arg5[%c0_10, %c0_11] : memref<1x32xf32, #tpu.memory_space<vmem>>, vector<1x32xf32>
    %12 = vector.broadcast %11 : vector<1x32xf32> to vector<196x32xf32>
    %13 = arith.addf %10, %12 : vector<196x32xf32>
    %14 = arith.truncf %8 : vector<196x32xf32> to vector<196x32xbf16>
    %c0_12 = arith.constant 0 : index
    %c0_13 = arith.constant 0 : index
    %c0_14 = arith.constant 0 : index
    %15 = vector.load %arg6[%c0_12, %c0_13, %c0_14] : memref<1x196x32xbf16, #tpu.memory_space<vmem>>, vector<1x196x32xbf16>
    %16 = vector.shape_cast %15 : vector<1x196x32xbf16> to vector<196x32xbf16>
    %17 = vector.shape_cast %14 : vector<196x32xbf16> to vector<1x196x32xbf16>
    tpu.vector_store %arg6[%c0_12, %c0_13, %c0_14], %17 {strides = array<i32>} : memref<1x196x32xbf16, #tpu.memory_space<vmem>>, vector<1x196x32xbf16>,
    %18 = arith.truncf %13 : vector<196x32xf32> to vector<196x32xbf16>
    %c0_15 = arith.constant 0 : index
    %c0_16 = arith.constant 0 : index
    %c0_17 = arith.constant 0 : index
    %19 = vector.load %arg7[%c0_15, %c0_16, %c0_17] : memref<1x196x32xbf16, #tpu.memory_space<vmem>>, vector<1x196x32xbf16>
    %20 = vector.shape_cast %19 : vector<1x196x32xbf16> to vector<196x32xbf16>
    %21 = vector.shape_cast %18 : vector<196x32xbf16> to vector<1x196x32xbf16>
    tpu.vector_store %arg7[%c0_15, %c0_16, %c0_17], %21 {strides = array<i32>} : memref<1x196x32xbf16, #tpu.memory_space<vmem>>, vector<1x196x32xbf16>,
    return
  }
  func.func @transform_0(%arg0: i32) -> (i32, i32, i32) {
    %c0_i32 = arith.constant 0 : i32
    %c0_i32_0 = arith.constant 0 : i32
    %c0_i32_1 = arith.constant 0 : i32
    return %arg0, %c0_i32, %c0_i32_0 : i32, i32, i32
  }
  func.func @transform_1(%arg0: i32) -> (i32, i32) {
    %c0_i32 = arith.constant 0 : i32
    %c0_i32_0 = arith.constant 0 : i32
    %c0_i32_1 = arith.constant 0 : i32
    return %c0_i32, %c0_i32_0 : i32, i32
  }
  func.func @transform_2(%arg0: i32) -> (i32, i32) {
    %c0_i32 = arith.constant 0 : i32
    %c0_i32_0 = arith.constant 0 : i32
    %c0_i32_1 = arith.constant 0 : i32
    return %c0_i32, %c0_i32_0 : i32, i32
  }
  func.func @transform_3(%arg0: i32) -> (i32, i32) {
    %c0_i32 = arith.constant 0 : i32
    %c0_i32_0 = arith.constant 0 : i32
    %c0_i32_1 = arith.constant 0 : i32
    return %c0_i32, %c0_i32_0 : i32, i32
  }
  func.func @transform_4(%arg0: i32) -> (i32, i32) {
    %c0_i32 = arith.constant 0 : i32
    %c0_i32_0 = arith.constant 0 : i32
    %c0_i32_1 = arith.constant 0 : i32
    return %c0_i32, %c0_i32_0 : i32, i32
  }
  func.func @transform_5(%arg0: i32) -> (i32, i32, i32) {
    %c0_i32 = arith.constant 0 : i32
    %c0_i32_0 = arith.constant 0 : i32
    %c0_i32_1 = arith.constant 0 : i32
    return %arg0, %c0_i32, %c0_i32_0 : i32, i32, i32
  }
  func.func @transform_6(%arg0: i32) -> (i32, i32, i32) {
    %c0_i32 = arith.constant 0 : i32
    %c0_i32_0 = arith.constant 0 : i32
    %c0_i32_1 = arith.constant 0 : i32
    return %arg0, %c0_i32, %c0_i32_0 : i32, i32, i32
  }
}

module attributes {stable_mosaic.version = 11 : i64} {
  func.func @_conv_add_pool_kernel(%arg0: i32, %arg1: memref<1x4x49x288xbf16, #tpu.memory_space<vmem>>, %arg2: memref<1x4x49x32xbf16, #tpu.memory_space<vmem>>, %arg3: memref<288x32xbf16, #tpu.memory_space<vmem>>, %arg4: memref<1x32xf32, #tpu.memory_space<vmem>>, %arg5: memref<1x49x32xbf16, #tpu.memory_space<vmem>>) attributes {dimension_semantics = [#tpu.dimension_semantics<parallel>], iteration_bounds = array<i64: 2>, scalar_prefetch = 0 : i64, scratch_operands = 0 : i64, tpu.core_type = #tpu.core_type<tc>, window_params = [{transform_indices = @transform_0, window_bounds = array<i64: 1, 4, 49, 288>}, {transform_indices = @transform_1, window_bounds = array<i64: 1, 4, 49, 32>}, {pipeline_mode = #tpu.pipeline_mode<synchronous>, transform_indices = @transform_2, window_bounds = array<i64: 288, 32>}, {pipeline_mode = #tpu.pipeline_mode<synchronous>, transform_indices = @transform_3, window_bounds = array<i64: 1, 32>}, {transform_indices = @transform_4, window_bounds = array<i64: 1, 49, 32>}]} {
    %c0 = arith.constant 0 : index
    %c0_0 = arith.constant 0 : index
    %c0_1 = arith.constant 0 : index
    %c0_2 = arith.constant 0 : index
    %0 = vector.load %arg1[%c0, %c0_0, %c0_1, %c0_2] : memref<1x4x49x288xbf16, #tpu.memory_space<vmem>>, vector<1x1x49x288xbf16>
    %1 = vector.shape_cast %0 : vector<1x1x49x288xbf16> to vector<49x288xbf16>
    %c0_3 = arith.constant 0 : index
    %c0_4 = arith.constant 0 : index
    %2 = vector.load %arg3[%c0_3, %c0_4] : memref<288x32xbf16, #tpu.memory_space<vmem>>, vector<288x32xbf16>
    %cst = arith.constant dense<0.000000e+00> : vector<49x32xf32>
    %3 = tpu.matmul %1, %2, %cst {dimension_numbers = #tpu.dot_dimension_numbers<[1], [0], [0], [1], [0, 0, 1, 1], [], []>} : vector<49x288xbf16>, vector<288x32xbf16>, vector<49x32xf32> -> vector<49x32xf32>
    %c0_5 = arith.constant 0 : index
    %c0_6 = arith.constant 0 : index
    %4 = vector.load %arg4[%c0_5, %c0_6] : memref<1x32xf32, #tpu.memory_space<vmem>>, vector<1x32xf32>
    %5 = vector.broadcast %4 : vector<1x32xf32> to vector<49x32xf32>
    %6 = arith.addf %3, %5 : vector<49x32xf32>
    %cst_7 = arith.constant 0.000000e+00 : f32
    %7 = vector.broadcast %cst_7 : f32 to vector<49x32xf32>
    %8 = arith.maximumf %6, %7 : vector<49x32xf32>
    %c0_8 = arith.constant 0 : index
    %c0_9 = arith.constant 0 : index
    %c0_10 = arith.constant 0 : index
    %c0_11 = arith.constant 0 : index
    %9 = vector.load %arg2[%c0_8, %c0_9, %c0_10, %c0_11] : memref<1x4x49x32xbf16, #tpu.memory_space<vmem>>, vector<1x1x49x32xbf16>
    %10 = vector.shape_cast %9 : vector<1x1x49x32xbf16> to vector<49x32xbf16>
    %11 = arith.extf %10 : vector<49x32xbf16> to vector<49x32xf32>
    %12 = arith.addf %8, %11 : vector<49x32xf32>
    %c0_12 = arith.constant 0 : index
    %c1 = arith.constant 1 : index
    %c0_13 = arith.constant 0 : index
    %c0_14 = arith.constant 0 : index
    %13 = vector.load %arg1[%c0_12, %c1, %c0_13, %c0_14] : memref<1x4x49x288xbf16, #tpu.memory_space<vmem>>, vector<1x1x49x288xbf16>
    %14 = vector.shape_cast %13 : vector<1x1x49x288xbf16> to vector<49x288xbf16>
    %c0_15 = arith.constant 0 : index
    %c0_16 = arith.constant 0 : index
    %15 = vector.load %arg3[%c0_15, %c0_16] : memref<288x32xbf16, #tpu.memory_space<vmem>>, vector<288x32xbf16>
    %cst_17 = arith.constant dense<0.000000e+00> : vector<49x32xf32>
    %16 = tpu.matmul %14, %15, %cst_17 {dimension_numbers = #tpu.dot_dimension_numbers<[1], [0], [0], [1], [0, 0, 1, 1], [], []>} : vector<49x288xbf16>, vector<288x32xbf16>, vector<49x32xf32> -> vector<49x32xf32>
    %c0_18 = arith.constant 0 : index
    %c0_19 = arith.constant 0 : index
    %17 = vector.load %arg4[%c0_18, %c0_19] : memref<1x32xf32, #tpu.memory_space<vmem>>, vector<1x32xf32>
    %18 = vector.broadcast %17 : vector<1x32xf32> to vector<49x32xf32>
    %19 = arith.addf %16, %18 : vector<49x32xf32>
    %cst_20 = arith.constant 0.000000e+00 : f32
    %20 = vector.broadcast %cst_20 : f32 to vector<49x32xf32>
    %21 = arith.maximumf %19, %20 : vector<49x32xf32>
    %c0_21 = arith.constant 0 : index
    %c1_22 = arith.constant 1 : index
    %c0_23 = arith.constant 0 : index
    %c0_24 = arith.constant 0 : index
    %22 = vector.load %arg2[%c0_21, %c1_22, %c0_23, %c0_24] : memref<1x4x49x32xbf16, #tpu.memory_space<vmem>>, vector<1x1x49x32xbf16>
    %23 = vector.shape_cast %22 : vector<1x1x49x32xbf16> to vector<49x32xbf16>
    %24 = arith.extf %23 : vector<49x32xbf16> to vector<49x32xf32>
    %25 = arith.addf %21, %24 : vector<49x32xf32>
    %26 = arith.maximumf %12, %25 : vector<49x32xf32>
    %c0_25 = arith.constant 0 : index
    %c2 = arith.constant 2 : index
    %c0_26 = arith.constant 0 : index
    %c0_27 = arith.constant 0 : index
    %27 = vector.load %arg1[%c0_25, %c2, %c0_26, %c0_27] : memref<1x4x49x288xbf16, #tpu.memory_space<vmem>>, vector<1x1x49x288xbf16>
    %28 = vector.shape_cast %27 : vector<1x1x49x288xbf16> to vector<49x288xbf16>
    %c0_28 = arith.constant 0 : index
    %c0_29 = arith.constant 0 : index
    %29 = vector.load %arg3[%c0_28, %c0_29] : memref<288x32xbf16, #tpu.memory_space<vmem>>, vector<288x32xbf16>
    %cst_30 = arith.constant dense<0.000000e+00> : vector<49x32xf32>
    %30 = tpu.matmul %28, %29, %cst_30 {dimension_numbers = #tpu.dot_dimension_numbers<[1], [0], [0], [1], [0, 0, 1, 1], [], []>} : vector<49x288xbf16>, vector<288x32xbf16>, vector<49x32xf32> -> vector<49x32xf32>
    %c0_31 = arith.constant 0 : index
    %c0_32 = arith.constant 0 : index
    %31 = vector.load %arg4[%c0_31, %c0_32] : memref<1x32xf32, #tpu.memory_space<vmem>>, vector<1x32xf32>
    %32 = vector.broadcast %31 : vector<1x32xf32> to vector<49x32xf32>
    %33 = arith.addf %30, %32 : vector<49x32xf32>
    %cst_33 = arith.constant 0.000000e+00 : f32
    %34 = vector.broadcast %cst_33 : f32 to vector<49x32xf32>
    %35 = arith.maximumf %33, %34 : vector<49x32xf32>
    %c0_34 = arith.constant 0 : index
    %c2_35 = arith.constant 2 : index
    %c0_36 = arith.constant 0 : index
    %c0_37 = arith.constant 0 : index
    %36 = vector.load %arg2[%c0_34, %c2_35, %c0_36, %c0_37] : memref<1x4x49x32xbf16, #tpu.memory_space<vmem>>, vector<1x1x49x32xbf16>
    %37 = vector.shape_cast %36 : vector<1x1x49x32xbf16> to vector<49x32xbf16>
    %38 = arith.extf %37 : vector<49x32xbf16> to vector<49x32xf32>
    %39 = arith.addf %35, %38 : vector<49x32xf32>
    %40 = arith.maximumf %26, %39 : vector<49x32xf32>
    %c0_38 = arith.constant 0 : index
    %c3 = arith.constant 3 : index
    %c0_39 = arith.constant 0 : index
    %c0_40 = arith.constant 0 : index
    %41 = vector.load %arg1[%c0_38, %c3, %c0_39, %c0_40] : memref<1x4x49x288xbf16, #tpu.memory_space<vmem>>, vector<1x1x49x288xbf16>
    %42 = vector.shape_cast %41 : vector<1x1x49x288xbf16> to vector<49x288xbf16>
    %c0_41 = arith.constant 0 : index
    %c0_42 = arith.constant 0 : index
    %43 = vector.load %arg3[%c0_41, %c0_42] : memref<288x32xbf16, #tpu.memory_space<vmem>>, vector<288x32xbf16>
    %cst_43 = arith.constant dense<0.000000e+00> : vector<49x32xf32>
    %44 = tpu.matmul %42, %43, %cst_43 {dimension_numbers = #tpu.dot_dimension_numbers<[1], [0], [0], [1], [0, 0, 1, 1], [], []>} : vector<49x288xbf16>, vector<288x32xbf16>, vector<49x32xf32> -> vector<49x32xf32>
    %c0_44 = arith.constant 0 : index
    %c0_45 = arith.constant 0 : index
    %45 = vector.load %arg4[%c0_44, %c0_45] : memref<1x32xf32, #tpu.memory_space<vmem>>, vector<1x32xf32>
    %46 = vector.broadcast %45 : vector<1x32xf32> to vector<49x32xf32>
    %47 = arith.addf %44, %46 : vector<49x32xf32>
    %cst_46 = arith.constant 0.000000e+00 : f32
    %48 = vector.broadcast %cst_46 : f32 to vector<49x32xf32>
    %49 = arith.maximumf %47, %48 : vector<49x32xf32>
    %c0_47 = arith.constant 0 : index
    %c3_48 = arith.constant 3 : index
    %c0_49 = arith.constant 0 : index
    %c0_50 = arith.constant 0 : index
    %50 = vector.load %arg2[%c0_47, %c3_48, %c0_49, %c0_50] : memref<1x4x49x32xbf16, #tpu.memory_space<vmem>>, vector<1x1x49x32xbf16>
    %51 = vector.shape_cast %50 : vector<1x1x49x32xbf16> to vector<49x32xbf16>
    %52 = arith.extf %51 : vector<49x32xbf16> to vector<49x32xf32>
    %53 = arith.addf %49, %52 : vector<49x32xf32>
    %54 = arith.maximumf %40, %53 : vector<49x32xf32>
    %55 = arith.truncf %54 : vector<49x32xf32> to vector<49x32xbf16>
    %c0_51 = arith.constant 0 : index
    %c0_52 = arith.constant 0 : index
    %c0_53 = arith.constant 0 : index
    %56 = vector.load %arg5[%c0_51, %c0_52, %c0_53] : memref<1x49x32xbf16, #tpu.memory_space<vmem>>, vector<1x49x32xbf16>
    %57 = vector.shape_cast %56 : vector<1x49x32xbf16> to vector<49x32xbf16>
    %58 = vector.shape_cast %55 : vector<49x32xbf16> to vector<1x49x32xbf16>
    tpu.vector_store %arg5[%c0_51, %c0_52, %c0_53], %58 {strides = array<i32>} : memref<1x49x32xbf16, #tpu.memory_space<vmem>>, vector<1x49x32xbf16>,
    return
  }
  func.func @transform_0(%arg0: i32) -> (i32, i32, i32, i32) {
    %c0_i32 = arith.constant 0 : i32
    %c0_i32_0 = arith.constant 0 : i32
    %c0_i32_1 = arith.constant 0 : i32
    %c0_i32_2 = arith.constant 0 : i32
    return %arg0, %c0_i32, %c0_i32_0, %c0_i32_1 : i32, i32, i32, i32
  }
  func.func @transform_1(%arg0: i32) -> (i32, i32, i32, i32) {
    %c0_i32 = arith.constant 0 : i32
    %c0_i32_0 = arith.constant 0 : i32
    %c0_i32_1 = arith.constant 0 : i32
    %c0_i32_2 = arith.constant 0 : i32
    return %arg0, %c0_i32, %c0_i32_0, %c0_i32_1 : i32, i32, i32, i32
  }
  func.func @transform_2(%arg0: i32) -> (i32, i32) {
    %c0_i32 = arith.constant 0 : i32
    %c0_i32_0 = arith.constant 0 : i32
    %c0_i32_1 = arith.constant 0 : i32
    return %c0_i32, %c0_i32_0 : i32, i32
  }
  func.func @transform_3(%arg0: i32) -> (i32, i32) {
    %c0_i32 = arith.constant 0 : i32
    %c0_i32_0 = arith.constant 0 : i32
    %c0_i32_1 = arith.constant 0 : i32
    return %c0_i32, %c0_i32_0 : i32, i32
  }
  func.func @transform_4(%arg0: i32) -> (i32, i32, i32) {
    %c0_i32 = arith.constant 0 : i32
    %c0_i32_0 = arith.constant 0 : i32
    %c0_i32_1 = arith.constant 0 : i32
    return %arg0, %c0_i32, %c0_i32_0 : i32, i32, i32
  }
}

module attributes {stable_mosaic.version = 11 : i64} {
  func.func @_head_kernel(%arg0: i32, %arg1: memref<1x9x288xbf16, #tpu.memory_space<vmem>>, %arg2: memref<288x64xbf16, #tpu.memory_space<vmem>>, %arg3: memref<1x64xf32, #tpu.memory_space<vmem>>, %arg4: memref<64x10xf32, #tpu.memory_space<vmem>>, %arg5: memref<1x10xf32, #tpu.memory_space<vmem>>, %arg6: memref<1x1x10xf32, #tpu.memory_space<vmem>>) attributes {dimension_semantics = [#tpu.dimension_semantics<parallel>], iteration_bounds = array<i64: 2>, scalar_prefetch = 0 : i64, scratch_operands = 0 : i64, tpu.core_type = #tpu.core_type<tc>, window_params = [{transform_indices = @transform_0, window_bounds = array<i64: 1, 9, 288>}, {pipeline_mode = #tpu.pipeline_mode<synchronous>, transform_indices = @transform_1, window_bounds = array<i64: 288, 64>}, {pipeline_mode = #tpu.pipeline_mode<synchronous>, transform_indices = @transform_2, window_bounds = array<i64: 1, 64>}, {pipeline_mode = #tpu.pipeline_mode<synchronous>, transform_indices = @transform_3, window_bounds = array<i64: 64, 10>}, {pipeline_mode = #tpu.pipeline_mode<synchronous>, transform_indices = @transform_4, window_bounds = array<i64: 1, 10>}, {transform_indices = @transform_5, window_bounds = array<i64: 1, 1, 10>}]} {
    %c0 = arith.constant 0 : index
    %c0_0 = arith.constant 0 : index
    %c0_1 = arith.constant 0 : index
    %0 = vector.load %arg1[%c0, %c0_0, %c0_1] : memref<1x9x288xbf16, #tpu.memory_space<vmem>>, vector<1x9x288xbf16>
    %1 = vector.shape_cast %0 : vector<1x9x288xbf16> to vector<9x288xbf16>
    %c0_2 = arith.constant 0 : index
    %c0_3 = arith.constant 0 : index
    %2 = vector.load %arg2[%c0_2, %c0_3] : memref<288x64xbf16, #tpu.memory_space<vmem>>, vector<288x64xbf16>
    %cst = arith.constant dense<0.000000e+00> : vector<9x64xf32>
    %3 = tpu.matmul %1, %2, %cst {dimension_numbers = #tpu.dot_dimension_numbers<[1], [0], [0], [1], [0, 0, 1, 1], [], []>} : vector<9x288xbf16>, vector<288x64xbf16>, vector<9x64xf32> -> vector<9x64xf32>
    %c0_4 = arith.constant 0 : index
    %c0_5 = arith.constant 0 : index
    %4 = vector.load %arg3[%c0_4, %c0_5] : memref<1x64xf32, #tpu.memory_space<vmem>>, vector<1x64xf32>
    %5 = vector.broadcast %4 : vector<1x64xf32> to vector<9x64xf32>
    %6 = arith.addf %3, %5 : vector<9x64xf32>
    %cst_6 = arith.constant 0.000000e+00 : f32
    %7 = vector.broadcast %cst_6 : f32 to vector<9x64xf32>
    %8 = arith.maximumf %6, %7 : vector<9x64xf32>
    %cst_7 = arith.constant dense<0xFF800000> : vector<64xf32>
    %9 = vector.multi_reduction <maximumf>, %8, %cst_7 [0] : vector<9x64xf32> to vector<64xf32>
    %10 = vector.shape_cast %9 : vector<64xf32> to vector<1x64xf32>
    %c0_8 = arith.constant 0 : index
    %c0_9 = arith.constant 0 : index
    %11 = vector.load %arg4[%c0_8, %c0_9] : memref<64x10xf32, #tpu.memory_space<vmem>>, vector<64x10xf32>
    %cst_10 = arith.constant dense<0.000000e+00> : vector<1x10xf32>
    %12 = tpu.matmul %10, %11, %cst_10 {dimension_numbers = #tpu.dot_dimension_numbers<[1], [0], [0], [1], [0, 0, 1, 1], [], []>} : vector<1x64xf32>, vector<64x10xf32>, vector<1x10xf32> -> vector<1x10xf32>
    %c0_11 = arith.constant 0 : index
    %c0_12 = arith.constant 0 : index
    %13 = vector.load %arg5[%c0_11, %c0_12] : memref<1x10xf32, #tpu.memory_space<vmem>>, vector<1x10xf32>
    %14 = arith.addf %12, %13 : vector<1x10xf32>
    %cst_13 = arith.constant dense<0xFF800000> : vector<1xf32>
    %15 = vector.multi_reduction <maximumf>, %14, %cst_13 [1] : vector<1x10xf32> to vector<1xf32>
    %16 = vector.shape_cast %15 : vector<1xf32> to vector<1x1xf32>
    %17 = vector.broadcast %16 : vector<1x1xf32> to vector<1x10xf32>
    %18 = arith.subf %14, %17 : vector<1x10xf32>
    %19 = math.exp %18 : vector<1x10xf32>
    %cst_14 = arith.constant dense<0.000000e+00> : vector<1xf32>
    %20 = vector.multi_reduction <add>, %19, %cst_14 [1] : vector<1x10xf32> to vector<1xf32>
    %21 = vector.shape_cast %20 : vector<1xf32> to vector<1x1xf32>
    %22 = tpu.reciprocal %21 {approx = true} : vector<1x1xf32> -> vector<1x1xf32>
    %23 = vector.broadcast %22 : vector<1x1xf32> to vector<1x10xf32>
    %24 = arith.mulf %19, %23 : vector<1x10xf32>
    %c0_15 = arith.constant 0 : index
    %c0_16 = arith.constant 0 : index
    %c0_17 = arith.constant 0 : index
    %25 = vector.load %arg6[%c0_15, %c0_16, %c0_17] : memref<1x1x10xf32, #tpu.memory_space<vmem>>, vector<1x1x10xf32>
    %26 = vector.shape_cast %25 : vector<1x1x10xf32> to vector<1x10xf32>
    %27 = vector.shape_cast %24 : vector<1x10xf32> to vector<1x1x10xf32>
    tpu.vector_store %arg6[%c0_15, %c0_16, %c0_17], %27 {strides = array<i32>} : memref<1x1x10xf32, #tpu.memory_space<vmem>>, vector<1x1x10xf32>,
    return
  }
  func.func @transform_0(%arg0: i32) -> (i32, i32, i32) {
    %c0_i32 = arith.constant 0 : i32
    %c0_i32_0 = arith.constant 0 : i32
    %c0_i32_1 = arith.constant 0 : i32
    return %arg0, %c0_i32, %c0_i32_0 : i32, i32, i32
  }
  func.func @transform_1(%arg0: i32) -> (i32, i32) {
    %c0_i32 = arith.constant 0 : i32
    %c0_i32_0 = arith.constant 0 : i32
    %c0_i32_1 = arith.constant 0 : i32
    return %c0_i32, %c0_i32_0 : i32, i32
  }
  func.func @transform_2(%arg0: i32) -> (i32, i32) {
    %c0_i32 = arith.constant 0 : i32
    %c0_i32_0 = arith.constant 0 : i32
    %c0_i32_1 = arith.constant 0 : i32
    return %c0_i32, %c0_i32_0 : i32, i32
  }
  func.func @transform_3(%arg0: i32) -> (i32, i32) {
    %c0_i32 = arith.constant 0 : i32
    %c0_i32_0 = arith.constant 0 : i32
    %c0_i32_1 = arith.constant 0 : i32
    return %c0_i32, %c0_i32_0 : i32, i32
  }
  func.func @transform_4(%arg0: i32) -> (i32, i32) {
    %c0_i32 = arith.constant 0 : i32
    %c0_i32_0 = arith.constant 0 : i32
    %c0_i32_1 = arith.constant 0 : i32
    return %c0_i32, %c0_i32_0 : i32, i32
  }
  func.func @transform_5(%arg0: i32) -> (i32, i32, i32) {
    %c0_i32 = arith.constant 0 : i32
    %c0_i32_0 = arith.constant 0 : i32
    %c0_i32_1 = arith.constant 0 : i32
    return %arg0, %c0_i32, %c0_i32_0 : i32, i32, i32
  }
}

</mosaic_0001>

<bundles_post_ra>
// kernel: my_net_forward.5
= control target key start
LH: loop header
LB: loop body
LE: loop exit
PB: predicated region body
PF: predicated region fallthrough
CT: control target
= control target key end

     0   :  { %s3974_s21 = smov 0   ;;  %s4974_s0 = inlined_call_operand.vmem [shape: bf16[2,784,9], index: 0, kind: input, shape index: {}]   ;;  %s4975_s1 = inlined_call_operand.vmem [shape: bf16[9,16], index: 1, kind: input, shape index: {}]   ;;  %s4976_s2 = inlined_call_operand.vmem [shape: f32[1,16], index: 2, kind: input, shape index: {}]   ;;  %s4977_s3 = inlined_call_operand.vmem [shape: bf16[9,16], index: 3, kind: input, shape index: {}]   ;;  %s4978_s4 = inlined_call_operand.vmem [shape: f32[1,16], index: 4, kind: input, shape index: {}]   ;;  %s4979_s5 = inlined_call_operand.vmem [shape: bf16[2,784,16], index: 5, kind: output, shape index: {0}]   ;;  %s4980_s6 = inlined_call_operand.vmem [shape: bf16[2,784,16], index: 6, kind: output, shape index: {1}]  }
   0x1 LB: > { %s2812_s22 = sadd.s32 4294967295, %s3934_s21   ;;  %p2816_p0 = scmp.ge.s32.totalorder %s3934_s21, 1  ;;  %s3934_s21 = sphi %s3974_s21, %s17_s21  }
   0x2   : > { %p215_p1 = scmp.lt.s32.totalorder %s3934_s21, 3 }
   0x4   : > { %p216_p2 = pnand %p2816_p0, %p215_p1 }
   0x5   : > { %vm771_vm0 = vcmask (!%p216_p2), 1043456   ;;  %v3936_v0 = vmov (!%p216_p2), 0.0   ;;  %v3873_v1 = vld [vmem:[%s4975_s1] sm:$0x1f] (!%p216_p2)   ;;  %vm772_vm1 = vcmask (!%p216_p2), 1044480   ;;  %v3937_v2 = vmov (!%p216_p2), 65535  }
   0x6   : > { %219 = sbr.rel (%p216_p2) target bundleno = 623 (0x26f), region = 40  ;;  %3465 = vmatprep.subr.bf16.mxu0 (!%p216_p2), %v3936_v0  ;;  %3663 = vmatprep.subr.bf16.mxu1 (!%p216_p2), %v3936_v0  ;;  %v773_v3 = vsel (!%p216_p2), %vm771_vm0, 4294967295, %v3937_v2  ;;  %v3874_v4 = vld [vmem:[%s4977_s3] sm:$0x1f] (!%p216_p2)   ;;  %vm3938_vm2 = vmmov (!%p216_p2), 0   ;;  %p250_p3 = scmp.lt.s32.totalorder (!%p216_p2), %s2812_s22, 1 }
   0x7   : > { %v774_v5 = vsel (!%p216_p2), %vm772_vm1, %v773_v3, 0  ;;  %3467 = vmatprep.mubr.msk.bf16.mxu0 (!%p216_p2), %vm3938_vm2, %v3936_v0  ;;  %3665 = vmatprep.mubr.msk.bf16.mxu1 (!%p216_p2), %vm3938_vm2, %v3936_v0  ;;  %vm623_vm3 = vcmask (!%p216_p2), 72704   ;;  %v4190_v35 = vld [vmem:[%s4976_s2] ss:$0 sm:$0xff] (!%p216_p2)  ;;  %vm2135_vm4 = vcmask (!%p216_p2), 125952  }
   0x8   : > { %v776_v6 = vand.u32 (!%p216_p2), %v3873_v1, %v774_v5  ;;  %v1316_v7 = vand.u32 (!%p216_p2), %v3874_v4, %v774_v5  ;;  %v4195_v36 = vld [vmem:[%s4978_s4] ss:$0 sm:$0xff] (!%p216_p2) }
   0xa   : > { %3466 = vmatpush3.bf16.msra.mxu0 (!%p216_p2), %v776_v6  ;;  %3664 = vmatpush3.bf16.msra.mxu1 (!%p216_p2), %v1316_v7 }
   0xd   : > { %s4982_s22 = smov (!%p250_p3, %s2812_s22), 1 }
   0xe   : > { %s3994_s27 = smul.u32 392, %s4982_s22 }
  0x10   : > { %s4000_s30 = scalar_lea.vmem %s4974_s0, %s3994_s27  ;;  %s4208_s13 = scalar_lea.vmem %s4980_s6, %s3994_s27 }
  0x11   : > { %v3875_v8 = vld [vmem:[%s4000_s30] sm:$0xff]   ;;  %v3876_v9 = vld [vmem:[%s4000_s30 + $0x8] sm:$0xff]   ;;  %v3877_v10 = vld [vmem:[%s4000_s30 + $0x10] sm:$0xff]   ;;  %s4216_s16 = scalar_lea.vmem %s4979_s5, %s3994_s27 }
  0x12   : > { %3468 = vmatmul.mubr.msk.bf16.vlgmr.msra.gmra.mrb[0].mxu0 %vm623_vm3, %v3875_v8  ;;  %3666 = vmatmul.mubr.msk.bf16.vlgmr.msra.gmra.mrb[0].mxu1 %vm623_vm3, %v3875_v8  ;;  %v3878_v11 = vld [vmem:[%s4000_s30 + $0x18] sm:$0xff]   ;;  %v3879_v12 = vld [vmem:[%s4000_s30 + $0x20] sm:$0xff]   ;;  %v3880_v13 = vld [vmem:[%s4000_s30 + $0x28] sm:$0xff]  }
  0x13   : > { %3471 = vmatprep.mubr.msk.bf16.mxu0 %vm3938_vm2, %v3936_v0  ;;  %3669 = vmatprep.mubr.msk.bf16.mxu1 %vm3938_vm2, %v3936_v0  ;;  %v3881_v14 = vld [vmem:[%s4000_s30 + $0x30] sm:$0xff]   ;;  %v3882_v15 = vld [vmem:[%s4000_s30 + $0x38] sm:$0xff]   ;;  %v3883_v16 = vld [vmem:[%s4000_s30 + $0x40] sm:$0xff]  }
  0x14   : > { %v3884_v17 = vld [vmem:[%s4000_s30 + $0x48] sm:$0xff]   ;;  %v3885_v18 = vld [vmem:[%s4000_s30 + $0x50] sm:$0xff]   ;;  %v3886_v19 = vld [vmem:[%s4000_s30 + $0x58] sm:$0xff]  }
  0x15   : > { %v3887_v20 = vld [vmem:[%s4000_s30 + $0x60] sm:$0xff]   ;;  %v3888_v21 = vld [vmem:[%s4000_s30 + $0x68] sm:$0xff]   ;;  %v3889_v22 = vld [vmem:[%s4000_s30 + $0x70] sm:$0xff]  }
  0x16   : > { %v3890_v23 = vld [vmem:[%s4000_s30 + $0x78] sm:$0xff]   ;;  %v3891_v24 = vld [vmem:[%s4000_s30 + $0x80] sm:$0xff]   ;;  %v3892_v25 = vld [vmem:[%s4000_s30 + $0x88] sm:$0xff]  }
  0x17   : > { %v3893_v26 = vld [vmem:[%s4000_s30 + $0x90] sm:$0xff]   ;;  %v3894_v27 = vld [vmem:[%s4000_s30 + $0x98] sm:$0xff]   ;;  %v3895_v28 = vld [vmem:[%s4000_s30 + $0xa0] sm:$0xff]  }
  0x18   : > { %v3896_v29 = vld [vmem:[%s4000_s30 + $0xa8] sm:$0xff]   ;;  %v3897_v30 = vld [vmem:[%s4000_s30 + $0xb0] sm:$0xff]   ;;  %v3898_v31 = vld [vmem:[%s4000_s30 + $0xb8] sm:$0xff]  }
  0x19   : > { %v3899_v32 = vld [vmem:[%s4000_s30 + $0xc0] sm:$0xff]   ;;  %v3900_v33 = vld [vmem:[%s4000_s30 + $0xc8] sm:$0xff]   ;;  %v3901_v34 = vld [vmem:[%s4000_s30 + $0xd0] sm:$0xff]  }
  0x1a   : > { %3472 = vmatmul.mubr.msk.bf16.gmra.mrb[4].mxu0 %vm623_vm3, %v3876_v9  ;;  %3670 = vmatmul.mubr.msk.bf16.gmra.mrb[4].mxu1 %vm623_vm3, %v3876_v9  ;;  %v3902_v43 = vld [vmem:[%s4000_s30 + $0xd8] sm:$0xff]   ;;  %v3903_v62 = vld [vmem:[%s4000_s30 + $0xe0] sm:$0xff]  }
  0x1b   : > { %3475 = vmatprep.mubr.msk.bf16.mxu0 %vm3938_vm2, %v3936_v0  ;;  %3673 = vmatprep.mubr.msk.bf16.mxu1 %vm3938_vm2, %v3936_v0 }
  0x22   : > { %3476 = vmatmul.mubr.msk.bf16.gmra.mrb[8].mxu0 %vm623_vm3, %v3877_v10  ;;  %3674 = vmatmul.mubr.msk.bf16.gmra.mrb[8].mxu1 %vm623_vm3, %v3877_v10 }
  0x23   : > { %3479 = vmatprep.mubr.msk.bf16.mxu0 %vm3938_vm2, %v3936_v0  ;;  %3677 = vmatprep.mubr.msk.bf16.mxu1 %vm3938_vm2, %v3936_v0 }
  0x2a   : > { %3480 = vmatmul.mubr.msk.bf16.gmra.mrb[12].mxu0 %vm623_vm3, %v3878_v11  ;;  %3678 = vmatmul.mubr.msk.bf16.gmra.mrb[12].mxu1 %vm623_vm3, %v3878_v11 }
  0x2b   : > { %3483 = vmatprep.mubr.msk.bf16.mxu0 %vm3938_vm2, %v3936_v0  ;;  %3681 = vmatprep.mubr.msk.bf16.mxu1 %vm3938_vm2, %v3936_v0 }
  0x32   : > { %3484 = vmatmul.mubr.msk.bf16.gmra.mrb[16].mxu0 %vm623_vm3, %v3879_v12  ;;  %3682 = vmatmul.mubr.msk.bf16.gmra.mrb[16].mxu1 %vm623_vm3, %v3879_v12 }
  0x33   : > { %3487 = vmatprep.mubr.msk.bf16.mxu0 %vm3938_vm2, %v3936_v0  ;;  %3685 = vmatprep.mubr.msk.bf16.mxu1 %vm3938_vm2, %v3936_v0 }
  0x3a   : > { %3488 = vmatmul.mubr.msk.bf16.gmra.mrb[20].mxu0 %vm623_vm3, %v3880_v13  ;;  %3686 = vmatmul.mubr.msk.bf16.gmra.mrb[20].mxu1 %vm623_vm3, %v3880_v13 }
  0x3b   : > { %3491 = vmatprep.mubr.msk.bf16.mxu0 %vm3938_vm2, %v3936_v0  ;;  %3689 = vmatprep.mubr.msk.bf16.mxu1 %vm3938_vm2, %v3936_v0 }
  0x42   : > { %3492 = vmatmul.mubr.msk.bf16.gmra.mrb[24].mxu0 %vm623_vm3, %v3881_v14  ;;  %3690 = vmatmul.mubr.msk.bf16.gmra.mrb[24].mxu1 %vm623_vm3, %v3881_v14 }
  0x43   : > { %3495 = vmatprep.mubr.msk.bf16.mxu0 %vm3938_vm2, %v3936_v0  ;;  %3693 = vmatprep.mubr.msk.bf16.mxu1 %vm3938_vm2, %v3936_v0 }
  0x4a   : > { %3496 = vmatmul.mubr.msk.bf16.gmra.mrb[28].mxu0 %vm623_vm3, %v3882_v15  ;;  %3694 = vmatmul.mubr.msk.bf16.gmra.mrb[28].mxu1 %vm623_vm3, %v3882_v15 }
  0x4b   : > { %3499 = vmatprep.mubr.msk.bf16.mxu0 %vm3938_vm2, %v3936_v0  ;;  %3697 = vmatprep.mubr.msk.bf16.mxu1 %vm3938_vm2, %v3936_v0 }
  0x52   : > { %3500 = vmatmul.mubr.msk.bf16.gmra.mrb[32].mxu0 %vm623_vm3, %v3883_v16  ;;  %3698 = vmatmul.mubr.msk.bf16.gmra.mrb[32].mxu1 %vm623_vm3, %v3883_v16 }
  0x53   : > { %3503 = vmatprep.mubr.msk.bf16.mxu0 %vm3938_vm2, %v3936_v0  ;;  %3701 = vmatprep.mubr.msk.bf16.mxu1 %vm3938_vm2, %v3936_v0 }
  0x5a   : > { %3504 = vmatmul.mubr.msk.bf16.gmra.mrb[36].mxu0 %vm623_vm3, %v3884_v17  ;;  %3702 = vmatmul.mubr.msk.bf16.gmra.mrb[36].mxu1 %vm623_vm3, %v3884_v17 }
  0x5b   : > { %3507 = vmatprep.mubr.msk.bf16.mxu0 %vm3938_vm2, %v3936_v0  ;;  %3705 = vmatprep.mubr.msk.bf16.mxu1 %vm3938_vm2, %v3936_v0 }
  0x62   : > { %3508 = vmatmul.mubr.msk.bf16.gmra.mrb[40].mxu0 %vm623_vm3, %v3885_v18  ;;  %3706 = vmatmul.mubr.msk.bf16.gmra.mrb[40].mxu1 %vm623_vm3, %v3885_v18  ;;  %v3904_v18 = vld [vmem:[%s4000_s30 + $0xe8] sm:$0xff]  }
  0x63   : > { %3511 = vmatprep.mubr.msk.bf16.mxu0 %vm3938_vm2, %v3936_v0  ;;  %3709 = vmatprep.mubr.msk.bf16.mxu1 %vm3938_vm2, %v3936_v0 }
  0x6a   : > { %3512 = vmatmul.mubr.msk.bf16.gmra.mrb[44].mxu0 %vm623_vm3, %v3886_v19  ;;  %3710 = vmatmul.mubr.msk.bf16.gmra.mrb[44].mxu1 %vm623_vm3, %v3886_v19 }
  0x6b   : > { %3515 = vmatprep.mubr.msk.bf16.mxu0 %vm3938_vm2, %v3936_v0  ;;  %3713 = vmatprep.mubr.msk.bf16.mxu1 %vm3938_vm2, %v3936_v0 }
  0x72   : > { %3516 = vmatmul.mubr.msk.bf16.gmra.mrb[48].mxu0 %vm623_vm3, %v3887_v20  ;;  %3714 = vmatmul.mubr.msk.bf16.gmra.mrb[48].mxu1 %vm623_vm3, %v3887_v20 }
  0x73   : > { %3519 = vmatprep.mubr.msk.bf16.mxu0 %vm3938_vm2, %v3936_v0  ;;  %3717 = vmatprep.mubr.msk.bf16.mxu1 %vm3938_vm2, %v3936_v0 }
  0x7a   : > { %3520 = vmatmul.mubr.msk.bf16.gmra.mrb[52].mxu0 %vm623_vm3, %v3888_v21  ;;  %3718 = vmatmul.mubr.msk.bf16.gmra.mrb[52].mxu1 %vm623_vm3, %v3888_v21 }
  0x7b   : > { %3523 = vmatprep.mubr.msk.bf16.mxu0 %vm3938_vm2, %v3936_v0  ;;  %3721 = vmatprep.mubr.msk.bf16.mxu1 %vm3938_vm2, %v3936_v0 }
  0x82   : > { %3524 = vmatmul.mubr.msk.bf16.gmra.mrb[56].mxu0 %vm623_vm3, %v3889_v22  ;;  %3722 = vmatmul.mubr.msk.bf16.gmra.mrb[56].mxu1 %vm623_vm3, %v3889_v22 }
  0x83   : > { %3527 = vmatprep.mubr.msk.bf16.mxu0 %vm3938_vm2, %v3936_v0  ;;  %3725 = vmatprep.mubr.msk.bf16.mxu1 %vm3938_vm2, %v3936_v0 }
  0x8a   : > { %3528 = vmatmul.mubr.msk.bf16.gmra.mrb[60].mxu0 %vm623_vm3, %v3890_v23  ;;  %3726 = vmatmul.mubr.msk.bf16.gmra.mrb[60].mxu1 %vm623_vm3, %v3890_v23 }
  0x8b   : > { %3531 = vmatprep.mubr.msk.bf16.mxu0 %vm3938_vm2, %v3936_v0  ;;  %3729 = vmatprep.mubr.msk.bf16.mxu1 %vm3938_vm2, %v3936_v0 }
  0x92   : > { %3532 = vmatmul.mubr.msk.bf16.gmra.mrb[64].mxu0 %vm623_vm3, %v3891_v24  ;;  %3730 = vmatmul.mubr.msk.bf16.gmra.mrb[64].mxu1 %vm623_vm3, %v3891_v24 }
  0x93   : > { %3535 = vmatprep.mubr.msk.bf16.mxu0 %vm3938_vm2, %v3936_v0  ;;  %3733 = vmatprep.mubr.msk.bf16.mxu1 %vm3938_vm2, %v3936_v0 }
  0x9a   : > { %3536 = vmatmul.mubr.msk.bf16.gmra.mrb[68].mxu0 %vm623_vm3, %v3892_v25  ;;  %3734 = vmatmul.mubr.msk.bf16.gmra.mrb[68].mxu1 %vm623_vm3, %v3892_v25 }
  0x9b   : > { %3539 = vmatprep.mubr.msk.bf16.mxu0 %vm3938_vm2, %v3936_v0  ;;  %3737 = vmatprep.mubr.msk.bf16.mxu1 %vm3938_vm2, %v3936_v0 }
  0xa2   : > { %3540 = vmatmul.mubr.msk.bf16.gmra.mrb[72].mxu0 %vm623_vm3, %v3893_v26  ;;  %3738 = vmatmul.mubr.msk.bf16.gmra.mrb[72].mxu1 %vm623_vm3, %v3893_v26 }
  0xa3   : > { %3543 = vmatprep.mubr.msk.bf16.mxu0 %vm3938_vm2, %v3936_v0  ;;  %3741 = vmatprep.mubr.msk.bf16.mxu1 %vm3938_vm2, %v3936_v0 }
  0xaa   : > { %3544 = vmatmul.mubr.msk.bf16.gmra.mrb[76].mxu0 %vm623_vm3, %v3894_v27  ;;  %3742 = vmatmul.mubr.msk.bf16.gmra.mrb[76].mxu1 %vm623_vm3, %v3894_v27 }
  0xab   : > { %3547 = vmatprep.mubr.msk.bf16.mxu0 %vm3938_vm2, %v3936_v0  ;;  %3745 = vmatprep.mubr.msk.bf16.mxu1 %vm3938_vm2, %v3936_v0 }
  0xb2   : > { %3548 = vmatmul.mubr.msk.bf16.gmra.mrb[80].mxu0 %vm623_vm3, %v3895_v28  ;;  %3746 = vmatmul.mubr.msk.bf16.gmra.mrb[80].mxu1 %vm623_vm3, %v3895_v28 }
  0xb3   : > { %3551 = vmatprep.mubr.msk.bf16.mxu0 %vm3938_vm2, %v3936_v0  ;;  %3749 = vmatprep.mubr.msk.bf16.mxu1 %vm3938_vm2, %v3936_v0 }
  0xba   : > { %3552 = vmatmul.mubr.msk.bf16.gmra.mrb[84].mxu0 %vm623_vm3, %v3896_v29  ;;  %3750 = vmatmul.mubr.msk.bf16.gmra.mrb[84].mxu1 %vm623_vm3, %v3896_v29 }
  0xbb   : > { %3555 = vmatprep.mubr.msk.bf16.mxu0 %vm3938_vm2, %v3936_v0  ;;  %3753 = vmatprep.mubr.msk.bf16.mxu1 %vm3938_vm2, %v3936_v0 }
  0xc2   : > { %3556 = vmatmul.mubr.msk.bf16.gmra.mrb[88].mxu0 %vm623_vm3, %v3897_v30  ;;  %3754 = vmatmul.mubr.msk.bf16.gmra.mrb[88].mxu1 %vm623_vm3, %v3897_v30 }
  0xc3   : > { %3559 = vmatprep.mubr.msk.bf16.mxu0 %vm3938_vm2, %v3936_v0  ;;  %3757 = vmatprep.mubr.msk.bf16.mxu1 %vm3938_vm2, %v3936_v0 }
  0xca   : > { %3560 = vmatmul.mubr.msk.bf16.gmra.mrb[92].mxu0 %vm623_vm3, %v3898_v31  ;;  %3758 = vmatmul.mubr.msk.bf16.gmra.mrb[92].mxu1 %vm623_vm3, %v3898_v31 }
  0xcb   : > { %3563 = vmatprep.mubr.msk.bf16.mxu0 %vm3938_vm2, %v3936_v0  ;;  %3761 = vmatprep.mubr.msk.bf16.mxu1 %vm3938_vm2, %v3936_v0 }
  0xd2   : > { %3564 = vmatmul.mubr.msk.bf16.gmra.mrb[96].mxu0 %vm623_vm3, %v3899_v32  ;;  %3762 = vmatmul.mubr.msk.bf16.gmra.mrb[96].mxu1 %vm623_vm3, %v3899_v32 }
  0xd3   : > { %3567 = vmatprep.mubr.msk.bf16.mxu0 %vm3938_vm2, %v3936_v0  ;;  %3765 = vmatprep.mubr.msk.bf16.mxu1 %vm3938_vm2, %v3936_v0 }
  0xda   : > { %3568 = vmatmul.mubr.msk.bf16.gmra.mrb[100].mxu0 %vm623_vm3, %v3900_v33  ;;  %3766 = vmatmul.mubr.msk.bf16.gmra.mrb[100].mxu1 %vm623_vm3, %v3900_v33 }
  0xdb   : > { %3571 = vmatprep.mubr.msk.bf16.mxu0 %vm3938_vm2, %v3936_v0  ;;  %3769 = vmatprep.mubr.msk.bf16.mxu1 %vm3938_vm2, %v3936_v0 }
  0xe2   : > { %3572 = vmatmul.mubr.msk.bf16.gmra.mrb[104].mxu0 %vm623_vm3, %v3901_v34  ;;  %3770 = vmatmul.mubr.msk.bf16.gmra.mrb[104].mxu1 %vm623_vm3, %v3901_v34 }
  0xe3   : > { %3575 = vmatprep.mubr.msk.bf16.mxu0 %vm3938_vm2, %v3936_v0  ;;  %3773 = vmatprep.mubr.msk.bf16.mxu1 %vm3938_vm2, %v3936_v0 }
  0xe5   : > { %v812_v37 = vpop.f32.mrb[0].mxu0  ;;  %v1352_v38 = vpop.f32.mrb[0].mxu1 }
  0xe6   : > { %v813_v39 = vadd.f32 %v4190_v35, %v812_v37  ;;  %v1353_v40 = vadd.f32 %v4195_v36, %v1352_v38  ;;  %v3469_v41 = vpop.f32.mrb[1].mxu0  ;;  %v3667_v42 = vpop.f32.mrb[1].mxu1 }
  0xe7   : > { %v815_v44 = vpop.f32.mrb[2].mxu0  ;;  %v1355_v45 = vpop.f32.mrb[2].mxu1 }
  0xe8   : > { %v1203_v46 = vmax.f32 %v813_v39, 0.0  ;;  %v3267_v47 = vpack.c.bf16 %v1353_v40, %v1353_v40  ;;  %v816_v48 = vadd.f32 %v4190_v35, %v815_v44  ;;  %v1356_v49 = vadd.f32 %v4195_v36, %v1355_v45  ;;  %v3470_v50 = vpop.f32.mrb[3].mxu0  ;;  %v3668_v51 = vpop.f32.mrb[3].mxu1  ;;  %v3905_v39 = vld [vmem:[%s4000_s30 + $0xf0] sm:$0xff]  }
  0xea   : > { %v3169_v52 = vpack.c.bf16 %v1203_v46, %v1203_v46  ;;  %2626 = vst.msk [vmem:[%s4208_s13] sm:$0xf] %vm2135_vm4, %v3267_v47  ;;  %v1204_v53 = vmax.f32 %v816_v48, 0.0  ;;  %v3268_v54 = vpack.c.bf16 %v1356_v49, %v1356_v49  ;;  %3576 = vmatmul.mubr.msk.bf16.gmra.mrb[108].mxu0 %vm623_vm3, %v3902_v43  ;;  %3774 = vmatmul.mubr.msk.bf16.gmra.mrb[108].mxu1 %vm623_vm3, %v3902_v43 }
  0xeb   : > { %3579 = vmatprep.mubr.msk.bf16.mxu0 %vm3938_vm2, %v3936_v0  ;;  %3777 = vmatprep.mubr.msk.bf16.mxu1 %vm3938_vm2, %v3936_v0 }
  0xec   : > { %2136 = vst.msk [vmem:[%s4216_s16] sm:$0xf] %vm2135_vm4, %v3169_v52  ;;  %v3170_v55 = vpack.c.bf16 %v1204_v53, %v1204_v53  ;;  %2627 = vst.msk [vmem:[%s4208_s13 + $0x4] sm:$0xf] %vm2135_vm4, %v3268_v54 }
  0xed   : > { %v820_v56 = vpop.f32.mrb[4].mxu0  ;;  %v1360_v57 = vpop.f32.mrb[4].mxu1 }
  0xee   : > { %2137 = vst.msk [vmem:[%s4216_s16 + $0x4] sm:$0xf] %vm2135_vm4, %v3170_v55  ;;  %v821_v58 = vadd.f32 %v4190_v35, %v820_v56  ;;  %v1361_v59 = vadd.f32 %v4195_v36, %v1360_v57  ;;  %v3473_v60 = vpop.f32.mrb[5].mxu0  ;;  %v3671_v61 = vpop.f32.mrb[5].mxu1 }
  0xef   : > { %v823_v63 = vpop.f32.mrb[6].mxu0  ;;  %v1363_v1 = vpop.f32.mrb[6].mxu1 }
  0xf0   : > { %v1205_v2 = vmax.f32 %v821_v58, 0.0  ;;  %v3269_v3 = vpack.c.bf16 %v1361_v59, %v1361_v59  ;;  %v824_v4 = vadd.f32 %v4190_v35, %v823_v63  ;;  %v1364_v5 = vadd.f32 %v4195_v36, %v1363_v1  ;;  %v3474_v6 = vpop.f32.mrb[7].mxu0  ;;  %v3672_v7 = vpop.f32.mrb[7].mxu1  ;;  %v3906_v58 = vld [vmem:[%s4000_s30 + $0xf8] sm:$0xff]  }
  0xf2   : > { %v3171_v8 = vpack.c.bf16 %v1205_v2, %v1205_v2  ;;  %2628 = vst.msk [vmem:[%s4208_s13 + $0x8] sm:$0xf] %vm2135_vm4, %v3269_v3  ;;  %v1206_v9 = vmax.f32 %v824_v4, 0.0  ;;  %v3270_v10 = vpack.c.bf16 %v1364_v5, %v1364_v5  ;;  %3580 = vmatmul.mubr.msk.bf16.gmra.mrb[112].mxu0 %vm623_vm3, %v3903_v62  ;;  %3778 = vmatmul.mubr.msk.bf16.gmra.mrb[112].mxu1 %vm623_vm3, %v3903_v62 }
  0xf3   : > { %3583 = vmatprep.mubr.msk.bf16.mxu0 %vm3938_vm2, %v3936_v0  ;;  %3781 = vmatprep.mubr.msk.bf16.mxu1 %vm3938_vm2, %v3936_v0 }
  0xf4   : > { %2138 = vst.msk [vmem:[%s4216_s16 + $0x8] sm:$0xf] %vm2135_vm4, %v3171_v8  ;;  %v3172_v11 = vpack.c.bf16 %v1206_v9, %v1206_v9  ;;  %2629 = vst.msk [vmem:[%s4208_s13 + $0xc] sm:$0xf] %vm2135_vm4, %v3270_v10 }
  0xf5   : > { %v828_v12 = vpop.f32.mrb[8].mxu0  ;;  %v1368_v13 = vpop.f32.mrb[8].mxu1 }
  0xf6   : > { %2139 = vst.msk [vmem:[%s4216_s16 + $0xc] sm:$0xf] %vm2135_vm4, %v3172_v11  ;;  %v829_v14 = vadd.f32 %v4190_v35, %v828_v12  ;;  %v1369_v15 = vadd.f32 %v4195_v36, %v1368_v13  ;;  %v3477_v16 = vpop.f32.mrb[9].mxu0  ;;  %v3675_v17 = vpop.f32.mrb[9].mxu1 }
  0xf7   : > { %v831_v19 = vpop.f32.mrb[10].mxu0  ;;  %v1371_v20 = vpop.f32.mrb[10].mxu1 }
  0xf8   : > { %v1207_v21 = vmax.f32 %v829_v14, 0.0  ;;  %v3271_v22 = vpack.c.bf16 %v1369_v15, %v1369_v15  ;;  %v832_v23 = vadd.f32 %v4190_v35, %v831_v19  ;;  %v1372_v24 = vadd.f32 %v4195_v36, %v1371_v20  ;;  %v3478_v25 = vpop.f32.mrb[11].mxu0  ;;  %v3676_v26 = vpop.f32.mrb[11].mxu1  ;;  %v3907_v14 = vld [vmem:[%s4000_s30 + $0x100] sm:$0xff]  }
  0xfa   : > { %v3173_v27 = vpack.c.bf16 %v1207_v21, %v1207_v21  ;;  %2630 = vst.msk [vmem:[%s4208_s13 + $0x10] sm:$0xf] %vm2135_vm4, %v3271_v22  ;;  %v1208_v28 = vmax.f32 %v832_v23, 0.0  ;;  %v3272_v29 = vpack.c.bf16 %v1372_v24, %v1372_v24  ;;  %3584 = vmatmul.mubr.msk.bf16.gmra.mrb[116].mxu0 %vm623_vm3, %v3904_v18  ;;  %3782 = vmatmul.mubr.msk.bf16.gmra.mrb[116].mxu1 %vm623_vm3, %v3904_v18 }
  0xfb   : > { %3587 = vmatprep.mubr.msk.bf16.mxu0 %vm3938_vm2, %v3936_v0  ;;  %3785 = vmatprep.mubr.msk.bf16.mxu1 %vm3938_vm2, %v3936_v0 }
  0xfc   : > { %2140 = vst.msk [vmem:[%s4216_s16 + $0x10] sm:$0xf] %vm2135_vm4, %v3173_v27  ;;  %v3174_v30 = vpack.c.bf16 %v1208_v28, %v1208_v28  ;;  %2631 = vst.msk [vmem:[%s4208_s13 + $0x14] sm:$0xf] %vm2135_vm4, %v3272_v29 }
  0xfd   : > { %v836_v31 = vpop.f32.mrb[12].mxu0  ;;  %v1376_v32 = vpop.f32.mrb[12].mxu1 }
  0xfe   : > { %2141 = vst.msk [vmem:[%s4216_s16 + $0x14] sm:$0xf] %vm2135_vm4, %v3174_v30  ;;  %v837_v33 = vadd.f32 %v4190_v35, %v836_v31  ;;  %v1377_v34 = vadd.f32 %v4195_v36, %v1376_v32  ;;  %v3481_v37 = vpop.f32.mrb[13].mxu0  ;;  %v3679_v38 = vpop.f32.mrb[13].mxu1 }
  0xff   : > { %v839_v40 = vpop.f32.mrb[14].mxu0  ;;  %v1379_v41 = vpop.f32.mrb[14].mxu1 }
 0x100   : > { %v1209_v42 = vmax.f32 %v837_v33, 0.0  ;;  %v3273_v43 = vpack.c.bf16 %v1377_v34, %v1377_v34  ;;  %v840_v44 = vadd.f32 %v4190_v35, %v839_v40  ;;  %v1380_v45 = vadd.f32 %v4195_v36, %v1379_v41  ;;  %v3482_v46 = vpop.f32.mrb[15].mxu0  ;;  %v3680_v47 = vpop.f32.mrb[15].mxu1  ;;  %v3908_v33 = vld [vmem:[%s4000_s30 + $0x108] sm:$0xff]  }
 0x102   : > { %v3175_v48 = vpack.c.bf16 %v1209_v42, %v1209_v42  ;;  %2632 = vst.msk [vmem:[%s4208_s13 + $0x18] sm:$0xf] %vm2135_vm4, %v3273_v43  ;;  %v1210_v49 = vmax.f32 %v840_v44, 0.0  ;;  %v3274_v50 = vpack.c.bf16 %v1380_v45, %v1380_v45  ;;  %3588 = vmatmul.mubr.msk.bf16.gmra.mrb[120].mxu0 %vm623_vm3, %v3905_v39  ;;  %3786 = vmatmul.mubr.msk.bf16.gmra.mrb[120].mxu1 %vm623_vm3, %v3905_v39 }
 0x103   : > { %3591 = vmatprep.mubr.msk.bf16.mxu0 %vm3938_vm2, %v3936_v0  ;;  %3789 = vmatprep.mubr.msk.bf16.mxu1 %vm3938_vm2, %v3936_v0 }
 0x104   : > { %2142 = vst.msk [vmem:[%s4216_s16 + $0x18] sm:$0xf] %vm2135_vm4, %v3175_v48  ;;  %v3176_v51 = vpack.c.bf16 %v1210_v49, %v1210_v49  ;;  %2633 = vst.msk [vmem:[%s4208_s13 + $0x1c] sm:$0xf] %vm2135_vm4, %v3274_v50 }
 0x105   : > { %v844_v52 = vpop.f32.mrb[16].mxu0  ;;  %v1384_v53 = vpop.f32.mrb[16].mxu1 }
 0x106   : > { %2143 = vst.msk [vmem:[%s4216_s16 + $0x1c] sm:$0xf] %vm2135_vm4, %v3176_v51  ;;  %v845_v54 = vadd.f32 %v4190_v35, %v844_v52  ;;  %v1385_v55 = vadd.f32 %v4195_v36, %v1384_v53  ;;  %v3485_v56 = vpop.f32.mrb[17].mxu0  ;;  %v3683_v57 = vpop.f32.mrb[17].mxu1 }
 0x107   : > { %v847_v59 = vpop.f32.mrb[18].mxu0  ;;  %v1387_v60 = vpop.f32.mrb[18].mxu1 }
 0x108   : > { %v1211_v61 = vmax.f32 %v845_v54, 0.0  ;;  %v3275_v62 = vpack.c.bf16 %v1385_v55, %v1385_v55  ;;  %v848_v63 = vadd.f32 %v4190_v35, %v847_v59  ;;  %v1388_v1 = vadd.f32 %v4195_v36, %v1387_v60  ;;  %v3486_v2 = vpop.f32.mrb[19].mxu0  ;;  %v3684_v3 = vpop.f32.mrb[19].mxu1  ;;  %v3909_v54 = vld [vmem:[%s4000_s30 + $0x110] sm:$0xff]  }
 0x10a   : > { %v3177_v4 = vpack.c.bf16 %v1211_v61, %v1211_v61  ;;  %2634 = vst.msk [vmem:[%s4208_s13 + $0x20] sm:$0xf] %vm2135_vm4, %v3275_v62  ;;  %v1212_v5 = vmax.f32 %v848_v63, 0.0  ;;  %v3276_v6 = vpack.c.bf16 %v1388_v1, %v1388_v1  ;;  %3592 = vmatmul.mubr.msk.bf16.gmra.mrb[124].mxu0 %vm623_vm3, %v3906_v58  ;;  %3790 = vmatmul.mubr.msk.bf16.gmra.mrb[124].mxu1 %vm623_vm3, %v3906_v58 }
 0x10b   : > { %3595 = vmatprep.mubr.msk.bf16.mxu0 %vm3938_vm2, %v3936_v0  ;;  %3793 = vmatprep.mubr.msk.bf16.mxu1 %vm3938_vm2, %v3936_v0 }
 0x10c   : > { %2144 = vst.msk [vmem:[%s4216_s16 + $0x20] sm:$0xf] %vm2135_vm4, %v3177_v4  ;;  %v3178_v7 = vpack.c.bf16 %v1212_v5, %v1212_v5  ;;  %2635 = vst.msk [vmem:[%s4208_s13 + $0x24] sm:$0xf] %vm2135_vm4, %v3276_v6 }
 0x10d   : > { %v852_v8 = vpop.f32.mrb[20].mxu0  ;;  %v1392_v9 = vpop.f32.mrb[20].mxu1 }
 0x10e   : > { %2145 = vst.msk [vmem:[%s4216_s16 + $0x24] sm:$0xf] %vm2135_vm4, %v3178_v7  ;;  %v853_v10 = vadd.f32 %v4190_v35, %v852_v8  ;;  %v1393_v11 = vadd.f32 %v4195_v36, %v1392_v9  ;;  %v3489_v12 = vpop.f32.mrb[21].mxu0  ;;  %v3687_v13 = vpop.f32.mrb[21].mxu1 }
 0x10f   : > { %v855_v15 = vpop.f32.mrb[22].mxu0  ;;  %v1395_v16 = vpop.f32.mrb[22].mxu1 }
 0x110   : > { %v1213_v17 = vmax.f32 %v853_v10, 0.0  ;;  %v3277_v18 = vpack.c.bf16 %v1393_v11, %v1393_v11  ;;  %v856_v19 = vadd.f32 %v4190_v35, %v855_v15  ;;  %v1396_v20 = vadd.f32 %v4195_v36, %v1395_v16  ;;  %v3490_v21 = vpop.f32.mrb[23].mxu0  ;;  %v3688_v22 = vpop.f32.mrb[23].mxu1  ;;  %v3910_v10 = vld [vmem:[%s4000_s30 + $0x118] sm:$0xff]  }
 0x112   : > { %v3179_v23 = vpack.c.bf16 %v1213_v17, %v1213_v17  ;;  %2636 = vst.msk [vmem:[%s4208_s13 + $0x28] sm:$0xf] %vm2135_vm4, %v3277_v18  ;;  %v1214_v24 = vmax.f32 %v856_v19, 0.0  ;;  %v3278_v25 = vpack.c.bf16 %v1396_v20, %v1396_v20  ;;  %3596 = vmatmul.mubr.msk.bf16.gmra.mrb[128].mxu0 %vm623_vm3, %v3907_v14  ;;  %3794 = vmatmul.mubr.msk.bf16.gmra.mrb[128].mxu1 %vm623_vm3, %v3907_v14 }
 0x113   : > { %3599 = vmatprep.mubr.msk.bf16.mxu0 %vm3938_vm2, %v3936_v0  ;;  %3797 = vmatprep.mubr.msk.bf16.mxu1 %vm3938_vm2, %v3936_v0 }
 0x114   : > { %2146 = vst.msk [vmem:[%s4216_s16 + $0x28] sm:$0xf] %vm2135_vm4, %v3179_v23  ;;  %v3180_v26 = vpack.c.bf16 %v1214_v24, %v1214_v24  ;;  %2637 = vst.msk [vmem:[%s4208_s13 + $0x2c] sm:$0xf] %vm2135_vm4, %v3278_v25 }
 0x115   : > { %v860_v27 = vpop.f32.mrb[24].mxu0  ;;  %v1400_v28 = vpop.f32.mrb[24].mxu1 }
 0x116   : > { %2147 = vst.msk [vmem:[%s4216_s16 + $0x2c] sm:$0xf] %vm2135_vm4, %v3180_v26  ;;  %v861_v29 = vadd.f32 %v4190_v35, %v860_v27  ;;  %v1401_v30 = vadd.f32 %v4195_v36, %v1400_v28  ;;  %v3493_v31 = vpop.f32.mrb[25].mxu0  ;;  %v3691_v32 = vpop.f32.mrb[25].mxu1 }
 0x117   : > { %v863_v34 = vpop.f32.mrb[26].mxu0  ;;  %v1403_v37 = vpop.f32.mrb[26].mxu1 }
 0x118   : > { %v1215_v38 = vmax.f32 %v861_v29, 0.0  ;;  %v3279_v39 = vpack.c.bf16 %v1401_v30, %v1401_v30  ;;  %v864_v40 = vadd.f32 %v4190_v35, %v863_v34  ;;  %v1404_v41 = vadd.f32 %v4195_v36, %v1403_v37  ;;  %v3494_v42 = vpop.f32.mrb[27].mxu0  ;;  %v3692_v43 = vpop.f32.mrb[27].mxu1  ;;  %v3911_v29 = vld [vmem:[%s4000_s30 + $0x120] sm:$0xff]  }
 0x11a   : > { %v3181_v44 = vpack.c.bf16 %v1215_v38, %v1215_v38  ;;  %2638 = vst.msk [vmem:[%s4208_s13 + $0x30] sm:$0xf] %vm2135_vm4, %v3279_v39  ;;  %v1216_v45 = vmax.f32 %v864_v40, 0.0  ;;  %v3280_v46 = vpack.c.bf16 %v1404_v41, %v1404_v41  ;;  %3600 = vmatmul.mubr.msk.bf16.gmra.mrb[132].mxu0 %vm623_vm3, %v3908_v33  ;;  %3798 = vmatmul.mubr.msk.bf16.gmra.mrb[132].mxu1 %vm623_vm3, %v3908_v33 }
 0x11b   : > { %3603 = vmatprep.mubr.msk.bf16.mxu0 %vm3938_vm2, %v3936_v0  ;;  %3801 = vmatprep.mubr.msk.bf16.mxu1 %vm3938_vm2, %v3936_v0 }
 0x11c   : > { %2148 = vst.msk [vmem:[%s4216_s16 + $0x30] sm:$0xf] %vm2135_vm4, %v3181_v44  ;;  %v3182_v47 = vpack.c.bf16 %v1216_v45, %v1216_v45  ;;  %2639 = vst.msk [vmem:[%s4208_s13 + $0x34] sm:$0xf] %vm2135_vm4, %v3280_v46 }
 0x11d   : > { %v868_v48 = vpop.f32.mrb[28].mxu0  ;;  %v1408_v49 = vpop.f32.mrb[28].mxu1 }
 0x11e   : > { %2149 = vst.msk [vmem:[%s4216_s16 + $0x34] sm:$0xf] %vm2135_vm4, %v3182_v47  ;;  %v869_v50 = vadd.f32 %v4190_v35, %v868_v48  ;;  %v1409_v51 = vadd.f32 %v4195_v36, %v1408_v49  ;;  %v3497_v52 = vpop.f32.mrb[29].mxu0  ;;  %v3695_v53 = vpop.f32.mrb[29].mxu1 }
 0x11f   : > { %v871_v55 = vpop.f32.mrb[30].mxu0  ;;  %v1411_v56 = vpop.f32.mrb[30].mxu1 }
 0x120   : > { %v1217_v57 = vmax.f32 %v869_v50, 0.0  ;;  %v3281_v58 = vpack.c.bf16 %v1409_v51, %v1409_v51  ;;  %v872_v59 = vadd.f32 %v4190_v35, %v871_v55  ;;  %v1412_v60 = vadd.f32 %v4195_v36, %v1411_v56  ;;  %v3498_v61 = vpop.f32.mrb[31].mxu0  ;;  %v3696_v62 = vpop.f32.mrb[31].mxu1  ;;  %v3912_v50 = vld [vmem:[%s4000_s30 + $0x128] sm:$0xff]  }
 0x122   : > { %v3183_v63 = vpack.c.bf16 %v1217_v57, %v1217_v57  ;;  %2640 = vst.msk [vmem:[%s4208_s13 + $0x38] sm:$0xf] %vm2135_vm4, %v3281_v58  ;;  %v1218_v1 = vmax.f32 %v872_v59, 0.0  ;;  %v3282_v2 = vpack.c.bf16 %v1412_v60, %v1412_v60  ;;  %3604 = vmatmul.mubr.msk.bf16.gmra.mrb[136].mxu0 %vm623_vm3, %v3909_v54  ;;  %3802 = vmatmul.mubr.msk.bf16.gmra.mrb[136].mxu1 %vm623_vm3, %v3909_v54 }
 0x123   : > { %3607 = vmatprep.mubr.msk.bf16.mxu0 %vm3938_vm2, %v3936_v0  ;;  %3805 = vmatprep.mubr.msk.bf16.mxu1 %vm3938_vm2, %v3936_v0 }
 0x124   : > { %2150 = vst.msk [vmem:[%s4216_s16 + $0x38] sm:$0xf] %vm2135_vm4, %v3183_v63  ;;  %v3184_v3 = vpack.c.bf16 %v1218_v1, %v1218_v1  ;;  %2641 = vst.msk [vmem:[%s4208_s13 + $0x3c] sm:$0xf] %vm2135_vm4, %v3282_v2 }
 0x125   : > { %v876_v4 = vpop.f32.mrb[32].mxu0  ;;  %v1416_v5 = vpop.f32.mrb[32].mxu1 }
 0x126   : > { %2151 = vst.msk [vmem:[%s4216_s16 + $0x3c] sm:$0xf] %vm2135_vm4, %v3184_v3  ;;  %v877_v6 = vadd.f32 %v4190_v35, %v876_v4  ;;  %v1417_v7 = vadd.f32 %v4195_v36, %v1416_v5  ;;  %v3501_v8 = vpop.f32.mrb[33].mxu0  ;;  %v3699_v9 = vpop.f32.mrb[33].mxu1 }
 0x127   : > { %v879_v11 = vpop.f32.mrb[34].mxu0  ;;  %v1419_v12 = vpop.f32.mrb[34].mxu1 }
 0x128   : > { %v1219_v13 = vmax.f32 %v877_v6, 0.0  ;;  %v3283_v14 = vpack.c.bf16 %v1417_v7, %v1417_v7  ;;  %v880_v15 = vadd.f32 %v4190_v35, %v879_v11  ;;  %v1420_v16 = vadd.f32 %v4195_v36, %v1419_v12  ;;  %v3502_v17 = vpop.f32.mrb[35].mxu0  ;;  %v3700_v18 = vpop.f32.mrb[35].mxu1  ;;  %v3913_v6 = vld [vmem:[%s4000_s30 + $0x130] sm:$0xff]  }
 0x12a   : > { %v3185_v19 = vpack.c.bf16 %v1219_v13, %v1219_v13  ;;  %2642 = vst.msk [vmem:[%s4208_s13 + $0x40] sm:$0xf] %vm2135_vm4, %v3283_v14  ;;  %v1220_v20 = vmax.f32 %v880_v15, 0.0  ;;  %v3284_v21 = vpack.c.bf16 %v1420_v16, %v1420_v16  ;;  %3608 = vmatmul.mubr.msk.bf16.gmra.mrb[140].mxu0 %vm623_vm3, %v3910_v10  ;;  %3806 = vmatmul.mubr.msk.bf16.gmra.mrb[140].mxu1 %vm623_vm3, %v3910_v10 }
 0x12b   : > { %3611 = vmatprep.mubr.msk.bf16.mxu0 %vm3938_vm2, %v3936_v0  ;;  %3809 = vmatprep.mubr.msk.bf16.mxu1 %vm3938_vm2, %v3936_v0 }
 0x12c   : > { %2152 = vst.msk [vmem:[%s4216_s16 + $0x40] sm:$0xf] %vm2135_vm4, %v3185_v19  ;;  %v3186_v22 = vpack.c.bf16 %v1220_v20, %v1220_v20  ;;  %2643 = vst.msk [vmem:[%s4208_s13 + $0x44] sm:$0xf] %vm2135_vm4, %v3284_v21 }
 0x12d   : > { %v884_v23 = vpop.f32.mrb[36].mxu0  ;;  %v1424_v24 = vpop.f32.mrb[36].mxu1 }
 0x12e   : > { %2153 = vst.msk [vmem:[%s4216_s16 + $0x44] sm:$0xf] %vm2135_vm4, %v3186_v22  ;;  %v885_v25 = vadd.f32 %v4190_v35, %v884_v23  ;;  %v1425_v26 = vadd.f32 %v4195_v36, %v1424_v24  ;;  %v3505_v27 = vpop.f32.mrb[37].mxu0  ;;  %v3703_v28 = vpop.f32.mrb[37].mxu1 }
 0x12f   : > { %v887_v30 = vpop.f32.mrb[38].mxu0  ;;  %v1427_v31 = vpop.f32.mrb[38].mxu1 }
 0x130   : > { %v1221_v32 = vmax.f32 %v885_v25, 0.0  ;;  %v3285_v33 = vpack.c.bf16 %v1425_v26, %v1425_v26  ;;  %v888_v34 = vadd.f32 %v4190_v35, %v887_v30  ;;  %v1428_v37 = vadd.f32 %v4195_v36, %v1427_v31  ;;  %v3506_v38 = vpop.f32.mrb[39].mxu0  ;;  %v3704_v39 = vpop.f32.mrb[39].mxu1  ;;  %v3914_v25 = vld [vmem:[%s4000_s30 + $0x138] sm:$0xff]  }
 0x132   : > { %v3187_v40 = vpack.c.bf16 %v1221_v32, %v1221_v32  ;;  %2644 = vst.msk [vmem:[%s4208_s13 + $0x48] sm:$0xf] %vm2135_vm4, %v3285_v33  ;;  %v1222_v41 = vmax.f32 %v888_v34, 0.0  ;;  %v3286_v42 = vpack.c.bf16 %v1428_v37, %v1428_v37  ;;  %3612 = vmatmul.mubr.msk.bf16.gmra.mrb[144].mxu0 %vm623_vm3, %v3911_v29  ;;  %3810 = vmatmul.mubr.msk.bf16.gmra.mrb[144].mxu1 %vm623_vm3, %v3911_v29 }
 0x133   : > { %3615 = vmatprep.mubr.msk.bf16.mxu0 %vm3938_vm2, %v3936_v0  ;;  %3813 = vmatprep.mubr.msk.bf16.mxu1 %vm3938_vm2, %v3936_v0 }
 0x134   : > { %2154 = vst.msk [vmem:[%s4216_s16 + $0x48] sm:$0xf] %vm2135_vm4, %v3187_v40  ;;  %v3188_v43 = vpack.c.bf16 %v1222_v41, %v1222_v41  ;;  %2645 = vst.msk [vmem:[%s4208_s13 + $0x4c] sm:$0xf] %vm2135_vm4, %v3286_v42 }
 0x135   : > { %v892_v44 = vpop.f32.mrb[40].mxu0  ;;  %v1432_v45 = vpop.f32.mrb[40].mxu1 }
 0x136   : > { %2155 = vst.msk [vmem:[%s4216_s16 + $0x4c] sm:$0xf] %vm2135_vm4, %v3188_v43  ;;  %v893_v46 = vadd.f32 %v4190_v35, %v892_v44  ;;  %v1433_v47 = vadd.f32 %v4195_v36, %v1432_v45  ;;  %v3509_v48 = vpop.f32.mrb[41].mxu0  ;;  %v3707_v49 = vpop.f32.mrb[41].mxu1 }
 0x137   : > { %v895_v51 = vpop.f32.mrb[42].mxu0  ;;  %v1435_v52 = vpop.f32.mrb[42].mxu1 }
 0x138   : > { %v1223_v53 = vmax.f32 %v893_v46, 0.0  ;;  %v3287_v54 = vpack.c.bf16 %v1433_v47, %v1433_v47  ;;  %v896_v55 = vadd.f32 %v4190_v35, %v895_v51  ;;  %v1436_v56 = vadd.f32 %v4195_v36, %v1435_v52  ;;  %v3510_v57 = vpop.f32.mrb[43].mxu0  ;;  %v3708_v58 = vpop.f32.mrb[43].mxu1  ;;  %v3915_v46 = vld [vmem:[%s4000_s30 + $0x140] sm:$0xff]  }
 0x13a   : > { %v3189_v59 = vpack.c.bf16 %v1223_v53, %v1223_v53  ;;  %2646 = vst.msk [vmem:[%s4208_s13 + $0x50] sm:$0xf] %vm2135_vm4, %v3287_v54  ;;  %v1224_v60 = vmax.f32 %v896_v55, 0.0  ;;  %v3288_v61 = vpack.c.bf16 %v1436_v56, %v1436_v56  ;;  %3616 = vmatmul.mubr.msk.bf16.gmra.mrb[148].mxu0 %vm623_vm3, %v3912_v50  ;;  %3814 = vmatmul.mubr.msk.bf16.gmra.mrb[148].mxu1 %vm623_vm3, %v3912_v50 }
 0x13b   : > { %3619 = vmatprep.mubr.msk.bf16.mxu0 %vm3938_vm2, %v3936_v0  ;;  %3817 = vmatprep.mubr.msk.bf16.mxu1 %vm3938_vm2, %v3936_v0 }
 0x13c   : > { %2156 = vst.msk [vmem:[%s4216_s16 + $0x50] sm:$0xf] %vm2135_vm4, %v3189_v59  ;;  %v3190_v62 = vpack.c.bf16 %v1224_v60, %v1224_v60  ;;  %2647 = vst.msk [vmem:[%s4208_s13 + $0x54] sm:$0xf] %vm2135_vm4, %v3288_v61 }
 0x13d   : > { %v900_v63 = vpop.f32.mrb[44].mxu0  ;;  %v1440_v1 = vpop.f32.mrb[44].mxu1 }
 0x13e   : > { %2157 = vst.msk [vmem:[%s4216_s16 + $0x54] sm:$0xf] %vm2135_vm4, %v3190_v62  ;;  %v901_v2 = vadd.f32 %v4190_v35, %v900_v63  ;;  %v1441_v3 = vadd.f32 %v4195_v36, %v1440_v1  ;;  %v3513_v4 = vpop.f32.mrb[45].mxu0  ;;  %v3711_v5 = vpop.f32.mrb[45].mxu1 }
 0x13f   : > { %v903_v7 = vpop.f32.mrb[46].mxu0  ;;  %v1443_v8 = vpop.f32.mrb[46].mxu1 }
 0x140   : > { %v1225_v9 = vmax.f32 %v901_v2, 0.0  ;;  %v3289_v10 = vpack.c.bf16 %v1441_v3, %v1441_v3  ;;  %v904_v11 = vadd.f32 %v4190_v35, %v903_v7  ;;  %v1444_v12 = vadd.f32 %v4195_v36, %v1443_v8  ;;  %v3514_v13 = vpop.f32.mrb[47].mxu0  ;;  %v3712_v14 = vpop.f32.mrb[47].mxu1  ;;  %v3916_v2 = vld [vmem:[%s4000_s30 + $0x148] sm:$0xff]  }
 0x142   : > { %v3191_v15 = vpack.c.bf16 %v1225_v9, %v1225_v9  ;;  %2648 = vst.msk [vmem:[%s4208_s13 + $0x58] sm:$0xf] %vm2135_vm4, %v3289_v10  ;;  %v1226_v16 = vmax.f32 %v904_v11, 0.0  ;;  %v3290_v17 = vpack.c.bf16 %v1444_v12, %v1444_v12  ;;  %3620 = vmatmul.mubr.msk.bf16.gmra.mrb[152].mxu0 %vm623_vm3, %v3913_v6  ;;  %3818 = vmatmul.mubr.msk.bf16.gmra.mrb[152].mxu1 %vm623_vm3, %v3913_v6 }
 0x143   : > { %3623 = vmatprep.mubr.msk.bf16.mxu0 %vm3938_vm2, %v3936_v0  ;;  %3821 = vmatprep.mubr.msk.bf16.mxu1 %vm3938_vm2, %v3936_v0 }
 0x144   : > { %2158 = vst.msk [vmem:[%s4216_s16 + $0x58] sm:$0xf] %vm2135_vm4, %v3191_v15  ;;  %v3192_v18 = vpack.c.bf16 %v1226_v16, %v1226_v16  ;;  %2649 = vst.msk [vmem:[%s4208_s13 + $0x5c] sm:$0xf] %vm2135_vm4, %v3290_v17 }
 0x145   : > { %v908_v19 = vpop.f32.mrb[48].mxu0  ;;  %v1448_v20 = vpop.f32.mrb[48].mxu1 }
 0x146   : > { %2159 = vst.msk [vmem:[%s4216_s16 + $0x5c] sm:$0xf] %vm2135_vm4, %v3192_v18  ;;  %v909_v21 = vadd.f32 %v4190_v35, %v908_v19  ;;  %v1449_v22 = vadd.f32 %v4195_v36, %v1448_v20  ;;  %v3517_v23 = vpop.f32.mrb[49].mxu0  ;;  %v3715_v24 = vpop.f32.mrb[49].mxu1 }
 0x147   : > { %v911_v26 = vpop.f32.mrb[50].mxu0  ;;  %v1451_v27 = vpop.f32.mrb[50].mxu1 }
 0x148   : > { %v1227_v28 = vmax.f32 %v909_v21, 0.0  ;;  %v3291_v29 = vpack.c.bf16 %v1449_v22, %v1449_v22  ;;  %v912_v30 = vadd.f32 %v4190_v35, %v911_v26  ;;  %v1452_v31 = vadd.f32 %v4195_v36, %v1451_v27  ;;  %v3518_v32 = vpop.f32.mrb[51].mxu0  ;;  %v3716_v33 = vpop.f32.mrb[51].mxu1  ;;  %v3917_v21 = vld [vmem:[%s4000_s30 + $0x150] sm:$0xff]  }
 0x14a   : > { %v3193_v34 = vpack.c.bf16 %v1227_v28, %v1227_v28  ;;  %2650 = vst.msk [vmem:[%s4208_s13 + $0x60] sm:$0xf] %vm2135_vm4, %v3291_v29  ;;  %v1228_v37 = vmax.f32 %v912_v30, 0.0  ;;  %v3292_v38 = vpack.c.bf16 %v1452_v31, %v1452_v31  ;;  %3624 = vmatmul.mubr.msk.bf16.gmra.mrb[156].mxu0 %vm623_vm3, %v3914_v25  ;;  %3822 = vmatmul.mubr.msk.bf16.gmra.mrb[156].mxu1 %vm623_vm3, %v3914_v25 }
 0x14b   : > { %3627 = vmatprep.mubr.msk.bf16.mxu0 %vm3938_vm2, %v3936_v0  ;;  %3825 = vmatprep.mubr.msk.bf16.mxu1 %vm3938_vm2, %v3936_v0 }
 0x14c   : > { %2160 = vst.msk [vmem:[%s4216_s16 + $0x60] sm:$0xf] %vm2135_vm4, %v3193_v34  ;;  %v3194_v39 = vpack.c.bf16 %v1228_v37, %v1228_v37  ;;  %2651 = vst.msk [vmem:[%s4208_s13 + $0x64] sm:$0xf] %vm2135_vm4, %v3292_v38 }
 0x14d   : > { %v916_v40 = vpop.f32.mrb[52].mxu0  ;;  %v1456_v41 = vpop.f32.mrb[52].mxu1 }
 0x14e   : > { %2161 = vst.msk [vmem:[%s4216_s16 + $0x64] sm:$0xf] %vm2135_vm4, %v3194_v39  ;;  %v917_v42 = vadd.f32 %v4190_v35, %v916_v40  ;;  %v1457_v43 = vadd.f32 %v4195_v36, %v1456_v41  ;;  %v3521_v44 = vpop.f32.mrb[53].mxu0  ;;  %v3719_v45 = vpop.f32.mrb[53].mxu1 }
 0x14f   : > { %v919_v47 = vpop.f32.mrb[54].mxu0  ;;  %v1459_v48 = vpop.f32.mrb[54].mxu1 }
 0x150   : > { %v1229_v49 = vmax.f32 %v917_v42, 0.0  ;;  %v3293_v50 = vpack.c.bf16 %v1457_v43, %v1457_v43  ;;  %v920_v51 = vadd.f32 %v4190_v35, %v919_v47  ;;  %v1460_v52 = vadd.f32 %v4195_v36, %v1459_v48  ;;  %v3522_v53 = vpop.f32.mrb[55].mxu0  ;;  %v3720_v54 = vpop.f32.mrb[55].mxu1  ;;  %v3918_v42 = vld [vmem:[%s4000_s30 + $0x158] sm:$0xff]  }
 0x152   : > { %v3195_v55 = vpack.c.bf16 %v1229_v49, %v1229_v49  ;;  %2652 = vst.msk [vmem:[%s4208_s13 + $0x68] sm:$0xf] %vm2135_vm4, %v3293_v50  ;;  %v1230_v56 = vmax.f32 %v920_v51, 0.0  ;;  %v3294_v57 = vpack.c.bf16 %v1460_v52, %v1460_v52  ;;  %3628 = vmatmul.mubr.msk.bf16.gmra.mrb[160].mxu0 %vm623_vm3, %v3915_v46  ;;  %3826 = vmatmul.mubr.msk.bf16.gmra.mrb[160].mxu1 %vm623_vm3, %v3915_v46 }
 0x153   : > { %3631 = vmatprep.mubr.msk.bf16.mxu0 %vm3938_vm2, %v3936_v0  ;;  %3829 = vmatprep.mubr.msk.bf16.mxu1 %vm3938_vm2, %v3936_v0 }
 0x154   : > { %2162 = vst.msk [vmem:[%s4216_s16 + $0x68] sm:$0xf] %vm2135_vm4, %v3195_v55  ;;  %v3196_v58 = vpack.c.bf16 %v1230_v56, %v1230_v56  ;;  %2653 = vst.msk [vmem:[%s4208_s13 + $0x6c] sm:$0xf] %vm2135_vm4, %v3294_v57 }
 0x155   : > { %v924_v59 = vpop.f32.mrb[56].mxu0  ;;  %v1464_v60 = vpop.f32.mrb[56].mxu1 }
 0x156   : > { %2163 = vst.msk [vmem:[%s4216_s16 + $0x6c] sm:$0xf] %vm2135_vm4, %v3196_v58  ;;  %v925_v61 = vadd.f32 %v4190_v35, %v924_v59  ;;  %v1465_v62 = vadd.f32 %v4195_v36, %v1464_v60  ;;  %v3525_v63 = vpop.f32.mrb[57].mxu0  ;;  %v3723_v1 = vpop.f32.mrb[57].mxu1 }
 0x157   : > { %v927_v3 = vpop.f32.mrb[58].mxu0  ;;  %v1467_v4 = vpop.f32.mrb[58].mxu1 }
 0x158   : > { %v1231_v5 = vmax.f32 %v925_v61, 0.0  ;;  %v3295_v6 = vpack.c.bf16 %v1465_v62, %v1465_v62  ;;  %v928_v7 = vadd.f32 %v4190_v35, %v927_v3  ;;  %v1468_v8 = vadd.f32 %v4195_v36, %v1467_v4  ;;  %v3526_v9 = vpop.f32.mrb[59].mxu0  ;;  %v3724_v10 = vpop.f32.mrb[59].mxu1  ;;  %v3919_v61 = vld [vmem:[%s4000_s30 + $0x160] sm:$0xff]  }
 0x15a   : > { %v3197_v11 = vpack.c.bf16 %v1231_v5, %v1231_v5  ;;  %2654 = vst.msk [vmem:[%s4208_s13 + $0x70] sm:$0xf] %vm2135_vm4, %v3295_v6  ;;  %v1232_v12 = vmax.f32 %v928_v7, 0.0  ;;  %v3296_v13 = vpack.c.bf16 %v1468_v8, %v1468_v8  ;;  %3632 = vmatmul.mubr.msk.bf16.gmra.mrb[164].mxu0 %vm623_vm3, %v3916_v2  ;;  %3830 = vmatmul.mubr.msk.bf16.gmra.mrb[164].mxu1 %vm623_vm3, %v3916_v2 }
 0x15b   : > { %3635 = vmatprep.mubr.msk.bf16.mxu0 %vm3938_vm2, %v3936_v0  ;;  %3833 = vmatprep.mubr.msk.bf16.mxu1 %vm3938_vm2, %v3936_v0 }
 0x15c   : > { %2164 = vst.msk [vmem:[%s4216_s16 + $0x70] sm:$0xf] %vm2135_vm4, %v3197_v11  ;;  %v3198_v14 = vpack.c.bf16 %v1232_v12, %v1232_v12  ;;  %2655 = vst.msk [vmem:[%s4208_s13 + $0x74] sm:$0xf] %vm2135_vm4, %v3296_v13 }
 0x15d   : > { %v932_v15 = vpop.f32.mrb[60].mxu0  ;;  %v1472_v16 = vpop.f32.mrb[60].mxu1 }
 0x15e   : > { %2165 = vst.msk [vmem:[%s4216_s16 + $0x74] sm:$0xf] %vm2135_vm4, %v3198_v14  ;;  %v933_v17 = vadd.f32 %v4190_v35, %v932_v15  ;;  %v1473_v18 = vadd.f32 %v4195_v36, %v1472_v16  ;;  %v3529_v19 = vpop.f32.mrb[61].mxu0  ;;  %v3727_v20 = vpop.f32.mrb[61].mxu1 }
 0x15f   : > { %v935_v22 = vpop.f32.mrb[62].mxu0  ;;  %v1475_v23 = vpop.f32.mrb[62].mxu1 }
 0x160   : > { %v1233_v24 = vmax.f32 %v933_v17, 0.0  ;;  %v3297_v25 = vpack.c.bf16 %v1473_v18, %v1473_v18  ;;  %v936_v26 = vadd.f32 %v4190_v35, %v935_v22  ;;  %v1476_v27 = vadd.f32 %v4195_v36, %v1475_v23  ;;  %v3530_v28 = vpop.f32.mrb[63].mxu0  ;;  %v3728_v29 = vpop.f32.mrb[63].mxu1  ;;  %v3920_v17 = vld [vmem:[%s4000_s30 + $0x168] sm:$0xff]  }
 0x162   : > { %v3199_v30 = vpack.c.bf16 %v1233_v24, %v1233_v24  ;;  %2656 = vst.msk [vmem:[%s4208_s13 + $0x78] sm:$0xf] %vm2135_vm4, %v3297_v25  ;;  %v1234_v31 = vmax.f32 %v936_v26, 0.0  ;;  %v3298_v32 = vpack.c.bf16 %v1476_v27, %v1476_v27  ;;  %3636 = vmatmul.mubr.msk.bf16.gmra.mrb[168].mxu0 %vm623_vm3, %v3917_v21  ;;  %3834 = vmatmul.mubr.msk.bf16.gmra.mrb[168].mxu1 %vm623_vm3, %v3917_v21 }
 0x163   : > { %3639 = vmatprep.mubr.msk.bf16.mxu0 %vm3938_vm2, %v3936_v0  ;;  %3837 = vmatprep.mubr.msk.bf16.mxu1 %vm3938_vm2, %v3936_v0 }
 0x164   : > { %2166 = vst.msk [vmem:[%s4216_s16 + $0x78] sm:$0xf] %vm2135_vm4, %v3199_v30  ;;  %v3200_v33 = vpack.c.bf16 %v1234_v31, %v1234_v31  ;;  %2657 = vst.msk [vmem:[%s4208_s13 + $0x7c] sm:$0xf] %vm2135_vm4, %v3298_v32  ;;  %v4577_v30 = vld [vmem:[%s4976_s2] ss:$0 sm:$0xff] }
 0x165   : > { %v940_v34 = vpop.f32.mrb[64].mxu0  ;;  %v1480_v37 = vpop.f32.mrb[64].mxu1  ;;  %v4583_v32 = vld [vmem:[%s4978_s4] ss:$0 sm:$0xff] }
 0x166   : > { %2167 = vst.msk [vmem:[%s4216_s16 + $0x7c] sm:$0xf] %vm2135_vm4, %v3200_v33  ;;  %v941_v38 = vadd.f32 %v4190_v35, %v940_v34  ;;  %v1481_v39 = vadd.f32 %v4195_v36, %v1480_v37  ;;  %v3533_v40 = vpop.f32.mrb[65].mxu0  ;;  %v3731_v41 = vpop.f32.mrb[65].mxu1 }
 0x167   : > { %v943_v43 = vpop.f32.mrb[66].mxu0  ;;  %v1483_v44 = vpop.f32.mrb[66].mxu1 }
 0x168   : > { %v1235_v45 = vmax.f32 %v941_v38, 0.0  ;;  %v3299_v46 = vpack.c.bf16 %v1481_v39, %v1481_v39  ;;  %v944_v47 = vadd.f32 %v4190_v35, %v943_v43  ;;  %v1484_v48 = vadd.f32 %v4195_v36, %v1483_v44  ;;  %v3534_v49 = vpop.f32.mrb[67].mxu0  ;;  %v3732_v50 = vpop.f32.mrb[67].mxu1  ;;  %v3921_v38 = vld [vmem:[%s4000_s30 + $0x170] sm:$0xff]  }
 0x16a   : > { %v3201_v51 = vpack.c.bf16 %v1235_v45, %v1235_v45  ;;  %2658 = vst.msk [vmem:[%s4208_s13 + $0x80] sm:$0xf] %vm2135_vm4, %v3299_v46  ;;  %v1236_v52 = vmax.f32 %v944_v47, 0.0  ;;  %v3300_v53 = vpack.c.bf16 %v1484_v48, %v1484_v48  ;;  %3640 = vmatmul.mubr.msk.bf16.gmra.mrb[172].mxu0 %vm623_vm3, %v3918_v42  ;;  %3838 = vmatmul.mubr.msk.bf16.gmra.mrb[172].mxu1 %vm623_vm3, %v3918_v42 }
 0x16b   : > { %3643 = vmatprep.mubr.msk.bf16.mxu0 %vm3938_vm2, %v3936_v0  ;;  %3841 = vmatprep.mubr.msk.bf16.mxu1 %vm3938_vm2, %v3936_v0 }
 0x16c   : > { %2168 = vst.msk [vmem:[%s4216_s16 + $0x80] sm:$0xf] %vm2135_vm4, %v3201_v51  ;;  %v3202_v54 = vpack.c.bf16 %v1236_v52, %v1236_v52  ;;  %2659 = vst.msk [vmem:[%s4208_s13 + $0x84] sm:$0xf] %vm2135_vm4, %v3300_v53 }
 0x16d   : > { %v948_v55 = vpop.f32.mrb[68].mxu0  ;;  %v1488_v56 = vpop.f32.mrb[68].mxu1 }
 0x16e   : > { %2169 = vst.msk [vmem:[%s4216_s16 + $0x84] sm:$0xf] %vm2135_vm4, %v3202_v54  ;;  %v949_v57 = vadd.f32 %v4190_v35, %v948_v55  ;;  %v1489_v58 = vadd.f32 %v4195_v36, %v1488_v56  ;;  %v3537_v59 = vpop.f32.mrb[69].mxu0  ;;  %v3735_v60 = vpop.f32.mrb[69].mxu1 }
 0x16f   : > { %v951_v62 = vpop.f32.mrb[70].mxu0  ;;  %v1491_v63 = vpop.f32.mrb[70].mxu1 }
 0x170   : > { %v1237_v1 = vmax.f32 %v949_v57, 0.0  ;;  %v3301_v2 = vpack.c.bf16 %v1489_v58, %v1489_v58  ;;  %v952_v3 = vadd.f32 %v4190_v35, %v951_v62  ;;  %v1492_v4 = vadd.f32 %v4195_v36, %v1491_v63  ;;  %v3538_v5 = vpop.f32.mrb[71].mxu0  ;;  %v3736_v6 = vpop.f32.mrb[71].mxu1  ;;  %v3922_v57 = vld [vmem:[%s4000_s30 + $0x178] sm:$0xff]  }
 0x172   : > { %v3203_v7 = vpack.c.bf16 %v1237_v1, %v1237_v1  ;;  %2660 = vst.msk [vmem:[%s4208_s13 + $0x88] sm:$0xf] %vm2135_vm4, %v3301_v2  ;;  %v1238_v8 = vmax.f32 %v952_v3, 0.0  ;;  %v3302_v9 = vpack.c.bf16 %v1492_v4, %v1492_v4  ;;  %3644 = vmatmul.mubr.msk.bf16.gmra.mrb[176].mxu0 %vm623_vm3, %v3919_v61  ;;  %3842 = vmatmul.mubr.msk.bf16.gmra.mrb[176].mxu1 %vm623_vm3, %v3919_v61 }
 0x173   : > { %3647 = vmatprep.mubr.msk.bf16.mxu0 %vm3938_vm2, %v3936_v0  ;;  %3845 = vmatprep.mubr.msk.bf16.mxu1 %vm3938_vm2, %v3936_v0 }
 0x174   : > { %2170 = vst.msk [vmem:[%s4216_s16 + $0x88] sm:$0xf] %vm2135_vm4, %v3203_v7  ;;  %v3204_v10 = vpack.c.bf16 %v1238_v8, %v1238_v8  ;;  %2661 = vst.msk [vmem:[%s4208_s13 + $0x8c] sm:$0xf] %vm2135_vm4, %v3302_v9 }
 0x175   : > { %v956_v11 = vpop.f32.mrb[72].mxu0  ;;  %v1496_v12 = vpop.f32.mrb[72].mxu1 }
 0x176   : > { %2171 = vst.msk [vmem:[%s4216_s16 + $0x8c] sm:$0xf] %vm2135_vm4, %v3204_v10  ;;  %v957_v13 = vadd.f32 %v4190_v35, %v956_v11  ;;  %v1497_v14 = vadd.f32 %v4195_v36, %v1496_v12  ;;  %v3541_v15 = vpop.f32.mrb[73].mxu0  ;;  %v3739_v16 = vpop.f32.mrb[73].mxu1 }
 0x177   : > { %v959_v18 = vpop.f32.mrb[74].mxu0  ;;  %v1499_v19 = vpop.f32.mrb[74].mxu1 }
 0x178   : > { %v1239_v20 = vmax.f32 %v957_v13, 0.0  ;;  %v3303_v21 = vpack.c.bf16 %v1497_v14, %v1497_v14  ;;  %v960_v22 = vadd.f32 %v4190_v35, %v959_v18  ;;  %v1500_v23 = vadd.f32 %v4195_v36, %v1499_v19  ;;  %v3542_v24 = vpop.f32.mrb[75].mxu0  ;;  %v3740_v25 = vpop.f32.mrb[75].mxu1  ;;  %v3923_v13 = vld [vmem:[%s4000_s30 + $0x180] sm:$0xff]  }
 0x17a   : > { %v3205_v26 = vpack.c.bf16 %v1239_v20, %v1239_v20  ;;  %2662 = vst.msk [vmem:[%s4208_s13 + $0x90] sm:$0xf] %vm2135_vm4, %v3303_v21  ;;  %v1240_v27 = vmax.f32 %v960_v22, 0.0  ;;  %v3304_v28 = vpack.c.bf16 %v1500_v23, %v1500_v23  ;;  %3648 = vmatmul.mubr.msk.bf16.gmra.mrb[180].mxu0 %vm623_vm3, %v3920_v17  ;;  %3846 = vmatmul.mubr.msk.bf16.gmra.mrb[180].mxu1 %vm623_vm3, %v3920_v17 }
 0x17b   : > { %3651 = vmatprep.mubr.msk.bf16.mxu0 %vm3938_vm2, %v3936_v0  ;;  %3849 = vmatprep.mubr.msk.bf16.mxu1 %vm3938_vm2, %v3936_v0 }
 0x17c   : > { %2172 = vst.msk [vmem:[%s4216_s16 + $0x90] sm:$0xf] %vm2135_vm4, %v3205_v26  ;;  %v3206_v35 = vpack.c.bf16 %v1240_v27, %v1240_v27  ;;  %2663 = vst.msk [vmem:[%s4208_s13 + $0x94] sm:$0xf] %vm2135_vm4, %v3304_v28 }
 0x17d   : > { %v964_v36 = vpop.f32.mrb[76].mxu0  ;;  %v1504_v29 = vpop.f32.mrb[76].mxu1 }
 0x17e   : > { %2173 = vst.msk [vmem:[%s4216_s16 + $0x94] sm:$0xf] %vm2135_vm4, %v3206_v35  ;;  %v965_v31 = vadd.f32 %v4577_v30, %v964_v36  ;;  %v1505_v33 = vadd.f32 %v4583_v32, %v1504_v29  ;;  %v3545_v34 = vpop.f32.mrb[77].mxu0  ;;  %v3743_v37 = vpop.f32.mrb[77].mxu1 }
 0x17f   : > { %v967_v39 = vpop.f32.mrb[78].mxu0  ;;  %v1507_v40 = vpop.f32.mrb[78].mxu1 }
 0x180   : > { %v1241_v41 = vmax.f32 %v965_v31, 0.0  ;;  %v3305_v42 = vpack.c.bf16 %v1505_v33, %v1505_v33  ;;  %v968_v43 = vadd.f32 %v4577_v30, %v967_v39  ;;  %v1508_v44 = vadd.f32 %v4583_v32, %v1507_v40  ;;  %v3546_v45 = vpop.f32.mrb[79].mxu0  ;;  %v3744_v46 = vpop.f32.mrb[79].mxu1 }
 0x182   : > { %v3207_v47 = vpack.c.bf16 %v1241_v41, %v1241_v41  ;;  %2664 = vst.msk [vmem:[%s4208_s13 + $0x98] sm:$0xf] %vm2135_vm4, %v3305_v42  ;;  %v1242_v48 = vmax.f32 %v968_v43, 0.0  ;;  %v3306_v49 = vpack.c.bf16 %v1508_v44, %v1508_v44  ;;  %3652 = vmatmul.mubr.msk.bf16.gmra.mrb[184].mxu0 %vm623_vm3, %v3921_v38  ;;  %3850 = vmatmul.mubr.msk.bf16.gmra.mrb[184].mxu1 %vm623_vm3, %v3921_v38 }
 0x183   : > { %3655 = vmatprep.mubr.msk.bf16.mxu0 %vm3938_vm2, %v3936_v0  ;;  %3853 = vmatprep.mubr.msk.bf16.mxu1 %vm3938_vm2, %v3936_v0 }
 0x184   : > { %2174 = vst.msk [vmem:[%s4216_s16 + $0x98] sm:$0xf] %vm2135_vm4, %v3207_v47  ;;  %v3208_v50 = vpack.c.bf16 %v1242_v48, %v1242_v48  ;;  %2665 = vst.msk [vmem:[%s4208_s13 + $0x9c] sm:$0xf] %vm2135_vm4, %v3306_v49 }
 0x185   : > { %v972_v51 = vpop.f32.mrb[80].mxu0  ;;  %v1512_v52 = vpop.f32.mrb[80].mxu1 }
 0x186   : > { %2175 = vst.msk [vmem:[%s4216_s16 + $0x9c] sm:$0xf] %vm2135_vm4, %v3208_v50  ;;  %v973_v53 = vadd.f32 %v4577_v30, %v972_v51  ;;  %v1513_v54 = vadd.f32 %v4583_v32, %v1512_v52  ;;  %v3549_v55 = vpop.f32.mrb[81].mxu0  ;;  %v3747_v56 = vpop.f32.mrb[81].mxu1 }
 0x187   : > { %v975_v58 = vpop.f32.mrb[82].mxu0  ;;  %v1515_v59 = vpop.f32.mrb[82].mxu1 }
 0x188   : > { %v1243_v60 = vmax.f32 %v973_v53, 0.0  ;;  %v3307_v61 = vpack.c.bf16 %v1513_v54, %v1513_v54  ;;  %v976_v62 = vadd.f32 %v4577_v30, %v975_v58  ;;  %v1516_v63 = vadd.f32 %v4583_v32, %v1515_v59  ;;  %v3550_v1 = vpop.f32.mrb[83].mxu0  ;;  %v3748_v2 = vpop.f32.mrb[83].mxu1 }
 0x18a   : > { %v3209_v3 = vpack.c.bf16 %v1243_v60, %v1243_v60  ;;  %2666 = vst.msk [vmem:[%s4208_s13 + $0xa0] sm:$0xf] %vm2135_vm4, %v3307_v61  ;;  %v1244_v4 = vmax.f32 %v976_v62, 0.0  ;;  %v3308_v5 = vpack.c.bf16 %v1516_v63, %v1516_v63  ;;  %3656 = vmatmul.mubr.msk.bf16.gmra.mrb[188].mxu0 %vm623_vm3, %v3922_v57  ;;  %3854 = vmatmul.mubr.msk.bf16.gmra.mrb[188].mxu1 %vm623_vm3, %v3922_v57 }
 0x18b   : > { %3659 = vmatprep.mubr.msk.bf16.mxu0 %vm3938_vm2, %v3936_v0  ;;  %3857 = vmatprep.mubr.msk.bf16.mxu1 %vm3938_vm2, %v3936_v0 }
 0x18c   : > { %2176 = vst.msk [vmem:[%s4216_s16 + $0xa0] sm:$0xf] %vm2135_vm4, %v3209_v3  ;;  %v3210_v6 = vpack.c.bf16 %v1244_v4, %v1244_v4  ;;  %2667 = vst.msk [vmem:[%s4208_s13 + $0xa4] sm:$0xf] %vm2135_vm4, %v3308_v5 }
 0x18d   : > { %v980_v7 = vpop.f32.mrb[84].mxu0  ;;  %v1520_v8 = vpop.f32.mrb[84].mxu1 }
 0x18e   : > { %2177 = vst.msk [vmem:[%s4216_s16 + $0xa4] sm:$0xf] %vm2135_vm4, %v3210_v6  ;;  %v981_v9 = vadd.f32 %v4577_v30, %v980_v7  ;;  %v1521_v10 = vadd.f32 %v4583_v32, %v1520_v8  ;;  %v3553_v11 = vpop.f32.mrb[85].mxu0  ;;  %v3751_v12 = vpop.f32.mrb[85].mxu1 }
 0x18f   : > { %v983_v14 = vpop.f32.mrb[86].mxu0  ;;  %v1523_v0 = vpop.f32.mrb[86].mxu1 }
 0x190   : > { %v1245_v15 = vmax.f32 %v981_v9, 0.0  ;;  %v3309_v16 = vpack.c.bf16 %v1521_v10, %v1521_v10  ;;  %v984_v17 = vadd.f32 %v4577_v30, %v983_v14  ;;  %v1524_v18 = vadd.f32 %v4583_v32, %v1523_v0  ;;  %v3554_v19 = vpop.f32.mrb[87].mxu0  ;;  %v3752_v20 = vpop.f32.mrb[87].mxu1 }
 0x192   : > { %v3211_v21 = vpack.c.bf16 %v1245_v15, %v1245_v15  ;;  %2668 = vst.msk [vmem:[%s4208_s13 + $0xa8] sm:$0xf] %vm2135_vm4, %v3309_v16  ;;  %v1246_v22 = vmax.f32 %v984_v17, 0.0  ;;  %v3310_v23 = vpack.c.bf16 %v1524_v18, %v1524_v18  ;;  %3660 = vmatmul.mubr.msk.bf16.gmra.mrb[192].mxu0 %vm623_vm3, %v3923_v13  ;;  %3858 = vmatmul.mubr.msk.bf16.gmra.mrb[192].mxu1 %vm623_vm3, %v3923_v13 }
 0x194   : > { %2178 = vst.msk [vmem:[%s4216_s16 + $0xa8] sm:$0xf] %vm2135_vm4, %v3211_v21  ;;  %v3212_v24 = vpack.c.bf16 %v1246_v22, %v1246_v22  ;;  %2669 = vst.msk [vmem:[%s4208_s13 + $0xac] sm:$0xf] %vm2135_vm4, %v3310_v23 }
 0x195   : > { %v988_v25 = vpop.f32.mrb[88].mxu0  ;;  %v1528_v26 = vpop.f32.mrb[88].mxu1 }
 0x196   : > { %2179 = vst.msk [vmem:[%s4216_s16 + $0xac] sm:$0xf] %vm2135_vm4, %v3212_v24  ;;  %v989_v27 = vadd.f32 %v4577_v30, %v988_v25  ;;  %v1529_v28 = vadd.f32 %v4583_v32, %v1528_v26  ;;  %v3557_v35 = vpop.f32.mrb[89].mxu0  ;;  %v3755_v36 = vpop.f32.mrb[89].mxu1 }
 0x197   : > { %v991_v29 = vpop.f32.mrb[90].mxu0  ;;  %v1531_v31 = vpop.f32.mrb[90].mxu1 }
 0x198   : > { %v1247_v33 = vmax.f32 %v989_v27, 0.0  ;;  %v3311_v34 = vpack.c.bf16 %v1529_v28, %v1529_v28  ;;  %v992_v37 = vadd.f32 %v4577_v30, %v991_v29  ;;  %v1532_v38 = vadd.f32 %v4583_v32, %v1531_v31  ;;  %v3558_v39 = vpop.f32.mrb[91].mxu0  ;;  %v3756_v40 = vpop.f32.mrb[91].mxu1 }
 0x19a   : > { %v3213_v41 = vpack.c.bf16 %v1247_v33, %v1247_v33  ;;  %2670 = vst.msk [vmem:[%s4208_s13 + $0xb0] sm:$0xf] %vm2135_vm4, %v3311_v34  ;;  %v1248_v42 = vmax.f32 %v992_v37, 0.0  ;;  %v3312_v43 = vpack.c.bf16 %v1532_v38, %v1532_v38 }
 0x19c   : > { %2180 = vst.msk [vmem:[%s4216_s16 + $0xb0] sm:$0xf] %vm2135_vm4, %v3213_v41  ;;  %v3214_v44 = vpack.c.bf16 %v1248_v42, %v1248_v42  ;;  %2671 = vst.msk [vmem:[%s4208_s13 + $0xb4] sm:$0xf] %vm2135_vm4, %v3312_v43 }
 0x19d   : > { %v996_v45 = vpop.f32.mrb[92].mxu0  ;;  %v1536_v46 = vpop.f32.mrb[92].mxu1 }
 0x19e   : > { %2181 = vst.msk [vmem:[%s4216_s16 + $0xb4] sm:$0xf] %vm2135_vm4, %v3214_v44  ;;  %v997_v47 = vadd.f32 %v4577_v30, %v996_v45  ;;  %v1537_v48 = vadd.f32 %v4583_v32, %v1536_v46  ;;  %v3561_v49 = vpop.f32.mrb[93].mxu0  ;;  %v3759_v50 = vpop.f32.mrb[93].mxu1 }
 0x19f   : > { %v999_v51 = vpop.f32.mrb[94].mxu0  ;;  %v1539_v52 = vpop.f32.mrb[94].mxu1 }
 0x1a0   : > { %v1249_v53 = vmax.f32 %v997_v47, 0.0  ;;  %v3313_v54 = vpack.c.bf16 %v1537_v48, %v1537_v48  ;;  %v1000_v55 = vadd.f32 %v4577_v30, %v999_v51  ;;  %v1540_v56 = vadd.f32 %v4583_v32, %v1539_v52  ;;  %v3562_v57 = vpop.f32.mrb[95].mxu0  ;;  %v3760_v58 = vpop.f32.mrb[95].mxu1 }
 0x1a2   : > { %v3215_v59 = vpack.c.bf16 %v1249_v53, %v1249_v53  ;;  %2672 = vst.msk [vmem:[%s4208_s13 + $0xb8] sm:$0xf] %vm2135_vm4, %v3313_v54  ;;  %v1250_v60 = vmax.f32 %v1000_v55, 0.0  ;;  %v3314_v61 = vpack.c.bf16 %v1540_v56, %v1540_v56 }
 0x1a4   : > { %2182 = vst.msk [vmem:[%s4216_s16 + $0xb8] sm:$0xf] %vm2135_vm4, %v3215_v59  ;;  %v3216_v62 = vpack.c.bf16 %v1250_v60, %v1250_v60  ;;  %2673 = vst.msk [vmem:[%s4208_s13 + $0xbc] sm:$0xf] %vm2135_vm4, %v3314_v61 }
 0x1a5   : > { %v1004_v63 = vpop.f32.mrb[96].mxu0  ;;  %v1544_v1 = vpop.f32.mrb[96].mxu1 }
 0x1a6   : > { %2183 = vst.msk [vmem:[%s4216_s16 + $0xbc] sm:$0xf] %vm2135_vm4, %v3216_v62  ;;  %v1005_v2 = vadd.f32 %v4577_v30, %v1004_v63  ;;  %v1545_v3 = vadd.f32 %v4583_v32, %v1544_v1  ;;  %v3565_v4 = vpop.f32.mrb[97].mxu0  ;;  %v3763_v5 = vpop.f32.mrb[97].mxu1 }
 0x1a7   : > { %v1007_v6 = vpop.f32.mrb[98].mxu0  ;;  %v1547_v7 = vpop.f32.mrb[98].mxu1 }
 0x1a8   : > { %v1251_v8 = vmax.f32 %v1005_v2, 0.0  ;;  %v3315_v9 = vpack.c.bf16 %v1545_v3, %v1545_v3  ;;  %v1008_v10 = vadd.f32 %v4577_v30, %v1007_v6  ;;  %v1548_v11 = vadd.f32 %v4583_v32, %v1547_v7  ;;  %v3566_v12 = vpop.f32.mrb[99].mxu0  ;;  %v3764_v13 = vpop.f32.mrb[99].mxu1 }
 0x1aa   : > { %v3217_v14 = vpack.c.bf16 %v1251_v8, %v1251_v8  ;;  %2674 = vst.msk [vmem:[%s4208_s13 + $0xc0] sm:$0xf] %vm2135_vm4, %v3315_v9  ;;  %v1252_v0 = vmax.f32 %v1008_v10, 0.0  ;;  %v3316_v15 = vpack.c.bf16 %v1548_v11, %v1548_v11 }
 0x1ac   : > { %2184 = vst.msk [vmem:[%s4216_s16 + $0xc0] sm:$0xf] %vm2135_vm4, %v3217_v14  ;;  %v3218_v16 = vpack.c.bf16 %v1252_v0, %v1252_v0  ;;  %2675 = vst.msk [vmem:[%s4208_s13 + $0xc4] sm:$0xf] %vm2135_vm4, %v3316_v15 }
 0x1ad   : > { %v1012_v17 = vpop.f32.mrb[100].mxu0  ;;  %v1552_v18 = vpop.f32.mrb[100].mxu1 }
 0x1ae   : > { %2185 = vst.msk [vmem:[%s4216_s16 + $0xc4] sm:$0xf] %vm2135_vm4, %v3218_v16  ;;  %v1013_v19 = vadd.f32 %v4577_v30, %v1012_v17  ;;  %v1553_v20 = vadd.f32 %v4583_v32, %v1552_v18  ;;  %v3569_v21 = vpop.f32.mrb[101].mxu0  ;;  %v3767_v22 = vpop.f32.mrb[101].mxu1 }
 0x1af   : > { %v1015_v23 = vpop.f32.mrb[102].mxu0  ;;  %v1555_v24 = vpop.f32.mrb[102].mxu1 }
 0x1b0   : > { %v1253_v25 = vmax.f32 %v1013_v19, 0.0  ;;  %v3317_v26 = vpack.c.bf16 %v1553_v20, %v1553_v20  ;;  %v1016_v27 = vadd.f32 %v4577_v30, %v1015_v23  ;;  %v1556_v28 = vadd.f32 %v4583_v32, %v1555_v24  ;;  %v3570_v35 = vpop.f32.mrb[103].mxu0  ;;  %v3768_v36 = vpop.f32.mrb[103].mxu1 }
 0x1b2   : > { %v3219_v29 = vpack.c.bf16 %v1253_v25, %v1253_v25  ;;  %2676 = vst.msk [vmem:[%s4208_s13 + $0xc8] sm:$0xf] %vm2135_vm4, %v3317_v26  ;;  %v1254_v31 = vmax.f32 %v1016_v27, 0.0  ;;  %v3318_v33 = vpack.c.bf16 %v1556_v28, %v1556_v28 }
 0x1b4   : > { %2186 = vst.msk [vmem:[%s4216_s16 + $0xc8] sm:$0xf] %vm2135_vm4, %v3219_v29  ;;  %v3220_v34 = vpack.c.bf16 %v1254_v31, %v1254_v31  ;;  %2677 = vst.msk [vmem:[%s4208_s13 + $0xcc] sm:$0xf] %vm2135_vm4, %v3318_v33 }
 0x1b5   : > { %v1020_v37 = vpop.f32.mrb[104].mxu0  ;;  %v1560_v38 = vpop.f32.mrb[104].mxu1 }
 0x1b6   : > { %2187 = vst.msk [vmem:[%s4216_s16 + $0xcc] sm:$0xf] %vm2135_vm4, %v3220_v34  ;;  %v1021_v39 = vadd.f32 %v4577_v30, %v1020_v37  ;;  %v1561_v40 = vadd.f32 %v4583_v32, %v1560_v38  ;;  %v3573_v41 = vpop.f32.mrb[105].mxu0  ;;  %v3771_v42 = vpop.f32.mrb[105].mxu1 }
 0x1b7   : > { %v1023_v43 = vpop.f32.mrb[106].mxu0  ;;  %v1563_v44 = vpop.f32.mrb[106].mxu1 }
 0x1b8   : > { %v1255_v45 = vmax.f32 %v1021_v39, 0.0  ;;  %v3319_v46 = vpack.c.bf16 %v1561_v40, %v1561_v40  ;;  %v1024_v47 = vadd.f32 %v4577_v30, %v1023_v43  ;;  %v1564_v48 = vadd.f32 %v4583_v32, %v1563_v44  ;;  %v3574_v49 = vpop.f32.mrb[107].mxu0  ;;  %v3772_v50 = vpop.f32.mrb[107].mxu1 }
 0x1ba   : > { %v3221_v51 = vpack.c.bf16 %v1255_v45, %v1255_v45  ;;  %2678 = vst.msk [vmem:[%s4208_s13 + $0xd0] sm:$0xf] %vm2135_vm4, %v3319_v46  ;;  %v1256_v52 = vmax.f32 %v1024_v47, 0.0  ;;  %v3320_v53 = vpack.c.bf16 %v1564_v48, %v1564_v48 }
 0x1bc   : > { %2188 = vst.msk [vmem:[%s4216_s16 + $0xd0] sm:$0xf] %vm2135_vm4, %v3221_v51  ;;  %v3222_v54 = vpack.c.bf16 %v1256_v52, %v1256_v52  ;;  %2679 = vst.msk [vmem:[%s4208_s13 + $0xd4] sm:$0xf] %vm2135_vm4, %v3320_v53 }
 0x1bd   : > { %v1028_v55 = vpop.f32.mrb[108].mxu0  ;;  %v1568_v56 = vpop.f32.mrb[108].mxu1 }
 0x1be   : > { %2189 = vst.msk [vmem:[%s4216_s16 + $0xd4] sm:$0xf] %vm2135_vm4, %v3222_v54  ;;  %v1029_v57 = vadd.f32 %v4577_v30, %v1028_v55  ;;  %v1569_v58 = vadd.f32 %v4583_v32, %v1568_v56  ;;  %v3577_v59 = vpop.f32.mrb[109].mxu0  ;;  %v3775_v60 = vpop.f32.mrb[109].mxu1 }
 0x1bf   : > { %v1031_v61 = vpop.f32.mrb[110].mxu0  ;;  %v1571_v62 = vpop.f32.mrb[110].mxu1 }
 0x1c0   : > { %v1257_v63 = vmax.f32 %v1029_v57, 0.0  ;;  %v3321_v1 = vpack.c.bf16 %v1569_v58, %v1569_v58  ;;  %v1032_v2 = vadd.f32 %v4577_v30, %v1031_v61  ;;  %v1572_v3 = vadd.f32 %v4583_v32, %v1571_v62  ;;  %v3578_v4 = vpop.f32.mrb[111].mxu0  ;;  %v3776_v5 = vpop.f32.mrb[111].mxu1 }
 0x1c2   : > { %v3223_v6 = vpack.c.bf16 %v1257_v63, %v1257_v63  ;;  %2680 = vst.msk [vmem:[%s4208_s13 + $0xd8] sm:$0xf] %vm2135_vm4, %v3321_v1  ;;  %v1258_v7 = vmax.f32 %v1032_v2, 0.0  ;;  %v3322_v8 = vpack.c.bf16 %v1572_v3, %v1572_v3 }
 0x1c4   : > { %2190 = vst.msk [vmem:[%s4216_s16 + $0xd8] sm:$0xf] %vm2135_vm4, %v3223_v6  ;;  %v3224_v9 = vpack.c.bf16 %v1258_v7, %v1258_v7  ;;  %2681 = vst.msk [vmem:[%s4208_s13 + $0xdc] sm:$0xf] %vm2135_vm4, %v3322_v8 }
 0x1c5   : > { %v1036_v10 = vpop.f32.mrb[112].mxu0  ;;  %v1576_v11 = vpop.f32.mrb[112].mxu1 }
 0x1c6   : > { %2191 = vst.msk [vmem:[%s4216_s16 + $0xdc] sm:$0xf] %vm2135_vm4, %v3224_v9  ;;  %v1037_v12 = vadd.f32 %v4577_v30, %v1036_v10  ;;  %v1577_v13 = vadd.f32 %v4583_v32, %v1576_v11  ;;  %v3581_v14 = vpop.f32.mrb[113].mxu0  ;;  %v3779_v0 = vpop.f32.mrb[113].mxu1 }
 0x1c7   : > { %v1039_v15 = vpop.f32.mrb[114].mxu0  ;;  %v1579_v16 = vpop.f32.mrb[114].mxu1 }
 0x1c8   : > { %v1259_v17 = vmax.f32 %v1037_v12, 0.0  ;;  %v3323_v18 = vpack.c.bf16 %v1577_v13, %v1577_v13  ;;  %v1040_v19 = vadd.f32 %v4577_v30, %v1039_v15  ;;  %v1580_v20 = vadd.f32 %v4583_v32, %v1579_v16  ;;  %v3582_v21 = vpop.f32.mrb[115].mxu0  ;;  %v3780_v22 = vpop.f32.mrb[115].mxu1 }
 0x1ca   : > { %v3225_v23 = vpack.c.bf16 %v1259_v17, %v1259_v17  ;;  %2682 = vst.msk [vmem:[%s4208_s13 + $0xe0] sm:$0xf] %vm2135_vm4, %v3323_v18  ;;  %v1260_v24 = vmax.f32 %v1040_v19, 0.0  ;;  %v3324_v25 = vpack.c.bf16 %v1580_v20, %v1580_v20 }
 0x1cc   : > { %2192 = vst.msk [vmem:[%s4216_s16 + $0xe0] sm:$0xf] %vm2135_vm4, %v3225_v23  ;;  %v3226_v26 = vpack.c.bf16 %v1260_v24, %v1260_v24  ;;  %2683 = vst.msk [vmem:[%s4208_s13 + $0xe4] sm:$0xf] %vm2135_vm4, %v3324_v25 }
 0x1cd   : > { %v1044_v27 = vpop.f32.mrb[116].mxu0  ;;  %v1584_v28 = vpop.f32.mrb[116].mxu1 }
 0x1ce   : > { %2193 = vst.msk [vmem:[%s4216_s16 + $0xe4] sm:$0xf] %vm2135_vm4, %v3226_v26  ;;  %v1045_v35 = vadd.f32 %v4577_v30, %v1044_v27  ;;  %v1585_v36 = vadd.f32 %v4583_v32, %v1584_v28  ;;  %v3585_v29 = vpop.f32.mrb[117].mxu0  ;;  %v3783_v31 = vpop.f32.mrb[117].mxu1 }
 0x1cf   : > { %v1047_v33 = vpop.f32.mrb[118].mxu0  ;;  %v1587_v34 = vpop.f32.mrb[118].mxu1 }
 0x1d0   : > { %v1261_v37 = vmax.f32 %v1045_v35, 0.0  ;;  %v3325_v38 = vpack.c.bf16 %v1585_v36, %v1585_v36  ;;  %v1048_v39 = vadd.f32 %v4577_v30, %v1047_v33  ;;  %v1588_v40 = vadd.f32 %v4583_v32, %v1587_v34  ;;  %v3586_v41 = vpop.f32.mrb[119].mxu0  ;;  %v3784_v42 = vpop.f32.mrb[119].mxu1 }
 0x1d2   : > { %v3227_v43 = vpack.c.bf16 %v1261_v37, %v1261_v37  ;;  %2684 = vst.msk [vmem:[%s4208_s13 + $0xe8] sm:$0xf] %vm2135_vm4, %v3325_v38  ;;  %v1262_v44 = vmax.f32 %v1048_v39, 0.0  ;;  %v3326_v45 = vpack.c.bf16 %v1588_v40, %v1588_v40 }
 0x1d4   : > { %2194 = vst.msk [vmem:[%s4216_s16 + $0xe8] sm:$0xf] %vm2135_vm4, %v3227_v43  ;;  %v3228_v46 = vpack.c.bf16 %v1262_v44, %v1262_v44  ;;  %2685 = vst.msk [vmem:[%s4208_s13 + $0xec] sm:$0xf] %vm2135_vm4, %v3326_v45 }
 0x1d5   : > { %v1052_v47 = vpop.f32.mrb[120].mxu0  ;;  %v1592_v48 = vpop.f32.mrb[120].mxu1 }
 0x1d6   : > { %2195 = vst.msk [vmem:[%s4216_s16 + $0xec] sm:$0xf] %vm2135_vm4, %v3228_v46  ;;  %v1053_v49 = vadd.f32 %v4577_v30, %v1052_v47  ;;  %v1593_v50 = vadd.f32 %v4583_v32, %v1592_v48  ;;  %v3589_v51 = vpop.f32.mrb[121].mxu0  ;;  %v3787_v52 = vpop.f32.mrb[121].mxu1 }
 0x1d7   : > { %v1055_v53 = vpop.f32.mrb[122].mxu0  ;;  %v1595_v54 = vpop.f32.mrb[122].mxu1 }
 0x1d8   : > { %v1263_v55 = vmax.f32 %v1053_v49, 0.0  ;;  %v3327_v56 = vpack.c.bf16 %v1593_v50, %v1593_v50  ;;  %v1056_v57 = vadd.f32 %v4577_v30, %v1055_v53  ;;  %v1596_v58 = vadd.f32 %v4583_v32, %v1595_v54  ;;  %v3590_v59 = vpop.f32.mrb[123].mxu0  ;;  %v3788_v60 = vpop.f32.mrb[123].mxu1 }
 0x1da   : > { %v3229_v61 = vpack.c.bf16 %v1263_v55, %v1263_v55  ;;  %2686 = vst.msk [vmem:[%s4208_s13 + $0xf0] sm:$0xf] %vm2135_vm4, %v3327_v56  ;;  %v1264_v62 = vmax.f32 %v1056_v57, 0.0  ;;  %v3328_v63 = vpack.c.bf16 %v1596_v58, %v1596_v58 }
 0x1dc   : > { %2196 = vst.msk [vmem:[%s4216_s16 + $0xf0] sm:$0xf] %vm2135_vm4, %v3229_v61  ;;  %v3230_v1 = vpack.c.bf16 %v1264_v62, %v1264_v62  ;;  %2687 = vst.msk [vmem:[%s4208_s13 + $0xf4] sm:$0xf] %vm2135_vm4, %v3328_v63 }
 0x1dd   : > { %v1060_v2 = vpop.f32.mrb[124].mxu0  ;;  %v1600_v3 = vpop.f32.mrb[124].mxu1 }
 0x1de   : > { %2197 = vst.msk [vmem:[%s4216_s16 + $0xf4] sm:$0xf] %vm2135_vm4, %v3230_v1  ;;  %v1061_v4 = vadd.f32 %v4577_v30, %v1060_v2  ;;  %v1601_v5 = vadd.f32 %v4583_v32, %v1600_v3  ;;  %v3593_v6 = vpop.f32.mrb[125].mxu0  ;;  %v3791_v7 = vpop.f32.mrb[125].mxu1 }
 0x1df   : > { %v1063_v8 = vpop.f32.mrb[126].mxu0  ;;  %v1603_v9 = vpop.f32.mrb[126].mxu1 }
 0x1e0   : > { %v1265_v10 = vmax.f32 %v1061_v4, 0.0  ;;  %v3329_v11 = vpack.c.bf16 %v1601_v5, %v1601_v5  ;;  %v1064_v12 = vadd.f32 %v4577_v30, %v1063_v8  ;;  %v1604_v13 = vadd.f32 %v4583_v32, %v1603_v9  ;;  %v3594_v14 = vpop.f32.mrb[127].mxu0  ;;  %v3792_v0 = vpop.f32.mrb[127].mxu1 }
 0x1e2   : > { %v3231_v15 = vpack.c.bf16 %v1265_v10, %v1265_v10  ;;  %2688 = vst.msk [vmem:[%s4208_s13 + $0xf8] sm:$0xf] %vm2135_vm4, %v3329_v11  ;;  %v1266_v16 = vmax.f32 %v1064_v12, 0.0  ;;  %v3330_v17 = vpack.c.bf16 %v1604_v13, %v1604_v13 }
 0x1e4   : > { %2198 = vst.msk [vmem:[%s4216_s16 + $0xf8] sm:$0xf] %vm2135_vm4, %v3231_v15  ;;  %v3232_v18 = vpack.c.bf16 %v1266_v16, %v1266_v16  ;;  %2689 = vst.msk [vmem:[%s4208_s13 + $0xfc] sm:$0xf] %vm2135_vm4, %v3330_v17 }
 0x1e5   : > { %v1068_v19 = vpop.f32.mrb[128].mxu0  ;;  %v1608_v20 = vpop.f32.mrb[128].mxu1 }
 0x1e6   : > { %2199 = vst.msk [vmem:[%s4216_s16 + $0xfc] sm:$0xf] %vm2135_vm4, %v3232_v18  ;;  %v1069_v21 = vadd.f32 %v4577_v30, %v1068_v19  ;;  %v1609_v22 = vadd.f32 %v4583_v32, %v1608_v20  ;;  %v3597_v23 = vpop.f32.mrb[129].mxu0  ;;  %v3795_v24 = vpop.f32.mrb[129].mxu1 }
 0x1e7   : > { %v1071_v25 = vpop.f32.mrb[130].mxu0  ;;  %v1611_v26 = vpop.f32.mrb[130].mxu1 }
 0x1e8   : > { %v1267_v27 = vmax.f32 %v1069_v21, 0.0  ;;  %v3331_v28 = vpack.c.bf16 %v1609_v22, %v1609_v22  ;;  %v1072_v35 = vadd.f32 %v4577_v30, %v1071_v25  ;;  %v1612_v36 = vadd.f32 %v4583_v32, %v1611_v26  ;;  %v3598_v29 = vpop.f32.mrb[131].mxu0  ;;  %v3796_v31 = vpop.f32.mrb[131].mxu1 }
 0x1ea   : > { %v3233_v33 = vpack.c.bf16 %v1267_v27, %v1267_v27  ;;  %2690 = vst.msk [vmem:[%s4208_s13 + $0x100] sm:$0xf] %vm2135_vm4, %v3331_v28  ;;  %v1268_v34 = vmax.f32 %v1072_v35, 0.0  ;;  %v3332_v37 = vpack.c.bf16 %v1612_v36, %v1612_v36 }
 0x1ec   : > { %2200 = vst.msk [vmem:[%s4216_s16 + $0x100] sm:$0xf] %vm2135_vm4, %v3233_v33  ;;  %v3234_v38 = vpack.c.bf16 %v1268_v34, %v1268_v34  ;;  %2691 = vst.msk [vmem:[%s4208_s13 + $0x104] sm:$0xf] %vm2135_vm4, %v3332_v37 }
 0x1ed   : > { %v1076_v39 = vpop.f32.mrb[132].mxu0  ;;  %v1616_v40 = vpop.f32.mrb[132].mxu1 }
 0x1ee   : > { %2201 = vst.msk [vmem:[%s4216_s16 + $0x104] sm:$0xf] %vm2135_vm4, %v3234_v38  ;;  %v1077_v41 = vadd.f32 %v4577_v30, %v1076_v39  ;;  %v1617_v42 = vadd.f32 %v4583_v32, %v1616_v40  ;;  %v3601_v43 = vpop.f32.mrb[133].mxu0  ;;  %v3799_v44 = vpop.f32.mrb[133].mxu1 }
 0x1ef   : > { %v1079_v45 = vpop.f32.mrb[134].mxu0  ;;  %v1619_v46 = vpop.f32.mrb[134].mxu1 }
 0x1f0   : > { %v1269_v47 = vmax.f32 %v1077_v41, 0.0  ;;  %v3333_v48 = vpack.c.bf16 %v1617_v42, %v1617_v42  ;;  %v1080_v49 = vadd.f32 %v4577_v30, %v1079_v45  ;;  %v1620_v50 = vadd.f32 %v4583_v32, %v1619_v46  ;;  %v3602_v51 = vpop.f32.mrb[135].mxu0  ;;  %v3800_v52 = vpop.f32.mrb[135].mxu1 }
 0x1f2   : > { %v3235_v53 = vpack.c.bf16 %v1269_v47, %v1269_v47  ;;  %2692 = vst.msk [vmem:[%s4208_s13 + $0x108] sm:$0xf] %vm2135_vm4, %v3333_v48  ;;  %v1270_v54 = vmax.f32 %v1080_v49, 0.0  ;;  %v3334_v55 = vpack.c.bf16 %v1620_v50, %v1620_v50 }
 0x1f4   : > { %2202 = vst.msk [vmem:[%s4216_s16 + $0x108] sm:$0xf] %vm2135_vm4, %v3235_v53  ;;  %v3236_v56 = vpack.c.bf16 %v1270_v54, %v1270_v54  ;;  %2693 = vst.msk [vmem:[%s4208_s13 + $0x10c] sm:$0xf] %vm2135_vm4, %v3334_v55 }
 0x1f5   : > { %v1084_v57 = vpop.f32.mrb[136].mxu0  ;;  %v1624_v58 = vpop.f32.mrb[136].mxu1 }
 0x1f6   : > { %2203 = vst.msk [vmem:[%s4216_s16 + $0x10c] sm:$0xf] %vm2135_vm4, %v3236_v56  ;;  %v1085_v59 = vadd.f32 %v4577_v30, %v1084_v57  ;;  %v1625_v60 = vadd.f32 %v4583_v32, %v1624_v58  ;;  %v3605_v61 = vpop.f32.mrb[137].mxu0  ;;  %v3803_v62 = vpop.f32.mrb[137].mxu1 }
 0x1f7   : > { %v1087_v63 = vpop.f32.mrb[138].mxu0  ;;  %v1627_v1 = vpop.f32.mrb[138].mxu1 }
 0x1f8   : > { %v1271_v2 = vmax.f32 %v1085_v59, 0.0  ;;  %v3335_v3 = vpack.c.bf16 %v1625_v60, %v1625_v60  ;;  %v1088_v4 = vadd.f32 %v4577_v30, %v1087_v63  ;;  %v1628_v5 = vadd.f32 %v4583_v32, %v1627_v1  ;;  %v3606_v6 = vpop.f32.mrb[139].mxu0  ;;  %v3804_v7 = vpop.f32.mrb[139].mxu1 }
 0x1fa   : > { %v3237_v8 = vpack.c.bf16 %v1271_v2, %v1271_v2  ;;  %2694 = vst.msk [vmem:[%s4208_s13 + $0x110] sm:$0xf] %vm2135_vm4, %v3335_v3  ;;  %v1272_v9 = vmax.f32 %v1088_v4, 0.0  ;;  %v3336_v10 = vpack.c.bf16 %v1628_v5, %v1628_v5 }
 0x1fc   : > { %2204 = vst.msk [vmem:[%s4216_s16 + $0x110] sm:$0xf] %vm2135_vm4, %v3237_v8  ;;  %v3238_v11 = vpack.c.bf16 %v1272_v9, %v1272_v9  ;;  %2695 = vst.msk [vmem:[%s4208_s13 + $0x114] sm:$0xf] %vm2135_vm4, %v3336_v10 }
 0x1fd   : > { %v1092_v12 = vpop.f32.mrb[140].mxu0  ;;  %v1632_v13 = vpop.f32.mrb[140].mxu1 }
 0x1fe   : > { %2205 = vst.msk [vmem:[%s4216_s16 + $0x114] sm:$0xf] %vm2135_vm4, %v3238_v11  ;;  %v1093_v14 = vadd.f32 %v4577_v30, %v1092_v12  ;;  %v1633_v0 = vadd.f32 %v4583_v32, %v1632_v13  ;;  %v3609_v15 = vpop.f32.mrb[141].mxu0  ;;  %v3807_v16 = vpop.f32.mrb[141].mxu1 }
 0x1ff   : > { %v1095_v17 = vpop.f32.mrb[142].mxu0  ;;  %v1635_v18 = vpop.f32.mrb[142].mxu1 }
 0x200   : > { %v1273_v19 = vmax.f32 %v1093_v14, 0.0  ;;  %v3337_v20 = vpack.c.bf16 %v1633_v0, %v1633_v0  ;;  %v1096_v21 = vadd.f32 %v4577_v30, %v1095_v17  ;;  %v1636_v22 = vadd.f32 %v4583_v32, %v1635_v18  ;;  %v3610_v23 = vpop.f32.mrb[143].mxu0  ;;  %v3808_v24 = vpop.f32.mrb[143].mxu1 }
 0x202   : > { %v3239_v25 = vpack.c.bf16 %v1273_v19, %v1273_v19  ;;  %2696 = vst.msk [vmem:[%s4208_s13 + $0x118] sm:$0xf] %vm2135_vm4, %v3337_v20  ;;  %v1274_v26 = vmax.f32 %v1096_v21, 0.0  ;;  %v3338_v27 = vpack.c.bf16 %v1636_v22, %v1636_v22 }
 0x204   : > { %2206 = vst.msk [vmem:[%s4216_s16 + $0x118] sm:$0xf] %vm2135_vm4, %v3239_v25  ;;  %v3240_v28 = vpack.c.bf16 %v1274_v26, %v1274_v26  ;;  %2697 = vst.msk [vmem:[%s4208_s13 + $0x11c] sm:$0xf] %vm2135_vm4, %v3338_v27 }
 0x205   : > { %v1100_v35 = vpop.f32.mrb[144].mxu0  ;;  %v1640_v36 = vpop.f32.mrb[144].mxu1 }
 0x206   : > { %2207 = vst.msk [vmem:[%s4216_s16 + $0x11c] sm:$0xf] %vm2135_vm4, %v3240_v28  ;;  %v1101_v29 = vadd.f32 %v4577_v30, %v1100_v35  ;;  %v1641_v31 = vadd.f32 %v4583_v32, %v1640_v36  ;;  %v3613_v33 = vpop.f32.mrb[145].mxu0  ;;  %v3811_v34 = vpop.f32.mrb[145].mxu1 }
 0x207   : > { %v1103_v37 = vpop.f32.mrb[146].mxu0  ;;  %v1643_v38 = vpop.f32.mrb[146].mxu1 }
 0x208   : > { %v1275_v39 = vmax.f32 %v1101_v29, 0.0  ;;  %v3339_v40 = vpack.c.bf16 %v1641_v31, %v1641_v31  ;;  %v1104_v41 = vadd.f32 %v4577_v30, %v1103_v37  ;;  %v1644_v42 = vadd.f32 %v4583_v32, %v1643_v38  ;;  %v3614_v43 = vpop.f32.mrb[147].mxu0  ;;  %v3812_v44 = vpop.f32.mrb[147].mxu1 }
 0x20a   : > { %v3241_v45 = vpack.c.bf16 %v1275_v39, %v1275_v39  ;;  %2698 = vst.msk [vmem:[%s4208_s13 + $0x120] sm:$0xf] %vm2135_vm4, %v3339_v40  ;;  %v1276_v46 = vmax.f32 %v1104_v41, 0.0  ;;  %v3340_v47 = vpack.c.bf16 %v1644_v42, %v1644_v42 }
 0x20c   : > { %2208 = vst.msk [vmem:[%s4216_s16 + $0x120] sm:$0xf] %vm2135_vm4, %v3241_v45  ;;  %v3242_v48 = vpack.c.bf16 %v1276_v46, %v1276_v46  ;;  %2699 = vst.msk [vmem:[%s4208_s13 + $0x124] sm:$0xf] %vm2135_vm4, %v3340_v47 }
 0x20d   : > { %v1108_v49 = vpop.f32.mrb[148].mxu0  ;;  %v1648_v50 = vpop.f32.mrb[148].mxu1 }
 0x20e   : > { %2209 = vst.msk [vmem:[%s4216_s16 + $0x124] sm:$0xf] %vm2135_vm4, %v3242_v48  ;;  %v1109_v51 = vadd.f32 %v4577_v30, %v1108_v49  ;;  %v1649_v52 = vadd.f32 %v4583_v32, %v1648_v50  ;;  %v3617_v53 = vpop.f32.mrb[149].mxu0  ;;  %v3815_v54 = vpop.f32.mrb[149].mxu1 }
 0x20f   : > { %v1111_v55 = vpop.f32.mrb[150].mxu0  ;;  %v1651_v56 = vpop.f32.mrb[150].mxu1 }
 0x210   : > { %v1277_v57 = vmax.f32 %v1109_v51, 0.0  ;;  %v3341_v58 = vpack.c.bf16 %v1649_v52, %v1649_v52  ;;  %v1112_v59 = vadd.f32 %v4577_v30, %v1111_v55  ;;  %v1652_v60 = vadd.f32 %v4583_v32, %v1651_v56  ;;  %v3618_v61 = vpop.f32.mrb[151].mxu0  ;;  %v3816_v62 = vpop.f32.mrb[151].mxu1 }
 0x212   : > { %v3243_v63 = vpack.c.bf16 %v1277_v57, %v1277_v57  ;;  %2700 = vst.msk [vmem:[%s4208_s13 + $0x128] sm:$0xf] %vm2135_vm4, %v3341_v58  ;;  %v1278_v1 = vmax.f32 %v1112_v59, 0.0  ;;  %v3342_v2 = vpack.c.bf16 %v1652_v60, %v1652_v60 }
 0x214   : > { %2210 = vst.msk [vmem:[%s4216_s16 + $0x128] sm:$0xf] %vm2135_vm4, %v3243_v63  ;;  %v3244_v3 = vpack.c.bf16 %v1278_v1, %v1278_v1  ;;  %2701 = vst.msk [vmem:[%s4208_s13 + $0x12c] sm:$0xf] %vm2135_vm4, %v3342_v2 }
 0x215   : > { %v1116_v4 = vpop.f32.mrb[152].mxu0  ;;  %v1656_v5 = vpop.f32.mrb[152].mxu1 }
 0x216   : > { %2211 = vst.msk [vmem:[%s4216_s16 + $0x12c] sm:$0xf] %vm2135_vm4, %v3244_v3  ;;  %v1117_v6 = vadd.f32 %v4577_v30, %v1116_v4  ;;  %v1657_v7 = vadd.f32 %v4583_v32, %v1656_v5  ;;  %v3621_v8 = vpop.f32.mrb[153].mxu0  ;;  %v3819_v9 = vpop.f32.mrb[153].mxu1 }
 0x217   : > { %v1119_v10 = vpop.f32.mrb[154].mxu0  ;;  %v1659_v11 = vpop.f32.mrb[154].mxu1 }
 0x218   : > { %v1279_v12 = vmax.f32 %v1117_v6, 0.0  ;;  %v3343_v13 = vpack.c.bf16 %v1657_v7, %v1657_v7  ;;  %v1120_v14 = vadd.f32 %v4577_v30, %v1119_v10  ;;  %v1660_v0 = vadd.f32 %v4583_v32, %v1659_v11  ;;  %v3622_v15 = vpop.f32.mrb[155].mxu0  ;;  %v3820_v16 = vpop.f32.mrb[155].mxu1 }
 0x219   : > { %v4886_v15 = vld [vmem:[%s4978_s4] ss:$0 sm:$0xff] }
 0x21a   : > { %v3245_v17 = vpack.c.bf16 %v1279_v12, %v1279_v12  ;;  %2702 = vst.msk [vmem:[%s4208_s13 + $0x130] sm:$0xf] %vm2135_vm4, %v3343_v13  ;;  %v1280_v18 = vmax.f32 %v1120_v14, 0.0  ;;  %v3344_v19 = vpack.c.bf16 %v1660_v0, %v1660_v0 }
 0x21c   : > { %2212 = vst.msk [vmem:[%s4216_s16 + $0x130] sm:$0xf] %vm2135_vm4, %v3245_v17  ;;  %v3246_v20 = vpack.c.bf16 %v1280_v18, %v1280_v18  ;;  %2703 = vst.msk [vmem:[%s4208_s13 + $0x134] sm:$0xf] %vm2135_vm4, %v3344_v19 }
 0x21d   : > { %v1124_v21 = vpop.f32.mrb[156].mxu0  ;;  %v1664_v22 = vpop.f32.mrb[156].mxu1 }
 0x21e   : > { %2213 = vst.msk [vmem:[%s4216_s16 + $0x134] sm:$0xf] %vm2135_vm4, %v3246_v20  ;;  %v1125_v23 = vadd.f32 %v4577_v30, %v1124_v21  ;;  %v1665_v24 = vadd.f32 %v4583_v32, %v1664_v22  ;;  %v3625_v25 = vpop.f32.mrb[157].mxu0  ;;  %v3823_v26 = vpop.f32.mrb[157].mxu1 }
 0x21f   : > { %v1127_v27 = vpop.f32.mrb[158].mxu0  ;;  %v1667_v28 = vpop.f32.mrb[158].mxu1 }
 0x220   : > { %v1281_v35 = vmax.f32 %v1125_v23, 0.0  ;;  %v3345_v36 = vpack.c.bf16 %v1665_v24, %v1665_v24  ;;  %v1128_v29 = vadd.f32 %v4577_v30, %v1127_v27  ;;  %v1668_v31 = vadd.f32 %v4583_v32, %v1667_v28  ;;  %v3626_v33 = vpop.f32.mrb[159].mxu0  ;;  %v3824_v34 = vpop.f32.mrb[159].mxu1 }
 0x222   : > { %v3247_v37 = vpack.c.bf16 %v1281_v35, %v1281_v35  ;;  %2704 = vst.msk [vmem:[%s4208_s13 + $0x138] sm:$0xf] %vm2135_vm4, %v3345_v36  ;;  %v1282_v38 = vmax.f32 %v1128_v29, 0.0  ;;  %v3346_v39 = vpack.c.bf16 %v1668_v31, %v1668_v31 }
 0x224   : > { %2214 = vst.msk [vmem:[%s4216_s16 + $0x138] sm:$0xf] %vm2135_vm4, %v3247_v37  ;;  %v3248_v40 = vpack.c.bf16 %v1282_v38, %v1282_v38  ;;  %2705 = vst.msk [vmem:[%s4208_s13 + $0x13c] sm:$0xf] %vm2135_vm4, %v3346_v39 }
 0x225   : > { %v1132_v41 = vpop.f32.mrb[160].mxu0  ;;  %v1672_v42 = vpop.f32.mrb[160].mxu1 }
 0x226   : > { %2215 = vst.msk [vmem:[%s4216_s16 + $0x13c] sm:$0xf] %vm2135_vm4, %v3248_v40  ;;  %v1133_v43 = vadd.f32 %v4577_v30, %v1132_v41  ;;  %v1673_v44 = vadd.f32 %v4583_v32, %v1672_v42  ;;  %v3629_v45 = vpop.f32.mrb[161].mxu0  ;;  %v3827_v46 = vpop.f32.mrb[161].mxu1 }
 0x227   : > { %v1135_v47 = vpop.f32.mrb[162].mxu0  ;;  %v1675_v48 = vpop.f32.mrb[162].mxu1 }
 0x228   : > { %v1283_v49 = vmax.f32 %v1133_v43, 0.0  ;;  %v3347_v50 = vpack.c.bf16 %v1673_v44, %v1673_v44  ;;  %v1136_v51 = vadd.f32 %v4577_v30, %v1135_v47  ;;  %v1676_v52 = vadd.f32 %v4583_v32, %v1675_v48  ;;  %v3630_v53 = vpop.f32.mrb[163].mxu0  ;;  %v3828_v54 = vpop.f32.mrb[163].mxu1 }
 0x22a   : > { %v3249_v55 = vpack.c.bf16 %v1283_v49, %v1283_v49  ;;  %2706 = vst.msk [vmem:[%s4208_s13 + $0x140] sm:$0xf] %vm2135_vm4, %v3347_v50  ;;  %v1284_v56 = vmax.f32 %v1136_v51, 0.0  ;;  %v3348_v57 = vpack.c.bf16 %v1676_v52, %v1676_v52 }
 0x22c   : > { %2216 = vst.msk [vmem:[%s4216_s16 + $0x140] sm:$0xf] %vm2135_vm4, %v3249_v55  ;;  %v3250_v58 = vpack.c.bf16 %v1284_v56, %v1284_v56  ;;  %2707 = vst.msk [vmem:[%s4208_s13 + $0x144] sm:$0xf] %vm2135_vm4, %v3348_v57 }
 0x22d   : > { %v1140_v59 = vpop.f32.mrb[164].mxu0  ;;  %v1680_v60 = vpop.f32.mrb[164].mxu1 }
 0x22e   : > { %2217 = vst.msk [vmem:[%s4216_s16 + $0x144] sm:$0xf] %vm2135_vm4, %v3250_v58  ;;  %v1141_v61 = vadd.f32 %v4577_v30, %v1140_v59  ;;  %v1681_v62 = vadd.f32 %v4583_v32, %v1680_v60  ;;  %v3633_v63 = vpop.f32.mrb[165].mxu0  ;;  %v3831_v1 = vpop.f32.mrb[165].mxu1 }
 0x22f   : > { %v1143_v2 = vpop.f32.mrb[166].mxu0  ;;  %v1683_v3 = vpop.f32.mrb[166].mxu1 }
 0x230   : > { %v1285_v4 = vmax.f32 %v1141_v61, 0.0  ;;  %v3349_v5 = vpack.c.bf16 %v1681_v62, %v1681_v62  ;;  %v1144_v6 = vadd.f32 %v4577_v30, %v1143_v2  ;;  %v1684_v7 = vadd.f32 %v4583_v32, %v1683_v3  ;;  %v3634_v8 = vpop.f32.mrb[167].mxu0  ;;  %v3832_v9 = vpop.f32.mrb[167].mxu1  ;;  %v4880_v30 = vld [vmem:[%s4976_s2] ss:$0 sm:$0xff] }
 0x232   : > { %v3251_v10 = vpack.c.bf16 %v1285_v4, %v1285_v4  ;;  %2708 = vst.msk [vmem:[%s4208_s13 + $0x148] sm:$0xf] %vm2135_vm4, %v3349_v5  ;;  %v1286_v11 = vmax.f32 %v1144_v6, 0.0  ;;  %v3350_v12 = vpack.c.bf16 %v1684_v7, %v1684_v7 }
 0x234   : > { %2218 = vst.msk [vmem:[%s4216_s16 + $0x148] sm:$0xf] %vm2135_vm4, %v3251_v10  ;;  %v3252_v13 = vpack.c.bf16 %v1286_v11, %v1286_v11  ;;  %2709 = vst.msk [vmem:[%s4208_s13 + $0x14c] sm:$0xf] %vm2135_vm4, %v3350_v12 }
 0x235   : > { %v1148_v14 = vpop.f32.mrb[168].mxu0  ;;  %v1688_v0 = vpop.f32.mrb[168].mxu1 }
 0x236   : > { %2219 = vst.msk [vmem:[%s4216_s16 + $0x14c] sm:$0xf] %vm2135_vm4, %v3252_v13  ;;  %v1149_v32 = vadd.f32 %v4880_v30, %v1148_v14  ;;  %v1689_v16 = vadd.f32 %v4886_v15, %v1688_v0  ;;  %v3637_v17 = vpop.f32.mrb[169].mxu0  ;;  %v3835_v18 = vpop.f32.mrb[169].mxu1 }
 0x237   : > { %v1151_v19 = vpop.f32.mrb[170].mxu0  ;;  %v1691_v20 = vpop.f32.mrb[170].mxu1 }
 0x238   : > { %v1287_v21 = vmax.f32 %v1149_v32, 0.0  ;;  %v3351_v22 = vpack.c.bf16 %v1689_v16, %v1689_v16  ;;  %v1152_v23 = vadd.f32 %v4880_v30, %v1151_v19  ;;  %v1692_v24 = vadd.f32 %v4886_v15, %v1691_v20  ;;  %v3638_v25 = vpop.f32.mrb[171].mxu0  ;;  %v3836_v26 = vpop.f32.mrb[171].mxu1 }
 0x23a   : > { %v3253_v27 = vpack.c.bf16 %v1287_v21, %v1287_v21  ;;  %2710 = vst.msk [vmem:[%s4208_s13 + $0x150] sm:$0xf] %vm2135_vm4, %v3351_v22  ;;  %v1288_v28 = vmax.f32 %v1152_v23, 0.0  ;;  %v3352_v35 = vpack.c.bf16 %v1692_v24, %v1692_v24 }
 0x23c   : > { %2220 = vst.msk [vmem:[%s4216_s16 + $0x150] sm:$0xf] %vm2135_vm4, %v3253_v27  ;;  %v3254_v36 = vpack.c.bf16 %v1288_v28, %v1288_v28  ;;  %2711 = vst.msk [vmem:[%s4208_s13 + $0x154] sm:$0xf] %vm2135_vm4, %v3352_v35 }
 0x23d   : > { %v1156_v29 = vpop.f32.mrb[172].mxu0  ;;  %v1696_v31 = vpop.f32.mrb[172].mxu1 }
 0x23e   : > { %2221 = vst.msk [vmem:[%s4216_s16 + $0x154] sm:$0xf] %vm2135_vm4, %v3254_v36  ;;  %v1157_v33 = vadd.f32 %v4880_v30, %v1156_v29  ;;  %v1697_v34 = vadd.f32 %v4886_v15, %v1696_v31  ;;  %v3641_v37 = vpop.f32.mrb[173].mxu0  ;;  %v3839_v38 = vpop.f32.mrb[173].mxu1 }
 0x23f   : > { %v1159_v39 = vpop.f32.mrb[174].mxu0  ;;  %v1699_v40 = vpop.f32.mrb[174].mxu1 }
 0x240   : > { %v1289_v41 = vmax.f32 %v1157_v33, 0.0  ;;  %v3353_v42 = vpack.c.bf16 %v1697_v34, %v1697_v34  ;;  %v1160_v43 = vadd.f32 %v4880_v30, %v1159_v39  ;;  %v1700_v44 = vadd.f32 %v4886_v15, %v1699_v40  ;;  %v3642_v45 = vpop.f32.mrb[175].mxu0  ;;  %v3840_v46 = vpop.f32.mrb[175].mxu1 }
 0x242   : > { %v3255_v47 = vpack.c.bf16 %v1289_v41, %v1289_v41  ;;  %2712 = vst.msk [vmem:[%s4208_s13 + $0x158] sm:$0xf] %vm2135_vm4, %v3353_v42  ;;  %v1290_v48 = vmax.f32 %v1160_v43, 0.0  ;;  %v3354_v49 = vpack.c.bf16 %v1700_v44, %v1700_v44 }
 0x244   : > { %2222 = vst.msk [vmem:[%s4216_s16 + $0x158] sm:$0xf] %vm2135_vm4, %v3255_v47  ;;  %v3256_v50 = vpack.c.bf16 %v1290_v48, %v1290_v48  ;;  %2713 = vst.msk [vmem:[%s4208_s13 + $0x15c] sm:$0xf] %vm2135_vm4, %v3354_v49 }
 0x245   : > { %v1164_v51 = vpop.f32.mrb[176].mxu0  ;;  %v1704_v52 = vpop.f32.mrb[176].mxu1 }
 0x246   : > { %2223 = vst.msk [vmem:[%s4216_s16 + $0x15c] sm:$0xf] %vm2135_vm4, %v3256_v50  ;;  %v1165_v53 = vadd.f32 %v4880_v30, %v1164_v51  ;;  %v1705_v54 = vadd.f32 %v4886_v15, %v1704_v52  ;;  %v3645_v55 = vpop.f32.mrb[177].mxu0  ;;  %v3843_v56 = vpop.f32.mrb[177].mxu1 }
 0x247   : > { %v1167_v57 = vpop.f32.mrb[178].mxu0  ;;  %v1707_v58 = vpop.f32.mrb[178].mxu1 }
 0x248   : > { %v1291_v59 = vmax.f32 %v1165_v53, 0.0  ;;  %v3355_v60 = vpack.c.bf16 %v1705_v54, %v1705_v54  ;;  %v1168_v61 = vadd.f32 %v4880_v30, %v1167_v57  ;;  %v1708_v62 = vadd.f32 %v4886_v15, %v1707_v58  ;;  %v3646_v63 = vpop.f32.mrb[179].mxu0  ;;  %v3844_v1 = vpop.f32.mrb[179].mxu1 }
 0x24a   : > { %v3257_v2 = vpack.c.bf16 %v1291_v59, %v1291_v59  ;;  %2714 = vst.msk [vmem:[%s4208_s13 + $0x160] sm:$0xf] %vm2135_vm4, %v3355_v60  ;;  %v1292_v3 = vmax.f32 %v1168_v61, 0.0  ;;  %v3356_v4 = vpack.c.bf16 %v1708_v62, %v1708_v62 }
 0x24c   : > { %2224 = vst.msk [vmem:[%s4216_s16 + $0x160] sm:$0xf] %vm2135_vm4, %v3257_v2  ;;  %v3258_v5 = vpack.c.bf16 %v1292_v3, %v1292_v3  ;;  %2715 = vst.msk [vmem:[%s4208_s13 + $0x164] sm:$0xf] %vm2135_vm4, %v3356_v4 }
 0x24d   : > { %v1172_v6 = vpop.f32.mrb[180].mxu0  ;;  %v1712_v7 = vpop.f32.mrb[180].mxu1 }
 0x24e   : > { %2225 = vst.msk [vmem:[%s4216_s16 + $0x164] sm:$0xf] %vm2135_vm4, %v3258_v5  ;;  %v1173_v8 = vadd.f32 %v4880_v30, %v1172_v6  ;;  %v1713_v9 = vadd.f32 %v4886_v15, %v1712_v7  ;;  %v3649_v10 = vpop.f32.mrb[181].mxu0  ;;  %v3847_v11 = vpop.f32.mrb[181].mxu1 }
 0x24f   : > { %v1175_v12 = vpop.f32.mrb[182].mxu0  ;;  %v1715_v13 = vpop.f32.mrb[182].mxu1 }
 0x250   : > { %v1293_v14 = vmax.f32 %v1173_v8, 0.0  ;;  %v3357_v0 = vpack.c.bf16 %v1713_v9, %v1713_v9  ;;  %v1176_v32 = vadd.f32 %v4880_v30, %v1175_v12  ;;  %v1716_v16 = vadd.f32 %v4886_v15, %v1715_v13  ;;  %v3650_v17 = vpop.f32.mrb[183].mxu0  ;;  %v3848_v18 = vpop.f32.mrb[183].mxu1 }
 0x252   : > { %v3259_v19 = vpack.c.bf16 %v1293_v14, %v1293_v14  ;;  %2716 = vst.msk [vmem:[%s4208_s13 + $0x168] sm:$0xf] %vm2135_vm4, %v3357_v0  ;;  %v1294_v20 = vmax.f32 %v1176_v32, 0.0  ;;  %v3358_v21 = vpack.c.bf16 %v1716_v16, %v1716_v16 }
 0x254   : > { %2226 = vst.msk [vmem:[%s4216_s16 + $0x168] sm:$0xf] %vm2135_vm4, %v3259_v19  ;;  %v3260_v22 = vpack.c.bf16 %v1294_v20, %v1294_v20  ;;  %2717 = vst.msk [vmem:[%s4208_s13 + $0x16c] sm:$0xf] %vm2135_vm4, %v3358_v21 }
 0x255   : > { %v1180_v23 = vpop.f32.mrb[184].mxu0  ;;  %v1720_v24 = vpop.f32.mrb[184].mxu1 }
 0x256   : > { %2227 = vst.msk [vmem:[%s4216_s16 + $0x16c] sm:$0xf] %vm2135_vm4, %v3260_v22  ;;  %v1181_v25 = vadd.f32 %v4880_v30, %v1180_v23  ;;  %v1721_v26 = vadd.f32 %v4886_v15, %v1720_v24  ;;  %v3653_v27 = vpop.f32.mrb[185].mxu0  ;;  %v3851_v28 = vpop.f32.mrb[185].mxu1 }
 0x257   : > { %v1183_v35 = vpop.f32.mrb[186].mxu0  ;;  %v1723_v36 = vpop.f32.mrb[186].mxu1 }
 0x258   : > { %v1295_v29 = vmax.f32 %v1181_v25, 0.0  ;;  %v3359_v31 = vpack.c.bf16 %v1721_v26, %v1721_v26  ;;  %v1184_v33 = vadd.f32 %v4880_v30, %v1183_v35  ;;  %v1724_v34 = vadd.f32 %v4886_v15, %v1723_v36  ;;  %v3654_v37 = vpop.f32.mrb[187].mxu0  ;;  %v3852_v38 = vpop.f32.mrb[187].mxu1 }
 0x25a   : > { %v3261_v39 = vpack.c.bf16 %v1295_v29, %v1295_v29  ;;  %2718 = vst.msk [vmem:[%s4208_s13 + $0x170] sm:$0xf] %vm2135_vm4, %v3359_v31  ;;  %v1296_v40 = vmax.f32 %v1184_v33, 0.0  ;;  %v3360_v41 = vpack.c.bf16 %v1724_v34, %v1724_v34 }
 0x25c   : > { %2228 = vst.msk [vmem:[%s4216_s16 + $0x170] sm:$0xf] %vm2135_vm4, %v3261_v39  ;;  %v3262_v42 = vpack.c.bf16 %v1296_v40, %v1296_v40  ;;  %2719 = vst.msk [vmem:[%s4208_s13 + $0x174] sm:$0xf] %vm2135_vm4, %v3360_v41 }
 0x25d   : > { %v1188_v43 = vpop.f32.mrb[188].mxu0  ;;  %v1728_v44 = vpop.f32.mrb[188].mxu1 }
 0x25e   : > { %2229 = vst.msk [vmem:[%s4216_s16 + $0x174] sm:$0xf] %vm2135_vm4, %v3262_v42  ;;  %v1189_v45 = vadd.f32 %v4880_v30, %v1188_v43  ;;  %v1729_v46 = vadd.f32 %v4886_v15, %v1728_v44  ;;  %v3657_v47 = vpop.f32.mrb[189].mxu0  ;;  %v3855_v48 = vpop.f32.mrb[189].mxu1 }
 0x25f   : > { %v1191_v49 = vpop.f32.mrb[190].mxu0  ;;  %v1731_v50 = vpop.f32.mrb[190].mxu1 }
 0x260   : > { %v1297_v51 = vmax.f32 %v1189_v45, 0.0  ;;  %v3361_v52 = vpack.c.bf16 %v1729_v46, %v1729_v46  ;;  %v1192_v53 = vadd.f32 %v4880_v30, %v1191_v49  ;;  %v1732_v54 = vadd.f32 %v4886_v15, %v1731_v50  ;;  %v3658_v55 = vpop.f32.mrb[191].mxu0  ;;  %v3856_v56 = vpop.f32.mrb[191].mxu1 }
 0x262   : > { %v3263_v57 = vpack.c.bf16 %v1297_v51, %v1297_v51  ;;  %2720 = vst.msk [vmem:[%s4208_s13 + $0x178] sm:$0xf] %vm2135_vm4, %v3361_v52  ;;  %v1298_v58 = vmax.f32 %v1192_v53, 0.0  ;;  %v3362_v59 = vpack.c.bf16 %v1732_v54, %v1732_v54 }
 0x264   : > { %2230 = vst.msk [vmem:[%s4216_s16 + $0x178] sm:$0xf] %vm2135_vm4, %v3263_v57  ;;  %v3264_v60 = vpack.c.bf16 %v1298_v58, %v1298_v58  ;;  %2721 = vst.msk [vmem:[%s4208_s13 + $0x17c] sm:$0xf] %vm2135_vm4, %v3362_v59 }
 0x265   : > { %v1196_v61 = vpop.f32.mrb[192].mxu0  ;;  %v1736_v62 = vpop.f32.mrb[192].mxu1 }
 0x266   : > { %2231 = vst.msk [vmem:[%s4216_s16 + $0x17c] sm:$0xf] %vm2135_vm4, %v3264_v60  ;;  %v1197_v63 = vadd.f32 %v4880_v30, %v1196_v61  ;;  %v1737_v1 = vadd.f32 %v4886_v15, %v1736_v62  ;;  %v3661_v2 = vpop.f32.mrb[193].mxu0  ;;  %v3859_v3 = vpop.f32.mrb[193].mxu1 }
 0x267   : > { %v1199_v4 = vpop.f32.mrb[194].mxu0  ;;  %v1739_v5 = vpop.f32.mrb[194].mxu1 }
 0x268   : > { %v1299_v6 = vmax.f32 %v1197_v63, 0.0  ;;  %v3363_v7 = vpack.c.bf16 %v1737_v1, %v1737_v1  ;;  %v1200_v8 = vadd.f32 %v4880_v30, %v1199_v4  ;;  %v1740_v9 = vadd.f32 %v4886_v15, %v1739_v5  ;;  %v3662_v10 = vpop.f32.mrb[195].mxu0  ;;  %v3860_v11 = vpop.f32.mrb[195].mxu1 }
 0x26a   : > { %v3265_v12 = vpack.c.bf16 %v1299_v6, %v1299_v6  ;;  %2722 = vst.msk [vmem:[%s4208_s13 + $0x180] sm:$0xf] %vm2135_vm4, %v3363_v7  ;;  %v1300_v13 = vmax.f32 %v1200_v8, 0.0  ;;  %v3364_v14 = vpack.c.bf16 %v1740_v9, %v1740_v9 }
 0x26c   : > { %2232 = vst.msk [vmem:[%s4216_s16 + $0x180] sm:$0xf] %vm2135_vm4, %v3265_v12  ;;  %v3266_v0 = vpack.c.bf16 %v1300_v13, %v1300_v13  ;;  %2723 = vst.msk [vmem:[%s4208_s13 + $0x184] sm:$0xf] %vm2135_vm4, %v3364_v14 }
 0x26e   : > { %2233 = vst.msk [vmem:[%s4216_s16 + $0x184] sm:$0xf] %vm2135_vm4, %v3266_v0 }
 0x26f PF: > { %s17_s21 = sadd.s32 1, %s3934_s21  }
 0x270   : > { %p14_p4 = scmp.ge.s32.totalorder %s17_s21, 4  }
 0x272   :  { %16 = sbr.rel (!%p14_p4) target bundleno = 1 (0x1), region = 82 }

// kernel: my_net_forward.6
= control target key start
LH: loop header
LB: loop body
LE: loop exit
PB: predicated region body
PF: predicated region fallthrough
CT: control target
= control target key end

     0   :  { %s3044_s15 = smov 0   ;;  %s3785_s0 = inlined_call_operand.vmem [shape: bf16[2,4,196,144], index: 0, kind: input, shape index: {}]   ;;  %s3786_s1 = inlined_call_operand.vmem [shape: bf16[2,4,196,16], index: 1, kind: input, shape index: {}]   ;;  %s3787_s2 = inlined_call_operand.vmem [shape: bf16[144,16], index: 2, kind: input, shape index: {}]   ;;  %s3788_s3 = inlined_call_operand.vmem [shape: f32[1,16], index: 3, kind: input, shape index: {}]   ;;  %s3789_s4 = inlined_call_operand.vmem [shape: bf16[2,196,16], index: 4, kind: output, shape index: {}]  }
   0x1 LB: > { %s2231_s16 = sadd.s32 4294967295, %s3016_s15   ;;  %p2235_p0 = scmp.ge.s32.totalorder %s3016_s15, 1  ;;  %s3016_s15 = sphi %s3044_s15, %s14_s15  }
   0x2   : > { %p172_p1 = scmp.lt.s32.totalorder %s3016_s15, 3 }
   0x4   : > { %p173_p2 = pnand %p2235_p0, %p172_p1 }
   0x6   : > { %176 = sbr.rel (%p173_p2) target bundleno = 475 (0x1db), region = 36 }
   0xd   : > { %v3055_v0 = vld [vmem:[%s3787_s2] sm:$0xff]   ;;  %v3018_v1 = vmov 0   ;;  %p203_p3 = scmp.lt.s32.totalorder %s2231_s16, 1  ;;  %v3064_v2 = vld [vmem:[%s3787_s2 + $0x8] sm:$0xff]   ;;  %v3076_v3 = vld [vmem:[%s3787_s2 + $0x10] sm:$0xff]   ;;  %vm437_vm0 = vcmask 130048  }
   0xe   : > { %477 = vmatprep.subr.bf16.mxu0 %v3018_v1  ;;  %892 = vmatprep.subr.bf16.mxu1 %v3018_v1  ;;  %v3088_v4 = vld [vmem:[%s3787_s2 + $0x18] sm:$0xff]   ;;  %v3103_v7 = vld [vmem:[%s3787_s2 + $0x20] sm:$0xff]   ;;  %v3112_v8 = vld [vmem:[%s3787_s2 + $0x28] sm:$0xff]   ;;  %vm2137_vm1 = vcmask 125952   ;;  %vm2162_vm2 = vcmask 123904  }
   0xf   : > { %478 = vmatpush1.bf16.msra.mxu0 %v3055_v0  ;;  %893 = vmatpush1.bf16.msra.mxu1 %v3055_v0  ;;  %s3849_s16 = smov (!%p203_p3, %s2231_s16), 1  ;;  %v3121_v9 = vld [vmem:[%s3787_s2 + $0x30] sm:$0xff]   ;;  %v3130_v10 = vld [vmem:[%s3787_s2 + $0x38] sm:$0xff]   ;;  %v3139_v11 = vld [vmem:[%s3787_s2 + $0x40] sm:$0xff]  }
  0x10   : > { %479 = vmatprep.subr.bf16.mxu0 %v3018_v1  ;;  %894 = vmatprep.subr.bf16.mxu1 %v3018_v1  ;;  %s2836_s21 = smul.u32 800, %s3849_s16 }
  0x11   : > { %s2837_s13 = smul.u32 400, %s3849_s16 }
  0x12   : > { %s3083_s26 = scalar_lea.vmem %s3785_s0, %s2836_s21  ;;  %s2838_s21 = smul.u32 100, %s3849_s16 }
  0x13   : > { %480 = vmatpush1.bf16.msra.mxu0 %v3064_v2  ;;  %895 = vmatpush1.bf16.msra.mxu1 %v3064_v2  ;;  %v2859_v5 = vld [vmem:[%s3083_s26 + $0x4] ss:$8 sps:$4 sm:$0xff]   ;;  %v2857_v12 = vld [vmem:[%s3083_s26] ss:$8 sps:$4 sm:$0xff]   ;;  %v2863_v14 = vld [vmem:[%s3083_s26 + $0x14] ss:$8 sps:$4 sm:$0xff]   ;;  %s3333_s18 = scalar_lea.vmem %s3786_s1, %s2837_s13 }
  0x14   : > { %481 = vmatprep.subr.bf16.mxu0 %v3018_v1  ;;  %896 = vmatprep.subr.bf16.mxu1 %v3018_v1  ;;  %v2862_v6 = vld [vmem:[%s3083_s26 + $0xcc] ss:$8 sps:$4 sm:$0xff]   ;;  %v2860_v13 = vld [vmem:[%s3083_s26 + $0xc8] ss:$8 sps:$4 sm:$0xff]   ;;  %v2865_v15 = vld [vmem:[%s3083_s26 + $0xdc] ss:$8 sps:$4 sm:$0xff]   ;;  %s3590_s23 = scalar_lea.vmem %s3789_s4, %s2838_s21 }
  0x15   : > { %2275 = vmatprep.mubr.msk.bf16.mxu0 %vm437_vm0, %v2859_v5  ;;  %2339 = vmatprep.mubr.msk.bf16.mxu1 %vm437_vm0, %v2862_v6  ;;  %v2867_v16 = vld [vmem:[%s3083_s26 + $0x10] ss:$8 sps:$4 sm:$0xff]   ;;  %v2869_v18 = vld [vmem:[%s3083_s26 + $0x24] ss:$8 sps:$4 sm:$0xff]   ;;  %v2873_v20 = vld [vmem:[%s3083_s26 + $0x20] ss:$8 sps:$4 sm:$0xff]  }
  0x16   : > { %v2868_v17 = vld [vmem:[%s3083_s26 + $0xd8] ss:$8 sps:$4 sm:$0xff]   ;;  %v2871_v19 = vld [vmem:[%s3083_s26 + $0xec] ss:$8 sps:$4 sm:$0xff]   ;;  %v2874_v21 = vld [vmem:[%s3083_s26 + $0xe8] ss:$8 sps:$4 sm:$0xff]  }
  0x17   : > { %482 = vmatpush1.bf16.msra.mxu0 %v3076_v3  ;;  %897 = vmatpush1.bf16.msra.mxu1 %v3076_v3  ;;  %v2875_v22 = vld [vmem:[%s3083_s26 + $0x34] ss:$8 sps:$4 sm:$0xff]   ;;  %v2879_v24 = vld [vmem:[%s3083_s26 + $0x30] ss:$8 sps:$4 sm:$0xff]   ;;  %v2881_v26 = vld [vmem:[%s3083_s26 + $0x44] ss:$8 sps:$4 sm:$0xff]  }
  0x18   : > { %483 = vmatprep.subr.bf16.mxu0 %v3018_v1  ;;  %898 = vmatprep.subr.bf16.mxu1 %v3018_v1  ;;  %v2877_v23 = vld [vmem:[%s3083_s26 + $0xfc] ss:$8 sps:$4 sm:$0xff]   ;;  %v2880_v25 = vld [vmem:[%s3083_s26 + $0xf8] ss:$8 sps:$4 sm:$0xff]   ;;  %v2883_v27 = vld [vmem:[%s3083_s26 + $0x10c] ss:$8 sps:$4 sm:$0xff]  }
  0x19   : > { %v2885_v28 = vld [vmem:[%s3083_s26 + $0x40] ss:$8 sps:$4 sm:$0xff]   ;;  %v2887_v30 = vld [vmem:[%s3083_s26 + $0x54] ss:$8 sps:$4 sm:$0xff]   ;;  %v2891_v32 = vld [vmem:[%s3083_s26 + $0x50] ss:$8 sps:$4 sm:$0xff]  }
  0x1a   : > { %v2886_v29 = vld [vmem:[%s3083_s26 + $0x108] ss:$8 sps:$4 sm:$0xff]   ;;  %v2889_v31 = vld [vmem:[%s3083_s26 + $0x11c] ss:$8 sps:$4 sm:$0xff]   ;;  %v2892_v33 = vld [vmem:[%s3083_s26 + $0x118] ss:$8 sps:$4 sm:$0xff]  }
  0x1b   : > { %484 = vmatpush1.bf16.msra.mxu0 %v3088_v4  ;;  %899 = vmatpush1.bf16.msra.mxu1 %v3088_v4  ;;  %v2893_v34 = vld [vmem:[%s3083_s26 + $0x64] ss:$8 sps:$4 sm:$0xff]   ;;  %v2897_v36 = vld [vmem:[%s3083_s26 + $0x60] ss:$8 sps:$4 sm:$0xff]   ;;  %v2899_v38 = vld [vmem:[%s3083_s26 + $0x74] ss:$8 sps:$4 sm:$0xff]  }
  0x1c   : > { %485 = vmatprep.subr.bf16.mxu0 %v3018_v1  ;;  %900 = vmatprep.subr.bf16.mxu1 %v3018_v1  ;;  %v2895_v35 = vld [vmem:[%s3083_s26 + $0x12c] ss:$8 sps:$4 sm:$0xff]   ;;  %v2898_v37 = vld [vmem:[%s3083_s26 + $0x128] ss:$8 sps:$4 sm:$0xff]   ;;  %v2901_v39 = vld [vmem:[%s3083_s26 + $0x13c] ss:$8 sps:$4 sm:$0xff]  }
  0x1d   : > { %v2903_v40 = vld [vmem:[%s3083_s26 + $0x70] ss:$8 sps:$4 sm:$0xff]   ;;  %v2905_v42 = vld [vmem:[%s3083_s26 + $0x84] ss:$8 sps:$4 sm:$0xff]   ;;  %v2909_v44 = vld [vmem:[%s3083_s26 + $0x80] ss:$8 sps:$4 sm:$0xff]  }
  0x1e   : > { %v2904_v41 = vld [vmem:[%s3083_s26 + $0x138] ss:$8 sps:$4 sm:$0xff]   ;;  %v2907_v43 = vld [vmem:[%s3083_s26 + $0x14c] ss:$8 sps:$4 sm:$0xff]   ;;  %v2910_v45 = vld [vmem:[%s3083_s26 + $0x148] ss:$8 sps:$4 sm:$0xff]  }
  0x1f   : > { %486 = vmatpush1.bf16.msra.mxu0 %v3103_v7  ;;  %901 = vmatpush1.bf16.msra.mxu1 %v3103_v7  ;;  %v2911_v46 = vld [vmem:[%s3083_s26 + $0x94] ss:$8 sps:$4 sm:$0xff]   ;;  %v2915_v48 = vld [vmem:[%s3083_s26 + $0x90] ss:$8 sps:$4 sm:$0xff]   ;;  %v2917_v50 = vld [vmem:[%s3083_s26 + $0xa4] ss:$8 sps:$4 sm:$0xff]  }
  0x20   : > { %487 = vmatprep.subr.bf16.mxu0 %v3018_v1  ;;  %902 = vmatprep.subr.bf16.mxu1 %v3018_v1  ;;  %v2913_v47 = vld [vmem:[%s3083_s26 + $0x15c] ss:$8 sps:$4 sm:$0xff]   ;;  %v2916_v49 = vld [vmem:[%s3083_s26 + $0x158] ss:$8 sps:$4 sm:$0xff]   ;;  %v2919_v51 = vld [vmem:[%s3083_s26 + $0x16c] ss:$8 sps:$4 sm:$0xff]  }
  0x21   : > { %v2921_v52 = vld [vmem:[%s3083_s26 + $0xa0] ss:$8 sps:$4 sm:$0xff]   ;;  %v2923_v54 = vld [vmem:[%s3083_s26 + $0xb4] ss:$8 sps:$4 sm:$0xff]   ;;  %v2927_v58 = vld [vmem:[%s3083_s26 + $0xb0] ss:$8 sps:$4 sm:$0xff]  }
  0x22   : > { %v2922_v53 = vld [vmem:[%s3083_s26 + $0x168] ss:$8 sps:$4 sm:$0xff]   ;;  %v2925_v55 = vld [vmem:[%s3083_s26 + $0x17c] ss:$8 sps:$4 sm:$0xff]   ;;  %v2928_v59 = vld [vmem:[%s3083_s26 + $0x178] ss:$8 sps:$4 sm:$0xff]  }
  0x23   : > { %488 = vmatpush1.bf16.msra.mxu0 %v3112_v8  ;;  %903 = vmatpush1.bf16.msra.mxu1 %v3112_v8  ;;  %v243_v56 = vld [vmem:[%s3083_s26 + $0xc0] sm:$0x33]  ;;  %v2312_v57 = vld [vmem:[%s3083_s26 + $0x188] sm:$0x33] }
  0x24   : > { %489 = vmatprep.subr.bf16.mxu0 %v3018_v1  ;;  %904 = vmatprep.subr.bf16.mxu1 %v3018_v1  ;;  %v2265_v60 = vcombine.high %v243_v56, %v243_v56  ;;  %v2338_v61 = vcombine.high %v2312_v57, %v2312_v57  ;;  %v2264_v62 = vcombine.low %v243_v56, %v243_v56  ;;  %v2941_v5 = vld [vmem:[%s3083_s26 + $0x26c] ss:$8 sps:$4 sm:$0xff]   ;;  %v2943_v6 = vld [vmem:[%s3083_s26 + $0x1a0] ss:$8 sps:$4 sm:$0xff]   ;;  %v2352_v56 = vld [vmem:[%s3333_s18 + $0x64] sm:$0xf] }
  0x25   : > { %v2337_v63 = vcombine.low %v2312_v57, %v2312_v57  ;;  %v2802_v57 = vld [vmem:[%s3333_s18 + $0x68] sm:$0xff]  }
  0x27   : > { %490 = vmatpush1.bf16.msra.mxu0 %v3121_v9  ;;  %905 = vmatpush1.bf16.msra.mxu1 %v3121_v9 }
  0x28   : > { %491 = vmatprep.subr.bf16.mxu0 %v3018_v1  ;;  %906 = vmatprep.subr.bf16.mxu1 %v3018_v1 }
  0x2b   : > { %492 = vmatpush1.bf16.msra.mxu0 %v3130_v10  ;;  %907 = vmatpush1.bf16.msra.mxu1 %v3130_v10 }
  0x2c   : > { %493 = vmatprep.subr.bf16.mxu0 %v3018_v1  ;;  %908 = vmatprep.subr.bf16.mxu1 %v3018_v1 }
  0x2f   : > { %494 = vmatpush1.bf16.msra.mxu0 %v3139_v11  ;;  %909 = vmatpush1.bf16.msra.mxu1 %v3139_v11 }
  0x30   : > { %1333 = vmatprep.subr.bf16.mxu0 %v3018_v1  ;;  %1774 = vmatprep.subr.bf16.mxu1 %v3018_v1 }
  0x32   : > { %510 = vmatmul.mubr.bf16.vlgmr.msra.gmra.mrb[0].mxu0 %v2857_v12  ;;  %925 = vmatmul.mubr.bf16.vlgmr.msra.gmra.mrb[0].mxu1 %v2860_v13  ;;  %v2951_v12 = vld [vmem:[%s3083_s26 + $0x1c4] ss:$8 sps:$4 sm:$0xff]  }
  0x33   : > { %1334 = vmatpush1.bf16.msra.mxu0 %v3055_v0  ;;  %1775 = vmatpush1.bf16.msra.mxu1 %v3055_v0  ;;  %v2935_v0 = vld [vmem:[%s3083_s26 + $0x194] ss:$8 sps:$4 sm:$0xff]  }
  0x34   : > { %2276 = vmatprep.mubr.msk.bf16.mxu0 %vm437_vm0, %v2863_v14  ;;  %2340 = vmatprep.mubr.msk.bf16.mxu1 %vm437_vm0, %v2865_v15  ;;  %v2953_v13 = vld [vmem:[%s3083_s26 + $0x28c] ss:$8 sps:$4 sm:$0xff]   ;;  %v2955_v14 = vld [vmem:[%s3083_s26 + $0x1c0] ss:$8 sps:$4 sm:$0xff]  }
  0x35   : > { %1335 = vmatprep.subr.bf16.mxu0 %v3018_v1  ;;  %1776 = vmatprep.subr.bf16.mxu1 %v3018_v1  ;;  %v2956_v15 = vld [vmem:[%s3083_s26 + $0x288] ss:$8 sps:$4 sm:$0xff]  }
  0x37   : > { %1336 = vmatpush1.bf16.msra.mxu0 %v3064_v2  ;;  %1777 = vmatpush1.bf16.msra.mxu1 %v3064_v2  ;;  %v2933_v2 = vld [vmem:[%s3083_s26 + $0x190] ss:$8 sps:$4 sm:$0xff]  }
  0x38   : > { %1337 = vmatprep.subr.bf16.mxu0 %v3018_v1  ;;  %1778 = vmatprep.subr.bf16.mxu1 %v3018_v1 }
  0x3a   : > { %518 = vmatmul.mubr.bf16.gmra.mrb[4].mxu0 %v2867_v16  ;;  %933 = vmatmul.mubr.bf16.gmra.mrb[4].mxu1 %v2868_v17  ;;  %v2957_v16 = vld [vmem:[%s3083_s26 + $0x1d4] ss:$8 sps:$4 sm:$0xff]  }
  0x3b   : > { %2277 = vmatprep.mubr.msk.bf16.mxu0 %vm437_vm0, %v2869_v18  ;;  %2341 = vmatprep.mubr.msk.bf16.mxu1 %vm437_vm0, %v2871_v19  ;;  %v2959_v17 = vld [vmem:[%s3083_s26 + $0x29c] ss:$8 sps:$4 sm:$0xff]   ;;  %v2961_v18 = vld [vmem:[%s3083_s26 + $0x1d0] ss:$8 sps:$4 sm:$0xff]  }
  0x3c   : > { %1338 = vmatpush1.bf16.msra.mxu0 %v3076_v3  ;;  %1779 = vmatpush1.bf16.msra.mxu1 %v3076_v3  ;;  %v2936_v3 = vld [vmem:[%s3083_s26 + $0x258] ss:$8 sps:$4 sm:$0xff]  }
  0x3d   : > { %1339 = vmatprep.subr.bf16.mxu0 %v3018_v1  ;;  %1780 = vmatprep.subr.bf16.mxu1 %v3018_v1  ;;  %v2962_v19 = vld [vmem:[%s3083_s26 + $0x298] ss:$8 sps:$4 sm:$0xff]  }
  0x40   : > { %1340 = vmatpush1.bf16.msra.mxu0 %v3088_v4  ;;  %1781 = vmatpush1.bf16.msra.mxu1 %v3088_v4  ;;  %v2939_v4 = vld [vmem:[%s3083_s26 + $0x1a4] ss:$8 sps:$4 sm:$0xff]  }
  0x41   : > { %1341 = vmatprep.subr.bf16.mxu0 %v3018_v1  ;;  %1782 = vmatprep.subr.bf16.mxu1 %v3018_v1 }
  0x42   : > { %526 = vmatmul.mubr.bf16.gmra.mrb[8].mxu0 %v2873_v20  ;;  %941 = vmatmul.mubr.bf16.gmra.mrb[8].mxu1 %v2874_v21  ;;  %v2963_v20 = vld [vmem:[%s3083_s26 + $0x1e4] ss:$8 sps:$4 sm:$0xff]  }
  0x43   : > { %2278 = vmatprep.mubr.msk.bf16.mxu0 %vm437_vm0, %v2875_v22  ;;  %2342 = vmatprep.mubr.msk.bf16.mxu1 %vm437_vm0, %v2877_v23  ;;  %v2965_v21 = vld [vmem:[%s3083_s26 + $0x2ac] ss:$8 sps:$4 sm:$0xff]   ;;  %v2967_v22 = vld [vmem:[%s3083_s26 + $0x1e0] ss:$8 sps:$4 sm:$0xff]  }
  0x44   : > { %1342 = vmatpush1.bf16.msra.mxu0 %v3103_v7  ;;  %1783 = vmatpush1.bf16.msra.mxu1 %v3103_v7  ;;  %v2944_v7 = vld [vmem:[%s3083_s26 + $0x268] ss:$8 sps:$4 sm:$0xff]  }
  0x45   : > { %1343 = vmatprep.subr.bf16.mxu0 %v3018_v1  ;;  %1784 = vmatprep.subr.bf16.mxu1 %v3018_v1  ;;  %v2968_v23 = vld [vmem:[%s3083_s26 + $0x2a8] ss:$8 sps:$4 sm:$0xff]  }
  0x48   : > { %1344 = vmatpush1.bf16.msra.mxu0 %v3112_v8  ;;  %1785 = vmatpush1.bf16.msra.mxu1 %v3112_v8  ;;  %v2945_v8 = vld [vmem:[%s3083_s26 + $0x1b4] ss:$8 sps:$4 sm:$0xff]  }
  0x49   : > { %1345 = vmatprep.subr.bf16.mxu0 %v3018_v1  ;;  %1786 = vmatprep.subr.bf16.mxu1 %v3018_v1 }
  0x4a   : > { %534 = vmatmul.mubr.bf16.gmra.mrb[12].mxu0 %v2879_v24  ;;  %949 = vmatmul.mubr.bf16.gmra.mrb[12].mxu1 %v2880_v25  ;;  %v2969_v24 = vld [vmem:[%s3083_s26 + $0x1f4] ss:$8 sps:$4 sm:$0xff]  }
  0x4b   : > { %2279 = vmatprep.mubr.msk.bf16.mxu0 %vm437_vm0, %v2881_v26  ;;  %2343 = vmatprep.mubr.msk.bf16.mxu1 %vm437_vm0, %v2883_v27  ;;  %v2971_v25 = vld [vmem:[%s3083_s26 + $0x2bc] ss:$8 sps:$4 sm:$0xff]   ;;  %v2973_v26 = vld [vmem:[%s3083_s26 + $0x1f0] ss:$8 sps:$4 sm:$0xff]  }
  0x4c   : > { %1346 = vmatpush1.bf16.msra.mxu0 %v3121_v9  ;;  %1787 = vmatpush1.bf16.msra.mxu1 %v3121_v9  ;;  %v2947_v9 = vld [vmem:[%s3083_s26 + $0x27c] ss:$8 sps:$4 sm:$0xff]   ;;  %v2974_v27 = vld [vmem:[%s3083_s26 + $0x2b8] ss:$8 sps:$4 sm:$0xff]  }
  0x4d   : > { %1347 = vmatprep.subr.bf16.mxu0 %v3018_v1  ;;  %1788 = vmatprep.subr.bf16.mxu1 %v3018_v1 }
  0x50   : > { %1348 = vmatpush1.bf16.msra.mxu0 %v3130_v10  ;;  %1789 = vmatpush1.bf16.msra.mxu1 %v3130_v10  ;;  %v2949_v10 = vld [vmem:[%s3083_s26 + $0x1b0] ss:$8 sps:$4 sm:$0xff]  }
  0x51   : > { %1349 = vmatprep.subr.bf16.mxu0 %v3018_v1  ;;  %1790 = vmatprep.subr.bf16.mxu1 %v3018_v1  ;;  %v2938_v1 = vld [vmem:[%s3083_s26 + $0x25c] ss:$8 sps:$4 sm:$0xff]  }
  0x52   : > { %542 = vmatmul.mubr.bf16.gmra.mrb[16].mxu0 %v2885_v28  ;;  %957 = vmatmul.mubr.bf16.gmra.mrb[16].mxu1 %v2886_v29  ;;  %v2975_v28 = vld [vmem:[%s3083_s26 + $0x204] ss:$8 sps:$4 sm:$0xff]  }
  0x53   : > { %2280 = vmatprep.mubr.msk.bf16.mxu0 %vm437_vm0, %v2887_v30  ;;  %2344 = vmatprep.mubr.msk.bf16.mxu1 %vm437_vm0, %v2889_v31  ;;  %v2977_v29 = vld [vmem:[%s3083_s26 + $0x2cc] ss:$8 sps:$4 sm:$0xff]   ;;  %v2979_v30 = vld [vmem:[%s3083_s26 + $0x200] ss:$8 sps:$4 sm:$0xff]  }
  0x54   : > { %1350 = vmatpush1.bf16.msra.mxu0 %v3139_v11  ;;  %1791 = vmatpush1.bf16.msra.mxu1 %v3139_v11  ;;  %v2950_v11 = vld [vmem:[%s3083_s26 + $0x278] ss:$8 sps:$4 sm:$0xff]   ;;  %v2980_v31 = vld [vmem:[%s3083_s26 + $0x2c8] ss:$8 sps:$4 sm:$0xff]  }
  0x5a   : > { %550 = vmatmul.mubr.bf16.gmra.mrb[20].mxu0 %v2891_v32  ;;  %965 = vmatmul.mubr.bf16.gmra.mrb[20].mxu1 %v2892_v33  ;;  %v2981_v32 = vld [vmem:[%s3083_s26 + $0x214] ss:$8 sps:$4 sm:$0xff]  }
  0x5b   : > { %2281 = vmatprep.mubr.msk.bf16.mxu0 %vm437_vm0, %v2893_v34  ;;  %2345 = vmatprep.mubr.msk.bf16.mxu1 %vm437_vm0, %v2895_v35  ;;  %v2983_v33 = vld [vmem:[%s3083_s26 + $0x2dc] ss:$8 sps:$4 sm:$0xff]   ;;  %v2985_v34 = vld [vmem:[%s3083_s26 + $0x210] ss:$8 sps:$4 sm:$0xff]  }
  0x5c   : > { %v2986_v35 = vld [vmem:[%s3083_s26 + $0x2d8] ss:$8 sps:$4 sm:$0xff]  }
  0x62   : > { %558 = vmatmul.mubr.bf16.gmra.mrb[24].mxu0 %v2897_v36  ;;  %973 = vmatmul.mubr.bf16.gmra.mrb[24].mxu1 %v2898_v37  ;;  %v2987_v36 = vld [vmem:[%s3083_s26 + $0x224] ss:$8 sps:$4 sm:$0xff]  }
  0x63   : > { %2282 = vmatprep.mubr.msk.bf16.mxu0 %vm437_vm0, %v2899_v38  ;;  %2346 = vmatprep.mubr.msk.bf16.mxu1 %vm437_vm0, %v2901_v39  ;;  %v2989_v37 = vld [vmem:[%s3083_s26 + $0x2ec] ss:$8 sps:$4 sm:$0xff]   ;;  %v2991_v38 = vld [vmem:[%s3083_s26 + $0x220] ss:$8 sps:$4 sm:$0xff]  }
  0x64   : > { %v2992_v39 = vld [vmem:[%s3083_s26 + $0x2e8] ss:$8 sps:$4 sm:$0xff]  }
  0x6a   : > { %566 = vmatmul.mubr.bf16.gmra.mrb[28].mxu0 %v2903_v40  ;;  %981 = vmatmul.mubr.bf16.gmra.mrb[28].mxu1 %v2904_v41  ;;  %v2993_v40 = vld [vmem:[%s3083_s26 + $0x234] ss:$8 sps:$4 sm:$0xff]  }
  0x6b   : > { %2283 = vmatprep.mubr.msk.bf16.mxu0 %vm437_vm0, %v2905_v42  ;;  %2347 = vmatprep.mubr.msk.bf16.mxu1 %vm437_vm0, %v2907_v43  ;;  %v2995_v41 = vld [vmem:[%s3083_s26 + $0x2fc] ss:$8 sps:$4 sm:$0xff]   ;;  %v2997_v42 = vld [vmem:[%s3083_s26 + $0x230] ss:$8 sps:$4 sm:$0xff]  }
  0x6c   : > { %v2998_v43 = vld [vmem:[%s3083_s26 + $0x2f8] ss:$8 sps:$4 sm:$0xff]  }
  0x72   : > { %574 = vmatmul.mubr.bf16.gmra.mrb[32].mxu0 %v2909_v44  ;;  %989 = vmatmul.mubr.bf16.gmra.mrb[32].mxu1 %v2910_v45  ;;  %v2999_v44 = vld [vmem:[%s3083_s26 + $0x244] ss:$8 sps:$4 sm:$0xff]  }
  0x73   : > { %2284 = vmatprep.mubr.msk.bf16.mxu0 %vm437_vm0, %v2911_v46  ;;  %2348 = vmatprep.mubr.msk.bf16.mxu1 %vm437_vm0, %v2913_v47  ;;  %v3001_v45 = vld [vmem:[%s3083_s26 + $0x30c] ss:$8 sps:$4 sm:$0xff]   ;;  %v2490_v47 = vld [vmem:[%s3083_s26 + $0x318] sm:$0x33] }
  0x74   : > { %v2401_v46 = vld [vmem:[%s3083_s26 + $0x250] sm:$0x33] }
  0x7a   : > { %582 = vmatmul.mubr.bf16.gmra.mrb[36].mxu0 %v2915_v48  ;;  %997 = vmatmul.mubr.bf16.gmra.mrb[36].mxu1 %v2916_v49  ;;  %v3003_v48 = vld [vmem:[%s3083_s26 + $0x240] ss:$8 sps:$4 sm:$0xff]  }
  0x7b   : > { %2285 = vmatprep.mubr.msk.bf16.mxu0 %vm437_vm0, %v2917_v50  ;;  %2349 = vmatprep.mubr.msk.bf16.mxu1 %vm437_vm0, %v2919_v51  ;;  %v3004_v49 = vld [vmem:[%s3083_s26 + $0x308] ss:$8 sps:$4 sm:$0xff]   ;;  %v2427_v50 = vcombine.high %v2401_v46, %v2401_v46  ;;  %v2516_v51 = vcombine.high %v2490_v47, %v2490_v47 }
  0x82   : > { %590 = vmatmul.mubr.bf16.gmra.mrb[40].mxu0 %v2921_v52  ;;  %1005 = vmatmul.mubr.bf16.gmra.mrb[40].mxu1 %v2922_v53  ;;  %v2426_v52 = vcombine.low %v2401_v46, %v2401_v46  ;;  %v2515_v53 = vcombine.low %v2490_v47, %v2490_v47 }
  0x83   : > { %2286 = vmatprep.mubr.msk.bf16.mxu0 %vm437_vm0, %v2923_v54  ;;  %2350 = vmatprep.mubr.msk.bf16.mxu1 %vm437_vm0, %v2925_v55  ;;  %v3338_v54 = vld [vmem:[%s3788_s3] ss:$0 sm:$0xff] }
  0x84   : > { %v2608_v55 = vld [vmem:[%s3333_s18] sm:$0xff]  }
  0x8a   : > { %598 = vmatmul.mubr.bf16.gmra.mrb[44].mxu0 %v2927_v58  ;;  %1013 = vmatmul.mubr.bf16.gmra.mrb[44].mxu1 %v2928_v59 }
  0x8b   : > { %2287 = vmatprep.mubr.msk.bf16.mxu0 %vm437_vm0, %v2265_v60  ;;  %2351 = vmatprep.mubr.msk.bf16.mxu1 %vm437_vm0, %v2338_v61  ;;  %v2609_v61 = vunpack.c.l.bf16 %v2608_v55 }
  0x92   : > { %606 = vmatmul.mubr.bf16.gmra.mrb[48].mxu0 %v2264_v62  ;;  %1021 = vmatmul.mubr.bf16.gmra.mrb[48].mxu1 %v2337_v63  ;;  %v1079_v63 = vunpack.c.l.bf16 %v2352_v56 }
  0x93   : > { %2428 = vmatprep.mubr.msk.bf16.mxu0 %vm437_vm0, %v2935_v0  ;;  %2517 = vmatprep.mubr.msk.bf16.mxu1 %vm437_vm0, %v2938_v1 }
  0x9a   : > { %1366 = vmatmul.mubr.bf16.vlgmr.msra.gmra.mrb[52].mxu0 %v2933_v2  ;;  %1807 = vmatmul.mubr.bf16.vlgmr.msra.gmra.mrb[52].mxu1 %v2936_v3  ;;  %v2610_v3 = vunpack.c.h.bf16 %v2608_v55 }
  0x9b   : > { %2429 = vmatprep.mubr.msk.bf16.mxu0 %vm437_vm0, %v2939_v4  ;;  %2518 = vmatprep.mubr.msk.bf16.mxu1 %vm437_vm0, %v2941_v5  ;;  %v2657_v5 = vunpack.c.l.bf16 %v2802_v57 }
  0xa2   : > { %1374 = vmatmul.mubr.bf16.gmra.mrb[56].mxu0 %v2943_v6  ;;  %1815 = vmatmul.mubr.bf16.gmra.mrb[56].mxu1 %v2944_v7 }
  0xa3   : > { %2430 = vmatprep.mubr.msk.bf16.mxu0 %vm437_vm0, %v2945_v8  ;;  %2519 = vmatprep.mubr.msk.bf16.mxu1 %vm437_vm0, %v2947_v9 }
  0xaa   : > { %1382 = vmatmul.mubr.bf16.gmra.mrb[60].mxu0 %v2949_v10  ;;  %1823 = vmatmul.mubr.bf16.gmra.mrb[60].mxu1 %v2950_v11 }
  0xab   : > { %2431 = vmatprep.mubr.msk.bf16.mxu0 %vm437_vm0, %v2951_v12  ;;  %2520 = vmatprep.mubr.msk.bf16.mxu1 %vm437_vm0, %v2953_v13 }
  0xb2   : > { %1390 = vmatmul.mubr.bf16.gmra.mrb[64].mxu0 %v2955_v14  ;;  %1831 = vmatmul.mubr.bf16.gmra.mrb[64].mxu1 %v2956_v15 }
  0xb3   : > { %2432 = vmatprep.mubr.msk.bf16.mxu0 %vm437_vm0, %v2957_v16  ;;  %2521 = vmatprep.mubr.msk.bf16.mxu1 %vm437_vm0, %v2959_v17  ;;  %v2791_v16 = vld [vmem:[%s3333_s18 + $0x8] sm:$0xff]  }
  0xba   : > { %1398 = vmatmul.mubr.bf16.gmra.mrb[68].mxu0 %v2961_v18  ;;  %1839 = vmatmul.mubr.bf16.gmra.mrb[68].mxu1 %v2962_v19 }
  0xbb   : > { %2433 = vmatprep.mubr.msk.bf16.mxu0 %vm437_vm0, %v2963_v20  ;;  %2522 = vmatprep.mubr.msk.bf16.mxu1 %vm437_vm0, %v2965_v21  ;;  %v2803_v20 = vld [vmem:[%s3333_s18 + $0x70] sm:$0xff]  }
  0xbc   : > { %v2662_v56 = vunpack.c.h.bf16 %v2803_v20 }
  0xc2   : > { %1406 = vmatmul.mubr.bf16.gmra.mrb[72].mxu0 %v2967_v22  ;;  %1847 = vmatmul.mubr.bf16.gmra.mrb[72].mxu1 %v2968_v23  ;;  %v2613_v22 = vunpack.c.l.bf16 %v2791_v16 }
  0xc3   : > { %2434 = vmatprep.mubr.msk.bf16.mxu0 %vm437_vm0, %v2969_v24  ;;  %2523 = vmatprep.mubr.msk.bf16.mxu1 %vm437_vm0, %v2971_v25 }
  0xca   : > { %1414 = vmatmul.mubr.bf16.gmra.mrb[76].mxu0 %v2973_v26  ;;  %1855 = vmatmul.mubr.bf16.gmra.mrb[76].mxu1 %v2974_v27  ;;  %v2658_v27 = vunpack.c.h.bf16 %v2802_v57 }
  0xcb   : > { %2435 = vmatprep.mubr.msk.bf16.mxu0 %vm437_vm0, %v2975_v28  ;;  %2524 = vmatprep.mubr.msk.bf16.mxu1 %vm437_vm0, %v2977_v29 }
  0xd2   : > { %1422 = vmatmul.mubr.bf16.gmra.mrb[80].mxu0 %v2979_v30  ;;  %1863 = vmatmul.mubr.bf16.gmra.mrb[80].mxu1 %v2980_v31  ;;  %v2614_v31 = vunpack.c.h.bf16 %v2791_v16 }
  0xd3   : > { %2436 = vmatprep.mubr.msk.bf16.mxu0 %vm437_vm0, %v2981_v32  ;;  %2525 = vmatprep.mubr.msk.bf16.mxu1 %vm437_vm0, %v2983_v33  ;;  %v2661_v33 = vunpack.c.l.bf16 %v2803_v20 }
  0xda   : > { %1430 = vmatmul.mubr.bf16.gmra.mrb[84].mxu0 %v2985_v34  ;;  %1871 = vmatmul.mubr.bf16.gmra.mrb[84].mxu1 %v2986_v35 }
  0xdb   : > { %2437 = vmatprep.mubr.msk.bf16.mxu0 %vm437_vm0, %v2987_v36  ;;  %2526 = vmatprep.mubr.msk.bf16.mxu1 %vm437_vm0, %v2989_v37 }
  0xe2   : > { %1438 = vmatmul.mubr.bf16.gmra.mrb[88].mxu0 %v2991_v38  ;;  %1879 = vmatmul.mubr.bf16.gmra.mrb[88].mxu1 %v2992_v39 }
  0xe3   : > { %2438 = vmatprep.mubr.msk.bf16.mxu0 %vm437_vm0, %v2993_v40  ;;  %2527 = vmatprep.mubr.msk.bf16.mxu1 %vm437_vm0, %v2995_v41 }
  0xea   : > { %1446 = vmatmul.mubr.bf16.gmra.mrb[92].mxu0 %v2997_v42  ;;  %1887 = vmatmul.mubr.bf16.gmra.mrb[92].mxu1 %v2998_v43 }
  0xeb   : > { %2439 = vmatprep.mubr.msk.bf16.mxu0 %vm437_vm0, %v2999_v44  ;;  %2528 = vmatprep.mubr.msk.bf16.mxu1 %vm437_vm0, %v3001_v45  ;;  %v2792_v44 = vld [vmem:[%s3333_s18 + $0x10] sm:$0xff]  }
  0xf2   : > { %1454 = vmatmul.mubr.bf16.gmra.mrb[96].mxu0 %v3003_v48  ;;  %1895 = vmatmul.mubr.bf16.gmra.mrb[96].mxu1 %v3004_v49  ;;  %v2804_v48 = vld [vmem:[%s3333_s18 + $0x78] sm:$0xff]  }
  0xf3   : > { %2440 = vmatprep.mubr.msk.bf16.mxu0 %vm437_vm0, %v2427_v50  ;;  %2529 = vmatprep.mubr.msk.bf16.mxu1 %vm437_vm0, %v2516_v51  ;;  %v2617_v50 = vunpack.c.l.bf16 %v2792_v44 }
  0xfa   : > { %1462 = vmatmul.mubr.bf16.gmra.mrb[100].mxu0 %v2426_v52  ;;  %1903 = vmatmul.mubr.bf16.gmra.mrb[100].mxu1 %v2515_v53 }
 0x105   : > { %v511_v58 = vpop.f32.mrb[0].mxu0  ;;  %v926_v59 = vpop.f32.mrb[0].mxu1 }
 0x106   : > { %v512_v60 = vadd.f32 %v3338_v54, %v511_v58  ;;  %v927_v62 = vadd.f32 %v3338_v54, %v926_v59  ;;  %v513_v0 = vpop.f32.mrb[1].mxu0  ;;  %v928_v1 = vpop.f32.mrb[1].mxu1 }
 0x107   : > { %v514_v2 = vpop.f32.mrb[2].mxu0  ;;  %v929_v4 = vpop.f32.mrb[2].mxu1 }
 0x108   : > { %v613_v6 = vmax.f32 %v512_v60, 0.0  ;;  %v1028_v7 = vmax.f32 %v927_v62, 0.0  ;;  %v515_v8 = vadd.f32 %v3338_v54, %v514_v2  ;;  %v930_v9 = vadd.f32 %v3338_v54, %v929_v4  ;;  %v516_v10 = vpop.f32.mrb[3].mxu0  ;;  %v931_v11 = vpop.f32.mrb[3].mxu1 }
 0x109   : > { %v2618_v60 = vunpack.c.h.bf16 %v2792_v44  ;;  %v2665_v62 = vunpack.c.l.bf16 %v2804_v48 }
 0x10a   : > { %v3347_v12 = vadd.f32 %v2609_v61, %v613_v6  ;;  %v3349_v13 = vadd.f32 %v1079_v63, %v1028_v7  ;;  %v614_v14 = vmax.f32 %v515_v8, 0.0  ;;  %v1029_v15 = vmax.f32 %v930_v9, 0.0  ;;  %v2793_v9 = vld [vmem:[%s3333_s18 + $0x18] sm:$0xff]  }
 0x10b   : > { %v2621_v20 = vunpack.c.l.bf16 %v2793_v9 }
 0x10c   : > { %v3354_v18 = vadd.f32 %v2610_v3, %v614_v14  ;;  %v3356_v19 = vadd.f32 %v2657_v5, %v1029_v15  ;;  %v2805_v15 = vld [vmem:[%s3333_s18 + $0x80] sm:$0xff]  }
 0x10d   : > { %v519_v21 = vpop.f32.mrb[4].mxu0  ;;  %v934_v23 = vpop.f32.mrb[4].mxu1 }
 0x10e   : > { %v520_v25 = vadd.f32 %v3338_v54, %v519_v21  ;;  %v935_v26 = vadd.f32 %v3338_v54, %v934_v23  ;;  %v521_v28 = vpop.f32.mrb[5].mxu0  ;;  %v936_v29 = vpop.f32.mrb[5].mxu1 }
 0x10f   : > { %v522_v30 = vpop.f32.mrb[6].mxu0  ;;  %v937_v32 = vpop.f32.mrb[6].mxu1 }
 0x110   : > { %v615_v34 = vmax.f32 %v520_v25, 0.0  ;;  %v1030_v35 = vmax.f32 %v935_v26, 0.0  ;;  %v523_v36 = vadd.f32 %v3338_v54, %v522_v30  ;;  %v938_v37 = vadd.f32 %v3338_v54, %v937_v32  ;;  %v524_v38 = vpop.f32.mrb[7].mxu0  ;;  %v939_v39 = vpop.f32.mrb[7].mxu1 }
 0x111   : > { %v2666_v26 = vunpack.c.h.bf16 %v2804_v48  ;;  %v2622_v30 = vunpack.c.h.bf16 %v2793_v9  ;;  %v2669_v32 = vunpack.c.l.bf16 %v2805_v15  ;;  %v2794_v48 = vld [vmem:[%s3333_s18 + $0x20] sm:$0xff]  }
 0x112   : > { %v3365_v40 = vadd.f32 %v2613_v22, %v615_v34  ;;  %v3367_v41 = vadd.f32 %v2658_v27, %v1030_v35  ;;  %v616_v42 = vmax.f32 %v523_v36, 0.0  ;;  %v1031_v43 = vmax.f32 %v938_v37, 0.0 }
 0x114   : > { %v3372_v46 = vadd.f32 %v2614_v31, %v616_v42  ;;  %v3374_v47 = vadd.f32 %v2661_v33, %v1031_v43 }
 0x115   : > { %v527_v49 = vpop.f32.mrb[8].mxu0  ;;  %v942_v51 = vpop.f32.mrb[8].mxu1 }
 0x116   : > { %v528_v53 = vadd.f32 %v3338_v54, %v527_v49  ;;  %v943_v55 = vadd.f32 %v3338_v54, %v942_v51  ;;  %v529_v57 = vpop.f32.mrb[9].mxu0  ;;  %v944_v58 = vpop.f32.mrb[9].mxu1 }
 0x117   : > { %v530_v59 = vpop.f32.mrb[10].mxu0  ;;  %v945_v61 = vpop.f32.mrb[10].mxu1 }
 0x118   : > { %v617_v63 = vmax.f32 %v528_v53, 0.0  ;;  %v1032_v0 = vmax.f32 %v943_v55, 0.0  ;;  %v531_v1 = vadd.f32 %v3338_v54, %v530_v59  ;;  %v946_v2 = vadd.f32 %v3338_v54, %v945_v61  ;;  %v532_v3 = vpop.f32.mrb[11].mxu0  ;;  %v947_v4 = vpop.f32.mrb[11].mxu1  ;;  %v2806_v53 = vld [vmem:[%s3333_s18 + $0x88] sm:$0xff]  }
 0x119   : > { %v2670_v61 = vunpack.c.h.bf16 %v2805_v15  ;;  %v2673_v3 = vunpack.c.l.bf16 %v2806_v53 }
 0x11a   : > { %v3383_v5 = vadd.f32 %v2617_v50, %v617_v63  ;;  %v3385_v6 = vadd.f32 %v2662_v56, %v1032_v0  ;;  %v618_v7 = vmax.f32 %v531_v1, 0.0  ;;  %v1033_v8 = vmax.f32 %v946_v2, 0.0 }
 0x11b   : > { %v2625_v56 = vunpack.c.l.bf16 %v2794_v48  ;;  %v2626_v1 = vunpack.c.h.bf16 %v2794_v48 }
 0x11c   : > { %v3390_v11 = vadd.f32 %v2618_v60, %v618_v7  ;;  %v3392_v14 = vadd.f32 %v2665_v62, %v1033_v8 }
 0x11d   : > { %v535_v16 = vpop.f32.mrb[12].mxu0  ;;  %v950_v21 = vpop.f32.mrb[12].mxu1 }
 0x11e   : > { %v536_v23 = vadd.f32 %v3338_v54, %v535_v16  ;;  %v951_v25 = vadd.f32 %v3338_v54, %v950_v21  ;;  %v537_v27 = vpop.f32.mrb[13].mxu0  ;;  %v952_v28 = vpop.f32.mrb[13].mxu1 }
 0x11f   : > { %v538_v29 = vpop.f32.mrb[14].mxu0  ;;  %v953_v31 = vpop.f32.mrb[14].mxu1 }
 0x120   : > { %v619_v33 = vmax.f32 %v536_v23, 0.0  ;;  %v1034_v34 = vmax.f32 %v951_v25, 0.0  ;;  %v539_v35 = vadd.f32 %v3338_v54, %v538_v29  ;;  %v954_v36 = vadd.f32 %v3338_v54, %v953_v31  ;;  %v540_v37 = vpop.f32.mrb[15].mxu0  ;;  %v955_v38 = vpop.f32.mrb[15].mxu1 }
 0x121   : > { %v2674_v37 = vunpack.c.h.bf16 %v2806_v53 }
 0x122   : > { %v3401_v39 = vadd.f32 %v2621_v20, %v619_v33  ;;  %v3403_v42 = vadd.f32 %v2666_v26, %v1034_v34  ;;  %v620_v43 = vmax.f32 %v539_v35, 0.0  ;;  %v1035_v44 = vmax.f32 %v954_v36, 0.0  ;;  %v2795_v26 = vld [vmem:[%s3333_s18 + $0x28] sm:$0xff]  }
 0x123   : > { %v2630_v48 = vunpack.c.h.bf16 %v2795_v26 }
 0x124   : > { %v3408_v50 = vadd.f32 %v2622_v30, %v620_v43  ;;  %v3410_v51 = vadd.f32 %v2669_v32, %v1035_v44  ;;  %v2807_v30 = vld [vmem:[%s3333_s18 + $0x90] sm:$0xff]   ;;  %v2629_v32 = vunpack.c.l.bf16 %v2795_v26 }
 0x125   : > { %v543_v55 = vpop.f32.mrb[16].mxu0  ;;  %v958_v57 = vpop.f32.mrb[16].mxu1 }
 0x126   : > { %v544_v59 = vadd.f32 %v3338_v54, %v543_v55  ;;  %v959_v60 = vadd.f32 %v3338_v54, %v958_v57  ;;  %v545_v62 = vpop.f32.mrb[17].mxu0  ;;  %v960_v63 = vpop.f32.mrb[17].mxu1 }
 0x127   : > { %v546_v0 = vpop.f32.mrb[18].mxu0  ;;  %v961_v2 = vpop.f32.mrb[18].mxu1 }
 0x128   : > { %v621_v4 = vmax.f32 %v544_v59, 0.0  ;;  %v1036_v7 = vmax.f32 %v959_v60, 0.0  ;;  %v547_v8 = vadd.f32 %v3338_v54, %v546_v0  ;;  %v962_v9 = vadd.f32 %v3338_v54, %v961_v2  ;;  %v548_v16 = vpop.f32.mrb[19].mxu0  ;;  %v963_v20 = vpop.f32.mrb[19].mxu1 }
 0x12a   : > { %v3419_v21 = vadd.f32 %v2625_v56, %v621_v4  ;;  %v3421_v23 = vadd.f32 %v2670_v61, %v1036_v7  ;;  %v622_v15 = vmax.f32 %v547_v8, 0.0  ;;  %v1037_v25 = vmax.f32 %v962_v9, 0.0  ;;  %v2808_v9 = vld [vmem:[%s3333_s18 + $0x98] sm:$0xff]  }
 0x12b   : > { %v2677_v56 = vunpack.c.l.bf16 %v2807_v30 }
 0x12c   : > { %v3426_v28 = vadd.f32 %v2626_v1, %v622_v15  ;;  %v3428_v29 = vadd.f32 %v2673_v3, %v1037_v25  ;;  %v2796_v3 = vld [vmem:[%s3333_s18 + $0x30] sm:$0xff]  }
 0x12d   : > { %v551_v31 = vpop.f32.mrb[20].mxu0  ;;  %v966_v33 = vpop.f32.mrb[20].mxu1  ;;  %v2633_v20 = vunpack.c.l.bf16 %v2796_v3 }
 0x12e   : > { %v552_v35 = vadd.f32 %v3338_v54, %v551_v31  ;;  %v967_v36 = vadd.f32 %v3338_v54, %v966_v33  ;;  %v553_v38 = vpop.f32.mrb[21].mxu0  ;;  %v968_v43 = vpop.f32.mrb[21].mxu1 }
 0x12f   : > { %v554_v44 = vpop.f32.mrb[22].mxu0  ;;  %v969_v55 = vpop.f32.mrb[22].mxu1  ;;  %v2681_v43 = vunpack.c.l.bf16 %v2808_v9 }
 0x130   : > { %v623_v57 = vmax.f32 %v552_v35, 0.0  ;;  %v1038_v59 = vmax.f32 %v967_v36, 0.0  ;;  %v555_v60 = vadd.f32 %v3338_v54, %v554_v44  ;;  %v970_v61 = vadd.f32 %v3338_v54, %v969_v55  ;;  %v556_v62 = vpop.f32.mrb[23].mxu0  ;;  %v971_v63 = vpop.f32.mrb[23].mxu1 }
 0x131   : > { %v2797_v63 = vld [vmem:[%s3333_s18 + $0x38] sm:$0xff]  }
 0x132   : > { %v3437_v0 = vadd.f32 %v2629_v32, %v623_v57  ;;  %v3439_v1 = vadd.f32 %v2674_v37, %v1038_v59  ;;  %v624_v53 = vmax.f32 %v555_v60, 0.0  ;;  %v1039_v2 = vmax.f32 %v970_v61, 0.0 }
 0x133   : > { %v2678_v32 = vunpack.c.h.bf16 %v2807_v30  ;;  %v2634_v37 = vunpack.c.h.bf16 %v2796_v3 }
 0x134   : > { %v3444_v7 = vadd.f32 %v2630_v48, %v624_v53  ;;  %v3446_v8 = vadd.f32 %v2677_v56, %v1039_v2 }
 0x135   : > { %v559_v16 = vpop.f32.mrb[24].mxu0  ;;  %v974_v15 = vpop.f32.mrb[24].mxu1 }
 0x136   : > { %v560_v26 = vadd.f32 %v3338_v54, %v559_v16  ;;  %v975_v31 = vadd.f32 %v3338_v54, %v974_v15  ;;  %v561_v33 = vpop.f32.mrb[25].mxu0  ;;  %v976_v35 = vpop.f32.mrb[25].mxu1  ;;  %v2809_v16 = vld [vmem:[%s3333_s18 + $0xa0] sm:$0xff]  }
 0x137   : > { %v562_v36 = vpop.f32.mrb[26].mxu0  ;;  %v977_v38 = vpop.f32.mrb[26].mxu1  ;;  %v2682_v35 = vunpack.c.h.bf16 %v2808_v9 }
 0x138   : > { %v625_v44 = vmax.f32 %v560_v26, 0.0  ;;  %v1040_v48 = vmax.f32 %v975_v31, 0.0  ;;  %v563_v55 = vadd.f32 %v3338_v54, %v562_v36  ;;  %v978_v56 = vadd.f32 %v3338_v54, %v977_v38  ;;  %v564_v57 = vpop.f32.mrb[27].mxu0  ;;  %v979_v59 = vpop.f32.mrb[27].mxu1 }
 0x139   : > { %v2637_v26 = vunpack.c.l.bf16 %v2797_v63 }
 0x13a   : > { %v3455_v60 = vadd.f32 %v2633_v20, %v625_v44  ;;  %v3457_v61 = vadd.f32 %v2678_v32, %v1040_v48  ;;  %v626_v30 = vmax.f32 %v563_v55, 0.0  ;;  %v1041_v62 = vmax.f32 %v978_v56, 0.0 }
 0x13c   : > { %v3462_v2 = vadd.f32 %v2634_v37, %v626_v30  ;;  %v3464_v3 = vadd.f32 %v2681_v43, %v1041_v62  ;;  %v2638_v37 = vunpack.c.h.bf16 %v2797_v63  ;;  %v2685_v43 = vunpack.c.l.bf16 %v2809_v16 }
 0x13d   : > { %v567_v15 = vpop.f32.mrb[28].mxu0  ;;  %v982_v31 = vpop.f32.mrb[28].mxu1 }
 0x13e   : > { %v568_v32 = vadd.f32 %v3338_v54, %v567_v15  ;;  %v983_v33 = vadd.f32 %v3338_v54, %v982_v31  ;;  %v569_v36 = vpop.f32.mrb[29].mxu0  ;;  %v984_v38 = vpop.f32.mrb[29].mxu1 }
 0x13f   : > { %v570_v44 = vpop.f32.mrb[30].mxu0  ;;  %v985_v48 = vpop.f32.mrb[30].mxu1  ;;  %v2798_v38 = vld [vmem:[%s3333_s18 + $0x40] sm:$0xff]  }
 0x140   : > { %v627_v55 = vmax.f32 %v568_v32, 0.0  ;;  %v1042_v56 = vmax.f32 %v983_v33, 0.0  ;;  %v571_v57 = vadd.f32 %v3338_v54, %v570_v44  ;;  %v986_v59 = vadd.f32 %v3338_v54, %v985_v48  ;;  %v572_v30 = vpop.f32.mrb[31].mxu0  ;;  %v987_v62 = vpop.f32.mrb[31].mxu1  ;;  %v2810_v33 = vld [vmem:[%s3333_s18 + $0xa8] sm:$0xff]  }
 0x141   : > { %v2641_v53 = vunpack.c.l.bf16 %v2798_v38 }
 0x142   : > { %v3473_v15 = vadd.f32 %v2637_v26, %v627_v55  ;;  %v3475_v31 = vadd.f32 %v2682_v35, %v1042_v56  ;;  %v628_v9 = vmax.f32 %v571_v57, 0.0  ;;  %v1043_v36 = vmax.f32 %v986_v59, 0.0 }
 0x143   : > { %v2686_v56 = vunpack.c.h.bf16 %v2809_v16 }
 0x144   : > { %v3480_v20 = vadd.f32 %v2638_v37, %v628_v9  ;;  %v3482_v32 = vadd.f32 %v2685_v43, %v1043_v36  ;;  %v2642_v37 = vunpack.c.h.bf16 %v2798_v38  ;;  %v2689_v43 = vunpack.c.l.bf16 %v2810_v33 }
 0x145   : > { %v575_v44 = vpop.f32.mrb[32].mxu0  ;;  %v990_v48 = vpop.f32.mrb[32].mxu1 }
 0x146   : > { %v576_v35 = vadd.f32 %v3338_v54, %v575_v44  ;;  %v991_v55 = vadd.f32 %v3338_v54, %v990_v48  ;;  %v577_v57 = vpop.f32.mrb[33].mxu0  ;;  %v992_v59 = vpop.f32.mrb[33].mxu1 }
 0x147   : > { %v578_v30 = vpop.f32.mrb[34].mxu0  ;;  %v993_v62 = vpop.f32.mrb[34].mxu1  ;;  %v2799_v59 = vld [vmem:[%s3333_s18 + $0x48] sm:$0xff]  }
 0x148   : > { %v629_v9 = vmax.f32 %v576_v35, 0.0  ;;  %v1044_v36 = vmax.f32 %v991_v55, 0.0  ;;  %v579_v63 = vadd.f32 %v3338_v54, %v578_v30  ;;  %v994_v25 = vadd.f32 %v3338_v54, %v993_v62  ;;  %v580_v26 = vpop.f32.mrb[35].mxu0  ;;  %v995_v4 = vpop.f32.mrb[35].mxu1  ;;  %v2811_v55 = vld [vmem:[%s3333_s18 + $0xb0] sm:$0xff]  }
 0x149   : > { %v2645_v27 = vunpack.c.l.bf16 %v2799_v59 }
 0x14a   : > { %v3491_v44 = vadd.f32 %v2641_v53, %v629_v9  ;;  %v3493_v48 = vadd.f32 %v2686_v56, %v1044_v36  ;;  %v630_v16 = vmax.f32 %v579_v63, 0.0  ;;  %v1045_v57 = vmax.f32 %v994_v25, 0.0 }
 0x14b   : > { %v2690_v25 = vunpack.c.h.bf16 %v2810_v33 }
 0x14c   : > { %v3498_v34 = vadd.f32 %v2642_v37, %v630_v16  ;;  %v3500_v35 = vadd.f32 %v2689_v43, %v1045_v57  ;;  %v2646_v37 = vunpack.c.h.bf16 %v2799_v59  ;;  %v2693_v43 = vunpack.c.l.bf16 %v2811_v55 }
 0x14d   : > { %v583_v30 = vpop.f32.mrb[36].mxu0  ;;  %v998_v62 = vpop.f32.mrb[36].mxu1 }
 0x14e   : > { %v584_v53 = vadd.f32 %v3338_v54, %v583_v30  ;;  %v999_v63 = vadd.f32 %v3338_v54, %v998_v62  ;;  %v585_v26 = vpop.f32.mrb[37].mxu0  ;;  %v1000_v56 = vpop.f32.mrb[37].mxu1 }
 0x14f   : > { %v586_v9 = vpop.f32.mrb[38].mxu0  ;;  %v1001_v36 = vpop.f32.mrb[38].mxu1  ;;  %v2800_v56 = vld [vmem:[%s3333_s18 + $0x50] sm:$0xff]  }
 0x150   : > { %v631_v16 = vmax.f32 %v584_v53, 0.0  ;;  %v1046_v57 = vmax.f32 %v999_v63, 0.0  ;;  %v587_v38 = vadd.f32 %v3338_v54, %v586_v9  ;;  %v1002_v58 = vadd.f32 %v3338_v54, %v1001_v36  ;;  %v588_v4 = vpop.f32.mrb[39].mxu0  ;;  %v1003_v49 = vpop.f32.mrb[39].mxu1  ;;  %v2812_v63 = vld [vmem:[%s3333_s18 + $0xb8] sm:$0xff]  }
 0x151   : > { %v2649_v10 = vunpack.c.l.bf16 %v2800_v56 }
 0x152   : > { %v3509_v30 = vadd.f32 %v2645_v27, %v631_v16  ;;  %v3511_v62 = vadd.f32 %v2690_v25, %v1046_v57  ;;  %v632_v33 = vmax.f32 %v587_v38, 0.0  ;;  %v1047_v26 = vmax.f32 %v1002_v58, 0.0 }
 0x153   : > { %v2694_v58 = vunpack.c.h.bf16 %v2811_v55 }
 0x154   : > { %v3516_v22 = vadd.f32 %v2646_v37, %v632_v33  ;;  %v3518_v53 = vadd.f32 %v2693_v43, %v1047_v26  ;;  %v2650_v37 = vunpack.c.h.bf16 %v2800_v56  ;;  %v2697_v43 = vunpack.c.l.bf16 %v2812_v63 }
 0x155   : > { %v591_v9 = vpop.f32.mrb[40].mxu0  ;;  %v1006_v36 = vpop.f32.mrb[40].mxu1 }
 0x156   : > { %3801 = vst [vmem:[#allocation2_spill] sm:$0xff] %v3518_v53  ;;  %v592_v27 = vadd.f32 %v3338_v54, %v591_v9  ;;  %v1007_v38 = vadd.f32 %v3338_v54, %v1006_v36  ;;  %v593_v4 = vpop.f32.mrb[41].mxu0  ;;  %v1008_v25 = vpop.f32.mrb[41].mxu1 }
 0x157   : > { %v594_v16 = vpop.f32.mrb[42].mxu0  ;;  %v1009_v57 = vpop.f32.mrb[42].mxu1  ;;  %v2801_v25 = vld [vmem:[%s3333_s18 + $0x58] sm:$0xff]  }
 0x158   : > { %v633_v33 = vmax.f32 %v592_v27, 0.0  ;;  %v1048_v26 = vmax.f32 %v1007_v38, 0.0  ;;  %v595_v59 = vadd.f32 %v3338_v54, %v594_v16  ;;  %v1010_v52 = vadd.f32 %v3338_v54, %v1009_v57  ;;  %v596_v49 = vpop.f32.mrb[43].mxu0  ;;  %v1011_v45 = vpop.f32.mrb[43].mxu1  ;;  %v3539_v38 = vld [vmem:[%s3333_s18 + $0xc0] ss:$108 sps:$4 sm:$0xff]  }
 0x159   : > { %v2653_v57 = vunpack.c.l.bf16 %v2801_v25 }
 0x15a   : > { %v3527_v9 = vadd.f32 %v2649_v10, %v633_v33  ;;  %v3529_v36 = vadd.f32 %v2694_v58, %v1048_v26  ;;  %v634_v55 = vmax.f32 %v595_v59, 0.0  ;;  %v1049_v4 = vmax.f32 %v1010_v52, 0.0 }
 0x15b   : > { %v2698_v59 = vunpack.c.h.bf16 %v2812_v63 }
 0x15c   : > { %3802 = vst [vmem:[#allocation3_spill] sm:$0xff] %v3527_v9  ;;  %3803 = vst [vmem:[#allocation4_spill] sm:$0xff] %v3529_v36  ;;  %v3534_v24 = vadd.f32 %v2650_v37, %v634_v55  ;;  %v3536_v27 = vadd.f32 %v2697_v43, %v1049_v4  ;;  %v2654_v43 = vunpack.c.h.bf16 %v2801_v25  ;;  %v1102_v55 = vunpack.c.l.bf16 %v3539_v38  ;;  %v2376_v36 = vld [vmem:[%s3333_s18 + $0xc4] sm:$0x3] }
 0x15d   : > { %v599_v16 = vpop.f32.mrb[44].mxu0  ;;  %v1014_v49 = vpop.f32.mrb[44].mxu1 }
 0x15e   : > { %3804 = vst [vmem:[#allocation5_spill] sm:$0xff] %v3534_v24  ;;  %3805 = vst [vmem:[#allocation6_spill] sm:$0xff] %v3536_v27  ;;  %v600_v10 = vadd.f32 %v3338_v54, %v599_v16  ;;  %v1015_v52 = vadd.f32 %v3338_v54, %v1014_v49  ;;  %v601_v58 = vpop.f32.mrb[45].mxu0  ;;  %v1016_v33 = vpop.f32.mrb[45].mxu1 }
 0x15f   : > { %v602_v37 = vpop.f32.mrb[46].mxu0  ;;  %v1017_v26 = vpop.f32.mrb[46].mxu1  ;;  %v662_v33 = vld [vmem:[%s3333_s18 + $0x60] sm:$0x3] }
 0x160   : > { %v635_v4 = vmax.f32 %v600_v10, 0.0  ;;  %v1050_v56 = vmax.f32 %v1015_v52, 0.0  ;;  %v603_v17 = vadd.f32 %v3338_v54, %v602_v37  ;;  %v1018_v45 = vadd.f32 %v3338_v54, %v1017_v26  ;;  %v604_v27 = vpop.f32.mrb[47].mxu0  ;;  %v1019_v16 = vpop.f32.mrb[47].mxu1 }
 0x161   : > { %v687_v37 = vunpack.c.l.bf16 %v662_v33 }
 0x162   : > { %v3548_v24 = vadd.f32 %v2653_v57, %v635_v4  ;;  %v3550_v63 = vadd.f32 %v2698_v59, %v1050_v56  ;;  %v636_v49 = vmax.f32 %v603_v17, 0.0  ;;  %v1051_v58 = vmax.f32 %v1018_v45, 0.0 }
 0x163   : > { %v1103_v45 = vunpack.c.l.bf16 %v2376_v36 }
 0x164   : > { %3806 = vst [vmem:[#allocation7_spill] sm:$0xff] %v3548_v24  ;;  %3807 = vst [vmem:[#allocation8_spill] sm:$0xff] %v3550_v63  ;;  %v3556_v9 = vadd.f32 %v2654_v43, %v636_v49  ;;  %v3558_v10 = vadd.f32 %v1102_v55, %v1051_v58  ;;  %v2813_v63 = vld [vmem:[%s3333_s18 + $0xc8] sm:$0xff]  }
 0x165   : > { %v607_v52 = vpop.f32.mrb[48].mxu0  ;;  %v1022_v27 = vpop.f32.mrb[48].mxu1 }
 0x166   : > { %3808 = vst [vmem:[#allocation9_spill] sm:$0xff] %v3556_v9  ;;  %3809 = vst [vmem:[#allocation10_spill] sm:$0xff] %v3558_v10  ;;  %v608_v56 = vadd.f32 %v3338_v54, %v607_v52  ;;  %v1023_v17 = vadd.f32 %v3338_v54, %v1022_v27  ;;  %v609_v59 = vpop.f32.mrb[49].mxu0  ;;  %v1024_v26 = vpop.f32.mrb[49].mxu1  ;;  %v3812_v9 = vmax.f32 %v3347_v12, %v3349_v13 }
 0x167   : > { %v610_v4 = vpop.f32.mrb[50].mxu0  ;;  %v1025_v16 = vpop.f32.mrb[50].mxu1  ;;  %v2701_v59 = vunpack.c.l.bf16 %v2813_v63 }
 0x168   : > { %v637_v43 = vmax.f32 %v608_v56, 0.0  ;;  %v1052_v55 = vmax.f32 %v1023_v17, 0.0  ;;  %v611_v49 = vpop.f32.mrb[51].mxu0  ;;  %v1026_v58 = vpop.f32.mrb[51].mxu1  ;;  %v1961_v56 = vunpack.c.h.bf16 %v3539_v38  ;;  %v2702_v16 = vunpack.c.h.bf16 %v2813_v63 }
 0x16a   : > { %v3564_v33 = vadd.f32 %v687_v37, %v637_v43  ;;  %v3566_v25 = vadd.f32 %v1103_v45, %v1052_v55  ;;  %v2825_v37 = vld [vmem:[%s3333_s18 + $0x130] sm:$0xff]  }
 0x16c   : > { %3810 = vst [vmem:[#allocation11_spill] sm:$0xff] %v3564_v33  ;;  %3811 = vst [vmem:[#allocation12_spill] sm:$0xff] %v3566_v25  ;;  %v2749_v33 = vunpack.c.l.bf16 %v2825_v37 }
 0x16d   : > { %v1367_v57 = vpop.f32.mrb[52].mxu0  ;;  %v1808_v27 = vpop.f32.mrb[52].mxu1 }
 0x16e   : > { %v1368_v36 = vadd.f32 %v3338_v54, %v1367_v57  ;;  %v1809_v26 = vadd.f32 %v3338_v54, %v1808_v27  ;;  %v1369_v17 = vpop.f32.mrb[53].mxu0  ;;  %v1810_v4 = vpop.f32.mrb[53].mxu1 }
 0x16f   : > { %v1370_v45 = vpop.f32.mrb[54].mxu0  ;;  %v1811_v43 = vpop.f32.mrb[54].mxu1  ;;  %v2814_v4 = vld [vmem:[%s3333_s18 + $0xd0] sm:$0xff]  }
 0x170   : > { %v1469_v55 = vmax.f32 %v1368_v36, 0.0  ;;  %v1910_v49 = vmax.f32 %v1809_v26, 0.0  ;;  %v1371_v58 = vadd.f32 %v3338_v54, %v1370_v45  ;;  %v1812_v52 = vadd.f32 %v3338_v54, %v1811_v43  ;;  %v1372_v57 = vpop.f32.mrb[55].mxu0  ;;  %v1813_v25 = vpop.f32.mrb[55].mxu1 }
 0x171   : > { %v2705_v53 = vunpack.c.l.bf16 %v2814_v4  ;;  %v2750_v43 = vunpack.c.h.bf16 %v2825_v37  ;;  %v3813_v25 = vmax.f32 %v3354_v18, %v3356_v19 }
 0x172   : > { %v1545_v27 = vadd.f32 %v2701_v59, %v1469_v55  ;;  %v1986_v10 = vadd.f32 %v1961_v56, %v1910_v49  ;;  %v1470_v38 = vmax.f32 %v1371_v58, 0.0  ;;  %v1911_v17 = vmax.f32 %v1812_v52, 0.0 }
 0x173   : > { %v2706_v58 = vunpack.c.h.bf16 %v2814_v4 }
 0x174   : > { %v1570_v63 = vmax.f32 %v3812_v9, %v1545_v27  ;;  %v1546_v24 = vadd.f32 %v2702_v16, %v1470_v38  ;;  %v1987_v36 = vadd.f32 %v2749_v33, %v1911_v17 }
 0x175   : > { %v1375_v26 = vpop.f32.mrb[56].mxu0  ;;  %v1816_v45 = vpop.f32.mrb[56].mxu1 }
 0x176   : > { %v2011_v57 = vmax.f32 %v1570_v63, %v1986_v10  ;;  %v1571_v59 = vmax.f32 %v3813_v25, %v1546_v24  ;;  %v1376_v52 = vadd.f32 %v3338_v54, %v1375_v26  ;;  %v1817_v56 = vadd.f32 %v3338_v54, %v1816_v45  ;;  %v1377_v55 = vpop.f32.mrb[57].mxu0  ;;  %v1818_v49 = vpop.f32.mrb[57].mxu1  ;;  %v2826_v24 = vld [vmem:[%s3333_s18 + $0x138] sm:$0xff]  }
 0x177   : > { %v1378_v12 = vpop.f32.mrb[58].mxu0  ;;  %v1819_v13 = vpop.f32.mrb[58].mxu1  ;;  %v2815_v26 = vld [vmem:[%s3333_s18 + $0xd8] sm:$0xff]   ;;  %v3814_v25 = vmax.f32 %v3365_v40, %v3367_v41 }
 0x178   : > { %v2582_v9 = vpack.c.bf16 %v2011_v57, %v2011_v57  ;;  %v2012_v10 = vmax.f32 %v1571_v59, %v1987_v36  ;;  %v1471_v18 = vmax.f32 %v1376_v52, 0.0  ;;  %v1912_v19 = vmax.f32 %v1817_v56, 0.0  ;;  %v1380_v33 = vpop.f32.mrb[59].mxu0  ;;  %v1821_v37 = vpop.f32.mrb[59].mxu1 }
 0x179   : > { %v1379_v16 = vadd.f32 %v3338_v54, %v1378_v12  ;;  %v1820_v27 = vadd.f32 %v3338_v54, %v1819_v13  ;;  %v2753_v57 = vunpack.c.l.bf16 %v2826_v24  ;;  %v2709_v56 = vunpack.c.l.bf16 %v2815_v26 }
 0x17a   : > { %2138 = vst.msk [vmem:[%s3590_s23] sm:$0xf] %vm2137_vm1, %v2582_v9  ;;  %v2583_v38 = vpack.c.bf16 %v2012_v10, %v2012_v10  ;;  %v1547_v17 = vadd.f32 %v2705_v53, %v1471_v18  ;;  %v1988_v63 = vadd.f32 %v2750_v43, %v1912_v19  ;;  %v2754_v43 = vunpack.c.h.bf16 %v2826_v24  ;;  %v2827_v10 = vld [vmem:[%s3333_s18 + $0x140] sm:$0xff]  }
 0x17b   : > { %v1472_v45 = vmax.f32 %v1379_v16, 0.0  ;;  %v1913_v36 = vmax.f32 %v1820_v27, 0.0  ;;  %v3815_v18 = vmax.f32 %v3372_v46, %v3374_v47  ;;  %v2710_v33 = vunpack.c.h.bf16 %v2815_v26 }
 0x17c   : > { %2139 = vst.msk [vmem:[%s3590_s23 + $0x4] sm:$0xf] %vm2137_vm1, %v2583_v38  ;;  %v1572_v59 = vmax.f32 %v3814_v25, %v1547_v17  ;;  %v2757_v25 = vunpack.c.l.bf16 %v2827_v10 }
 0x17d   : > { %v1548_v52 = vadd.f32 %v2706_v58, %v1472_v45  ;;  %v1383_v4 = vpop.f32.mrb[60].mxu0  ;;  %v1824_v55 = vpop.f32.mrb[60].mxu1  ;;  %v1989_v40 = vadd.f32 %v2753_v57, %v1913_v36  ;;  %v2816_v57 = vld [vmem:[%s3333_s18 + $0xe0] sm:$0xff]  }
 0x17e   : > { %v2013_v49 = vmax.f32 %v1572_v59, %v1988_v63  ;;  %v1384_v12 = vadd.f32 %v3338_v54, %v1383_v4  ;;  %v1825_v53 = vadd.f32 %v3338_v54, %v1824_v55  ;;  %v1385_v13 = vpop.f32.mrb[61].mxu0  ;;  %v1826_v9 = vpop.f32.mrb[61].mxu1 }
 0x17f   : > { %v1573_v19 = vmax.f32 %v3815_v18, %v1548_v52  ;;  %v1386_v41 = vpop.f32.mrb[62].mxu0  ;;  %v1827_v37 = vpop.f32.mrb[62].mxu1  ;;  %v3816_v52 = vmax.f32 %v3383_v5, %v3385_v6  ;;  %v2758_v9 = vunpack.c.h.bf16 %v2827_v10 }
 0x180   : > { %v2584_v16 = vpack.c.bf16 %v2013_v49, %v2013_v49  ;;  %v1473_v58 = vmax.f32 %v1384_v12, 0.0  ;;  %v1914_v27 = vmax.f32 %v1825_v53, 0.0  ;;  %v1387_v38 = vadd.f32 %v3338_v54, %v1386_v41  ;;  %v1388_v24 = vpop.f32.mrb[63].mxu0  ;;  %v1829_v17 = vpop.f32.mrb[63].mxu1 }
 0x181   : > { %v2014_v63 = vmax.f32 %v1573_v19, %v1989_v40  ;;  %v1828_v45 = vadd.f32 %v3338_v54, %v1827_v37  ;;  %v2713_v53 = vunpack.c.l.bf16 %v2816_v57 }
 0x182   : > { %2140 = vst.msk [vmem:[%s3590_s23 + $0x8] sm:$0xf] %vm2137_vm1, %v2584_v16  ;;  %v1549_v46 = vadd.f32 %v2709_v56, %v1473_v58  ;;  %v1990_v47 = vadd.f32 %v2754_v43, %v1914_v27  ;;  %v1474_v36 = vmax.f32 %v1387_v38, 0.0  ;;  %v3817_v56 = vmax.f32 %v3390_v11, %v3392_v14  ;;  %v2828_v27 = vld [vmem:[%s3333_s18 + $0x148] sm:$0xff]  }
 0x183   : > { %v2585_v26 = vpack.c.bf16 %v2014_v63, %v2014_v63  ;;  %v1915_v59 = vmax.f32 %v1828_v45, 0.0  ;;  %v2714_v14 = vunpack.c.h.bf16 %v2816_v57 }
 0x184   : > { %v1574_v4 = vmax.f32 %v3816_v52, %v1549_v46  ;;  %v1550_v55 = vadd.f32 %v2710_v33, %v1474_v36  ;;  %v2817_v46 = vld [vmem:[%s3333_s18 + $0xe8] sm:$0xff]  }
 0x185   : > { %2141 = vst.msk [vmem:[%s3590_s23 + $0xc] sm:$0xf] %vm2137_vm1, %v2585_v26  ;;  %v1991_v49 = vadd.f32 %v2757_v25, %v1915_v59  ;;  %v1391_v12 = vpop.f32.mrb[64].mxu0  ;;  %v1832_v13 = vpop.f32.mrb[64].mxu1  ;;  %v2761_v26 = vunpack.c.l.bf16 %v2828_v27  ;;  %v3818_v59 = vmax.f32 %v3401_v39, %v3403_v42 }
 0x186   : > { %v2015_v18 = vmax.f32 %v1574_v4, %v1990_v47  ;;  %v1575_v43 = vmax.f32 %v3817_v56, %v1550_v55  ;;  %v1392_v19 = vadd.f32 %v3338_v54, %v1391_v12  ;;  %v1833_v5 = vadd.f32 %v3338_v54, %v1832_v13  ;;  %v1393_v6 = vpop.f32.mrb[65].mxu0  ;;  %v1834_v40 = vpop.f32.mrb[65].mxu1 }
 0x187   : > { %v1394_v41 = vpop.f32.mrb[66].mxu0  ;;  %v1835_v33 = vpop.f32.mrb[66].mxu1  ;;  %v2717_v55 = vunpack.c.l.bf16 %v2817_v46  ;;  %v2718_v6 = vunpack.c.h.bf16 %v2817_v46 }
 0x188   : > { %v2586_v37 = vpack.c.bf16 %v2015_v18, %v2015_v18  ;;  %v2016_v16 = vmax.f32 %v1575_v43, %v1991_v49  ;;  %v1475_v58 = vmax.f32 %v1392_v19, 0.0  ;;  %v1916_v10 = vmax.f32 %v1833_v5, 0.0  ;;  %v1396_v38 = vpop.f32.mrb[67].mxu0  ;;  %v1837_v24 = vpop.f32.mrb[67].mxu1  ;;  %v2829_v43 = vld [vmem:[%s3333_s18 + $0x150] sm:$0xff]  }
 0x189   : > { %v1395_v11 = vadd.f32 %v3338_v54, %v1394_v41  ;;  %v1836_v17 = vadd.f32 %v3338_v54, %v1835_v33  ;;  %v3819_v19 = vmax.f32 %v3408_v50, %v3410_v51  ;;  %v2765_v24 = vunpack.c.l.bf16 %v2829_v43 }
 0x18a   : > { %2142 = vst.msk [vmem:[%s3590_s23 + $0x10] sm:$0xf] %vm2137_vm1, %v2586_v37  ;;  %v2587_v63 = vpack.c.bf16 %v2016_v16, %v2016_v16  ;;  %v1551_v45 = vadd.f32 %v2713_v53, %v1475_v58  ;;  %v1992_v25 = vadd.f32 %v2758_v9, %v1916_v10  ;;  %v2762_v9 = vunpack.c.h.bf16 %v2828_v27 }
 0x18b   : > { %v1476_v47 = vmax.f32 %v1395_v11, 0.0  ;;  %v1917_v36 = vmax.f32 %v1836_v17, 0.0 }
 0x18c   : > { %2143 = vst.msk [vmem:[%s3590_s23 + $0x14] sm:$0xf] %vm2137_vm1, %v2587_v63  ;;  %v1576_v52 = vmax.f32 %v3818_v59, %v1551_v45  ;;  %v3820_v45 = vmax.f32 %v3419_v21, %v3421_v23  ;;  %v2766_v59 = vunpack.c.h.bf16 %v2829_v43 }
 0x18d   : > { %v1552_v4 = vadd.f32 %v2714_v14, %v1476_v47  ;;  %v1399_v57 = vpop.f32.mrb[68].mxu0  ;;  %v1840_v49 = vpop.f32.mrb[68].mxu1  ;;  %v1993_v39 = vadd.f32 %v2761_v26, %v1917_v36  ;;  %v2818_v14 = vld [vmem:[%s3333_s18 + $0xf0] sm:$0xff]  }
 0x18e   : > { %v2017_v12 = vmax.f32 %v1576_v52, %v1992_v25  ;;  %v1400_v13 = vadd.f32 %v3338_v54, %v1399_v57  ;;  %v1841_v53 = vadd.f32 %v3338_v54, %v1840_v49  ;;  %v1401_v18 = vpop.f32.mrb[69].mxu0  ;;  %v1842_v56 = vpop.f32.mrb[69].mxu1  ;;  %v2721_v26 = vunpack.c.l.bf16 %v2818_v14 }
 0x18f   : > { %v1577_v5 = vmax.f32 %v3819_v19, %v1552_v4  ;;  %v1402_v42 = vpop.f32.mrb[70].mxu0  ;;  %v1843_v40 = vpop.f32.mrb[70].mxu1  ;;  %v3821_v4 = vmax.f32 %v3426_v28, %v3428_v29  ;;  %v2830_v29 = vld [vmem:[%s3333_s18 + $0x158] sm:$0xff]  }
 0x190   : > { %v2588_v41 = vpack.c.bf16 %v2017_v12, %v2017_v12  ;;  %v1477_v33 = vmax.f32 %v1400_v13, 0.0  ;;  %v1918_v37 = vmax.f32 %v1841_v53, 0.0  ;;  %v1403_v16 = vadd.f32 %v3338_v54, %v1402_v42  ;;  %v1404_v58 = vpop.f32.mrb[71].mxu0  ;;  %v1845_v10 = vpop.f32.mrb[71].mxu1 }
 0x191   : > { %v2018_v27 = vmax.f32 %v1577_v5, %v1993_v39  ;;  %v1844_v38 = vadd.f32 %v3338_v54, %v1843_v40  ;;  %v2722_v39 = vunpack.c.h.bf16 %v2818_v14  ;;  %v2769_v58 = vunpack.c.l.bf16 %v2830_v29 }
 0x192   : > { %2144 = vst.msk [vmem:[%s3590_s23 + $0x18] sm:$0xf] %vm2137_vm1, %v2588_v41  ;;  %v1553_v50 = vadd.f32 %v2717_v55, %v1477_v33  ;;  %v1994_v51 = vadd.f32 %v2762_v9, %v1918_v37  ;;  %v1478_v11 = vmax.f32 %v1403_v16, 0.0  ;;  %v3657_v55 = vld [vmem:[%s3788_s3] ss:$0 sm:$0xff]  ;;  %v2819_v33 = vld [vmem:[%s3333_s18 + $0xf8] sm:$0xff]   ;;  %v3822_v10 = vmax.f32 %v3437_v0, %v3439_v1 }
 0x193   : > { %v2589_v17 = vpack.c.bf16 %v2018_v27, %v2018_v27  ;;  %v1919_v63 = vmax.f32 %v1844_v38, 0.0 }
 0x194   : > { %v1578_v25 = vmax.f32 %v3820_v45, %v1553_v50  ;;  %v1554_v46 = vadd.f32 %v2718_v6, %v1478_v11  ;;  %v2725_v50 = vunpack.c.l.bf16 %v2819_v33 }
 0x195   : > { %2145 = vst.msk [vmem:[%s3590_s23 + $0x1c] sm:$0xf] %vm2137_vm1, %v2589_v17  ;;  %v1995_v47 = vadd.f32 %v2765_v24, %v1919_v63  ;;  %v1407_v36 = vpop.f32.mrb[72].mxu0  ;;  %v1848_v54 = vpop.f32.mrb[72].mxu1  ;;  %v2770_v63 = vunpack.c.h.bf16 %v2830_v29 }
 0x196   : > { %v2019_v52 = vmax.f32 %v1578_v25, %v1994_v51  ;;  %v1579_v57 = vmax.f32 %v3821_v4, %v1554_v46  ;;  %v1408_v21 = vadd.f32 %v3657_v55, %v1407_v36  ;;  %v1849_v23 = vadd.f32 %v3657_v55, %v1848_v54  ;;  %v1409_v49 = vpop.f32.mrb[73].mxu0  ;;  %v1850_v12 = vpop.f32.mrb[73].mxu1  ;;  %v2831_v46 = vld [vmem:[%s3333_s18 + $0x160] sm:$0xff]  }
 0x197   : > { %v1410_v13 = vpop.f32.mrb[74].mxu0  ;;  %v1851_v53 = vpop.f32.mrb[74].mxu1 }
 0x198   : > { %v2590_v9 = vpack.c.bf16 %v2019_v52, %v2019_v52  ;;  %v2020_v18 = vmax.f32 %v1579_v57, %v1995_v47  ;;  %v1479_v56 = vmax.f32 %v1408_v21, 0.0  ;;  %v1920_v28 = vmax.f32 %v1849_v23, 0.0  ;;  %v1412_v43 = vpop.f32.mrb[75].mxu0  ;;  %v1853_v19 = vpop.f32.mrb[75].mxu1 }
 0x199   : > { %v1411_v5 = vadd.f32 %v3657_v55, %v1410_v13  ;;  %v1852_v42 = vadd.f32 %v3657_v55, %v1851_v53  ;;  %v3823_v47 = vmax.f32 %v3444_v7, %v3446_v8  ;;  %v2773_v13 = vunpack.c.l.bf16 %v2831_v46 }
 0x19a   : > { %2146 = vst.msk [vmem:[%s3590_s23 + $0x20] sm:$0xf] %vm2137_vm1, %v2590_v9  ;;  %v2591_v6 = vpack.c.bf16 %v2020_v18, %v2020_v18  ;;  %v1555_v40 = vadd.f32 %v2721_v26, %v1479_v56  ;;  %v1996_v41 = vadd.f32 %v2766_v59, %v1920_v28  ;;  %v2726_v26 = vunpack.c.h.bf16 %v2819_v33  ;;  %v2820_v9 = vld [vmem:[%s3333_s18 + $0x100] sm:$0xff]  }
 0x19b   : > { %v1480_v37 = vmax.f32 %v1411_v5, 0.0  ;;  %v1921_v16 = vmax.f32 %v1852_v42, 0.0  ;;  %v3824_v28 = vmax.f32 %v3455_v60, %v3457_v61 }
 0x19c   : > { %2147 = vst.msk [vmem:[%s3590_s23 + $0x24] sm:$0xf] %vm2137_vm1, %v2591_v6  ;;  %v1580_v27 = vmax.f32 %v3822_v10, %v1555_v40  ;;  %v2774_v6 = vunpack.c.h.bf16 %v2831_v46  ;;  %v2821_v46 = vld [vmem:[%s3333_s18 + $0x108] sm:$0xff]  }
 0x19d   : > { %v1556_v38 = vadd.f32 %v2722_v39, %v1480_v37  ;;  %v1415_v24 = vpop.f32.mrb[76].mxu0  ;;  %v1856_v51 = vpop.f32.mrb[76].mxu1  ;;  %v1997_v0 = vadd.f32 %v2769_v58, %v1921_v16  ;;  %v2729_v39 = vunpack.c.l.bf16 %v2820_v9 }
 0x19e   : > { %v2021_v11 = vmax.f32 %v1580_v27, %v1996_v41  ;;  %v1416_v14 = vadd.f32 %v3657_v55, %v1415_v24  ;;  %v1857_v17 = vadd.f32 %v3657_v55, %v1856_v51  ;;  %v1417_v45 = vpop.f32.mrb[77].mxu0  ;;  %v1858_v25 = vpop.f32.mrb[77].mxu1  ;;  %v3825_v41 = vmax.f32 %v3462_v2, %v3464_v3  ;;  %v2832_v51 = vld [vmem:[%s3333_s18 + $0x168] sm:$0xff]  }
 0x19f   : > { %v1581_v36 = vmax.f32 %v3823_v47, %v1556_v38  ;;  %v1418_v1 = vpop.f32.mrb[78].mxu0  ;;  %v1859_v54 = vpop.f32.mrb[78].mxu1  ;;  %v2730_v3 = vunpack.c.h.bf16 %v2820_v9  ;;  %v2734_v9 = vunpack.c.h.bf16 %v2821_v46 }
 0x1a0   : > { %v2592_v59 = vpack.c.bf16 %v2021_v11, %v2021_v11  ;;  %v1481_v52 = vmax.f32 %v1416_v14, 0.0  ;;  %v1922_v4 = vmax.f32 %v1857_v17, 0.0  ;;  %v1419_v57 = vadd.f32 %v3657_v55, %v1418_v1  ;;  %v1420_v21 = vpop.f32.mrb[79].mxu0  ;;  %v1861_v23 = vpop.f32.mrb[79].mxu1 }
 0x1a1   : > { %v2022_v49 = vmax.f32 %v1581_v36, %v1997_v0  ;;  %v1860_v12 = vadd.f32 %v3657_v55, %v1859_v54  ;;  %v2777_v0 = vunpack.c.l.bf16 %v2832_v51  ;;  %v3826_v1 = vmax.f32 %v3473_v15, %v3475_v31 }
 0x1a2   : > { %2148 = vst.msk [vmem:[%s3590_s23 + $0x28] sm:$0xf] %vm2137_vm1, %v2592_v59  ;;  %v1557_v7 = vadd.f32 %v2725_v50, %v1481_v52  ;;  %v1998_v8 = vadd.f32 %v2770_v63, %v1922_v4  ;;  %v1482_v53 = vmax.f32 %v1419_v57, 0.0  ;;  %v2733_v52 = vunpack.c.l.bf16 %v2821_v46 }
 0x1a3   : > { %v2593_v18 = vpack.c.bf16 %v2022_v49, %v2022_v49  ;;  %v1923_v56 = vmax.f32 %v1860_v12, 0.0  ;;  %v2778_v49 = vunpack.c.h.bf16 %v2832_v51  ;;  %v3829_v51 = vmax.f32 %v3498_v34, %v3500_v35 }
 0x1a4   : > { %v1582_v29 = vmax.f32 %v3824_v28, %v1557_v7  ;;  %v1558_v43 = vadd.f32 %v2726_v26, %v1482_v53  ;;  %v2833_v7 = vld [vmem:[%s3333_s18 + $0x170] sm:$0xff]  }
 0x1a5   : > { %2149 = vst.msk [vmem:[%s3590_s23 + $0x2c] sm:$0xf] %vm2137_vm1, %v2593_v18  ;;  %v1999_v19 = vadd.f32 %v2773_v13, %v1923_v56  ;;  %v1423_v5 = vpop.f32.mrb[80].mxu0  ;;  %v1864_v42 = vpop.f32.mrb[80].mxu1 }
 0x1a6   : > { %v2023_v40 = vmax.f32 %v1582_v29, %v1998_v8  ;;  %v1583_v33 = vmax.f32 %v3825_v41, %v1558_v43  ;;  %v1424_v37 = vadd.f32 %v3657_v55, %v1423_v5  ;;  %v1865_v60 = vadd.f32 %v3657_v55, %v1864_v42  ;;  %v1425_v61 = vpop.f32.mrb[81].mxu0  ;;  %v1866_v16 = vpop.f32.mrb[81].mxu1  ;;  %v2822_v41 = vld [vmem:[%s3333_s18 + $0x110] sm:$0xff]  }
 0x1a7   : > { %v1426_v58 = vpop.f32.mrb[82].mxu0  ;;  %v1867_v10 = vpop.f32.mrb[82].mxu1  ;;  %v3827_v8 = vmax.f32 %v3480_v20, %v3482_v32  ;;  %v2738_v35 = vunpack.c.h.bf16 %v2822_v41 }
 0x1a8   : > { %v2594_v27 = vpack.c.bf16 %v2023_v40, %v2023_v40  ;;  %v2024_v38 = vmax.f32 %v1583_v33, %v1999_v19  ;;  %v1483_v24 = vmax.f32 %v1424_v37, 0.0  ;;  %v1924_v50 = vmax.f32 %v1865_v60, 0.0  ;;  %v1428_v11 = vpop.f32.mrb[83].mxu0  ;;  %v1869_v14 = vpop.f32.mrb[83].mxu1 }
 0x1a9   : > { %v1427_v2 = vadd.f32 %v3657_v55, %v1426_v58  ;;  %v1868_v17 = vadd.f32 %v3657_v55, %v1867_v10  ;;  %v3828_v60 = vmax.f32 %v3491_v44, %v3493_v48 }
 0x1aa   : > { %2150 = vst.msk [vmem:[%s3590_s23 + $0x30] sm:$0xf] %vm2137_vm1, %v2594_v27  ;;  %v2595_v63 = vpack.c.bf16 %v2024_v38, %v2024_v38  ;;  %v1559_v45 = vadd.f32 %v2729_v39, %v1483_v24  ;;  %v2000_v25 = vadd.f32 %v2774_v6, %v1924_v50  ;;  %v2781_v6 = vunpack.c.l.bf16 %v2833_v7 }
 0x1ab   : > { %v1484_v47 = vmax.f32 %v1427_v2, 0.0  ;;  %v1925_v36 = vmax.f32 %v1868_v17, 0.0  ;;  %v2737_v27 = vunpack.c.l.bf16 %v2822_v41  ;;  %v2782_v24 = vunpack.c.h.bf16 %v2833_v7 }
 0x1ac   : > { %2151 = vst.msk [vmem:[%s3590_s23 + $0x34] sm:$0xf] %vm2137_vm1, %v2595_v63  ;;  %v1584_v26 = vmax.f32 %v3826_v1, %v1559_v45 }
 0x1ad   : > { %v1560_v54 = vadd.f32 %v2730_v3, %v1484_v47  ;;  %v1431_v59 = vpop.f32.mrb[84].mxu0  ;;  %v1872_v4 = vpop.f32.mrb[84].mxu1  ;;  %v2001_v15 = vadd.f32 %v2777_v0, %v1925_v36  ;;  %v2834_v47 = vld [vmem:[%s3333_s18 + $0x178] sm:$0xff]  }
 0x1ae   : > { %v2025_v57 = vmax.f32 %v1584_v26, %v2000_v25  ;;  %v1432_v21 = vadd.f32 %v3657_v55, %v1431_v59  ;;  %v1873_v23 = vadd.f32 %v3657_v55, %v1872_v4  ;;  %v1433_v12 = vpop.f32.mrb[85].mxu0  ;;  %v1874_v13 = vpop.f32.mrb[85].mxu1 }
 0x1af   : > { %v1585_v53 = vmax.f32 %v3827_v8, %v1560_v54  ;;  %v1434_v31 = vpop.f32.mrb[86].mxu0  ;;  %v1875_v18 = vpop.f32.mrb[86].mxu1 }
 0x1b0   : > { %v2596_v56 = vpack.c.bf16 %v2025_v57, %v2025_v57  ;;  %v1485_v28 = vmax.f32 %v1432_v21, 0.0  ;;  %v1926_v29 = vmax.f32 %v1873_v23, 0.0  ;;  %v1435_v43 = vadd.f32 %v3657_v55, %v1434_v31  ;;  %v1436_v19 = vpop.f32.mrb[87].mxu0  ;;  %v1877_v5 = vpop.f32.mrb[87].mxu1 }
 0x1b1   : > { %v2026_v39 = vmax.f32 %v1585_v53, %v2001_v15  ;;  %v1876_v42 = vadd.f32 %v3657_v55, %v1875_v18  ;;  %v2785_v21 = vunpack.c.l.bf16 %v2834_v47  ;;  %v3830_v23 = vmax.f32 %v3509_v30, %v3511_v62 }
 0x1b2   : > { %2152 = vst.msk [vmem:[%s3590_s23 + $0x38] sm:$0xf] %vm2137_vm1, %v2596_v56  ;;  %v1561_v20 = vadd.f32 %v2733_v52, %v1485_v28  ;;  %v2002_v32 = vadd.f32 %v2778_v49, %v1926_v29  ;;  %v1486_v40 = vmax.f32 %v1435_v43, 0.0  ;;  %v2823_v52 = vld [vmem:[%s3333_s18 + $0x118] sm:$0xff]   ;;  %v2835_v28 = vld [vmem:[%s3333_s18 + $0x180] sm:$0xff]  }
 0x1b3   : > { %v2597_v33 = vpack.c.bf16 %v2026_v39, %v2026_v39  ;;  %v1927_v37 = vmax.f32 %v1876_v42, 0.0  ;;  %v2741_v7 = vunpack.c.l.bf16 %v2823_v52  ;;  %v3831_v29 = vld [vmem:[#allocation2_spill] sm:$0xff]  ;;  %v2742_v5 = vunpack.c.h.bf16 %v2823_v52 }
 0x1b4   : > { %v1586_v61 = vmax.f32 %v3828_v60, %v1561_v20  ;;  %v1562_v16 = vadd.f32 %v2734_v9, %v1486_v40  ;;  %v2786_v9 = vunpack.c.h.bf16 %v2834_v47  ;;  %v3832_v43 = vmax.f32 %v3516_v22, %v3831_v29 }
 0x1b5   : > { %2153 = vst.msk [vmem:[%s3590_s23 + $0x3c] sm:$0xf] %vm2137_vm1, %v2597_v33  ;;  %v2003_v58 = vadd.f32 %v2781_v6, %v1927_v37  ;;  %v1439_v10 = vpop.f32.mrb[88].mxu0  ;;  %v1880_v38 = vpop.f32.mrb[88].mxu1  ;;  %v2789_v60 = vunpack.c.l.bf16 %v2835_v28 }
 0x1b6   : > { %v2027_v50 = vmax.f32 %v1586_v61, %v2002_v32  ;;  %v1587_v11 = vmax.f32 %v3829_v51, %v1562_v16  ;;  %v1440_v14 = vadd.f32 %v3657_v55, %v1439_v10  ;;  %v1881_v44 = vadd.f32 %v3657_v55, %v1880_v38  ;;  %v1441_v48 = vpop.f32.mrb[89].mxu0  ;;  %v1882_v2 = vpop.f32.mrb[89].mxu1  ;;  %v3833_v38 = vld [vmem:[#allocation3_spill] sm:$0xff] }
 0x1b7   : > { %v1442_v3 = vpop.f32.mrb[90].mxu0  ;;  %v1883_v17 = vpop.f32.mrb[90].mxu1 }
 0x1b8   : > { %v2598_v63 = vpack.c.bf16 %v2027_v50, %v2027_v50  ;;  %v2028_v45 = vmax.f32 %v1587_v11, %v2003_v58  ;;  %v1487_v25 = vmax.f32 %v1440_v14, 0.0  ;;  %v1928_v46 = vmax.f32 %v1881_v44, 0.0  ;;  %v1444_v36 = vpop.f32.mrb[91].mxu0  ;;  %v1885_v0 = vpop.f32.mrb[91].mxu1  ;;  %v2824_v58 = vld [vmem:[%s3333_s18 + $0x120] sm:$0xff]  }
 0x1b9   : > { %v1443_v34 = vadd.f32 %v3657_v55, %v1442_v3  ;;  %v1884_v1 = vadd.f32 %v3657_v55, %v1883_v17  ;;  %v2745_v48 = vunpack.c.l.bf16 %v2824_v58  ;;  %v2790_v3 = vunpack.c.h.bf16 %v2835_v28  ;;  %v3840_v28 = vld [vmem:[#allocation8_spill] sm:$0xff] }
 0x1ba   : > { %2154 = vst.msk [vmem:[%s3590_s23 + $0x40] sm:$0xf] %vm2137_vm1, %v2598_v63  ;;  %v2599_v26 = vpack.c.bf16 %v2028_v45, %v2028_v45  ;;  %v1563_v54 = vadd.f32 %v2737_v27, %v1487_v25  ;;  %v2004_v59 = vadd.f32 %v2782_v24, %v1928_v46  ;;  %v3834_v24 = vld [vmem:[#allocation4_spill] sm:$0xff]  ;;  %v3836_v63 = vld [vmem:[#allocation5_spill] sm:$0xff]  ;;  %v3837_v45 = vld [vmem:[#allocation6_spill] sm:$0xff] }
 0x1bb   : > { %v1488_v4 = vmax.f32 %v1443_v34, 0.0  ;;  %v1929_v57 = vmax.f32 %v1884_v1, 0.0  ;;  %v3835_v50 = vmax.f32 %v3833_v38, %v3834_v24  ;;  %v3838_v25 = vmax.f32 %v3836_v63, %v3837_v45 }
 0x1bc   : > { %2155 = vst.msk [vmem:[%s3590_s23 + $0x44] sm:$0xf] %vm2137_vm1, %v2599_v26  ;;  %v1588_v49 = vmax.f32 %v3830_v23, %v1563_v54 }
 0x1bd   : > { %v1564_v12 = vadd.f32 %v2738_v35, %v1488_v4  ;;  %v1447_v13 = vpop.f32.mrb[92].mxu0  ;;  %v1888_v8 = vpop.f32.mrb[92].mxu1  ;;  %v2005_v30 = vadd.f32 %v2785_v21, %v1929_v57  ;;  %v2553_v4 = vld [vmem:[%s3333_s18 + $0x188] sm:$0xf] }
 0x1be   : > { %v2029_v53 = vmax.f32 %v1588_v49, %v2004_v59  ;;  %v1448_v15 = vadd.f32 %v3657_v55, %v1447_v13  ;;  %v1889_v31 = vadd.f32 %v3657_v55, %v1888_v8  ;;  %v1449_v18 = vpop.f32.mrb[93].mxu0  ;;  %v1890_v56 = vpop.f32.mrb[93].mxu1  ;;  %v2746_v49 = vunpack.c.h.bf16 %v2824_v58 }
 0x1bf   : > { %v1589_v19 = vmax.f32 %v3832_v43, %v1564_v12  ;;  %v1450_v62 = vpop.f32.mrb[94].mxu0  ;;  %v1891_v39 = vpop.f32.mrb[94].mxu1  ;;  %v2554_v18 = vld [vmem:[%s3333_s18 + $0x18c] sm:$0x3] }
 0x1c0   : > { %v2600_v42 = vpack.c.bf16 %v2029_v53, %v2029_v53  ;;  %v1489_v6 = vmax.f32 %v1448_v15, 0.0  ;;  %v1930_v20 = vmax.f32 %v1889_v31, 0.0  ;;  %v1451_v32 = vadd.f32 %v3657_v55, %v1450_v62  ;;  %v1452_v40 = vpop.f32.mrb[95].mxu0  ;;  %v1893_v41 = vpop.f32.mrb[95].mxu1  ;;  %v2465_v53 = vld [vmem:[%s3333_s18 + $0x128] sm:$0x3] }
 0x1c1   : > { %v2030_v33 = vmax.f32 %v1589_v19, %v2005_v30  ;;  %v1892_v37 = vadd.f32 %v3657_v55, %v1891_v39  ;;  %v3839_v56 = vld [vmem:[#allocation7_spill] sm:$0xff]  ;;  %v1544_v62 = vunpack.c.l.bf16 %v2465_v53  ;;  %v3842_v41 = vld [vmem:[#allocation9_spill] sm:$0xff] }
 0x1c2   : > { %2156 = vst.msk [vmem:[%s3590_s23 + $0x48] sm:$0xf] %vm2137_vm1, %v2600_v42  ;;  %v1565_v22 = vadd.f32 %v2741_v7, %v1489_v6  ;;  %v2006_v61 = vadd.f32 %v2786_v9, %v1930_v20  ;;  %v1490_v16 = vmax.f32 %v1451_v32, 0.0  ;;  %v1984_v9 = vunpack.c.l.bf16 %v2553_v4 }
 0x1c3   : > { %v2601_v10 = vpack.c.bf16 %v2030_v33, %v2030_v33  ;;  %v1931_v27 = vmax.f32 %v1892_v37, 0.0  ;;  %v3841_v29 = vmax.f32 %v3839_v56, %v3840_v28  ;;  %v1985_v20 = vunpack.c.l.bf16 %v2554_v18  ;;  %v3843_v33 = vld [vmem:[#allocation10_spill] sm:$0xff] }
 0x1c4   : > { %v1590_v51 = vmax.f32 %v3835_v50, %v1565_v22  ;;  %v1566_v11 = vadd.f32 %v2742_v5, %v1490_v16  ;;  %v3844_v37 = vmax.f32 %v3842_v41, %v3843_v33 }
 0x1c5   : > { %2157 = vst.msk [vmem:[%s3590_s23 + $0x4c] sm:$0xf] %vm2137_vm1, %v2601_v10  ;;  %v2007_v14 = vadd.f32 %v2789_v60, %v1931_v27  ;;  %v1455_v44 = vpop.f32.mrb[96].mxu0  ;;  %v1896_v2 = vpop.f32.mrb[96].mxu1 }
 0x1c6   : > { %v2031_v17 = vmax.f32 %v1590_v51, %v2006_v61  ;;  %v1591_v46 = vmax.f32 %v3838_v25, %v1566_v11  ;;  %v1456_v47 = vadd.f32 %v3657_v55, %v1455_v44  ;;  %v1897_v36 = vadd.f32 %v3657_v55, %v1896_v2  ;;  %v1457_v0 = vpop.f32.mrb[97].mxu0  ;;  %v1898_v34 = vpop.f32.mrb[97].mxu1  ;;  %v3846_v44 = vld [vmem:[#allocation12_spill] sm:$0xff] }
 0x1c7   : > { %v1458_v35 = vpop.f32.mrb[98].mxu0  ;;  %v1899_v1 = vpop.f32.mrb[98].mxu1 }
 0x1c8   : > { %v2602_v26 = vpack.c.bf16 %v2031_v17, %v2031_v17  ;;  %v2032_v54 = vmax.f32 %v1591_v46, %v2007_v14  ;;  %v1491_v59 = vmax.f32 %v1456_v47, 0.0  ;;  %v1932_v52 = vmax.f32 %v1897_v36, 0.0  ;;  %v1460_v57 = vpop.f32.mrb[99].mxu0  ;;  %v1901_v21 = vpop.f32.mrb[99].mxu1  ;;  %v3845_v14 = vld [vmem:[#allocation11_spill] sm:$0xff] }
 0x1c9   : > { %v1459_v23 = vadd.f32 %v3657_v55, %v1458_v35  ;;  %v1900_v12 = vadd.f32 %v3657_v55, %v1899_v1 }
 0x1ca   : > { %2158 = vst.msk [vmem:[%s3590_s23 + $0x50] sm:$0xf] %vm2137_vm1, %v2602_v26  ;;  %v2603_v13 = vpack.c.bf16 %v2032_v54, %v2032_v54  ;;  %v1567_v7 = vadd.f32 %v2745_v48, %v1491_v59  ;;  %v2008_v8 = vadd.f32 %v2790_v3, %v1932_v52  ;;  %v3847_v48 = vmax.f32 %v3845_v14, %v3846_v44 }
 0x1cb   : > { %v1492_v15 = vmax.f32 %v1459_v23, 0.0  ;;  %v1933_v31 = vmax.f32 %v1900_v12, 0.0 }
 0x1cc   : > { %2159 = vst.msk [vmem:[%s3590_s23 + $0x54] sm:$0xf] %vm2137_vm1, %v2603_v13  ;;  %v1592_v43 = vmax.f32 %v3841_v29, %v1567_v7 }
 0x1cd   : > { %v1568_v19 = vadd.f32 %v2746_v49, %v1492_v15  ;;  %v1463_v30 = vpop.f32.mrb[100].mxu0  ;;  %v1904_v5 = vpop.f32.mrb[100].mxu1  ;;  %v2009_v22 = vadd.f32 %v1984_v9, %v1933_v31 }
 0x1ce   : > { %v2033_v39 = vmax.f32 %v1592_v43, %v2008_v8  ;;  %v1464_v42 = vadd.f32 %v3657_v55, %v1463_v30  ;;  %v1905_v6 = vadd.f32 %v3657_v55, %v1904_v5  ;;  %v1465_v32 = vpop.f32.mrb[101].mxu0  ;;  %v1906_v40 = vpop.f32.mrb[101].mxu1 }
 0x1cf   : > { %v1593_v60 = vmax.f32 %v3844_v37, %v1568_v19  ;;  %v1466_v61 = vpop.f32.mrb[102].mxu0  ;;  %v1907_v16 = vpop.f32.mrb[102].mxu1 }
 0x1d0   : > { %v2604_v58 = vpack.c.bf16 %v2033_v39, %v2033_v39  ;;  %v1493_v10 = vmax.f32 %v1464_v42, 0.0  ;;  %v1934_v27 = vmax.f32 %v1905_v6, 0.0  ;;  %v1467_v38 = vpop.f32.mrb[103].mxu0  ;;  %v1908_v24 = vpop.f32.mrb[103].mxu1 }
 0x1d1   : > { %v2034_v50 = vmax.f32 %v1593_v60, %v2009_v22 }
 0x1d2   : > { %2160 = vst.msk [vmem:[%s3590_s23 + $0x58] sm:$0xf] %vm2137_vm1, %v2604_v58  ;;  %v1569_v55 = vadd.f32 %v1544_v62, %v1493_v10  ;;  %v2010_v51 = vadd.f32 %v1985_v20, %v1934_v27 }
 0x1d3   : > { %v2605_v11 = vpack.c.bf16 %v2034_v50, %v2034_v50 }
 0x1d4   : > { %v1594_v2 = vmax.f32 %v3847_v48, %v1569_v55 }
 0x1d5   : > { %2161 = vst.msk [vmem:[%s3590_s23 + $0x5c] sm:$0xf] %vm2137_vm1, %v2605_v11 }
 0x1d6   : > { %v2035_v3 = vmax.f32 %v1594_v2, %v2010_v51 }
 0x1d8   : > { %v2606_v17 = vpack.c.bf16 %v2035_v3, %v2035_v3 }
 0x1da   : > { %2163 = vst.msk [vmem:[%s3590_s23 + $0x60] sm:$0x3] %vm2162_vm2, %v2606_v17 }
 0x1db PF: > { %s14_s15 = sadd.s32 1, %s3016_s15  }
 0x1dc   : > { %p11_p4 = scmp.ge.s32.totalorder %s14_s15, 4  }
 0x1de   :  { %13 = sbr.rel (!%p11_p4) target bundleno = 1 (0x1), region = 75 }

// kernel: my_net_forward.7
= control target key start
LH: loop header
LB: loop body
LE: loop exit
PB: predicated region body
PF: predicated region fallthrough
CT: control target
= control target key end

     0   :  { %s1535_s21 = smov 0   ;;  %s1828_s0 = inlined_call_operand.vmem [shape: bf16[2,196,144], index: 0, kind: input, shape index: {}]   ;;  %s1829_s1 = inlined_call_operand.vmem [shape: bf16[144,32], index: 1, kind: input, shape index: {}]   ;;  %s1830_s2 = inlined_call_operand.vmem [shape: f32[1,32], index: 2, kind: input, shape index: {}]   ;;  %s1831_s3 = inlined_call_operand.vmem [shape: bf16[144,32], index: 3, kind: input, shape index: {}]   ;;  %s1832_s4 = inlined_call_operand.vmem [shape: f32[1,32], index: 4, kind: input, shape index: {}]   ;;  %s1833_s5 = inlined_call_operand.vmem [shape: bf16[2,196,32], index: 5, kind: output, shape index: {0}]   ;;  %s1834_s6 = inlined_call_operand.vmem [shape: bf16[2,196,32], index: 6, kind: output, shape index: {1}]  }
   0x1 LB: > { %s1242_s22 = sadd.s32 4294967295, %s1497_s21   ;;  %p1246_p0 = scmp.ge.s32.totalorder %s1497_s21, 1  ;;  %s1497_s21 = sphi %s1535_s21, %s17_s21  }
   0x2   : > { %p215_p1 = scmp.lt.s32.totalorder %s1497_s21, 3 }
   0x4   : > { %p216_p2 = pnand %p1246_p0, %p215_p1 }
   0x5   : > { %v1435_v0 = vld [vmem:[%s1829_s1] sm:$0xff] (!%p216_p2)   ;;  %v1499_v1 = vmov (!%p216_p2), 0   ;;  %v1437_v3 = vld [vmem:[%s1829_s1 + $0x8] sm:$0xff] (!%p216_p2)   ;;  %p250_p3 = scmp.lt.s32.totalorder (!%p216_p2), %s1242_s22, 1  ;;  %v1439_v5 = vld [vmem:[%s1829_s1 + $0x10] sm:$0xff] (!%p216_p2)   ;;  %vm484_vm0 = vcmask (!%p216_p2), 130048  }
   0x6   : > { %219 = sbr.rel (%p216_p2) target bundleno = 357 (0x165), region = 40  ;;  %524 = vmatprep.subr.bf16.mxu0 (!%p216_p2), %v1499_v1  ;;  %764 = vmatprep.subr.bf16.mxu1 (!%p216_p2), %v1499_v1  ;;  %v1436_v2 = vld [vmem:[%s1831_s3] sm:$0xff] (!%p216_p2)   ;;  %v1438_v4 = vld [vmem:[%s1831_s3 + $0x8] sm:$0xff] (!%p216_p2)   ;;  %v1440_v6 = vld [vmem:[%s1831_s3 + $0x10] sm:$0xff] (!%p216_p2)   ;;  %vm1001_vm1 = vcmask (!%p216_p2), 257024   ;;  %vm1026_vm2 = vcmask (!%p216_p2), 254976  }
   0x7   : > { %525 = vmatpush1.bf16.msra.mxu0 (!%p216_p2), %v1435_v0  ;;  %765 = vmatpush1.bf16.msra.mxu1 (!%p216_p2), %v1436_v2  ;;  %v1441_v7 = vld [vmem:[%s1829_s1 + $0x18] sm:$0xff] (!%p216_p2)   ;;  %v1443_v9 = vld [vmem:[%s1829_s1 + $0x20] sm:$0xff] (!%p216_p2)   ;;  %v1445_v11 = vld [vmem:[%s1829_s1 + $0x28] sm:$0xff] (!%p216_p2)  }
   0x8   : > { %526 = vmatprep.subr.bf16.mxu0 (!%p216_p2), %v1499_v1  ;;  %766 = vmatprep.subr.bf16.mxu1 (!%p216_p2), %v1499_v1  ;;  %v1442_v8 = vld [vmem:[%s1831_s3 + $0x18] sm:$0xff] (!%p216_p2)   ;;  %v1444_v10 = vld [vmem:[%s1831_s3 + $0x20] sm:$0xff] (!%p216_p2)   ;;  %v1446_v12 = vld [vmem:[%s1831_s3 + $0x28] sm:$0xff] (!%p216_p2)  }
   0x9   : > { %v1447_v14 = vld [vmem:[%s1829_s1 + $0x30] sm:$0xff] (!%p216_p2)   ;;  %v1449_v16 = vld [vmem:[%s1829_s1 + $0x38] sm:$0xff] (!%p216_p2)   ;;  %v1451_v18 = vld [vmem:[%s1829_s1 + $0x40] sm:$0xff] (!%p216_p2)  }
   0xa   : > { %v1448_v15 = vld [vmem:[%s1831_s3 + $0x30] sm:$0xff] (!%p216_p2)   ;;  %v1450_v17 = vld [vmem:[%s1831_s3 + $0x38] sm:$0xff] (!%p216_p2)   ;;  %v1452_v19 = vld [vmem:[%s1831_s3 + $0x40] sm:$0xff] (!%p216_p2)  }
   0xb   : > { %527 = vmatpush1.bf16.msra.mxu0 (!%p216_p2), %v1437_v3  ;;  %767 = vmatpush1.bf16.msra.mxu1 (!%p216_p2), %v1438_v4  ;;  %v1659_v46 = vld [vmem:[%s1830_s2] ss:$0 sm:$0xff] (!%p216_p2) }
   0xc   : > { %528 = vmatprep.subr.bf16.mxu0 (!%p216_p2), %v1499_v1  ;;  %768 = vmatprep.subr.bf16.mxu1 (!%p216_p2), %v1499_v1  ;;  %v1665_v47 = vld [vmem:[%s1832_s4] ss:$0 sm:$0xff] (!%p216_p2) }
   0xd   : > { %s1836_s22 = smov (!%p250_p3, %s1242_s22), 1 }
   0xe   : > { %s1424_s15 = smul.u32 200, %s1836_s22 }
   0xf   : > { %529 = vmatpush1.bf16.msra.mxu0 %v1439_v5  ;;  %769 = vmatpush1.bf16.msra.mxu1 %v1440_v6  ;;  %s1425_s19 = smul.u32 100, %s1836_s22 }
  0x10   : > { %530 = vmatprep.subr.bf16.mxu0 %v1499_v1  ;;  %770 = vmatprep.subr.bf16.mxu1 %v1499_v1  ;;  %s1579_s24 = scalar_lea.vmem %s1828_s0, %s1424_s15 }
  0x11   : > { %v1455_v13 = vld [vmem:[%s1579_s24 + $0x4] ss:$8 sps:$4 sm:$0xff]   ;;  %v1453_v20 = vld [vmem:[%s1579_s24] ss:$8 sps:$4 sm:$0xff]   ;;  %v1456_v21 = vld [vmem:[%s1579_s24 + $0x14] ss:$8 sps:$4 sm:$0xff]   ;;  %s1672_s22 = scalar_lea.vmem %s1834_s6, %s1425_s19  ;;  %s1678_s28 = scalar_lea.vmem %s1833_s5, %s1425_s19 }
  0x12   : > { %1286 = vmatprep.mubr.msk.bf16.mxu0 %vm484_vm0, %v1455_v13  ;;  %1309 = vmatprep.mubr.msk.bf16.mxu1 %vm484_vm0, %v1455_v13  ;;  %v1458_v22 = vld [vmem:[%s1579_s24 + $0x10] ss:$8 sps:$4 sm:$0xff]   ;;  %v1459_v23 = vld [vmem:[%s1579_s24 + $0x24] ss:$8 sps:$4 sm:$0xff]   ;;  %v1461_v24 = vld [vmem:[%s1579_s24 + $0x20] ss:$8 sps:$4 sm:$0xff]  }
  0x13   : > { %531 = vmatpush1.bf16.msra.mxu0 %v1441_v7  ;;  %771 = vmatpush1.bf16.msra.mxu1 %v1442_v8  ;;  %v1462_v25 = vld [vmem:[%s1579_s24 + $0x34] ss:$8 sps:$4 sm:$0xff]   ;;  %v1464_v26 = vld [vmem:[%s1579_s24 + $0x30] ss:$8 sps:$4 sm:$0xff]   ;;  %v1465_v27 = vld [vmem:[%s1579_s24 + $0x44] ss:$8 sps:$4 sm:$0xff]  }
  0x14   : > { %532 = vmatprep.subr.bf16.mxu0 %v1499_v1  ;;  %772 = vmatprep.subr.bf16.mxu1 %v1499_v1  ;;  %v1467_v28 = vld [vmem:[%s1579_s24 + $0x40] ss:$8 sps:$4 sm:$0xff]   ;;  %v1468_v29 = vld [vmem:[%s1579_s24 + $0x54] ss:$8 sps:$4 sm:$0xff]   ;;  %v1470_v30 = vld [vmem:[%s1579_s24 + $0x50] ss:$8 sps:$4 sm:$0xff]  }
  0x15   : > { %v1471_v31 = vld [vmem:[%s1579_s24 + $0x64] ss:$8 sps:$4 sm:$0xff]   ;;  %v1473_v32 = vld [vmem:[%s1579_s24 + $0x60] ss:$8 sps:$4 sm:$0xff]   ;;  %v1474_v33 = vld [vmem:[%s1579_s24 + $0x74] ss:$8 sps:$4 sm:$0xff]  }
  0x16   : > { %v1476_v34 = vld [vmem:[%s1579_s24 + $0x70] ss:$8 sps:$4 sm:$0xff]   ;;  %v1477_v35 = vld [vmem:[%s1579_s24 + $0x84] ss:$8 sps:$4 sm:$0xff]   ;;  %v1479_v36 = vld [vmem:[%s1579_s24 + $0x80] ss:$8 sps:$4 sm:$0xff]  }
  0x17   : > { %533 = vmatpush1.bf16.msra.mxu0 %v1443_v9  ;;  %773 = vmatpush1.bf16.msra.mxu1 %v1444_v10  ;;  %v1480_v37 = vld [vmem:[%s1579_s24 + $0x94] ss:$8 sps:$4 sm:$0xff]   ;;  %v1482_v38 = vld [vmem:[%s1579_s24 + $0x90] ss:$8 sps:$4 sm:$0xff]   ;;  %v1483_v39 = vld [vmem:[%s1579_s24 + $0xa4] ss:$8 sps:$4 sm:$0xff]  }
  0x18   : > { %534 = vmatprep.subr.bf16.mxu0 %v1499_v1  ;;  %774 = vmatprep.subr.bf16.mxu1 %v1499_v1  ;;  %v1485_v40 = vld [vmem:[%s1579_s24 + $0xa0] ss:$8 sps:$4 sm:$0xff]   ;;  %v1486_v41 = vld [vmem:[%s1579_s24 + $0xb4] ss:$8 sps:$4 sm:$0xff]   ;;  %v1488_v43 = vld [vmem:[%s1579_s24 + $0xb0] ss:$8 sps:$4 sm:$0xff]  }
  0x19   : > { %v290_v42 = vld [vmem:[%s1579_s24 + $0xc0] sm:$0x33] }
  0x1a   : > { %v1276_v44 = vcombine.high %v290_v42, %v290_v42  ;;  %v1275_v45 = vcombine.low %v290_v42, %v290_v42 }
  0x1b   : > { %535 = vmatpush1.bf16.msra.mxu0 %v1445_v11  ;;  %775 = vmatpush1.bf16.msra.mxu1 %v1446_v12 }
  0x1c   : > { %536 = vmatprep.subr.bf16.mxu0 %v1499_v1  ;;  %776 = vmatprep.subr.bf16.mxu1 %v1499_v1 }
  0x1f   : > { %537 = vmatpush1.bf16.msra.mxu0 %v1447_v14  ;;  %777 = vmatpush1.bf16.msra.mxu1 %v1448_v15 }
  0x20   : > { %538 = vmatprep.subr.bf16.mxu0 %v1499_v1  ;;  %778 = vmatprep.subr.bf16.mxu1 %v1499_v1 }
  0x23   : > { %539 = vmatpush1.bf16.msra.mxu0 %v1449_v16  ;;  %779 = vmatpush1.bf16.msra.mxu1 %v1450_v17 }
  0x24   : > { %540 = vmatprep.subr.bf16.mxu0 %v1499_v1  ;;  %780 = vmatprep.subr.bf16.mxu1 %v1499_v1 }
  0x27   : > { %541 = vmatpush1.bf16.msra.mxu0 %v1451_v18  ;;  %781 = vmatpush1.bf16.msra.mxu1 %v1452_v19 }
  0x2a   : > { %557 = vmatmul.mubr.bf16.vlgmr.msra.gmra.mrb[0].mxu0 %v1453_v20  ;;  %797 = vmatmul.mubr.bf16.vlgmr.msra.gmra.mrb[0].mxu1 %v1453_v20 }
  0x2b   : > { %1287 = vmatprep.mubr.msk.bf16.mxu0 %vm484_vm0, %v1456_v21  ;;  %1310 = vmatprep.mubr.msk.bf16.mxu1 %vm484_vm0, %v1456_v21 }
  0x32   : > { %565 = vmatmul.mubr.bf16.gmra.mrb[4].mxu0 %v1458_v22  ;;  %805 = vmatmul.mubr.bf16.gmra.mrb[4].mxu1 %v1458_v22 }
  0x33   : > { %1288 = vmatprep.mubr.msk.bf16.mxu0 %vm484_vm0, %v1459_v23  ;;  %1311 = vmatprep.mubr.msk.bf16.mxu1 %vm484_vm0, %v1459_v23 }
  0x3a   : > { %573 = vmatmul.mubr.bf16.gmra.mrb[8].mxu0 %v1461_v24  ;;  %813 = vmatmul.mubr.bf16.gmra.mrb[8].mxu1 %v1461_v24 }
  0x3b   : > { %1289 = vmatprep.mubr.msk.bf16.mxu0 %vm484_vm0, %v1462_v25  ;;  %1312 = vmatprep.mubr.msk.bf16.mxu1 %vm484_vm0, %v1462_v25 }
  0x42   : > { %581 = vmatmul.mubr.bf16.gmra.mrb[12].mxu0 %v1464_v26  ;;  %821 = vmatmul.mubr.bf16.gmra.mrb[12].mxu1 %v1464_v26 }
  0x43   : > { %1290 = vmatprep.mubr.msk.bf16.mxu0 %vm484_vm0, %v1465_v27  ;;  %1313 = vmatprep.mubr.msk.bf16.mxu1 %vm484_vm0, %v1465_v27 }
  0x4a   : > { %589 = vmatmul.mubr.bf16.gmra.mrb[16].mxu0 %v1467_v28  ;;  %829 = vmatmul.mubr.bf16.gmra.mrb[16].mxu1 %v1467_v28 }
  0x4b   : > { %1291 = vmatprep.mubr.msk.bf16.mxu0 %vm484_vm0, %v1468_v29  ;;  %1314 = vmatprep.mubr.msk.bf16.mxu1 %vm484_vm0, %v1468_v29 }
  0x52   : > { %597 = vmatmul.mubr.bf16.gmra.mrb[20].mxu0 %v1470_v30  ;;  %837 = vmatmul.mubr.bf16.gmra.mrb[20].mxu1 %v1470_v30 }
  0x53   : > { %1292 = vmatprep.mubr.msk.bf16.mxu0 %vm484_vm0, %v1471_v31  ;;  %1315 = vmatprep.mubr.msk.bf16.mxu1 %vm484_vm0, %v1471_v31 }
  0x5a   : > { %605 = vmatmul.mubr.bf16.gmra.mrb[24].mxu0 %v1473_v32  ;;  %845 = vmatmul.mubr.bf16.gmra.mrb[24].mxu1 %v1473_v32 }
  0x5b   : > { %1293 = vmatprep.mubr.msk.bf16.mxu0 %vm484_vm0, %v1474_v33  ;;  %1316 = vmatprep.mubr.msk.bf16.mxu1 %vm484_vm0, %v1474_v33 }
  0x62   : > { %613 = vmatmul.mubr.bf16.gmra.mrb[28].mxu0 %v1476_v34  ;;  %853 = vmatmul.mubr.bf16.gmra.mrb[28].mxu1 %v1476_v34 }
  0x63   : > { %1294 = vmatprep.mubr.msk.bf16.mxu0 %vm484_vm0, %v1477_v35  ;;  %1317 = vmatprep.mubr.msk.bf16.mxu1 %vm484_vm0, %v1477_v35 }
  0x6a   : > { %621 = vmatmul.mubr.bf16.gmra.mrb[32].mxu0 %v1479_v36  ;;  %861 = vmatmul.mubr.bf16.gmra.mrb[32].mxu1 %v1479_v36 }
  0x6b   : > { %1295 = vmatprep.mubr.msk.bf16.mxu0 %vm484_vm0, %v1480_v37  ;;  %1318 = vmatprep.mubr.msk.bf16.mxu1 %vm484_vm0, %v1480_v37 }
  0x72   : > { %629 = vmatmul.mubr.bf16.gmra.mrb[36].mxu0 %v1482_v38  ;;  %869 = vmatmul.mubr.bf16.gmra.mrb[36].mxu1 %v1482_v38 }
  0x73   : > { %1296 = vmatprep.mubr.msk.bf16.mxu0 %vm484_vm0, %v1483_v39  ;;  %1319 = vmatprep.mubr.msk.bf16.mxu1 %vm484_vm0, %v1483_v39 }
  0x7a   : > { %637 = vmatmul.mubr.bf16.gmra.mrb[40].mxu0 %v1485_v40  ;;  %877 = vmatmul.mubr.bf16.gmra.mrb[40].mxu1 %v1485_v40 }
  0x7b   : > { %1297 = vmatprep.mubr.msk.bf16.mxu0 %vm484_vm0, %v1486_v41  ;;  %1320 = vmatprep.mubr.msk.bf16.mxu1 %vm484_vm0, %v1486_v41 }
  0x82   : > { %645 = vmatmul.mubr.bf16.gmra.mrb[44].mxu0 %v1488_v43  ;;  %885 = vmatmul.mubr.bf16.gmra.mrb[44].mxu1 %v1488_v43 }
  0x83   : > { %1298 = vmatprep.mubr.msk.bf16.mxu0 %vm484_vm0, %v1276_v44  ;;  %1321 = vmatprep.mubr.msk.bf16.mxu1 %vm484_vm0, %v1276_v44 }
  0x8a   : > { %653 = vmatmul.mubr.bf16.gmra.mrb[48].mxu0 %v1275_v45  ;;  %893 = vmatmul.mubr.bf16.gmra.mrb[48].mxu1 %v1275_v45 }
  0xfd   : > { %v558_v48 = vpop.f32.mrb[0].mxu0  ;;  %v798_v50 = vpop.f32.mrb[0].mxu1 }
  0xfe   : > { %v559_v49 = vadd.f32 %v1659_v46, %v558_v48  ;;  %v560_v51 = vpop.f32.mrb[1].mxu0  ;;  %v799_v52 = vadd.f32 %v1665_v47, %v798_v50  ;;  %v800_v53 = vpop.f32.mrb[1].mxu1 }
  0xff   : > { %v561_v54 = vpop.f32.mrb[2].mxu0  ;;  %v801_v57 = vpop.f32.mrb[2].mxu1 }
 0x100   : > { %v660_v55 = vmax.f32 %v559_v49, 0.0  ;;  %v562_v56 = vadd.f32 %v1659_v46, %v561_v54  ;;  %v563_v58 = vpop.f32.mrb[3].mxu0  ;;  %v1399_v59 = vpack.c.bf16 %v799_v52, %v799_v52  ;;  %v802_v60 = vadd.f32 %v1665_v47, %v801_v57  ;;  %v803_v61 = vpop.f32.mrb[3].mxu1 }
 0x102   : > { %v1374_v62 = vpack.c.bf16 %v660_v55, %v660_v55  ;;  %v661_v63 = vmax.f32 %v562_v56, 0.0  ;;  %1129 = vst.msk [vmem:[%s1672_s22] sm:$0xf] %vm1001_vm1, %v1399_v59  ;;  %v1400_v0 = vpack.c.bf16 %v802_v60, %v802_v60 }
 0x104   : > { %1002 = vst.msk [vmem:[%s1678_s28] sm:$0xf] %vm1001_vm1, %v1374_v62  ;;  %v1375_v1 = vpack.c.bf16 %v661_v63, %v661_v63  ;;  %1130 = vst.msk [vmem:[%s1672_s22 + $0x4] sm:$0xf] %vm1001_vm1, %v1400_v0 }
 0x105   : > { %v566_v2 = vpop.f32.mrb[4].mxu0  ;;  %v806_v4 = vpop.f32.mrb[4].mxu1 }
 0x106   : > { %1003 = vst.msk [vmem:[%s1678_s28 + $0x4] sm:$0xf] %vm1001_vm1, %v1375_v1  ;;  %v567_v3 = vadd.f32 %v1659_v46, %v566_v2  ;;  %v568_v5 = vpop.f32.mrb[5].mxu0  ;;  %v807_v6 = vadd.f32 %v1665_v47, %v806_v4  ;;  %v808_v7 = vpop.f32.mrb[5].mxu1 }
 0x107   : > { %v569_v8 = vpop.f32.mrb[6].mxu0  ;;  %v809_v11 = vpop.f32.mrb[6].mxu1 }
 0x108   : > { %v662_v9 = vmax.f32 %v567_v3, 0.0  ;;  %v570_v10 = vadd.f32 %v1659_v46, %v569_v8  ;;  %v571_v12 = vpop.f32.mrb[7].mxu0  ;;  %v1401_v13 = vpack.c.bf16 %v807_v6, %v807_v6  ;;  %v810_v14 = vadd.f32 %v1665_v47, %v809_v11  ;;  %v811_v15 = vpop.f32.mrb[7].mxu1 }
 0x10a   : > { %v1376_v16 = vpack.c.bf16 %v662_v9, %v662_v9  ;;  %v663_v17 = vmax.f32 %v570_v10, 0.0  ;;  %1131 = vst.msk [vmem:[%s1672_s22 + $0x8] sm:$0xf] %vm1001_vm1, %v1401_v13  ;;  %v1402_v18 = vpack.c.bf16 %v810_v14, %v810_v14 }
 0x10c   : > { %1004 = vst.msk [vmem:[%s1678_s28 + $0x8] sm:$0xf] %vm1001_vm1, %v1376_v16  ;;  %v1377_v19 = vpack.c.bf16 %v663_v17, %v663_v17  ;;  %1132 = vst.msk [vmem:[%s1672_s22 + $0xc] sm:$0xf] %vm1001_vm1, %v1402_v18 }
 0x10d   : > { %v574_v20 = vpop.f32.mrb[8].mxu0  ;;  %v814_v22 = vpop.f32.mrb[8].mxu1 }
 0x10e   : > { %1005 = vst.msk [vmem:[%s1678_s28 + $0xc] sm:$0xf] %vm1001_vm1, %v1377_v19  ;;  %v575_v21 = vadd.f32 %v1659_v46, %v574_v20  ;;  %v576_v23 = vpop.f32.mrb[9].mxu0  ;;  %v815_v24 = vadd.f32 %v1665_v47, %v814_v22  ;;  %v816_v25 = vpop.f32.mrb[9].mxu1 }
 0x10f   : > { %v577_v26 = vpop.f32.mrb[10].mxu0  ;;  %v817_v29 = vpop.f32.mrb[10].mxu1 }
 0x110   : > { %v664_v27 = vmax.f32 %v575_v21, 0.0  ;;  %v578_v28 = vadd.f32 %v1659_v46, %v577_v26  ;;  %v579_v30 = vpop.f32.mrb[11].mxu0  ;;  %v1403_v31 = vpack.c.bf16 %v815_v24, %v815_v24  ;;  %v818_v32 = vadd.f32 %v1665_v47, %v817_v29  ;;  %v819_v33 = vpop.f32.mrb[11].mxu1 }
 0x112   : > { %v1378_v34 = vpack.c.bf16 %v664_v27, %v664_v27  ;;  %v665_v35 = vmax.f32 %v578_v28, 0.0  ;;  %1133 = vst.msk [vmem:[%s1672_s22 + $0x10] sm:$0xf] %vm1001_vm1, %v1403_v31  ;;  %v1404_v36 = vpack.c.bf16 %v818_v32, %v818_v32 }
 0x114   : > { %1006 = vst.msk [vmem:[%s1678_s28 + $0x10] sm:$0xf] %vm1001_vm1, %v1378_v34  ;;  %v1379_v37 = vpack.c.bf16 %v665_v35, %v665_v35  ;;  %1134 = vst.msk [vmem:[%s1672_s22 + $0x14] sm:$0xf] %vm1001_vm1, %v1404_v36 }
 0x115   : > { %v582_v38 = vpop.f32.mrb[12].mxu0  ;;  %v822_v40 = vpop.f32.mrb[12].mxu1 }
 0x116   : > { %1007 = vst.msk [vmem:[%s1678_s28 + $0x14] sm:$0xf] %vm1001_vm1, %v1379_v37  ;;  %v583_v39 = vadd.f32 %v1659_v46, %v582_v38  ;;  %v584_v41 = vpop.f32.mrb[13].mxu0  ;;  %v823_v42 = vadd.f32 %v1665_v47, %v822_v40  ;;  %v824_v43 = vpop.f32.mrb[13].mxu1 }
 0x117   : > { %v585_v44 = vpop.f32.mrb[14].mxu0  ;;  %v825_v49 = vpop.f32.mrb[14].mxu1 }
 0x118   : > { %v666_v45 = vmax.f32 %v583_v39, 0.0  ;;  %v586_v48 = vadd.f32 %v1659_v46, %v585_v44  ;;  %v587_v50 = vpop.f32.mrb[15].mxu0  ;;  %v1405_v51 = vpack.c.bf16 %v823_v42, %v823_v42  ;;  %v826_v52 = vadd.f32 %v1665_v47, %v825_v49  ;;  %v827_v53 = vpop.f32.mrb[15].mxu1 }
 0x11a   : > { %v1380_v54 = vpack.c.bf16 %v666_v45, %v666_v45  ;;  %v667_v55 = vmax.f32 %v586_v48, 0.0  ;;  %1135 = vst.msk [vmem:[%s1672_s22 + $0x18] sm:$0xf] %vm1001_vm1, %v1405_v51  ;;  %v1406_v56 = vpack.c.bf16 %v826_v52, %v826_v52 }
 0x11c   : > { %1008 = vst.msk [vmem:[%s1678_s28 + $0x18] sm:$0xf] %vm1001_vm1, %v1380_v54  ;;  %v1381_v57 = vpack.c.bf16 %v667_v55, %v667_v55  ;;  %1136 = vst.msk [vmem:[%s1672_s22 + $0x1c] sm:$0xf] %vm1001_vm1, %v1406_v56 }
 0x11d   : > { %v590_v58 = vpop.f32.mrb[16].mxu0  ;;  %v830_v60 = vpop.f32.mrb[16].mxu1 }
 0x11e   : > { %1009 = vst.msk [vmem:[%s1678_s28 + $0x1c] sm:$0xf] %vm1001_vm1, %v1381_v57  ;;  %v591_v59 = vadd.f32 %v1659_v46, %v590_v58  ;;  %v592_v61 = vpop.f32.mrb[17].mxu0  ;;  %v831_v62 = vadd.f32 %v1665_v47, %v830_v60  ;;  %v832_v63 = vpop.f32.mrb[17].mxu1 }
 0x11f   : > { %v593_v0 = vpop.f32.mrb[18].mxu0  ;;  %v833_v3 = vpop.f32.mrb[18].mxu1 }
 0x120   : > { %v668_v1 = vmax.f32 %v591_v59, 0.0  ;;  %v594_v2 = vadd.f32 %v1659_v46, %v593_v0  ;;  %v595_v4 = vpop.f32.mrb[19].mxu0  ;;  %v1407_v5 = vpack.c.bf16 %v831_v62, %v831_v62  ;;  %v834_v6 = vadd.f32 %v1665_v47, %v833_v3  ;;  %v835_v7 = vpop.f32.mrb[19].mxu1 }
 0x122   : > { %v1382_v8 = vpack.c.bf16 %v668_v1, %v668_v1  ;;  %v669_v9 = vmax.f32 %v594_v2, 0.0  ;;  %1137 = vst.msk [vmem:[%s1672_s22 + $0x20] sm:$0xf] %vm1001_vm1, %v1407_v5  ;;  %v1408_v10 = vpack.c.bf16 %v834_v6, %v834_v6 }
 0x124   : > { %1010 = vst.msk [vmem:[%s1678_s28 + $0x20] sm:$0xf] %vm1001_vm1, %v1382_v8  ;;  %v1383_v11 = vpack.c.bf16 %v669_v9, %v669_v9  ;;  %1138 = vst.msk [vmem:[%s1672_s22 + $0x24] sm:$0xf] %vm1001_vm1, %v1408_v10 }
 0x125   : > { %v598_v12 = vpop.f32.mrb[20].mxu0  ;;  %v838_v14 = vpop.f32.mrb[20].mxu1 }
 0x126   : > { %1011 = vst.msk [vmem:[%s1678_s28 + $0x24] sm:$0xf] %vm1001_vm1, %v1383_v11  ;;  %v599_v13 = vadd.f32 %v1659_v46, %v598_v12  ;;  %v600_v15 = vpop.f32.mrb[21].mxu0  ;;  %v839_v16 = vadd.f32 %v1665_v47, %v838_v14  ;;  %v840_v17 = vpop.f32.mrb[21].mxu1 }
 0x127   : > { %v601_v18 = vpop.f32.mrb[22].mxu0  ;;  %v841_v21 = vpop.f32.mrb[22].mxu1 }
 0x128   : > { %v670_v19 = vmax.f32 %v599_v13, 0.0  ;;  %v602_v20 = vadd.f32 %v1659_v46, %v601_v18  ;;  %v603_v22 = vpop.f32.mrb[23].mxu0  ;;  %v1409_v23 = vpack.c.bf16 %v839_v16, %v839_v16  ;;  %v842_v24 = vadd.f32 %v1665_v47, %v841_v21  ;;  %v843_v25 = vpop.f32.mrb[23].mxu1 }
 0x12a   : > { %v1384_v26 = vpack.c.bf16 %v670_v19, %v670_v19  ;;  %v671_v27 = vmax.f32 %v602_v20, 0.0  ;;  %1139 = vst.msk [vmem:[%s1672_s22 + $0x28] sm:$0xf] %vm1001_vm1, %v1409_v23  ;;  %v1410_v28 = vpack.c.bf16 %v842_v24, %v842_v24 }
 0x12c   : > { %1012 = vst.msk [vmem:[%s1678_s28 + $0x28] sm:$0xf] %vm1001_vm1, %v1384_v26  ;;  %v1385_v29 = vpack.c.bf16 %v671_v27, %v671_v27  ;;  %1140 = vst.msk [vmem:[%s1672_s22 + $0x2c] sm:$0xf] %vm1001_vm1, %v1410_v28 }
 0x12d   : > { %v606_v30 = vpop.f32.mrb[24].mxu0  ;;  %v846_v32 = vpop.f32.mrb[24].mxu1 }
 0x12e   : > { %1013 = vst.msk [vmem:[%s1678_s28 + $0x2c] sm:$0xf] %vm1001_vm1, %v1385_v29  ;;  %v607_v31 = vadd.f32 %v1659_v46, %v606_v30  ;;  %v608_v33 = vpop.f32.mrb[25].mxu0  ;;  %v847_v34 = vadd.f32 %v1665_v47, %v846_v32  ;;  %v848_v35 = vpop.f32.mrb[25].mxu1 }
 0x12f   : > { %v609_v36 = vpop.f32.mrb[26].mxu0  ;;  %v849_v39 = vpop.f32.mrb[26].mxu1 }
 0x130   : > { %v672_v37 = vmax.f32 %v607_v31, 0.0  ;;  %v610_v38 = vadd.f32 %v1659_v46, %v609_v36  ;;  %v611_v40 = vpop.f32.mrb[27].mxu0  ;;  %v1411_v41 = vpack.c.bf16 %v847_v34, %v847_v34  ;;  %v850_v42 = vadd.f32 %v1665_v47, %v849_v39  ;;  %v851_v43 = vpop.f32.mrb[27].mxu1 }
 0x132   : > { %v1386_v44 = vpack.c.bf16 %v672_v37, %v672_v37  ;;  %v673_v45 = vmax.f32 %v610_v38, 0.0  ;;  %1141 = vst.msk [vmem:[%s1672_s22 + $0x30] sm:$0xf] %vm1001_vm1, %v1411_v41  ;;  %v1412_v48 = vpack.c.bf16 %v850_v42, %v850_v42 }
 0x134   : > { %1014 = vst.msk [vmem:[%s1678_s28 + $0x30] sm:$0xf] %vm1001_vm1, %v1386_v44  ;;  %v1387_v49 = vpack.c.bf16 %v673_v45, %v673_v45  ;;  %1142 = vst.msk [vmem:[%s1672_s22 + $0x34] sm:$0xf] %vm1001_vm1, %v1412_v48 }
 0x135   : > { %v614_v50 = vpop.f32.mrb[28].mxu0  ;;  %v854_v52 = vpop.f32.mrb[28].mxu1 }
 0x136   : > { %1015 = vst.msk [vmem:[%s1678_s28 + $0x34] sm:$0xf] %vm1001_vm1, %v1387_v49  ;;  %v615_v51 = vadd.f32 %v1659_v46, %v614_v50  ;;  %v616_v53 = vpop.f32.mrb[29].mxu0  ;;  %v855_v54 = vadd.f32 %v1665_v47, %v854_v52  ;;  %v856_v55 = vpop.f32.mrb[29].mxu1 }
 0x137   : > { %v617_v56 = vpop.f32.mrb[30].mxu0  ;;  %v857_v59 = vpop.f32.mrb[30].mxu1 }
 0x138   : > { %v674_v57 = vmax.f32 %v615_v51, 0.0  ;;  %v618_v58 = vadd.f32 %v1659_v46, %v617_v56  ;;  %v619_v60 = vpop.f32.mrb[31].mxu0  ;;  %v1413_v61 = vpack.c.bf16 %v855_v54, %v855_v54  ;;  %v858_v62 = vadd.f32 %v1665_v47, %v857_v59  ;;  %v859_v63 = vpop.f32.mrb[31].mxu1 }
 0x13a   : > { %v1388_v0 = vpack.c.bf16 %v674_v57, %v674_v57  ;;  %v675_v1 = vmax.f32 %v618_v58, 0.0  ;;  %1143 = vst.msk [vmem:[%s1672_s22 + $0x38] sm:$0xf] %vm1001_vm1, %v1413_v61  ;;  %v1414_v2 = vpack.c.bf16 %v858_v62, %v858_v62 }
 0x13c   : > { %1016 = vst.msk [vmem:[%s1678_s28 + $0x38] sm:$0xf] %vm1001_vm1, %v1388_v0  ;;  %v1389_v3 = vpack.c.bf16 %v675_v1, %v675_v1  ;;  %1144 = vst.msk [vmem:[%s1672_s22 + $0x3c] sm:$0xf] %vm1001_vm1, %v1414_v2 }
 0x13d   : > { %v622_v4 = vpop.f32.mrb[32].mxu0  ;;  %v862_v6 = vpop.f32.mrb[32].mxu1 }
 0x13e   : > { %1017 = vst.msk [vmem:[%s1678_s28 + $0x3c] sm:$0xf] %vm1001_vm1, %v1389_v3  ;;  %v623_v5 = vadd.f32 %v1659_v46, %v622_v4  ;;  %v624_v7 = vpop.f32.mrb[33].mxu0  ;;  %v863_v8 = vadd.f32 %v1665_v47, %v862_v6  ;;  %v864_v9 = vpop.f32.mrb[33].mxu1 }
 0x13f   : > { %v625_v10 = vpop.f32.mrb[34].mxu0  ;;  %v865_v13 = vpop.f32.mrb[34].mxu1 }
 0x140   : > { %v676_v11 = vmax.f32 %v623_v5, 0.0  ;;  %v626_v12 = vadd.f32 %v1659_v46, %v625_v10  ;;  %v627_v14 = vpop.f32.mrb[35].mxu0  ;;  %v1415_v15 = vpack.c.bf16 %v863_v8, %v863_v8  ;;  %v866_v16 = vadd.f32 %v1665_v47, %v865_v13  ;;  %v867_v17 = vpop.f32.mrb[35].mxu1 }
 0x142   : > { %v1390_v18 = vpack.c.bf16 %v676_v11, %v676_v11  ;;  %v677_v19 = vmax.f32 %v626_v12, 0.0  ;;  %1145 = vst.msk [vmem:[%s1672_s22 + $0x40] sm:$0xf] %vm1001_vm1, %v1415_v15  ;;  %v1416_v20 = vpack.c.bf16 %v866_v16, %v866_v16 }
 0x144   : > { %1018 = vst.msk [vmem:[%s1678_s28 + $0x40] sm:$0xf] %vm1001_vm1, %v1390_v18  ;;  %v1391_v21 = vpack.c.bf16 %v677_v19, %v677_v19  ;;  %1146 = vst.msk [vmem:[%s1672_s22 + $0x44] sm:$0xf] %vm1001_vm1, %v1416_v20 }
 0x145   : > { %v630_v22 = vpop.f32.mrb[36].mxu0  ;;  %v870_v24 = vpop.f32.mrb[36].mxu1 }
 0x146   : > { %1019 = vst.msk [vmem:[%s1678_s28 + $0x44] sm:$0xf] %vm1001_vm1, %v1391_v21  ;;  %v631_v23 = vadd.f32 %v1659_v46, %v630_v22  ;;  %v632_v25 = vpop.f32.mrb[37].mxu0  ;;  %v871_v26 = vadd.f32 %v1665_v47, %v870_v24  ;;  %v872_v27 = vpop.f32.mrb[37].mxu1 }
 0x147   : > { %v633_v28 = vpop.f32.mrb[38].mxu0  ;;  %v873_v31 = vpop.f32.mrb[38].mxu1 }
 0x148   : > { %v678_v29 = vmax.f32 %v631_v23, 0.0  ;;  %v634_v30 = vadd.f32 %v1659_v46, %v633_v28  ;;  %v635_v32 = vpop.f32.mrb[39].mxu0  ;;  %v1417_v33 = vpack.c.bf16 %v871_v26, %v871_v26  ;;  %v874_v34 = vadd.f32 %v1665_v47, %v873_v31  ;;  %v875_v35 = vpop.f32.mrb[39].mxu1 }
 0x14a   : > { %v1392_v36 = vpack.c.bf16 %v678_v29, %v678_v29  ;;  %v679_v37 = vmax.f32 %v634_v30, 0.0  ;;  %1147 = vst.msk [vmem:[%s1672_s22 + $0x48] sm:$0xf] %vm1001_vm1, %v1417_v33  ;;  %v1418_v38 = vpack.c.bf16 %v874_v34, %v874_v34 }
 0x14c   : > { %1020 = vst.msk [vmem:[%s1678_s28 + $0x48] sm:$0xf] %vm1001_vm1, %v1392_v36  ;;  %v1393_v39 = vpack.c.bf16 %v679_v37, %v679_v37  ;;  %1148 = vst.msk [vmem:[%s1672_s22 + $0x4c] sm:$0xf] %vm1001_vm1, %v1418_v38 }
 0x14d   : > { %v638_v40 = vpop.f32.mrb[40].mxu0  ;;  %v878_v42 = vpop.f32.mrb[40].mxu1 }
 0x14e   : > { %1021 = vst.msk [vmem:[%s1678_s28 + $0x4c] sm:$0xf] %vm1001_vm1, %v1393_v39  ;;  %v639_v41 = vadd.f32 %v1659_v46, %v638_v40  ;;  %v640_v43 = vpop.f32.mrb[41].mxu0  ;;  %v879_v44 = vadd.f32 %v1665_v47, %v878_v42  ;;  %v880_v45 = vpop.f32.mrb[41].mxu1 }
 0x14f   : > { %v641_v48 = vpop.f32.mrb[42].mxu0  ;;  %v881_v51 = vpop.f32.mrb[42].mxu1 }
 0x150   : > { %v680_v49 = vmax.f32 %v639_v41, 0.0  ;;  %v642_v50 = vadd.f32 %v1659_v46, %v641_v48  ;;  %v643_v52 = vpop.f32.mrb[43].mxu0  ;;  %v1419_v53 = vpack.c.bf16 %v879_v44, %v879_v44  ;;  %v882_v54 = vadd.f32 %v1665_v47, %v881_v51  ;;  %v883_v55 = vpop.f32.mrb[43].mxu1 }
 0x152   : > { %v1394_v56 = vpack.c.bf16 %v680_v49, %v680_v49  ;;  %v681_v57 = vmax.f32 %v642_v50, 0.0  ;;  %1149 = vst.msk [vmem:[%s1672_s22 + $0x50] sm:$0xf] %vm1001_vm1, %v1419_v53  ;;  %v1420_v58 = vpack.c.bf16 %v882_v54, %v882_v54 }
 0x154   : > { %1022 = vst.msk [vmem:[%s1678_s28 + $0x50] sm:$0xf] %vm1001_vm1, %v1394_v56  ;;  %v1395_v59 = vpack.c.bf16 %v681_v57, %v681_v57  ;;  %1150 = vst.msk [vmem:[%s1672_s22 + $0x54] sm:$0xf] %vm1001_vm1, %v1420_v58 }
 0x155   : > { %v646_v60 = vpop.f32.mrb[44].mxu0  ;;  %v886_v62 = vpop.f32.mrb[44].mxu1 }
 0x156   : > { %1023 = vst.msk [vmem:[%s1678_s28 + $0x54] sm:$0xf] %vm1001_vm1, %v1395_v59  ;;  %v647_v61 = vadd.f32 %v1659_v46, %v646_v60  ;;  %v648_v63 = vpop.f32.mrb[45].mxu0  ;;  %v887_v0 = vadd.f32 %v1665_v47, %v886_v62  ;;  %v888_v1 = vpop.f32.mrb[45].mxu1 }
 0x157   : > { %v649_v2 = vpop.f32.mrb[46].mxu0  ;;  %v889_v5 = vpop.f32.mrb[46].mxu1 }
 0x158   : > { %v682_v3 = vmax.f32 %v647_v61, 0.0  ;;  %v650_v4 = vadd.f32 %v1659_v46, %v649_v2  ;;  %v651_v6 = vpop.f32.mrb[47].mxu0  ;;  %v1421_v7 = vpack.c.bf16 %v887_v0, %v887_v0  ;;  %v890_v8 = vadd.f32 %v1665_v47, %v889_v5  ;;  %v891_v9 = vpop.f32.mrb[47].mxu1 }
 0x15a   : > { %v1396_v10 = vpack.c.bf16 %v682_v3, %v682_v3  ;;  %v683_v11 = vmax.f32 %v650_v4, 0.0  ;;  %1151 = vst.msk [vmem:[%s1672_s22 + $0x58] sm:$0xf] %vm1001_vm1, %v1421_v7  ;;  %v1422_v12 = vpack.c.bf16 %v890_v8, %v890_v8 }
 0x15c   : > { %1024 = vst.msk [vmem:[%s1678_s28 + $0x58] sm:$0xf] %vm1001_vm1, %v1396_v10  ;;  %v1397_v13 = vpack.c.bf16 %v683_v11, %v683_v11  ;;  %1152 = vst.msk [vmem:[%s1672_s22 + $0x5c] sm:$0xf] %vm1001_vm1, %v1422_v12 }
 0x15d   : > { %v654_v14 = vpop.f32.mrb[48].mxu0  ;;  %v894_v16 = vpop.f32.mrb[48].mxu1 }
 0x15e   : > { %1025 = vst.msk [vmem:[%s1678_s28 + $0x5c] sm:$0xf] %vm1001_vm1, %v1397_v13  ;;  %v655_v15 = vadd.f32 %v1659_v46, %v654_v14  ;;  %v656_v17 = vpop.f32.mrb[49].mxu0  ;;  %v895_v18 = vadd.f32 %v1665_v47, %v894_v16  ;;  %v896_v19 = vpop.f32.mrb[49].mxu1 }
 0x15f   : > { %v657_v20 = vpop.f32.mrb[50].mxu0  ;;  %v897_v22 = vpop.f32.mrb[50].mxu1 }
 0x160   : > { %v684_v21 = vmax.f32 %v655_v15, 0.0  ;;  %v658_v23 = vpop.f32.mrb[51].mxu0  ;;  %v1423_v24 = vpack.c.bf16 %v895_v18, %v895_v18  ;;  %v898_v25 = vpop.f32.mrb[51].mxu1 }
 0x162   : > { %v1398_v26 = vpack.c.bf16 %v684_v21, %v684_v21  ;;  %1153 = vst.msk [vmem:[%s1672_s22 + $0x60] sm:$0x3] %vm1026_vm2, %v1423_v24 }
 0x164   : > { %1027 = vst.msk [vmem:[%s1678_s28 + $0x60] sm:$0x3] %vm1026_vm2, %v1398_v26 }
 0x165 PF: > { %s17_s21 = sadd.s32 1, %s1497_s21  }
 0x166   : > { %p14_p4 = scmp.ge.s32.totalorder %s17_s21, 4  }
 0x168   :  { %16 = sbr.rel (!%p14_p4) target bundleno = 1 (0x1), region = 82 }

// kernel: my_net_forward.8
= control target key start
LH: loop header
LB: loop body
LE: loop exit
PB: predicated region body
PF: predicated region fallthrough
CT: control target
= control target key end

     0   :  { %s2028_s15 = smov 0   ;;  %s2523_s0 = inlined_call_operand.vmem [shape: bf16[2,4,49,288], index: 0, kind: input, shape index: {}]   ;;  %s2524_s1 = inlined_call_operand.vmem [shape: bf16[2,4,49,32], index: 1, kind: input, shape index: {}]   ;;  %s2525_s2 = inlined_call_operand.vmem [shape: bf16[288,32], index: 2, kind: input, shape index: {}]   ;;  %s2526_s3 = inlined_call_operand.vmem [shape: f32[1,32], index: 3, kind: input, shape index: {}]   ;;  %s2527_s4 = inlined_call_operand.vmem [shape: bf16[2,49,32], index: 4, kind: output, shape index: {}]  }
   0x1 LB: > { %s1455_s16 = sadd.s32 4294967295, %s2001_s15   ;;  %p1459_p0 = scmp.ge.s32.totalorder %s2001_s15, 1  ;;  %s2001_s15 = sphi %s2028_s15, %s14_s15  }
   0x2   : > { %p172_p1 = scmp.lt.s32.totalorder %s2001_s15, 3 }
   0x4   : > { %p173_p2 = pnand %p1459_p0, %p172_p1 }
   0x5   : > { %v2039_v0 = vld [vmem:[%s2525_s2 + $0x40] sm:$0xff] (!%p173_p2)   ;;  %v2051_v2 = vld [vmem:[%s2525_s2 + $0x48] sm:$0xff] (!%p173_p2)   ;;  %p203_p3 = scmp.lt.s32.totalorder (!%p173_p2), %s1455_s16, 1  ;;  %v2065_v4 = vld [vmem:[%s2525_s2 + $0x50] sm:$0xff] (!%p173_p2)   ;;  %vm439_vm0 = vcmask (!%p173_p2), 261120   ;;  %vm1375_vm1 = vcmask (!%p173_p2), 257024  }
   0x6   : > { %176 = sbr.rel (%p173_p2) target bundleno = 355 (0x163), region = 36  ;;  %v2044_v1 = vld [vmem:[%s2525_s2] sm:$0xff] (!%p173_p2)   ;;  %1674 = vmatprep.subr.bf16.mxu0 (!%p173_p2), %v2039_v0  ;;  %1720 = vmatprep.subr.bf16.mxu1 (!%p173_p2), %v2039_v0  ;;  %v2058_v3 = vld [vmem:[%s2525_s2 + $0x8] sm:$0xff] (!%p173_p2)   ;;  %v2074_v5 = vld [vmem:[%s2525_s2 + $0x10] sm:$0xff] (!%p173_p2)   ;;  %vm1382_vm2 = vcmask (!%p173_p2), 253952  }
   0x7   : > { %1675 = vmatpush3.bf16.msra.mxu0 (!%p173_p2), %v2044_v1  ;;  %1721 = vmatpush3.bf16.msra.mxu1 (!%p173_p2), %v2044_v1  ;;  %v2081_v6 = vld [vmem:[%s2525_s2 + $0x58] sm:$0xff] (!%p173_p2)   ;;  %v2096_v8 = vld [vmem:[%s2525_s2 + $0x60] sm:$0xff] (!%p173_p2)   ;;  %v2115_v10 = vld [vmem:[%s2525_s2 + $0x68] sm:$0xff] (!%p173_p2)   ;;  %vm1383_vm3 = vsmask.f32 (!%p173_p2), 256 }
   0x8   : > { %1676 = vmatprep.subr.bf16.mxu0 (!%p173_p2), %v2051_v2  ;;  %1722 = vmatprep.subr.bf16.mxu1 (!%p173_p2), %v2051_v2  ;;  %v2089_v7 = vld [vmem:[%s2525_s2 + $0x18] sm:$0xff] (!%p173_p2)   ;;  %v2108_v9 = vld [vmem:[%s2525_s2 + $0x20] sm:$0xff] (!%p173_p2)   ;;  %v2124_v13 = vld [vmem:[%s2525_s2 + $0x28] sm:$0xff] (!%p173_p2)  }
   0x9   : > { %v2131_v14 = vld [vmem:[%s2525_s2 + $0x70] sm:$0xff] (!%p173_p2)   ;;  %v2145_v16 = vld [vmem:[%s2525_s2 + $0x78] sm:$0xff] (!%p173_p2)   ;;  %v2159_v18 = vld [vmem:[%s2525_s2 + $0x80] sm:$0xff] (!%p173_p2)  }
   0xa   : > { %v2138_v15 = vld [vmem:[%s2525_s2 + $0x30] sm:$0xff] (!%p173_p2)   ;;  %v2152_v17 = vld [vmem:[%s2525_s2 + $0x38] sm:$0xff] (!%p173_p2)   ;;  %v2172_v23 = vld [vmem:[%s2525_s2 + $0x88] sm:$0xff] (!%p173_p2)  }
   0xb   : > { %1677 = vmatpush3.bf16.msra.mxu0 (!%p173_p2), %v2058_v3  ;;  %1723 = vmatpush3.bf16.msra.mxu1 (!%p173_p2), %v2058_v3  ;;  %vm1384_vm4 = vmand (!%p173_p2), %vm1382_vm2, %vm1383_vm3 }
   0xc   : > { %1678 = vmatprep.subr.bf16.mxu0 (!%p173_p2), %v2065_v4  ;;  %1724 = vmatprep.subr.bf16.mxu1 (!%p173_p2), %v2065_v4 }
   0xd   : > { %s2529_s16 = smov (!%p203_p3, %s1455_s16), 1 }
   0xe   : > { %s1906_s5 = smul.u32 336, %s2529_s16 }
   0xf   : > { %1679 = vmatpush3.bf16.msra.mxu0 %v2074_v5  ;;  %1725 = vmatpush3.bf16.msra.mxu1 %v2074_v5  ;;  %s1907_s9 = smul.u32 112, %s2529_s16 }
  0x10   : > { %1680 = vmatprep.subr.bf16.mxu0 %v2081_v6  ;;  %1726 = vmatprep.subr.bf16.mxu1 %v2081_v6  ;;  %s2101_s12 = scalar_lea.vmem %s2523_s0, %s1906_s5  ;;  %s1908_s13 = smul.u32 28, %s2529_s16 }
  0x11   : > { %v1935_v11 = vld [vmem:[%s2101_s12 + $0x4] ss:$12 sps:$4 sm:$0xff]   ;;  %v1933_v19 = vld [vmem:[%s2101_s12] ss:$12 sps:$4 sm:$0xff]   ;;  %v1940_v21 = vld [vmem:[%s2101_s12 + $0x1c] ss:$12 sps:$4 sm:$0xff]  }
  0x12   : > { %v1938_v12 = vld [vmem:[%s2101_s12 + $0x58] ss:$12 sps:$4 sm:$0xff]   ;;  %484 = vmatprep.mubr.bf16.mxu0 %v1935_v11  ;;  %v1936_v20 = vld [vmem:[%s2101_s12 + $0x54] ss:$12 sps:$4 sm:$0xff]   ;;  %v1942_v22 = vld [vmem:[%s2101_s12 + $0x70] ss:$12 sps:$4 sm:$0xff]   ;;  %s2492_s18 = scalar_lea.vmem %s2527_s4, %s1908_s13 }
  0x13   : > { %1681 = vmatpush3.bf16.msra.mxu0 %v2089_v7  ;;  %1727 = vmatpush3.bf16.msra.mxu1 %v2089_v7  ;;  %v1944_v24 = vld [vmem:[%s2101_s12 + $0x18] ss:$12 sps:$4 sm:$0xff]   ;;  %v1946_v26 = vld [vmem:[%s2101_s12 + $0x34] ss:$12 sps:$4 sm:$0xff]   ;;  %v231_v28 = vld [vmem:[%s2101_s12 + $0x48] sm:$0x11] }
  0x14   : > { %1682 = vmatprep.subr.bf16.mxu0 %v2096_v8  ;;  %1728 = vmatprep.subr.bf16.mxu1 %v2096_v8  ;;  %v1945_v25 = vld [vmem:[%s2101_s12 + $0x6c] ss:$12 sps:$4 sm:$0xff]   ;;  %v1948_v27 = vld [vmem:[%s2101_s12 + $0x88] ss:$12 sps:$4 sm:$0xff]   ;;  %v1510_v29 = vld [vmem:[%s2101_s12 + $0x9c] sm:$0x11]  ;;  %v1474_v32 = vcombine.high %v231_v28, %v231_v28  ;;  %v1473_v34 = vcombine.low %v231_v28, %v231_v28 }
  0x15   : > { %722 = vmatprep.mubr.bf16.mxu1 %v1938_v12  ;;  %v1950_v30 = vld [vmem:[%s2101_s12 + $0x30] ss:$12 sps:$4 sm:$0xff]   ;;  %v1522_v33 = vcombine.high %v1510_v29, %v1510_v29  ;;  %v1521_v35 = vcombine.low %v1510_v29, %v1510_v29  ;;  %v1957_v36 = vld [vmem:[%s2101_s12 + $0x8] ss:$12 sps:$4 sm:$0xff]   ;;  %v1960_v37 = vld [vmem:[%s2101_s12 + $0xac] ss:$12 sps:$4 sm:$0xff]  }
  0x16   : > { %v1951_v31 = vld [vmem:[%s2101_s12 + $0x84] ss:$12 sps:$4 sm:$0xff]   ;;  %v1958_v38 = vld [vmem:[%s2101_s12 + $0xa8] ss:$12 sps:$4 sm:$0xff]   ;;  %v1961_v39 = vld [vmem:[%s2101_s12 + $0x20] ss:$12 sps:$4 sm:$0xff]  }
  0x17   : > { %1683 = vmatpush3.bf16.msra.mxu0 %v2108_v9  ;;  %1729 = vmatpush3.bf16.msra.mxu1 %v2108_v9  ;;  %v1962_v40 = vld [vmem:[%s2101_s12 + $0x38] ss:$12 sps:$4 sm:$0xff]   ;;  %v1965_v42 = vld [vmem:[%s2101_s12 + $0x50] ss:$0 sps:$4 sm:$0x11]  }
  0x18   : > { %1684 = vmatprep.subr.bf16.mxu0 %v2115_v10  ;;  %1730 = vmatprep.subr.bf16.mxu1 %v2115_v10  ;;  %v1963_v41 = vld [vmem:[%s2101_s12 + $0xc4] ss:$12 sps:$4 sm:$0xff]   ;;  %v1966_v43 = vld [vmem:[%s2101_s12 + $0xc0] ss:$12 sps:$4 sm:$0xff]   ;;  %v1967_v44 = vld [vmem:[%s2101_s12 + $0x5c] ss:$12 sps:$4 sm:$0xff]  }
  0x19   : > { %v1968_v45 = vld [vmem:[%s2101_s12 + $0xdc] ss:$12 sps:$4 sm:$0xff]   ;;  %v1970_v46 = vld [vmem:[%s2101_s12 + $0x74] ss:$12 sps:$4 sm:$0xff]   ;;  %v1971_v47 = vld [vmem:[%s2101_s12 + $0xd8] ss:$12 sps:$4 sm:$0xff]  }
  0x1a   : > { %v1547_v48 = vld [vmem:[%s2101_s12 + $0xf0] sm:$0x11]  ;;  %v1972_v49 = vld [vmem:[%s2101_s12 + $0x8c] ss:$12 sps:$4 sm:$0xff]   ;;  %v1977_v55 = vld [vmem:[%s2101_s12 + $0xfc] ss:$12 sps:$4 sm:$0xff]  }
  0x1b   : > { %1685 = vmatpush3.bf16.msra.mxu0 %v2124_v13  ;;  %1731 = vmatpush3.bf16.msra.mxu1 %v2124_v13  ;;  %v1559_v50 = vcombine.high %v1547_v48, %v1547_v48  ;;  %v1974_v51 = vld [vmem:[%s2101_s12 + $0xa4] ss:$0 sps:$4 sm:$0x11]   ;;  %v1558_v52 = vcombine.low %v1547_v48, %v1547_v48  ;;  %v1976_v53 = vld [vmem:[%s2101_s12 + $0xb0] ss:$12 sps:$4 sm:$0xff]  }
  0x1c   : > { %1686 = vmatprep.subr.bf16.mxu0 %v2131_v14  ;;  %1732 = vmatprep.subr.bf16.mxu1 %v2131_v14  ;;  %v1979_v54 = vld [vmem:[%s2101_s12 + $0x100] ss:$12 sps:$4 sm:$0xff]   ;;  %v1980_v56 = vld [vmem:[%s2101_s12 + $0xc8] ss:$12 sps:$4 sm:$0xff]   ;;  %v1982_v58 = vld [vmem:[%s2101_s12 + $0x118] ss:$12 sps:$4 sm:$0xff]  }
  0x1d   : > { %v1981_v57 = vld [vmem:[%s2101_s12 + $0xe0] ss:$12 sps:$4 sm:$0xff]   ;;  %v1984_v59 = vld [vmem:[%s2101_s12 + $0xf8] ss:$0 sps:$4 sm:$0x11]  }
  0x1e   : > { %v1985_v60 = vld [vmem:[%s2101_s12 + $0x114] ss:$12 sps:$4 sm:$0xff]   ;;  %v1986_v61 = vld [vmem:[%s2101_s12 + $0x130] ss:$12 sps:$4 sm:$0xff]   ;;  %v1584_v63 = vld [vmem:[%s2101_s12 + $0x144] sm:$0x11] }
  0x1f   : > { %1687 = vmatpush3.bf16.msra.mxu0 %v2138_v15  ;;  %1733 = vmatpush3.bf16.msra.mxu1 %v2138_v15  ;;  %v1988_v62 = vld [vmem:[%s2101_s12 + $0x104] ss:$12 sps:$4 sm:$0xff]  }
  0x20   : > { %1688 = vmatprep.subr.bf16.mxu0 %v2145_v16  ;;  %1734 = vmatprep.subr.bf16.mxu1 %v2145_v16 }
  0x23   : > { %1689 = vmatpush3.bf16.msra.mxu0 %v2152_v17  ;;  %1735 = vmatpush3.bf16.msra.mxu1 %v2152_v17 }
  0x24   : > { %1766 = vmatprep.subr.bf16.mxu1 %v2039_v0  ;;  %1858 = vmatprep.subr.bf16.mxu0 %v2159_v18 }
  0x26   : > { %485 = vmatmul.mubr.bf16.vlgmr.msra.gmra.mrb[0].mxu0 %v1933_v19  ;;  %723 = vmatmul.mubr.bf16.vlgmr.msra.gmra.mrb[0].mxu1 %v1936_v20 }
  0x27   : > { %1767 = vmatpush3.bf16.msra.mxu1 %v2044_v1  ;;  %1859 = vmatpush3.bf16.msra.mxu0 %v2159_v18 }
  0x28   : > { %1768 = vmatprep.subr.bf16.mxu1 %v2051_v2  ;;  %492 = vmatprep.mubr.bf16.mxu0 %v1940_v21 }
  0x29   : > { %730 = vmatprep.mubr.bf16.mxu1 %v1942_v22  ;;  %1860 = vmatprep.subr.bf16.mxu0 %v2172_v23 }
  0x2b   : > { %1769 = vmatpush3.bf16.msra.mxu1 %v2058_v3  ;;  %1861 = vmatpush3.bf16.msra.mxu0 %v2172_v23 }
  0x2c   : > { %1770 = vmatprep.subr.bf16.mxu1 %v2065_v4  ;;  %1870 = vmatprep.subr.bf16.mxu0 %v2159_v18 }
  0x2e   : > { %493 = vmatmul.mubr.bf16.gmra.mrb[4].mxu0 %v1944_v24  ;;  %731 = vmatmul.mubr.bf16.gmra.mrb[4].mxu1 %v1945_v25 }
  0x2f   : > { %1771 = vmatpush3.bf16.msra.mxu1 %v2074_v5  ;;  %500 = vmatprep.mubr.bf16.mxu0 %v1946_v26 }
  0x30   : > { %1772 = vmatprep.subr.bf16.mxu1 %v2081_v6  ;;  %738 = vmatprep.mubr.bf16.mxu1 %v1948_v27 }
  0x33   : > { %1773 = vmatpush3.bf16.msra.mxu1 %v2089_v7 }
  0x34   : > { %1774 = vmatprep.subr.bf16.mxu1 %v2096_v8 }
  0x36   : > { %501 = vmatmul.mubr.bf16.gmra.mrb[8].mxu0 %v1950_v30  ;;  %739 = vmatmul.mubr.bf16.gmra.mrb[8].mxu1 %v1951_v31 }
  0x37   : > { %1775 = vmatpush3.bf16.msra.mxu1 %v2108_v9  ;;  %508 = vmatprep.mubr.bf16.mxu0 %v1474_v32 }
  0x38   : > { %1776 = vmatprep.subr.bf16.mxu1 %v2115_v10  ;;  %746 = vmatprep.mubr.bf16.mxu1 %v1522_v33 }
  0x3b   : > { %1777 = vmatpush3.bf16.msra.mxu1 %v2124_v13 }
  0x3c   : > { %1778 = vmatprep.subr.bf16.mxu1 %v2131_v14 }
  0x3e   : > { %509 = vmatmul.mubr.bf16.gmra.mrb[12].mxu0 %v1473_v34  ;;  %747 = vmatmul.mubr.bf16.gmra.mrb[12].mxu1 %v1521_v35 }
  0x3f   : > { %1779 = vmatpush3.bf16.msra.mxu1 %v2138_v15  ;;  %1862 = vmatprep.mubr.msk.bf16.mxu0 %vm439_vm0, %v1957_v36 }
  0x40   : > { %1780 = vmatprep.subr.bf16.mxu1 %v2145_v16  ;;  %968 = vmatprep.mubr.bf16.mxu1 %v1960_v37 }
  0x43   : > { %1781 = vmatpush3.bf16.msra.mxu1 %v2152_v17 }
  0x44   : > { %1812 = vmatprep.subr.bf16.mxu1 %v2039_v0  ;;  %v1989_v0 = vld [vmem:[%s2101_s12 + $0x12c] ss:$12 sps:$4 sm:$0xff]  }
  0x46   : > { %1863 = vmatmul.mubr.msk.bf16.vlgmr.msra.gmra.mrb[16].mxu0 %vm439_vm0, %v1961_v39  ;;  %969 = vmatmul.mubr.bf16.vlgmr.msra.gmra.mrb[16].mxu1 %v1958_v38 }
  0x47   : > { %1813 = vmatpush3.bf16.msra.mxu1 %v2044_v1  ;;  %1871 = vmatpush3.bf16.msra.mxu0 %v2159_v18  ;;  %v1990_v1 = vld [vmem:[%s2101_s12 + $0x11c] ss:$12 sps:$4 sm:$0xff]  }
  0x48   : > { %1814 = vmatprep.subr.bf16.mxu1 %v2051_v2  ;;  %1866 = vmatprep.mubr.msk.bf16.mxu0 %vm439_vm0, %v1962_v40  ;;  %v1596_v2 = vcombine.high %v1584_v63, %v1584_v63 }
  0x49   : > { %976 = vmatprep.mubr.bf16.mxu1 %v1963_v41  ;;  %1872 = vmatprep.subr.bf16.mxu0 %v2172_v23 }
  0x4b   : > { %1815 = vmatpush3.bf16.msra.mxu1 %v2058_v3  ;;  %1873 = vmatpush3.bf16.msra.mxu0 %v2172_v23  ;;  %v1992_v3 = vld [vmem:[%s2101_s12 + $0x134] ss:$12 sps:$4 sm:$0xff]  }
  0x4c   : > { %1816 = vmatprep.subr.bf16.mxu1 %v2065_v4  ;;  %1882 = vmatprep.subr.bf16.mxu0 %v2159_v18  ;;  %v1595_v4 = vcombine.low %v1584_v63, %v1584_v63 }
  0x4e   : > { %1867 = vmatmul.mubr.msk.bf16.gmra.mrb[20].mxu0 %vm439_vm0, %v1965_v42  ;;  %977 = vmatmul.mubr.bf16.gmra.mrb[20].mxu1 %v1966_v43 }
  0x4f   : > { %1817 = vmatpush3.bf16.msra.mxu1 %v2074_v5  ;;  %1874 = vmatprep.mubr.msk.bf16.mxu0 %vm439_vm0, %v1967_v44  ;;  %v1994_v5 = vld [vmem:[%s2101_s12 + $0x14c] ss:$0 sps:$4 sm:$0x11]   ;;  %s2314_s12 = scalar_lea.vmem %s2524_s1, %s1907_s9 }
  0x50   : > { %1818 = vmatprep.subr.bf16.mxu1 %v2081_v6  ;;  %984 = vmatprep.mubr.bf16.mxu1 %v1968_v45 }
  0x53   : > { %1819 = vmatpush3.bf16.msra.mxu1 %v2089_v7 }
  0x54   : > { %1820 = vmatprep.subr.bf16.mxu1 %v2096_v8 }
  0x56   : > { %1875 = vmatmul.mubr.msk.bf16.vlgmr.msra.gmra.mrb[24].mxu0 %vm439_vm0, %v1970_v46  ;;  %985 = vmatmul.mubr.bf16.gmra.mrb[24].mxu1 %v1971_v47 }
  0x57   : > { %1821 = vmatpush3.bf16.msra.mxu1 %v2108_v9  ;;  %1883 = vmatpush3.bf16.msra.mxu0 %v2159_v18 }
  0x58   : > { %1822 = vmatprep.subr.bf16.mxu1 %v2115_v10  ;;  %1878 = vmatprep.mubr.msk.bf16.mxu0 %vm439_vm0, %v1972_v49 }
  0x59   : > { %992 = vmatprep.mubr.bf16.mxu1 %v1559_v50  ;;  %1884 = vmatprep.subr.bf16.mxu0 %v2172_v23 }
  0x5b   : > { %1823 = vmatpush3.bf16.msra.mxu1 %v2124_v13  ;;  %1885 = vmatpush3.bf16.msra.mxu0 %v2172_v23 }
  0x5c   : > { %1824 = vmatprep.subr.bf16.mxu1 %v2131_v14  ;;  %1894 = vmatprep.subr.bf16.mxu0 %v2159_v18 }
  0x5e   : > { %1879 = vmatmul.mubr.msk.bf16.gmra.mrb[28].mxu0 %vm439_vm0, %v1974_v51  ;;  %993 = vmatmul.mubr.bf16.gmra.mrb[28].mxu1 %v1558_v52  ;;  %v2291_v52 = vld [vmem:[%s2526_s3] ss:$0 sm:$0xff] }
  0x5f   : > { %1825 = vmatpush3.bf16.msra.mxu1 %v2138_v15  ;;  %1886 = vmatprep.mubr.msk.bf16.mxu0 %vm439_vm0, %v1976_v53 }
  0x60   : > { %1826 = vmatprep.subr.bf16.mxu1 %v2145_v16  ;;  %1214 = vmatprep.mubr.bf16.mxu1 %v1979_v54 }
  0x63   : > { %1827 = vmatpush3.bf16.msra.mxu1 %v2152_v17 }
  0x66   : > { %1887 = vmatmul.mubr.msk.bf16.vlgmr.msra.gmra.mrb[32].mxu0 %vm439_vm0, %v1980_v56  ;;  %1215 = vmatmul.mubr.bf16.vlgmr.msra.gmra.mrb[32].mxu1 %v1977_v55 }
  0x67   : > { %1895 = vmatpush3.bf16.msra.mxu0 %v2159_v18  ;;  %1890 = vmatprep.mubr.msk.bf16.mxu0 %vm439_vm0, %v1981_v57 }
  0x68   : > { %1222 = vmatprep.mubr.bf16.mxu1 %v1982_v58  ;;  %1896 = vmatprep.subr.bf16.mxu0 %v2172_v23 }
  0x6b   : > { %1897 = vmatpush3.bf16.msra.mxu0 %v2172_v23 }
  0x6e   : > { %1891 = vmatmul.mubr.msk.bf16.gmra.mrb[36].mxu0 %vm439_vm0, %v1984_v59  ;;  %1223 = vmatmul.mubr.bf16.gmra.mrb[36].mxu1 %v1985_v60 }
  0x6f   : > { %1230 = vmatprep.mubr.bf16.mxu1 %v1986_v61  ;;  %1898 = vmatprep.mubr.msk.bf16.mxu0 %vm439_vm0, %v1988_v62 }
  0x76   : > { %1231 = vmatmul.mubr.bf16.gmra.mrb[40].mxu1 %v1989_v0  ;;  %1899 = vmatmul.mubr.msk.bf16.vlgmr.msra.gmra.mrb[40].mxu0 %vm439_vm0, %v1990_v1 }
  0x77   : > { %1238 = vmatprep.mubr.bf16.mxu1 %v1596_v2  ;;  %1902 = vmatprep.mubr.msk.bf16.mxu0 %vm439_vm0, %v1992_v3 }
  0x7e   : > { %1239 = vmatmul.mubr.bf16.gmra.mrb[44].mxu1 %v1595_v4  ;;  %1903 = vmatmul.mubr.msk.bf16.gmra.mrb[44].mxu0 %vm439_vm0, %v1994_v5 }
  0xf9   : > { %v1736_v6 = vpop.f32.mrb[0].mxu1  ;;  %v1690_v7 = vpop.f32.mrb[0].mxu0 }
  0xfa   : > { %v1737_v8 = vpop.f32.mrb[1].mxu1  ;;  %v1691_v9 = vpop.f32.mrb[1].mxu0 }
  0xfb   : > { %v2274_v10 = vadd.f32 %v1737_v8, %v1736_v6  ;;  %v1692_v11 = vadd.f32 %v1691_v9, %v1690_v7  ;;  %v1739_v12 = vpop.f32.mrb[2].mxu1  ;;  %v1693_v13 = vpop.f32.mrb[2].mxu0 }
  0xfc   : > { %v1740_v14 = vpop.f32.mrb[3].mxu1  ;;  %v1694_v15 = vpop.f32.mrb[3].mxu0 }
  0xfd   : > { %v2276_v16 = vadd.f32 %v1740_v14, %v1739_v12  ;;  %v1695_v17 = vadd.f32 %v1694_v15, %v1693_v13  ;;  %v487_v56 = vadd.f32 %v1692_v11, %v2291_v52 }
  0xff   : > { %v490_v1 = vadd.f32 %v1695_v17, %v2291_v52 }
 0x101   : > { %v1742_v18 = vpop.f32.mrb[4].mxu1  ;;  %v1696_v19 = vpop.f32.mrb[4].mxu0 }
 0x102   : > { %v1743_v20 = vpop.f32.mrb[5].mxu1  ;;  %v1697_v21 = vpop.f32.mrb[5].mxu0 }
 0x103   : > { %v2278_v22 = vadd.f32 %v1743_v20, %v1742_v18  ;;  %v1698_v23 = vadd.f32 %v1697_v21, %v1696_v19  ;;  %v1745_v24 = vpop.f32.mrb[6].mxu1  ;;  %v1699_v25 = vpop.f32.mrb[6].mxu0  ;;  %v1665_v21 = vld [vmem:[%s2314_s12 + $0x8] sm:$0xff]  }
 0x104   : > { %v1746_v26 = vpop.f32.mrb[7].mxu1  ;;  %v1700_v27 = vpop.f32.mrb[7].mxu0 }
 0x105   : > { %v2280_v28 = vadd.f32 %v1746_v26, %v1745_v24  ;;  %v1701_v29 = vadd.f32 %v1700_v27, %v1699_v25  ;;  %v495_v53 = vadd.f32 %v1698_v23, %v2291_v52  ;;  %v1626_v23 = vld [vmem:[%s2314_s12] sm:$0xff]   ;;  %v2327_v26 = vld [vmem:[%s2314_s12 + $0x18] sm:$0x1] }
 0x107   : > { %v498_v60 = vadd.f32 %v1701_v29, %v2291_v52 }
 0x109   : > { %v1748_v30 = vpop.f32.mrb[8].mxu1  ;;  %v1702_v31 = vpop.f32.mrb[8].mxu0 }
 0x10a   : > { %v1749_v32 = vpop.f32.mrb[9].mxu1  ;;  %v1703_v33 = vpop.f32.mrb[9].mxu0 }
 0x10b   : > { %v2282_v34 = vadd.f32 %v1749_v32, %v1748_v30  ;;  %v1704_v35 = vadd.f32 %v1703_v33, %v1702_v31  ;;  %v1751_v36 = vpop.f32.mrb[10].mxu1  ;;  %v1705_v37 = vpop.f32.mrb[10].mxu0  ;;  %v2334_v30 = vld [vmem:[%s2314_s12 + $0x10] sm:$0xff]   ;;  %v1667_v31 = vld [vmem:[%s2314_s12 + $0x20] sm:$0xff]   ;;  %v1631_v33 = vunpack.c.l.bf16 %v1665_v21 }
 0x10c   : > { %v1752_v38 = vpop.f32.mrb[11].mxu1  ;;  %v1706_v39 = vpop.f32.mrb[11].mxu0  ;;  %v2338_v32 = vld [vmem:[%s2314_s12 + $0x1c] ss:$20 sps:$4 sm:$0xff]  }
 0x10d   : > { %v2284_v40 = vadd.f32 %v1752_v38, %v1751_v36  ;;  %v1707_v41 = vadd.f32 %v1706_v39, %v1705_v37  ;;  %v503_v11 = vadd.f32 %v1704_v35, %v2291_v52  ;;  %v1627_v35 = vunpack.c.l.bf16 %v1626_v23  ;;  %v2341_v36 = vld [vmem:[%s2314_s12 + $0x28] sm:$0xff]  }
 0x10e   : > { %v1632_v37 = vunpack.c.h.bf16 %v1665_v21  ;;  %v1628_v38 = vunpack.c.h.bf16 %v1626_v23  ;;  %v600_v39 = vunpack.c.l.bf16 %v2327_v26 }
 0x10f   : > { %v506_v20 = vadd.f32 %v1707_v41, %v2291_v52  ;;  %v733_v41 = vadd.f32 %v2278_v22, %v2291_v52  ;;  %v1643_v22 = vunpack.c.l.bf16 %v2341_v36 }
 0x111   : > { %v1754_v42 = vpop.f32.mrb[12].mxu1  ;;  %v1708_v43 = vpop.f32.mrb[12].mxu0 }
 0x112   : > { %v1755_v44 = vpop.f32.mrb[13].mxu1  ;;  %v1709_v45 = vpop.f32.mrb[13].mxu0 }
 0x113   : > { %v2286_v46 = vadd.f32 %v1755_v44, %v1754_v42  ;;  %v1710_v47 = vadd.f32 %v1709_v45, %v1708_v43  ;;  %v1757_v48 = vpop.f32.mrb[14].mxu1  ;;  %v1711_v49 = vpop.f32.mrb[14].mxu0  ;;  %v1635_v42 = vunpack.c.l.bf16 %v2334_v30  ;;  %v1640_v44 = vunpack.c.h.bf16 %v1667_v31 }
 0x114   : > { %v1758_v50 = vpop.f32.mrb[15].mxu1  ;;  %v1712_v51 = vpop.f32.mrb[15].mxu0  ;;  %v833_v48 = vunpack.c.l.bf16 %v2338_v32 }
 0x115   : > { %v511_v7 = vadd.f32 %v1710_v47, %v2291_v52  ;;  %v725_v47 = vadd.f32 %v2274_v10, %v2291_v52  ;;  %v728_v10 = vadd.f32 %v2276_v16, %v2291_v52 }
 0x119   : > { %v1864_v54 = vpop.f32.mrb[16].mxu0  ;;  %v1782_v55 = vpop.f32.mrb[16].mxu1 }
 0x11a   : > { %v2295_v57 = vadd.f32 %v1864_v54, %v495_v53  ;;  %v550_v58 = vpop.f32.mrb[17].mxu0  ;;  %v1783_v59 = vpop.f32.mrb[17].mxu1  ;;  %v736_v54 = vadd.f32 %v2280_v28, %v2291_v52 }
 0x11b   : > { %v2298_v61 = vadd.f32 %v550_v58, %v487_v56  ;;  %v2300_v62 = vadd.f32 %v1783_v59, %v1782_v55  ;;  %v1865_v63 = vpop.f32.mrb[18].mxu0  ;;  %v1785_v0 = vpop.f32.mrb[18].mxu1 }
 0x11c   : > { %v2303_v2 = vadd.f32 %v1865_v63, %v498_v60  ;;  %v553_v3 = vpop.f32.mrb[19].mxu0  ;;  %v1786_v4 = vpop.f32.mrb[19].mxu1  ;;  %v582_v49 = vmax.f32 %v2295_v57, 0.0  ;;  %v1534_v63 = vld [vmem:[%s2314_s12 + $0x34] sm:$0x1] }
 0x11d   : > { %v2306_v5 = vadd.f32 %v553_v3, %v490_v1  ;;  %v2308_v6 = vadd.f32 %v1786_v4, %v1785_v0  ;;  %v580_v55 = vmax.f32 %v2298_v61, 0.0  ;;  %v1639_v4 = vunpack.c.l.bf16 %v1667_v31 }
 0x11e   : > { %v583_v57 = vmax.f32 %v2303_v2, 0.0  ;;  %v839_v16 = vunpack.c.l.bf16 %v1534_v63 }
 0x120   : > { %v2373_v21 = vadd.f32 %v1632_v37, %v583_v57 }
 0x121   : > { %v1868_v8 = vpop.f32.mrb[20].mxu0  ;;  %v1788_v9 = vpop.f32.mrb[20].mxu1 }
 0x122   : > { %v2317_v12 = vadd.f32 %v1868_v8, %v511_v7  ;;  %v566_v13 = vpop.f32.mrb[21].mxu0  ;;  %v1789_v14 = vpop.f32.mrb[21].mxu1  ;;  %v581_v7 = vmax.f32 %v2306_v5, 0.0 }
 0x123   : > { %v2319_v15 = vadd.f32 %v566_v13, %v503_v11  ;;  %v2321_v17 = vadd.f32 %v1789_v14, %v1788_v9  ;;  %v1869_v18 = vpop.f32.mrb[22].mxu0  ;;  %v1791_v19 = vpop.f32.mrb[22].mxu1  ;;  %v2364_v11 = vadd.f32 %v1631_v33, %v582_v49 }
 0x124   : > { %v569_v24 = vpop.f32.mrb[23].mxu0  ;;  %v1792_v25 = vpop.f32.mrb[23].mxu1  ;;  %v2368_v18 = vadd.f32 %v1627_v35, %v580_v55  ;;  %v586_v37 = vmax.f32 %v2317_v12, 0.0 }
 0x125   : > { %v2329_v27 = vadd.f32 %v569_v24, %v506_v20  ;;  %v2331_v29 = vadd.f32 %v1792_v25, %v1791_v19  ;;  %v1644_v20 = vunpack.c.h.bf16 %v2341_v36  ;;  %v749_v24 = vadd.f32 %v2286_v46, %v2291_v52 }
 0x126   : > { %v2381_v25 = vadd.f32 %v1628_v38, %v581_v7  ;;  %v741_v36 = vadd.f32 %v2282_v34, %v2291_v52  ;;  %v744_v38 = vadd.f32 %v2284_v40, %v2291_v52 }
 0x127   : > { %v585_v55 = vmax.f32 %v2329_v27, 0.0 }
 0x129   : > { %v1876_v43 = vpop.f32.mrb[24].mxu0  ;;  %v1794_v45 = vpop.f32.mrb[24].mxu1 }
 0x12a   : > { %v797_v50 = vadd.f32 %v1876_v43, %v733_v41  ;;  %v788_v51 = vpop.f32.mrb[25].mxu0  ;;  %v1795_v53 = vpop.f32.mrb[25].mxu1 }
 0x12b   : > { %v789_v56 = vadd.f32 %v788_v51, %v725_v47  ;;  %v2355_v58 = vadd.f32 %v1795_v53, %v1794_v45  ;;  %v1877_v59 = vpop.f32.mrb[26].mxu0  ;;  %v1797_v60 = vpop.f32.mrb[26].mxu1  ;;  %v584_v47 = vmax.f32 %v2319_v15, 0.0  ;;  %v1636_v51 = vunpack.c.h.bf16 %v2334_v30 }
 0x12c   : > { %v820_v0 = vmax.f32 %v797_v50, 0.0  ;;  %v800_v1 = vadd.f32 %v1877_v59, %v736_v54  ;;  %v791_v3 = vpop.f32.mrb[27].mxu0  ;;  %v1798_v28 = vpop.f32.mrb[27].mxu1  ;;  %v838_v15 = vunpack.c.h.bf16 %v2338_v32  ;;  %v2402_v59 = vadd.f32 %v600_v39, %v586_v37 }
 0x12d   : > { %v818_v8 = vmax.f32 %v789_v56, 0.0  ;;  %v792_v61 = vadd.f32 %v791_v3, %v728_v10  ;;  %v2362_v9 = vadd.f32 %v1798_v28, %v1797_v60  ;;  %v2408_v10 = vadd.f32 %v1635_v42, %v584_v47 }
 0x12e   : > { %v2366_v13 = vadd.f32 %v1640_v44, %v820_v0  ;;  %v821_v14 = vmax.f32 %v800_v1, 0.0  ;;  %v1670_v0 = vld [vmem:[%s2314_s12 + $0x40] sm:$0xff]   ;;  %v1669_v1 = vld [vmem:[%s2314_s12 + $0x38] sm:$0xff]   ;;  %v979_v32 = vadd.f32 %v2321_v17, %v2291_v52  ;;  %v2418_v26 = vadd.f32 %v1636_v51, %v585_v55 }
 0x12f   : > { %v2370_v2 = vadd.f32 %v833_v48, %v818_v8  ;;  %v819_v19 = vmax.f32 %v792_v61, 0.0  ;;  %v1651_v7 = vunpack.c.l.bf16 %v1670_v0  ;;  %v1647_v61 = vunpack.c.l.bf16 %v1669_v1 }
 0x130   : > { %v849_v5 = vmax.f32 %v2364_v11, %v2366_v13  ;;  %v2377_v23 = vadd.f32 %v1643_v22, %v821_v14  ;;  %v982_v17 = vadd.f32 %v2331_v29, %v2291_v52  ;;  %v1652_v37 = vunpack.c.h.bf16 %v1670_v0 }
 0x131   : > { %v847_v31 = vmax.f32 %v2368_v18, %v2370_v2  ;;  %v2385_v33 = vadd.f32 %v1639_v4, %v819_v19  ;;  %v1880_v35 = vpop.f32.mrb[28].mxu0  ;;  %v1800_v41 = vpop.f32.mrb[28].mxu1  ;;  %v971_v4 = vadd.f32 %v2300_v62, %v2291_v52  ;;  %v974_v62 = vadd.f32 %v2308_v6, %v2291_v52 }
 0x132   : > { %v850_v43 = vmax.f32 %v2373_v21, %v2377_v23  ;;  %v813_v44 = vadd.f32 %v1880_v35, %v749_v24  ;;  %v804_v45 = vpop.f32.mrb[29].mxu0  ;;  %v1801_v46 = vpop.f32.mrb[29].mxu1  ;;  %v1648_v29 = vunpack.c.h.bf16 %v1669_v1  ;;  %v987_v0 = vadd.f32 %v2355_v58, %v2291_v52 }
 0x133   : > { %v848_v48 = vmax.f32 %v2381_v25, %v2385_v33  ;;  %v805_v49 = vadd.f32 %v804_v45, %v741_v36  ;;  %v1802_v50 = vadd.f32 %v1801_v46, %v1800_v41  ;;  %v1881_v34 = vpop.f32.mrb[30].mxu0  ;;  %v1803_v12 = vpop.f32.mrb[30].mxu1  ;;  %v990_v21 = vadd.f32 %v2362_v9, %v2291_v52 }
 0x134   : > { %v824_v53 = vmax.f32 %v813_v44, 0.0  ;;  %v807_v54 = vpop.f32.mrb[31].mxu0  ;;  %v1804_v22 = vpop.f32.mrb[31].mxu1 }
 0x135   : > { %v822_v56 = vmax.f32 %v805_v49, 0.0  ;;  %v808_v40 = vadd.f32 %v807_v54, %v744_v38  ;;  %v1671_v54 = vld [vmem:[%s2314_s12 + $0x48] sm:$0xff]   ;;  %v995_v55 = vadd.f32 %v1802_v50, %v2291_v52 }
 0x136   : > { %v2404_v60 = vadd.f32 %v839_v16, %v824_v53  ;;  %v1571_v53 = vld [vmem:[%s2314_s12 + $0x50] sm:$0x1]  ;;  %v1655_v50 = vunpack.c.l.bf16 %v1671_v54 }
 0x137   : > { %v2410_v63 = vadd.f32 %v1644_v20, %v822_v56  ;;  %v823_v57 = vmax.f32 %v808_v40, 0.0 }
 0x138   : > { %v853_v27 = vmax.f32 %v2402_v59, %v2404_v60 }
 0x139   : > { %v851_v39 = vmax.f32 %v2408_v10, %v2410_v63  ;;  %v2422_v3 = vadd.f32 %v838_v15, %v823_v57  ;;  %v1888_v30 = vpop.f32.mrb[32].mxu0  ;;  %v1828_v42 = vpop.f32.mrb[32].mxu1 }
 0x13a   : > { %v1043_v28 = vadd.f32 %v1888_v30, %v979_v32  ;;  %v1034_v8 = vpop.f32.mrb[33].mxu0  ;;  %v1829_v14 = vpop.f32.mrb[33].mxu1 }
 0x13b   : > { %v852_v16 = vmax.f32 %v2418_v26, %v2422_v3  ;;  %v1035_v19 = vadd.f32 %v1034_v8, %v971_v4  ;;  %v1830_v20 = vadd.f32 %v1829_v14, %v1828_v42  ;;  %v1889_v24 = vpop.f32.mrb[34].mxu0  ;;  %v1831_v35 = vpop.f32.mrb[34].mxu1  ;;  %v2461_v14 = vld [vmem:[%s2314_s12 + $0x54] ss:$20 sps:$4 sm:$0xff]  }
 0x13c   : > { %v1066_v41 = vmax.f32 %v1043_v28, 0.0  ;;  %v1046_v36 = vadd.f32 %v1889_v24, %v982_v17  ;;  %v1037_v44 = vpop.f32.mrb[35].mxu0  ;;  %v1832_v45 = vpop.f32.mrb[35].mxu1 }
 0x13d   : > { %v1064_v46 = vmax.f32 %v1035_v19, 0.0  ;;  %v1038_v38 = vadd.f32 %v1037_v44, %v974_v62  ;;  %v1833_v47 = vadd.f32 %v1832_v45, %v1831_v35 }
 0x13e   : > { %v1088_v49 = vadd.f32 %v1651_v7, %v1066_v41  ;;  %v1067_v34 = vmax.f32 %v1046_v36, 0.0  ;;  %v1656_v7 = vunpack.c.h.bf16 %v1671_v54  ;;  %v1217_v41 = vadd.f32 %v1830_v20, %v2291_v52  ;;  %v2476_v36 = vld [vmem:[%s2314_s12 + $0x60] sm:$0xff]  }
 0x13f   : > { %v1086_v12 = vadd.f32 %v1647_v61, %v1064_v46  ;;  %v1065_v51 = vmax.f32 %v1038_v38, 0.0  ;;  %v1672_v61 = vld [vmem:[%s2314_s12 + $0x58] sm:$0xff]   ;;  %v1220_v38 = vadd.f32 %v1833_v47, %v2291_v52 }
 0x140   : > { %v2437_v22 = vmax.f32 %v849_v5, %v1088_v49  ;;  %v1089_v6 = vadd.f32 %v1652_v37, %v1067_v34  ;;  %v1085_v5 = vunpack.c.l.bf16 %v1571_v53  ;;  %v1660_v44 = vunpack.c.h.bf16 %v1672_v61 }
 0x141   : > { %v2443_v56 = vmax.f32 %v847_v31, %v1086_v12  ;;  %v1087_v40 = vadd.f32 %v1648_v29, %v1065_v51  ;;  %v1892_v15 = vpop.f32.mrb[36].mxu0  ;;  %v1834_v57 = vpop.f32.mrb[36].mxu1  ;;  %v1663_v34 = vunpack.c.l.bf16 %v2476_v36 }
 0x142   : > { %v2450_v11 = vmax.f32 %v850_v43, %v1089_v6  ;;  %v1059_v13 = vadd.f32 %v1892_v15, %v995_v55  ;;  %v1050_v1 = vpop.f32.mrb[37].mxu0  ;;  %v1835_v32 = vpop.f32.mrb[37].mxu1  ;;  %v1659_v55 = vunpack.c.l.bf16 %v1672_v61 }
 0x143   : > { %v2455_v18 = vmax.f32 %v848_v48, %v1087_v40  ;;  %v1051_v2 = vadd.f32 %v1050_v1, %v987_v0  ;;  %v1836_v31 = vadd.f32 %v1835_v32, %v1834_v57  ;;  %v1893_v58 = vpop.f32.mrb[38].mxu0  ;;  %v1837_v30 = vpop.f32.mrb[38].mxu1 }
 0x144   : > { %v1070_v23 = vmax.f32 %v1059_v13, 0.0  ;;  %v1053_v43 = vpop.f32.mrb[39].mxu0  ;;  %v1838_v42 = vpop.f32.mrb[39].mxu1 }
 0x145   : > { %v1068_v4 = vmax.f32 %v1051_v2, 0.0  ;;  %v1054_v28 = vadd.f32 %v1053_v43, %v990_v21  ;;  %v1839_v8 = vadd.f32 %v1838_v42, %v1837_v30  ;;  %v1225_v9 = vadd.f32 %v1836_v31, %v2291_v52 }
 0x146   : > { %v1092_v25 = vadd.f32 %v1085_v5, %v1070_v23  ;;  %v1664_v31 = vunpack.c.h.bf16 %v2476_v36 }
 0x147   : > { %v1090_v33 = vadd.f32 %v1655_v50, %v1068_v4  ;;  %v1069_v48 = vmax.f32 %v1054_v28, 0.0  ;;  %v1228_v45 = vadd.f32 %v1839_v8, %v2291_v52  ;;  %v1330_v8 = vunpack.c.h.bf16 %v2461_v14 }
 0x148   : > { %v2466_v17 = vmax.f32 %v853_v27, %v1092_v25  ;;  %v1325_v27 = vunpack.c.l.bf16 %v2461_v14 }
 0x149   : > { %v2472_v19 = vmax.f32 %v851_v39, %v1090_v33  ;;  %v1091_v24 = vadd.f32 %v1656_v7, %v1069_v48  ;;  %v1840_v35 = vpop.f32.mrb[40].mxu1  ;;  %v1900_v62 = vpop.f32.mrb[40].mxu0 }
 0x14a   : > { %v1289_v37 = vadd.f32 %v1900_v62, %v1225_v9  ;;  %v1841_v59 = vpop.f32.mrb[41].mxu1  ;;  %v1280_v60 = vpop.f32.mrb[41].mxu0 }
 0x14b   : > { %v2483_v10 = vmax.f32 %v852_v16, %v1091_v24  ;;  %v1842_v63 = vadd.f32 %v1841_v59, %v1840_v35  ;;  %v1281_v39 = vadd.f32 %v1280_v60, %v1217_v41  ;;  %v1843_v46 = vpop.f32.mrb[42].mxu1  ;;  %v1901_v20 = vpop.f32.mrb[42].mxu0  ;;  %v1385_v60 = vld [vmem:[%s2492_s18 + $0x18] sm:$0x1] }
 0x14c   : > { %v1312_v29 = vmax.f32 %v1289_v37, 0.0  ;;  %v1292_v49 = vadd.f32 %v1901_v20, %v1228_v45  ;;  %v1844_v12 = vpop.f32.mrb[43].mxu1  ;;  %v1283_v51 = vpop.f32.mrb[43].mxu0 }
 0x14d   : > { %v1310_v53 = vmax.f32 %v1281_v39, 0.0  ;;  %v1845_v54 = vadd.f32 %v1844_v12, %v1843_v46  ;;  %v1284_v6 = vadd.f32 %v1283_v51, %v1220_v38  ;;  %v1233_v1 = vadd.f32 %v1842_v63, %v2291_v52 }
 0x14e   : > { %v1334_v26 = vadd.f32 %v1660_v44, %v1312_v29  ;;  %v1313_v3 = vmax.f32 %v1292_v49, 0.0 }
 0x14f   : > { %v1332_v16 = vadd.f32 %v1325_v27, %v1310_v53  ;;  %v1311_v40 = vmax.f32 %v1284_v6, 0.0  ;;  %v1236_v58 = vadd.f32 %v1845_v54, %v2291_v52 }
 0x150   : > { %v1341_v15 = vmax.f32 %v2437_v22, %v1334_v26  ;;  %v1335_v57 = vadd.f32 %v1663_v34, %v1313_v3 }
 0x151   : > { %v1339_v47 = vmax.f32 %v2443_v56, %v1332_v16  ;;  %v1333_v0 = vadd.f32 %v1659_v55, %v1311_v40  ;;  %v1846_v13 = vpop.f32.mrb[44].mxu1  ;;  %v1904_v5 = vpop.f32.mrb[44].mxu0 }
 0x152   : > { %v1620_v50 = vpack.c.bf16 %v1341_v15, %v1341_v15  ;;  %v1342_v32 = vmax.f32 %v2450_v11, %v1335_v57  ;;  %v1847_v22 = vpop.f32.mrb[45].mxu1  ;;  %v1296_v2 = vpop.f32.mrb[45].mxu0  ;;  %v1608_v11 = vld [vmem:[%s2314_s12 + $0x6c] sm:$0x1] }
 0x153   : > { %v1618_v30 = vpack.c.bf16 %v1339_v47, %v1339_v47  ;;  %v1340_v56 = vmax.f32 %v2455_v18, %v1333_v0  ;;  %v1848_v21 = vadd.f32 %v1847_v22, %v1846_v13  ;;  %v1297_v23 = vadd.f32 %v1296_v2, %v1233_v1  ;;  %v1849_v43 = vpop.f32.mrb[46].mxu1  ;;  %v1905_v42 = vpop.f32.mrb[46].mxu0 }
 0x154   : > { %1378 = vst.msk [vmem:[%s2492_s18 + $0x8] sm:$0xf] %vm1375_vm1, %v1620_v50  ;;  %v1621_v4 = vpack.c.bf16 %v1342_v32, %v1342_v32  ;;  %v1850_v28 = vpop.f32.mrb[47].mxu1  ;;  %v1299_v7 = vpop.f32.mrb[47].mxu0  ;;  %v1331_v9 = vunpack.c.l.bf16 %v1608_v11 }
 0x155   : > { %1376 = vst.msk [vmem:[%s2492_s18] sm:$0xf] %vm1375_vm1, %v1618_v30  ;;  %v1619_v25 = vpack.c.bf16 %v1340_v56, %v1340_v56  ;;  %v1241_v33 = vadd.f32 %v1848_v21, %v2291_v52  ;;  %v1314_v18 = vmax.f32 %v1297_v23, 0.0  ;;  %v1300_v48 = vadd.f32 %v1299_v7, %v1236_v58 }
 0x156   : > { %1379 = vst.msk [vmem:[%s2492_s18 + $0xc] sm:$0xf] %vm1375_vm1, %v1621_v4 }
 0x157   : > { %1377 = vst.msk [vmem:[%s2492_s18 + $0x4] sm:$0xf] %vm1375_vm1, %v1619_v25  ;;  %v1305_v61 = vadd.f32 %v1904_v5, %v1241_v33  ;;  %v1336_v24 = vadd.f32 %v1664_v31, %v1314_v18  ;;  %v1315_v35 = vmax.f32 %v1300_v48, 0.0 }
 0x159   : > { %v1316_v62 = vmax.f32 %v1305_v61, 0.0  ;;  %v1343_v14 = vmax.f32 %v2472_v19, %v1336_v24  ;;  %v1337_v41 = vadd.f32 %v1330_v8, %v1315_v35 }
 0x15b   : > { %v1338_v52 = vadd.f32 %v1331_v9, %v1316_v62  ;;  %v1622_v36 = vpack.c.bf16 %v1343_v14, %v1343_v14  ;;  %v1344_v37 = vmax.f32 %v2483_v10, %v1337_v41 }
 0x15d   : > { %v1345_v44 = vmax.f32 %v2466_v17, %v1338_v52  ;;  %1380 = vst.msk [vmem:[%s2492_s18 + $0x10] sm:$0xf] %vm1375_vm1, %v1622_v36  ;;  %v1623_v59 = vpack.c.bf16 %v1344_v37, %v1344_v37 }
 0x15f   : > { %v1624_v27 = vpack.c.bf16 %v1345_v44, %v1345_v44  ;;  %1381 = vst.msk [vmem:[%s2492_s18 + $0x14] sm:$0xf] %vm1375_vm1, %v1623_v59 }
 0x161   : > { %v1386_v45 = vsel %vm1384_vm4, %v1624_v27, %v1385_v60 }
 0x162   : > { %1387 = vst [vmem:[%s2492_s18 + $0x18] sm:$0x1] %v1386_v45 }
 0x163 PF: > { %s14_s15 = sadd.s32 1, %s2001_s15  }
 0x164   : > { %p11_p4 = scmp.ge.s32.totalorder %s14_s15, 4  }
 0x166   :  { %13 = sbr.rel (!%p11_p4) target bundleno = 1 (0x1), region = 75 }

// kernel: my_net_forward.9
= control target key start
LH: loop header
LB: loop body
LE: loop exit
PB: predicated region body
PF: predicated region fallthrough
CT: control target
= control target key end

     0   :  { %10 = vsyncpa [#allocation3], 0  ;;  %s1116_s0 = inlined_call_operand.vmem [shape: bf16[2,9,288], index: 0, kind: input, shape index: {}]   ;;  %s1117_s1 = inlined_call_operand.vmem [shape: bf16[288,64], index: 1, kind: input, shape index: {}]   ;;  %s1118_s2 = inlined_call_operand.vmem [shape: f32[1,64], index: 2, kind: input, shape index: {}]   ;;  %s1119_s3 = inlined_call_operand.vmem [shape: f32[64,10], index: 3, kind: input, shape index: {}]   ;;  %s1120_s4 = inlined_call_operand.vmem [shape: f32[1,10], index: 4, kind: input, shape index: {}]   ;;  %s1121_s5 = inlined_call_operand.hbm [shape: f32[2,1,10], index: 5, kind: output, shape index: {}]  }
   0x1   :  { %12 = vsyncpa [#allocation3 + $0x1], 0  ;;  %s927_s18 = smov 0   ;;  %s929_s19 = smov 0  }
   0x2   :  { %s931_s20 = smov 0   ;;  %s933_s21 = smov 0  }
   0x3 LB: > { %s948_s22 = sadd.s32 4294967295, %s891_s21   ;;  %s655_s23 = sadd.s32 4294967294, %s891_s21   ;;  %s891_s21 = sphi %s933_s21, %s1127_s21   ;;  %s887_s20 = sphi %s931_s20, %s1126_s20   ;;  %s883_s19 = sphi %s929_s19, %s1125_s19   ;;  %s879_s18 = sphi %s927_s18, %s1124_s18  }
   0x4   : > { %s952_s24 = sadd.s32 1, %s891_s21   ;;  %s135_s25 = sadd.s32 1, %s887_s20 }
   0x5   : > { %s132_s26 = ssub.s32 %s891_s21, %s952_s24  ;;  %p145_p0 = scmp.ne.s32.totalorder %s887_s20, %s883_s19 }
   0x6   : > { %p133_p1 = scmp.eq.s32.totalorder %s132_s26, 0  ;;  %p146_p2 = scmp.eq.s32.totalorder %s948_s22, 1 }
   0x7   : > { %p151_p3 = scmp.ne.s32.totalorder %s883_s19, %s879_s18  ;;  %p152_p4 = scmp.eq.s32.totalorder %s655_s23, 1 }
   0x8   : > { %s963_s27 = scalar_select %p133_p1, %s887_s20, %s135_s25  }
   0x9   : > { %p965_p5 = por %p146_p2, %p145_p0  ;;  %p969_p6 = por %p152_p4, %p151_p3 }
   0xa   : > { %p658_p7 = scmp.ge.s32.totalorder %s891_s21, 1  ;;  %p190_p8 = scmp.lt.s32.totalorder %s891_s21, 3 }
   0xc   : > { %p191_p9 = pnand %p658_p7, %p190_p8 }
   0xd   : > { %v803_v0 = vld [vmem:[%s1117_s1 + $0x40] sm:$0xff] (!%p191_p9)   ;;  %v893_v2 = vmov (!%p191_p9), 0.0   ;;  %v805_v3 = vld [vmem:[%s1117_s1 + $0x48] sm:$0xff] (!%p191_p9)   ;;  %p217_p10 = scmp.lt.s32.totalorder (!%p191_p9), %s948_s22, 1  ;;  %vm894_vm0 = vmmov (!%p191_p9), 0   ;;  %v807_v5 = vld [vmem:[%s1117_s1 + $0x50] sm:$0xff] (!%p191_p9)  }
   0xe   : > { %194 = sbr.rel (%p191_p9) target bundleno = 826 (0x33a), region = 40  ;;  %v804_v1 = vld [vmem:[%s1117_s1] sm:$0xff] (!%p191_p9)   ;;  %721 = vmatprep.subr.bf16.mxu1 (!%p191_p9), %v893_v2  ;;  %687 = vmatprep.subr.bf16.mxu0 (!%p191_p9), %v803_v0  ;;  %v806_v4 = vld [vmem:[%s1117_s1 + $0x8] sm:$0xff] (!%p191_p9)   ;;  %v808_v6 = vld [vmem:[%s1117_s1 + $0x10] sm:$0xff] (!%p191_p9)   ;;  %vm393_vm1 = vcmask (!%p191_p9), 261120   ;;  %v895_v25 = vmov (!%p191_p9), 0.0|0.0  }
   0xf   : > { %688 = vmatpush3.bf16.msra.mxu0 (!%p191_p9), %v804_v1  ;;  %725 = vmatprep.mubr.msk.bf16.mxu1 (!%p191_p9), %vm894_vm0, %v893_v2  ;;  %v809_v7 = vld [vmem:[%s1117_s1 + $0x58] sm:$0xff] (!%p191_p9)   ;;  %v811_v9 = vld [vmem:[%s1117_s1 + $0x60] sm:$0xff] (!%p191_p9)   ;;  %v813_v12 = vld [vmem:[%s1117_s1 + $0x68] sm:$0xff] (!%p191_p9)   ;;  %vm481_vm2 = vcmask (!%p191_p9), 523264   ;;  %vm483_vm3 = vcmask (!%p191_p9), 516096   ;;  %vm574_vm4 = vcmask (!%p191_p9), 73728  }
  0x10   : > { %689 = vmatprep.subr.bf16.mxu0 (!%p191_p9), %v805_v3  ;;  %v810_v8 = vld [vmem:[%s1117_s1 + $0x18] sm:$0xff] (!%p191_p9)   ;;  %v817_v10 = vld [vmem:[%s1117_s1 + $0x80] sm:$0xff] (!%p191_p9)   ;;  %v814_v13 = vld [vmem:[%s1117_s1 + $0x28] sm:$0xff] (!%p191_p9)   ;;  %s215_s25 = sand.u32 (!%p191_p9), 1, %s883_s19   ;;  %s684_s26 = sshll.u32 (!%p191_p9), %s948_s22, 4 }
  0x11   : > { %v812_v11 = vld [vmem:[%s1117_s1 + $0x20] sm:$0xff] (!%p191_p9)   ;;  %722 = vmatpush3.bf16.msra.mxu1 (!%p191_p9), %v817_v10  ;;  %v823_v15 = vld [vmem:[%s1117_s1 + $0x88] sm:$0xff] (!%p191_p9)   ;;  %v815_v16 = vld [vmem:[%s1117_s1 + $0x70] sm:$0xff] (!%p191_p9)   ;;  %s1073_s8 = scalar_lea.hbm (!%p191_p9), %s1121_s5, %s684_s26  ;;  %s588_s9 = scalar_lea.sflag (!%p191_p9), [#allocation3], %s215_s25 }
  0x12   : > { %723 = vmatprep.subr.bf16.mxu1 (!%p191_p9), %v893_v2  ;;  %v816_v18 = vld [vmem:[%s1117_s1 + $0x30] sm:$0xff] (!%p191_p9)   ;;  %v818_v19 = vld [vmem:[%s1117_s1 + $0x78] sm:$0xff] (!%p191_p9)   ;;  %v492_v22 = vld [vmem:[%s1119_s3] sm:$0xff] (!%p191_p9) }
  0x13   : > { %690 = vmatpush3.bf16.msra.mxu0 (!%p191_p9), %v806_v4  ;;  %v819_v20 = vld [vmem:[%s1117_s1 + $0x38] sm:$0xff] (!%p191_p9)   ;;  %v493_v23 = vld [vmem:[%s1119_s3 + $0x8] sm:$0xff] (!%p191_p9)  ;;  %v494_v26 = vld [vmem:[%s1119_s3 + $0x10] sm:$0xff] (!%p191_p9) }
  0x14   : > { %691 = vmatprep.subr.bf16.mxu0 (!%p191_p9), %v807_v5  ;;  %v749_v24 = vpack.c.bf16 (!%p191_p9), %v493_v23, %v492_v22  ;;  %v495_v27 = vld [vmem:[%s1119_s3 + $0x18] sm:$0xff] (!%p191_p9)  ;;  %v496_v29 = vld [vmem:[%s1119_s3 + $0x20] sm:$0xff] (!%p191_p9)  ;;  %v497_v30 = vld [vmem:[%s1119_s3 + $0x28] sm:$0xff] (!%p191_p9) }
  0x15   : > { %s218_s17 = scalar_select %p217_p10, %s948_s22, 1  ;;  %724 = vmatpush3.bf16.msra.mxu1 %v823_v15  ;;  %v752_v28 = vpack.c.bf16 %v495_v27, %v494_v26  ;;  %v755_v31 = vpack.c.bf16 %v497_v30, %v496_v29  ;;  %v498_v32 = vld [vmem:[%s1119_s3 + $0x30] sm:$0xff]  ;;  %v499_v33 = vld [vmem:[%s1119_s3 + $0x38] sm:$0xff]  ;;  %v660_v41 = vld [vmem:[%s1118_s2] ss:$0 sm:$0xff] }
  0x16   : > { %748 = vmatprep.subr.bf16.mxu1 %v895_v25  ;;  %v758_v34 = vpack.c.bf16 %v499_v33, %v498_v32  ;;  %v500_v61 = vld [vmem:[%s1120_s4] sm:$0x1]  ;;  %s896_s22 = smov [#allocation2]  }
  0x17   : > { %692 = vmatpush3.bf16.msra.mxu0 %v808_v6  ;;  %s760_s6 = smul.u32 24, %s218_s17  ;;  %s833_s11 = sshll.u32 %s896_s22, 4  ;;  %s834_s11 = int_to_ptr.vmem [resolvable:$false] %s833_s11 }
  0x18   : > { %693 = vmatprep.subr.bf16.mxu0 %v809_v7  ;;  %s835_s12 = scalar_lea.vmem %s834_s11, 32 }
  0x19   : > { %s221_s15 = scalar_lea.vmem %s1116_s0, %s760_s6 }
  0x1a   : > { %v822_v14 = vld [vmem:[%s221_s15 + $0x4] ss:$12 sps:$4 sm:$0x1f]   ;;  %v824_v17 = vld [vmem:[%s221_s15 + $0x8] ss:$12 sps:$4 sm:$0x1f]  }
  0x1b   : > { %694 = vmatpush3.bf16.msra.mxu0 %v810_v8  ;;  %429 = vmatprep.mubr.bf16.mxu0 %v822_v14  ;;  %v820_v21 = vld [vmem:[%s221_s15] ss:$12 sps:$4 sm:$0x1f]   ;;  %s216_s15 = scalar_lea.vmem [#allocation2], %s215_s25 }
  0x1c   : > { %695 = vmatprep.subr.bf16.mxu0 %v811_v9  ;;  %726 = vmatmul.mubr.msk.bf16.vlgmr.msra.gmra.mrb[0].mxu1 %vm393_vm1, %v824_v17  ;;  %s600_s30 = sshll.u32 %s216_s15, 4  ;;  %s1075_s30 = int_to_ptr.vmem [resolvable:$true] %s600_s30 }
  0x1d   : > { %745 = vmatprep.mubr.msk.f32.mxu1 %vm894_vm0, %v893_v2  ;;  %750 = vmatpush3.bf16.msra.mxu1 %v749_v24  ;;  %s829_s10 = scalar_lea.vmem %s1075_s30, 16  ;;  %p836_p0 = scmp.lt.s32.totalorder %s1075_s30, %s834_s11 }
  0x1e   : > { %751 = vmatprep.subr.bf16.mxu1 %v895_v25  ;;  %p830_p11 = scmp.ne.s32.totalorder %s1075_s30, %s829_s10  ;;  %p837_p1 = scmp.lt.s32.totalorder %s835_s12, %s829_s10 }
  0x1f   : > { %696 = vmatpush3.bf16.msra.mxu0 %v812_v11 }
  0x20   : > { %697 = vmatprep.subr.bf16.mxu0 %v813_v12  ;;  %p831_p12 = pnand %p830_p11, %p965_p5  ;;  %p838_p2 = por %p837_p1, %p836_p0 }
  0x21   : > { %753 = vmatpush3.bf16.msra.mxu1 %v752_v28 }
  0x22   : > { %754 = vmatprep.subr.bf16.mxu1 %v895_v25  ;;  %p832_p13 = pneg %p831_p12 }
  0x23   : > { %698 = vmatpush3.bf16.msra.mxu0 %v814_v13 }
  0x24   : > { %699 = vmatprep.subr.bf16.mxu0 %v815_v16  ;;  %p839_p3 = pnand %p838_p2, %p832_p13 }
  0x25   : > { %756 = vmatpush3.bf16.msra.mxu1 %v755_v31 }
  0x26   : > { %757 = vmatprep.subr.bf16.mxu1 %v895_v25 }
  0x27   : > { %700 = vmatpush3.bf16.msra.mxu0 %v816_v18 }
  0x28   : > { %701 = vmatprep.subr.bf16.mxu0 %v818_v19 }
  0x29   : > { %759 = vmatpush3.bf16.msra.mxu1 %v758_v34 }
  0x2b   : > { %702 = vmatpush3.bf16.msra.mxu0 %v819_v20 }
  0x2e   : > { %430 = vmatmul.mubr.bf16.vlgmr.msra.gmra.mrb[0].mxu0 %v820_v21 }
  0xef   : > { %v472_v35 = vpop.f32.mrb[0].mxu1 }
  0xf0   : > { %v727_v36 = vpop.f32.mrb[1].mxu1 }
  0xf1   : > { %v475_v37 = vpop.f32.mrb[2].mxu1 }
  0xf2   : > { %v728_v38 = vpop.f32.mrb[3].mxu1 }
 0x101   : > { %v703_v39 = vpop.f32.mrb[0].mxu0 }
 0x102   : > { %v704_v40 = vpop.f32.mrb[1].mxu0 }
 0x103   : > { %v705_v42 = vadd.f32 %v704_v40, %v703_v39  ;;  %v706_v43 = vpop.f32.mrb[2].mxu0 }
 0x104   : > { %v707_v44 = vpop.f32.mrb[3].mxu0 }
 0x105   : > { %v432_v45 = vadd.f32 %v705_v42, %v660_v41  ;;  %v708_v46 = vadd.f32 %v707_v44, %v706_v43 }
 0x107   : > { %v473_v47 = vadd.f32 %v472_v35, %v432_v45  ;;  %v435_v48 = vadd.f32 %v708_v46, %v660_v41 }
 0x109   : > { %v479_v49 = vmax.f32 %v473_v47, 0.0  ;;  %v476_v50 = vadd.f32 %v475_v37, %v435_v48 }
 0x10b   : > { %v480_v51 = vmax.f32 %v476_v50, 0.0  ;;  %v482_v52 = vsel %vm481_vm2, %v479_v49, -inf }
 0x10d   : > { %v484_v53 = vsel %vm483_vm3, %v480_v51, -inf }
 0x10e   : > { %v485_v54 = vmax.f32 %v482_v52, %v484_v53 }
 0x110   : > { %v486_v55 = vrot.slane %v485_v54, 4 }
 0x112   : > { %v487_v56 = vmax.f32 %v485_v54, %v486_v55 }
 0x114   : > { %v488_v57 = vrot.slane %v487_v56, 2 }
 0x116   : > { %v489_v58 = vmax.f32 %v487_v56, %v488_v57 }
 0x118   : > { %v490_v59 = vrot.slane %v489_v58, 1 }
 0x11a   : > { %v491_v60 = vmax.f32 %v489_v58, %v490_v59 }
 0x11c   : > { %746 = vmatmul.mubr.msk.f32.vlgmr.msra.gmra.mrb[4].mxu1 %vm481_vm2, %v491_v60 }
 0x1ef   : > { %v570_v62 = vpop.f32.mrb[4].mxu1 }
 0x1f0   : > { %v571_v63 = vadd.f32 %v570_v62, %v500_v61  ;;  %v747_v0 = vpop.f32.mrb[5].mxu1 }
 0x1f2   : > { %v575_v1 = vsel %vm574_vm4, %v571_v63, -inf }
 0x1f3   : > { %576 = vmax.xlane.f32.xlu0 %v575_v1 }
 0x280   : > { %v577_v2 = vpop.xlane.xlu0 %576 }
 0x281   : > { %v578_v3 = vsub.f32 %v571_v63, %v577_v2 }
 0x283   : > { %v579_v4 = vmul.f32 1.442695, %v578_v3 }
 0x285   : > { %825 = vpow2.f32 %v579_v4 }
 0x28f   : > { %v826_v5 = vpop.eup %825 }
 0x290   : > { %v581_v6 = vsel %vm574_vm4, %v826_v5, 0.0 }
 0x291   : > { %582 = vadd.xlane.f32.xlu0 %v581_v6 }
 0x31e   : > { %v583_v7 = vpop.xlane.xlu0 %582 }
 0x31f   : > { %827 = vrcp.f32 %v583_v7 }
 0x329   : > { %v828_v8 = vpop.eup %827 }
 0x32a   : > { %v585_v9 = vmul.f32 %v828_v8, %v826_v5 }
 0x32c   : > { %586 = vst.msk [vmem:[%s216_s15] sm:$0x1] %vm574_vm4, %v585_v9 }
 0x32d   : > { %842 = shalt.err (!%p839_p3)
}
 0x32e   : > { %s843_s13 = scalar_lea.hbm %s1073_s8, 16  ;;  %s847_s17 = scalar_lea.hbm %s1121_s5, 32 }
 0x32f   : > { %p844_p4 = scmp.ne.s32.totalorder %s1073_s8, %s843_s13  ;;  %p848_p9 = scmp.lt.u32.totalorder %s1073_s8, %s1121_s5 }
 0x330   : > { %p849_p10 = scmp.lt.u32.totalorder %s847_s17, %s843_s13  ;;  %p851_p12 = scmp.lt.u32.totalorder %s843_s13, %s1073_s8 }
 0x331   : > { %p845_p7 = pnand %p844_p4, %p965_p5 }
 0x332   : > { %p850_p11 = por %p849_p10, %p848_p9 }
 0x333   : > { %p846_p8 = pneg %p845_p7 }
 0x334   : > { %p852_p13 = por %p851_p12, %p850_p11 }
 0x336   : > { %p853_p0 = pnand %p852_p13, %p846_p8 }
 0x338   : > { %856 = shalt.err (!%p853_p0)
}
 0x339   : > { %761 = dma.vmem_to_hbm [thread:$0]  (%p965_p5), %s1075_s30, 16, %s1073_s8, %s588_s9  }
 0x33a PF: > { %p767_p1 = scmp.ge.s32.totalorder %s891_s21, 2  ;;  %s612_s26 = sand.u32 1, %s879_s18  }
 0x33b   : > { %s613_s15 = scalar_lea.sflag [#allocation3], %s612_s26 }
 0x33c   : > { %p764_p2 = pnand %p767_p1, %p969_p6 }
 0x33e   : > { %874 = dma.done.wait (!%p764_p2), %s613_s15, 16  }
 0x33f   : > { %876 = vsyncadd (!%p764_p2), %s613_s15, 4294967280  ;;  %p15_p3 = scmp.ge.s32.totalorder %s952_s24, 4   ;;  %s1124_s18 = smov %s883_s19 }
 0x340   : > { %s1125_s19 = smov %s887_s20  ;;  %s1126_s20 = smov %s963_s27 }
 0x341   : > { %s1127_s21 = smov %s952_s24  ;;  %17 = sbr.rel (!%p15_p3) target bundleno = 3 (0x3), region = 75 }
 0x348   :  { %617 = vsyncpa [#allocation3], 1 }
 0x349   :  { %619 = vsyncpa [#allocation3 + $0x1], 1 }

</bundles_post_ra>
